<compile_context>
chip_gen: v6e
topology: v6e:2x2x1
jax: 0.10.0
libtpu: 0.0.40
codegen_flags: <defaults>
</compile_context>

<pallas_src>
import math

import jax
import jax.numpy as jnp
from jax import lax
from jax.experimental import pallas as pl
from jax.experimental.pallas import tpu as pltpu

# ---- model dimensions (pars_shift indexes parameter 19, so the network input
#      is 20 parameters) ------------------------------------------------------
PARS = 20
HIDDEN = 256
COMPS = 40          # PCA components (RtdistSpec comps)
N_SPEC = 128        # spectrum length (PCA feature dim) -- synthetic choice
NUM_MODELS = 10     # ensemble size
N_HIDDEN = 8        # number of 256->256 hidden layers after the input layer
POWERS = (0, 2, 3, 4, 7, 8, 10, 11, 12, 13, 19)  # columns that get log10'd
LN10 = math.log(10.0)

MODELS_PER_STEP = 5                      # 5 models / grid step
assert NUM_MODELS % MODELS_PER_STEP == 0
GRID_STEPS = NUM_MODELS // MODELS_PER_STEP


def _gelu_exact(x):
    # torch.nn.GELU() default: exact erf formulation.
    return 0.5 * x * (1.0 + lax.erf(x * (1.0 / math.sqrt(2.0))))


def rtfast_kernel(theta_ref, mask_ref,
                  w_in_ref, b_in_ref, w_hid_ref, b_hid_ref, w_out_ref, b_out_ref,
                  comp_scale_ref, comp_mean_ref, pca_comp_ref, pca_mean_ref,
                  spec_scale_ref, spec_mean_ref,
                  out_ref, x_ref, acc_ref):
    g = pl.program_id(0)

    @pl.when(g == 0)
    def _():
        # pars_shift: log10 on the selected parameter columns, computed ONCE
        # into a VMEM scratch (hoisted out of the per-step work).
        # NOTE: jnp.log is evaluated on every column and masked by the where;
        # lanes of non-log10 columns that could be <=0 are discarded by the
        # select -- do NOT "optimize" the where into arithmetic masking.
        theta = theta_ref[...]                      # (B, PARS)
        mask = mask_ref[...]                        # (1, PARS), 1.0 where log10
        x_ref[...] = jnp.where(mask > 0, jnp.log(theta) * (1.0 / LN10), theta)
        acc_ref[...] = jnp.zeros_like(acc_ref)

    x = x_ref[...].astype(jnp.bfloat16)             # (B, PARS) bf16 for the MXU

    # MODELS_PER_STEP ensemble members per grid step (RtdistSpec forward).
    # bf16 x bf16 matmuls with f32 accumulation; biases / GELU in f32.
    partial = None
    for s in range(MODELS_PER_STEP):
        h = _gelu_exact(
            jnp.dot(x, w_in_ref[s], preferred_element_type=jnp.float32)
            + b_in_ref[s])                          # (B, HIDDEN) f32
        for l in range(N_HIDDEN):
            h = _gelu_exact(
                jnp.dot(h.astype(jnp.bfloat16), w_hid_ref[s, l],
                        preferred_element_type=jnp.float32)
                + b_hid_ref[s, l])                  # (B, HIDDEN) f32
        y = (jnp.dot(h.astype(jnp.bfloat16), w_out_ref[s],
                     preferred_element_type=jnp.float32)
             + b_out_ref[s])                        # (B, COMPS) f32
        partial = y if partial is None else partial + y

    acc_ref[...] += partial

    # After the last step: ensemble mean + inverse transforms + 10**x.
    @pl.when(g == pl.num_programs(0) - 1)
    def _():
        data = acc_ref[...] * (1.0 / NUM_MODELS)                    # mean over ensemble
        comps = data * comp_scale_ref[...] + comp_mean_ref[...]     # comp_inverse_transform
        std_spec = (jnp.dot(comps, pca_comp_ref[...],
                            preferred_element_type=jnp.float32)
                    + pca_mean_ref[...])                            # PCA_inverse_transform
        log10_spec = std_spec * spec_scale_ref[...] + spec_mean_ref[...]  # spec_inverse_transform
        out_ref[...] = jnp.exp(log10_spec * LN10)                   # 10 ** (...)


def rtfast_forward(theta, params):
    B = theta.shape[0]
    mps = MODELS_PER_STEP

    in_specs = [
        pl.BlockSpec((B, PARS), lambda g: (0, 0)),                               # theta
        pl.BlockSpec((1, PARS), lambda g: (0, 0)),                               # mask
        pl.BlockSpec((mps, PARS, HIDDEN), lambda g: (g, 0, 0)),                  # w_in (bf16)
        pl.BlockSpec((mps, 1, HIDDEN), lambda g: (g, 0, 0)),                     # b_in
        pl.BlockSpec((mps, N_HIDDEN, HIDDEN, HIDDEN), lambda g: (g, 0, 0, 0)),   # w_hid (bf16)
        pl.BlockSpec((mps, N_HIDDEN, 1, HIDDEN), lambda g: (g, 0, 0, 0)),        # b_hid
        pl.BlockSpec((mps, HIDDEN, COMPS), lambda g: (g, 0, 0)),                 # w_out (bf16)
        pl.BlockSpec((mps, 1, COMPS), lambda g: (g, 0, 0)),                      # b_out
        pl.BlockSpec((1, COMPS), lambda g: (0, 0)),                              # comp_scale
        pl.BlockSpec((1, COMPS), lambda g: (0, 0)),                              # comp_mean
        pl.BlockSpec((COMPS, N_SPEC), lambda g: (0, 0)),                         # pca_components
        pl.BlockSpec((1, N_SPEC), lambda g: (0, 0)),                             # pca_mean
        pl.BlockSpec((1, N_SPEC), lambda g: (0, 0)),                             # spec_scale
        pl.BlockSpec((1, N_SPEC), lambda g: (0, 0)),                             # spec_mean
    ]

    # Advisory cost estimate: the kernel is dominated by streaming the bf16
    # ensemble weights once per call.
    weight_bytes = 2 * (params["w_in"].size + params["w_hid"].size
                        + params["w_out"].size)
    bias_bytes = 4 * (params["b_in"].size + params["b_hid"].size
                      + params["b_out"].size)
    misc_bytes = 4 * (theta.size + params["mask"].size
                      + params["comp_scale"].size + params["comp_mean"].size
                      + params["pca_comp"].size + params["pca_mean"].size
                      + params["spec_scale"].size + params["spec_mean"].size
                      + B * N_SPEC)
    cost = pl.CostEstimate(
        flops=2 * B * NUM_MODELS * (PARS * HIDDEN + N_HIDDEN * HIDDEN * HIDDEN
                                    + HIDDEN * COMPS) + 2 * B * COMPS * N_SPEC,
        transcendentals=B * NUM_MODELS * HIDDEN * (1 + N_HIDDEN)
                        + B * (N_SPEC + PARS),
        bytes_accessed=weight_bytes + bias_bytes + misc_bytes,
    )

    return pl.pallas_call(
        rtfast_kernel,
        out_shape=jax.ShapeDtypeStruct((B, N_SPEC), jnp.float32),
        grid_spec=pltpu.PrefetchScalarGridSpec(
            num_scalar_prefetch=0,
            grid=(GRID_STEPS,),
            in_specs=in_specs,
            out_specs=pl.BlockSpec((B, N_SPEC), lambda g: (0, 0)),
            scratch_shapes=[pltpu.VMEM((B, PARS), jnp.float32),    # pars_shift cache
                            pltpu.VMEM((B, COMPS), jnp.float32)],  # ensemble accumulator
        ),
        compiler_params=pltpu.CompilerParams(
            # Accumulator scratch carried across the model axis => sequential.
            dimension_semantics=("arbitrary",),
            # 5 models/step of bf16 weights double-buffered ~= 11 MB; raise the
            # scoped limit above v5e's 16 MiB default, stay far under 64 MiB.
            vmem_limit_bytes=32 * 1024 * 1024,
        ),
        cost_estimate=cost,
    )(theta, params["mask"],
      params["w_in"], params["b_in"], params["w_hid"], params["b_hid"],
      params["w_out"], params["b_out"],
      params["comp_scale"], params["comp_mean"],
      params["pca_comp"], params["pca_mean"],
      params["spec_scale"], params["spec_mean"])


def make_params(key):
    """Deterministic synthetic parameters (shapes from RTFAST.__init__).

    Weights are stored in bf16 (streamed format); biases / scalers stay f32.
    """
    ks = jax.random.split(key, 16)
    f32, bf16 = jnp.float32, jnp.bfloat16
    p = {}
    p["w_in"] = (jax.random.normal(ks[0], (NUM_MODELS, PARS, HIDDEN), f32)
                 / math.sqrt(PARS)).astype(bf16)
    p["b_in"] = 0.01 * jax.random.normal(ks[1], (NUM_MODELS, 1, HIDDEN), f32)
    p["w_hid"] = (jax.random.normal(ks[2], (NUM_MODELS, N_HIDDEN, HIDDEN, HIDDEN), f32)
                  / math.sqrt(HIDDEN)).astype(bf16)
    p["b_hid"] = 0.01 * jax.random.normal(ks[3], (NUM_MODELS, N_HIDDEN, 1, HIDDEN), f32)
    p["w_out"] = (jax.random.normal(ks[4], (NUM_MODELS, HIDDEN, COMPS), f32)
                  / math.sqrt(HIDDEN)).astype(bf16)
    p["b_out"] = 0.01 * jax.random.normal(ks[5], (NUM_MODELS, 1, COMPS), f32)
    # StandardScaler / PCA objects (comp_20_spec, PCA_20_spec, spec_20_spec)
    p["comp_scale"] = jax.random.uniform(ks[6], (1, COMPS), f32, 0.5, 1.5)
    p["comp_mean"] = 0.1 * jax.random.normal(ks[7], (1, COMPS), f32)
    p["pca_comp"] = 0.1 * jax.random.normal(ks[8], (COMPS, N_SPEC), f32)
    p["pca_mean"] = 0.1 * jax.random.normal(ks[9], (1, N_SPEC), f32)
    p["spec_scale"] = jax.random.uniform(ks[10], (1, N_SPEC), f32, 0.02, 0.08)
    p["spec_mean"] = 0.1 * jax.random.normal(ks[11], (1, N_SPEC), f32)
    # log10 column mask for pars_shift
    p["mask"] = jnp.zeros((1, PARS), f32).at[0, list(POWERS)].set(1.0)
    return p


def reference_forward(theta, p):
    """Pure-JAX reference mirroring RTFAST.forward (batched branch).

    Uses the same bf16 weights with f32 accumulation, so the comparison
    validates the Pallas kernel structure directly.
    """
    x = jnp.where(p["mask"] > 0, jnp.log(theta) / LN10, theta)
    xb = x.astype(jnp.bfloat16)
    acc = jnp.zeros((theta.shape[0], COMPS), jnp.float32)
    for m in range(NUM_MODELS):
        h = _gelu_exact(
            jnp.dot(xb, p["w_in"][m], preferred_element_type=jnp.float32)
            + p["b_in"][m, 0])
        for l in range(N_HIDDEN):
            h = _gelu_exact(
                jnp.dot(h.astype(jnp.bfloat16), p["w_hid"][m, l],
                        preferred_element_type=jnp.float32)
                + p["b_hid"][m, l, 0])
        acc = acc + (jnp.dot(h.astype(jnp.bfloat16), p["w_out"][m],
                             preferred_element_type=jnp.float32)
                     + p["b_out"][m, 0])
    data = acc / NUM_MODELS
    comps = data * p["comp_scale"][0] + p["comp_mean"][0]
    std_spec = (jnp.dot(comps, p["pca_comp"], preferred_element_type=jnp.float32)
                + p["pca_mean"][0])
    return 10.0 ** (std_spec * p["spec_scale"][0] + p["spec_mean"][0])


if __name__ == "__main__":
    key = jax.random.PRNGKey(0)
    kp, kx = jax.random.split(key)
    params = make_params(kp)

    B = 8
    # Parameters must be positive where log10 is applied.
    theta = jax.random.uniform(kx, (B, PARS), jnp.float32, 0.5, 2.0)

    spectrum = rtfast_forward(theta, params)
    spectrum = jax.block_until_ready(spectrum)

    ref = reference_forward(theta, params)
    assert spectrum.shape == (B, N_SPEC)
    assert jnp.allclose(spectrum, ref, rtol=2e-3, atol=2e-3), (
        float(jnp.max(jnp.abs(spectrum - ref))))

    print("KERNEL_OK")
</pallas_src>

<mosaic_0001>
module attributes {stable_mosaic.version = 11 : i64} {
  func.func @rtfast_kernel(%arg0: i32, %arg1: memref<8x20xf32, #tpu.memory_space<vmem>>, %arg2: memref<1x20xf32, #tpu.memory_space<vmem>>, %arg3: memref<5x20x256xbf16, #tpu.memory_space<vmem>>, %arg4: memref<5x1x256xf32, #tpu.memory_space<vmem>>, %arg5: memref<5x8x256x256xbf16, #tpu.memory_space<vmem>>, %arg6: memref<5x8x1x256xf32, #tpu.memory_space<vmem>>, %arg7: memref<5x256x40xbf16, #tpu.memory_space<vmem>>, %arg8: memref<5x1x40xf32, #tpu.memory_space<vmem>>, %arg9: memref<1x40xf32, #tpu.memory_space<vmem>>, %arg10: memref<1x40xf32, #tpu.memory_space<vmem>>, %arg11: memref<40x128xf32, #tpu.memory_space<vmem>>, %arg12: memref<1x128xf32, #tpu.memory_space<vmem>>, %arg13: memref<1x128xf32, #tpu.memory_space<vmem>>, %arg14: memref<1x128xf32, #tpu.memory_space<vmem>>, %arg15: memref<8x128xf32, #tpu.memory_space<vmem>>, %arg16: memref<8x20xf32, #tpu.memory_space<vmem>>, %arg17: memref<8x40xf32, #tpu.memory_space<vmem>>) attributes {dimension_semantics = [#tpu.dimension_semantics<arbitrary>], iteration_bounds = array<i64: 2>, scalar_prefetch = 0 : i64, scratch_operands = 2 : i64, tpu.core_type = #tpu.core_type<tc>, window_params = [{pipeline_mode = #tpu.pipeline_mode<synchronous>, transform_indices = @transform_0, window_bounds = array<i64: 8, 20>}, {pipeline_mode = #tpu.pipeline_mode<synchronous>, transform_indices = @transform_1, window_bounds = array<i64: 1, 20>}, {transform_indices = @transform_2, window_bounds = array<i64: 5, 20, 256>}, {transform_indices = @transform_3, window_bounds = array<i64: 5, 1, 256>}, {transform_indices = @transform_4, window_bounds = array<i64: 5, 8, 256, 256>}, {transform_indices = @transform_5, window_bounds = array<i64: 5, 8, 1, 256>}, {transform_indices = @transform_6, window_bounds = array<i64: 5, 256, 40>}, {transform_indices = @transform_7, window_bounds = array<i64: 5, 1, 40>}, {pipeline_mode = #tpu.pipeline_mode<synchronous>, transform_indices = @transform_8, window_bounds = array<i64: 1, 40>}, {pipeline_mode = #tpu.pipeline_mode<synchronous>, transform_indices = @transform_9, window_bounds = array<i64: 1, 40>}, {pipeline_mode = #tpu.pipeline_mode<synchronous>, transform_indices = @transform_10, window_bounds = array<i64: 40, 128>}, {pipeline_mode = #tpu.pipeline_mode<synchronous>, transform_indices = @transform_11, window_bounds = array<i64: 1, 128>}, {pipeline_mode = #tpu.pipeline_mode<synchronous>, transform_indices = @transform_12, window_bounds = array<i64: 1, 128>}, {pipeline_mode = #tpu.pipeline_mode<synchronous>, transform_indices = @transform_13, window_bounds = array<i64: 1, 128>}, {pipeline_mode = #tpu.pipeline_mode<synchronous>, transform_indices = @transform_14, window_bounds = array<i64: 8, 128>}]} {
    %c0_i32 = arith.constant 0 : i32
    %0 = arith.cmpi eq, %arg0, %c0_i32 : i32
    %1 = arith.extui %0 : i1 to i32
    %c0_i32_0 = arith.constant 0 : i32
    %2 = arith.cmpi ne, %1, %c0_i32_0 : i32
    scf.if %2 {
      %c0_564 = arith.constant 0 : index
      %c0_565 = arith.constant 0 : index
      %770 = vector.load %arg1[%c0_564, %c0_565] : memref<8x20xf32, #tpu.memory_space<vmem>>, vector<8x20xf32>
      %c0_566 = arith.constant 0 : index
      %c0_567 = arith.constant 0 : index
      %771 = vector.load %arg2[%c0_566, %c0_567] : memref<1x20xf32, #tpu.memory_space<vmem>>, vector<1x20xf32>
      %cst_568 = arith.constant 0.000000e+00 : f32
      %772 = vector.broadcast %cst_568 : f32 to vector<1x20xf32>
      %773 = arith.cmpf ogt, %771, %772 : vector<1x20xf32>
      %774 = math.log %770 : vector<8x20xf32>
      %cst_569 = arith.constant 0.434294492 : f32
      %775 = vector.broadcast %cst_569 : f32 to vector<8x20xf32>
      %776 = arith.mulf %774, %775 : vector<8x20xf32>
      %777 = vector.shape_cast %773 : vector<1x20xi1> to vector<1x20xi1>
      %778 = vector.broadcast %777 : vector<1x20xi1> to vector<8x20xi1>
      %779 = arith.select %778, %776, %770 : vector<8x20xi1>, vector<8x20xf32>
      %c0_570 = arith.constant 0 : index
      %c0_571 = arith.constant 0 : index
      %780 = vector.load %arg16[%c0_570, %c0_571] : memref<8x20xf32, #tpu.memory_space<vmem>>, vector<8x20xf32>
      tpu.vector_store %arg16[%c0_570, %c0_571], %779 {strides = array<i32>} : memref<8x20xf32, #tpu.memory_space<vmem>>, vector<8x20xf32>,
      %cst_572 = arith.constant 0.000000e+00 : f32
      %781 = vector.broadcast %cst_572 : f32 to vector<8x40xf32>
      %c0_573 = arith.constant 0 : index
      %c0_574 = arith.constant 0 : index
      %782 = vector.load %arg17[%c0_573, %c0_574] : memref<8x40xf32, #tpu.memory_space<vmem>>, vector<8x40xf32>
      tpu.vector_store %arg17[%c0_573, %c0_574], %781 {strides = array<i32>} : memref<8x40xf32, #tpu.memory_space<vmem>>, vector<8x40xf32>,
    } else {
    }
    %c0 = arith.constant 0 : index
    %c0_1 = arith.constant 0 : index
    %3 = vector.load %arg16[%c0, %c0_1] : memref<8x20xf32, #tpu.memory_space<vmem>>, vector<8x20xf32>
    %4 = arith.truncf %3 : vector<8x20xf32> to vector<8x20xbf16>
    %c0_2 = arith.constant 0 : index
    %c0_3 = arith.constant 0 : index
    %c0_4 = arith.constant 0 : index
    %5 = vector.load %arg3[%c0_2, %c0_3, %c0_4] : memref<5x20x256xbf16, #tpu.memory_space<vmem>>, vector<1x20x256xbf16>
    %6 = vector.shape_cast %5 : vector<1x20x256xbf16> to vector<20x256xbf16>
    %cst = arith.constant dense<0.000000e+00> : vector<8x256xf32>
    %7 = tpu.matmul %4, %6, %cst {dimension_numbers = #tpu.dot_dimension_numbers<[1], [0], [0], [1], [0, 0, 1, 1], [], []>} : vector<8x20xbf16>, vector<20x256xbf16>, vector<8x256xf32> -> vector<8x256xf32>
    %c0_5 = arith.constant 0 : index
    %c0_6 = arith.constant 0 : index
    %c0_7 = arith.constant 0 : index
    %8 = vector.load %arg4[%c0_5, %c0_6, %c0_7] : memref<5x1x256xf32, #tpu.memory_space<vmem>>, vector<1x1x256xf32>
    %9 = vector.shape_cast %8 : vector<1x1x256xf32> to vector<1x256xf32>
    %10 = vector.broadcast %9 : vector<1x256xf32> to vector<8x256xf32>
    %11 = arith.addf %7, %10 : vector<8x256xf32>
    %cst_8 = arith.constant 5.000000e-01 : f32
    %12 = vector.broadcast %cst_8 : f32 to vector<8x256xf32>
    %13 = arith.mulf %12, %11 : vector<8x256xf32>
    %cst_9 = arith.constant 0.707106769 : f32
    %14 = vector.broadcast %cst_9 : f32 to vector<8x256xf32>
    %15 = arith.mulf %11, %14 : vector<8x256xf32>
    %16 = math.erf %15 : vector<8x256xf32>
    %cst_10 = arith.constant 1.000000e+00 : f32
    %17 = vector.broadcast %cst_10 : f32 to vector<8x256xf32>
    %18 = arith.addf %17, %16 : vector<8x256xf32>
    %19 = arith.mulf %13, %18 : vector<8x256xf32>
    %20 = arith.truncf %19 : vector<8x256xf32> to vector<8x256xbf16>
    %c0_11 = arith.constant 0 : index
    %c0_12 = arith.constant 0 : index
    %c0_13 = arith.constant 0 : index
    %c0_14 = arith.constant 0 : index
    %21 = vector.load %arg5[%c0_11, %c0_12, %c0_13, %c0_14] : memref<5x8x256x256xbf16, #tpu.memory_space<vmem>>, vector<1x1x256x256xbf16>
    %22 = vector.shape_cast %21 : vector<1x1x256x256xbf16> to vector<256x256xbf16>
    %cst_15 = arith.constant dense<0.000000e+00> : vector<8x256xf32>
    %23 = tpu.matmul %20, %22, %cst_15 {dimension_numbers = #tpu.dot_dimension_numbers<[1], [0], [0], [1], [0, 0, 1, 1], [], []>} : vector<8x256xbf16>, vector<256x256xbf16>, vector<8x256xf32> -> vector<8x256xf32>
    %c0_16 = arith.constant 0 : index
    %c0_17 = arith.constant 0 : index
    %c0_18 = arith.constant 0 : index
    %c0_19 = arith.constant 0 : index
    %24 = vector.load %arg6[%c0_16, %c0_17, %c0_18, %c0_19] : memref<5x8x1x256xf32, #tpu.memory_space<vmem>>, vector<1x1x1x256xf32>
    %25 = vector.shape_cast %24 : vector<1x1x1x256xf32> to vector<1x256xf32>
    %26 = vector.broadcast %25 : vector<1x256xf32> to vector<8x256xf32>
    %27 = arith.addf %23, %26 : vector<8x256xf32>
    %cst_20 = arith.constant 5.000000e-01 : f32
    %28 = vector.broadcast %cst_20 : f32 to vector<8x256xf32>
    %29 = arith.mulf %28, %27 : vector<8x256xf32>
    %cst_21 = arith.constant 0.707106769 : f32
    %30 = vector.broadcast %cst_21 : f32 to vector<8x256xf32>
    %31 = arith.mulf %27, %30 : vector<8x256xf32>
    %32 = math.erf %31 : vector<8x256xf32>
    %cst_22 = arith.constant 1.000000e+00 : f32
    %33 = vector.broadcast %cst_22 : f32 to vector<8x256xf32>
    %34 = arith.addf %33, %32 : vector<8x256xf32>
    %35 = arith.mulf %29, %34 : vector<8x256xf32>
    %36 = arith.truncf %35 : vector<8x256xf32> to vector<8x256xbf16>
    %c0_23 = arith.constant 0 : index
    %c1 = arith.constant 1 : index
    %c0_24 = arith.constant 0 : index
    %c0_25 = arith.constant 0 : index
    %37 = vector.load %arg5[%c0_23, %c1, %c0_24, %c0_25] : memref<5x8x256x256xbf16, #tpu.memory_space<vmem>>, vector<1x1x256x256xbf16>
    %38 = vector.shape_cast %37 : vector<1x1x256x256xbf16> to vector<256x256xbf16>
    %cst_26 = arith.constant dense<0.000000e+00> : vector<8x256xf32>
    %39 = tpu.matmul %36, %38, %cst_26 {dimension_numbers = #tpu.dot_dimension_numbers<[1], [0], [0], [1], [0, 0, 1, 1], [], []>} : vector<8x256xbf16>, vector<256x256xbf16>, vector<8x256xf32> -> vector<8x256xf32>
    %c0_27 = arith.constant 0 : index
    %c1_28 = arith.constant 1 : index
    %c0_29 = arith.constant 0 : index
    %c0_30 = arith.constant 0 : index
    %40 = vector.load %arg6[%c0_27, %c1_28, %c0_29, %c0_30] : memref<5x8x1x256xf32, #tpu.memory_space<vmem>>, vector<1x1x1x256xf32>
    %41 = vector.shape_cast %40 : vector<1x1x1x256xf32> to vector<1x256xf32>
    %42 = vector.broadcast %41 : vector<1x256xf32> to vector<8x256xf32>
    %43 = arith.addf %39, %42 : vector<8x256xf32>
    %cst_31 = arith.constant 5.000000e-01 : f32
    %44 = vector.broadcast %cst_31 : f32 to vector<8x256xf32>
    %45 = arith.mulf %44, %43 : vector<8x256xf32>
    %cst_32 = arith.constant 0.707106769 : f32
    %46 = vector.broadcast %cst_32 : f32 to vector<8x256xf32>
    %47 = arith.mulf %43, %46 : vector<8x256xf32>
    %48 = math.erf %47 : vector<8x256xf32>
    %cst_33 = arith.constant 1.000000e+00 : f32
    %49 = vector.broadcast %cst_33 : f32 to vector<8x256xf32>
    %50 = arith.addf %49, %48 : vector<8x256xf32>
    %51 = arith.mulf %45, %50 : vector<8x256xf32>
    %52 = arith.truncf %51 : vector<8x256xf32> to vector<8x256xbf16>
    %c0_34 = arith.constant 0 : index
    %c2 = arith.constant 2 : index
    %c0_35 = arith.constant 0 : index
    %c0_36 = arith.constant 0 : index
    %53 = vector.load %arg5[%c0_34, %c2, %c0_35, %c0_36] : memref<5x8x256x256xbf16, #tpu.memory_space<vmem>>, vector<1x1x256x256xbf16>
    %54 = vector.shape_cast %53 : vector<1x1x256x256xbf16> to vector<256x256xbf16>
    %cst_37 = arith.constant dense<0.000000e+00> : vector<8x256xf32>
    %55 = tpu.matmul %52, %54, %cst_37 {dimension_numbers = #tpu.dot_dimension_numbers<[1], [0], [0], [1], [0, 0, 1, 1], [], []>} : vector<8x256xbf16>, vector<256x256xbf16>, vector<8x256xf32> -> vector<8x256xf32>
    %c0_38 = arith.constant 0 : index
    %c2_39 = arith.constant 2 : index
    %c0_40 = arith.constant 0 : index
    %c0_41 = arith.constant 0 : index
    %56 = vector.load %arg6[%c0_38, %c2_39, %c0_40, %c0_41] : memref<5x8x1x256xf32, #tpu.memory_space<vmem>>, vector<1x1x1x256xf32>
    %57 = vector.shape_cast %56 : vector<1x1x1x256xf32> to vector<1x256xf32>
    %58 = vector.broadcast %57 : vector<1x256xf32> to vector<8x256xf32>
    %59 = arith.addf %55, %58 : vector<8x256xf32>
    %cst_42 = arith.constant 5.000000e-01 : f32
    %60 = vector.broadcast %cst_42 : f32 to vector<8x256xf32>
    %61 = arith.mulf %60, %59 : vector<8x256xf32>
    %cst_43 = arith.constant 0.707106769 : f32
    %62 = vector.broadcast %cst_43 : f32 to vector<8x256xf32>
    %63 = arith.mulf %59, %62 : vector<8x256xf32>
    %64 = math.erf %63 : vector<8x256xf32>
    %cst_44 = arith.constant 1.000000e+00 : f32
    %65 = vector.broadcast %cst_44 : f32 to vector<8x256xf32>
    %66 = arith.addf %65, %64 : vector<8x256xf32>
    %67 = arith.mulf %61, %66 : vector<8x256xf32>
    %68 = arith.truncf %67 : vector<8x256xf32> to vector<8x256xbf16>
    %c0_45 = arith.constant 0 : index
    %c3 = arith.constant 3 : index
    %c0_46 = arith.constant 0 : index
    %c0_47 = arith.constant 0 : index
    %69 = vector.load %arg5[%c0_45, %c3, %c0_46, %c0_47] : memref<5x8x256x256xbf16, #tpu.memory_space<vmem>>, vector<1x1x256x256xbf16>
    %70 = vector.shape_cast %69 : vector<1x1x256x256xbf16> to vector<256x256xbf16>
    %cst_48 = arith.constant dense<0.000000e+00> : vector<8x256xf32>
    %71 = tpu.matmul %68, %70, %cst_48 {dimension_numbers = #tpu.dot_dimension_numbers<[1], [0], [0], [1], [0, 0, 1, 1], [], []>} : vector<8x256xbf16>, vector<256x256xbf16>, vector<8x256xf32> -> vector<8x256xf32>
    %c0_49 = arith.constant 0 : index
    %c3_50 = arith.constant 3 : index
    %c0_51 = arith.constant 0 : index
    %c0_52 = arith.constant 0 : index
    %72 = vector.load %arg6[%c0_49, %c3_50, %c0_51, %c0_52] : memref<5x8x1x256xf32, #tpu.memory_space<vmem>>, vector<1x1x1x256xf32>
    %73 = vector.shape_cast %72 : vector<1x1x1x256xf32> to vector<1x256xf32>
    %74 = vector.broadcast %73 : vector<1x256xf32> to vector<8x256xf32>
    %75 = arith.addf %71, %74 : vector<8x256xf32>
    %cst_53 = arith.constant 5.000000e-01 : f32
    %76 = vector.broadcast %cst_53 : f32 to vector<8x256xf32>
    %77 = arith.mulf %76, %75 : vector<8x256xf32>
    %cst_54 = arith.constant 0.707106769 : f32
    %78 = vector.broadcast %cst_54 : f32 to vector<8x256xf32>
    %79 = arith.mulf %75, %78 : vector<8x256xf32>
    %80 = math.erf %79 : vector<8x256xf32>
    %cst_55 = arith.constant 1.000000e+00 : f32
    %81 = vector.broadcast %cst_55 : f32 to vector<8x256xf32>
    %82 = arith.addf %81, %80 : vector<8x256xf32>
    %83 = arith.mulf %77, %82 : vector<8x256xf32>
    %84 = arith.truncf %83 : vector<8x256xf32> to vector<8x256xbf16>
    %c0_56 = arith.constant 0 : index
    %c4 = arith.constant 4 : index
    %c0_57 = arith.constant 0 : index
    %c0_58 = arith.constant 0 : index
    %85 = vector.load %arg5[%c0_56, %c4, %c0_57, %c0_58] : memref<5x8x256x256xbf16, #tpu.memory_space<vmem>>, vector<1x1x256x256xbf16>
    %86 = vector.shape_cast %85 : vector<1x1x256x256xbf16> to vector<256x256xbf16>
    %cst_59 = arith.constant dense<0.000000e+00> : vector<8x256xf32>
    %87 = tpu.matmul %84, %86, %cst_59 {dimension_numbers = #tpu.dot_dimension_numbers<[1], [0], [0], [1], [0, 0, 1, 1], [], []>} : vector<8x256xbf16>, vector<256x256xbf16>, vector<8x256xf32> -> vector<8x256xf32>
    %c0_60 = arith.constant 0 : index
    %c4_61 = arith.constant 4 : index
    %c0_62 = arith.constant 0 : index
    %c0_63 = arith.constant 0 : index
    %88 = vector.load %arg6[%c0_60, %c4_61, %c0_62, %c0_63] : memref<5x8x1x256xf32, #tpu.memory_space<vmem>>, vector<1x1x1x256xf32>
    %89 = vector.shape_cast %88 : vector<1x1x1x256xf32> to vector<1x256xf32>
    %90 = vector.broadcast %89 : vector<1x256xf32> to vector<8x256xf32>
    %91 = arith.addf %87, %90 : vector<8x256xf32>
    %cst_64 = arith.constant 5.000000e-01 : f32
    %92 = vector.broadcast %cst_64 : f32 to vector<8x256xf32>
    %93 = arith.mulf %92, %91 : vector<8x256xf32>
    %cst_65 = arith.constant 0.707106769 : f32
    %94 = vector.broadcast %cst_65 : f32 to vector<8x256xf32>
    %95 = arith.mulf %91, %94 : vector<8x256xf32>
    %96 = math.erf %95 : vector<8x256xf32>
    %cst_66 = arith.constant 1.000000e+00 : f32
    %97 = vector.broadcast %cst_66 : f32 to vector<8x256xf32>
    %98 = arith.addf %97, %96 : vector<8x256xf32>
    %99 = arith.mulf %93, %98 : vector<8x256xf32>
    %100 = arith.truncf %99 : vector<8x256xf32> to vector<8x256xbf16>
    %c0_67 = arith.constant 0 : index
    %c5 = arith.constant 5 : index
    %c0_68 = arith.constant 0 : index
    %c0_69 = arith.constant 0 : index
    %101 = vector.load %arg5[%c0_67, %c5, %c0_68, %c0_69] : memref<5x8x256x256xbf16, #tpu.memory_space<vmem>>, vector<1x1x256x256xbf16>
    %102 = vector.shape_cast %101 : vector<1x1x256x256xbf16> to vector<256x256xbf16>
    %cst_70 = arith.constant dense<0.000000e+00> : vector<8x256xf32>
    %103 = tpu.matmul %100, %102, %cst_70 {dimension_numbers = #tpu.dot_dimension_numbers<[1], [0], [0], [1], [0, 0, 1, 1], [], []>} : vector<8x256xbf16>, vector<256x256xbf16>, vector<8x256xf32> -> vector<8x256xf32>
    %c0_71 = arith.constant 0 : index
    %c5_72 = arith.constant 5 : index
    %c0_73 = arith.constant 0 : index
    %c0_74 = arith.constant 0 : index
    %104 = vector.load %arg6[%c0_71, %c5_72, %c0_73, %c0_74] : memref<5x8x1x256xf32, #tpu.memory_space<vmem>>, vector<1x1x1x256xf32>
    %105 = vector.shape_cast %104 : vector<1x1x1x256xf32> to vector<1x256xf32>
    %106 = vector.broadcast %105 : vector<1x256xf32> to vector<8x256xf32>
    %107 = arith.addf %103, %106 : vector<8x256xf32>
    %cst_75 = arith.constant 5.000000e-01 : f32
    %108 = vector.broadcast %cst_75 : f32 to vector<8x256xf32>
    %109 = arith.mulf %108, %107 : vector<8x256xf32>
    %cst_76 = arith.constant 0.707106769 : f32
    %110 = vector.broadcast %cst_76 : f32 to vector<8x256xf32>
    %111 = arith.mulf %107, %110 : vector<8x256xf32>
    %112 = math.erf %111 : vector<8x256xf32>
    %cst_77 = arith.constant 1.000000e+00 : f32
    %113 = vector.broadcast %cst_77 : f32 to vector<8x256xf32>
    %114 = arith.addf %113, %112 : vector<8x256xf32>
    %115 = arith.mulf %109, %114 : vector<8x256xf32>
    %116 = arith.truncf %115 : vector<8x256xf32> to vector<8x256xbf16>
    %c0_78 = arith.constant 0 : index
    %c6 = arith.constant 6 : index
    %c0_79 = arith.constant 0 : index
    %c0_80 = arith.constant 0 : index
    %117 = vector.load %arg5[%c0_78, %c6, %c0_79, %c0_80] : memref<5x8x256x256xbf16, #tpu.memory_space<vmem>>, vector<1x1x256x256xbf16>
    %118 = vector.shape_cast %117 : vector<1x1x256x256xbf16> to vector<256x256xbf16>
    %cst_81 = arith.constant dense<0.000000e+00> : vector<8x256xf32>
    %119 = tpu.matmul %116, %118, %cst_81 {dimension_numbers = #tpu.dot_dimension_numbers<[1], [0], [0], [1], [0, 0, 1, 1], [], []>} : vector<8x256xbf16>, vector<256x256xbf16>, vector<8x256xf32> -> vector<8x256xf32>
    %c0_82 = arith.constant 0 : index
    %c6_83 = arith.constant 6 : index
    %c0_84 = arith.constant 0 : index
    %c0_85 = arith.constant 0 : index
    %120 = vector.load %arg6[%c0_82, %c6_83, %c0_84, %c0_85] : memref<5x8x1x256xf32, #tpu.memory_space<vmem>>, vector<1x1x1x256xf32>
    %121 = vector.shape_cast %120 : vector<1x1x1x256xf32> to vector<1x256xf32>
    %122 = vector.broadcast %121 : vector<1x256xf32> to vector<8x256xf32>
    %123 = arith.addf %119, %122 : vector<8x256xf32>
    %cst_86 = arith.constant 5.000000e-01 : f32
    %124 = vector.broadcast %cst_86 : f32 to vector<8x256xf32>
    %125 = arith.mulf %124, %123 : vector<8x256xf32>
    %cst_87 = arith.constant 0.707106769 : f32
    %126 = vector.broadcast %cst_87 : f32 to vector<8x256xf32>
    %127 = arith.mulf %123, %126 : vector<8x256xf32>
    %128 = math.erf %127 : vector<8x256xf32>
    %cst_88 = arith.constant 1.000000e+00 : f32
    %129 = vector.broadcast %cst_88 : f32 to vector<8x256xf32>
    %130 = arith.addf %129, %128 : vector<8x256xf32>
    %131 = arith.mulf %125, %130 : vector<8x256xf32>
    %132 = arith.truncf %131 : vector<8x256xf32> to vector<8x256xbf16>
    %c0_89 = arith.constant 0 : index
    %c7 = arith.constant 7 : index
    %c0_90 = arith.constant 0 : index
    %c0_91 = arith.constant 0 : index
    %133 = vector.load %arg5[%c0_89, %c7, %c0_90, %c0_91] : memref<5x8x256x256xbf16, #tpu.memory_space<vmem>>, vector<1x1x256x256xbf16>
    %134 = vector.shape_cast %133 : vector<1x1x256x256xbf16> to vector<256x256xbf16>
    %cst_92 = arith.constant dense<0.000000e+00> : vector<8x256xf32>
    %135 = tpu.matmul %132, %134, %cst_92 {dimension_numbers = #tpu.dot_dimension_numbers<[1], [0], [0], [1], [0, 0, 1, 1], [], []>} : vector<8x256xbf16>, vector<256x256xbf16>, vector<8x256xf32> -> vector<8x256xf32>
    %c0_93 = arith.constant 0 : index
    %c7_94 = arith.constant 7 : index
    %c0_95 = arith.constant 0 : index
    %c0_96 = arith.constant 0 : index
    %136 = vector.load %arg6[%c0_93, %c7_94, %c0_95, %c0_96] : memref<5x8x1x256xf32, #tpu.memory_space<vmem>>, vector<1x1x1x256xf32>
    %137 = vector.shape_cast %136 : vector<1x1x1x256xf32> to vector<1x256xf32>
    %138 = vector.broadcast %137 : vector<1x256xf32> to vector<8x256xf32>
    %139 = arith.addf %135, %138 : vector<8x256xf32>
    %cst_97 = arith.constant 5.000000e-01 : f32
    %140 = vector.broadcast %cst_97 : f32 to vector<8x256xf32>
    %141 = arith.mulf %140, %139 : vector<8x256xf32>
    %cst_98 = arith.constant 0.707106769 : f32
    %142 = vector.broadcast %cst_98 : f32 to vector<8x256xf32>
    %143 = arith.mulf %139, %142 : vector<8x256xf32>
    %144 = math.erf %143 : vector<8x256xf32>
    %cst_99 = arith.constant 1.000000e+00 : f32
    %145 = vector.broadcast %cst_99 : f32 to vector<8x256xf32>
    %146 = arith.addf %145, %144 : vector<8x256xf32>
    %147 = arith.mulf %141, %146 : vector<8x256xf32>
    %148 = arith.truncf %147 : vector<8x256xf32> to vector<8x256xbf16>
    %c0_100 = arith.constant 0 : index
    %c0_101 = arith.constant 0 : index
    %c0_102 = arith.constant 0 : index
    %149 = vector.load %arg7[%c0_100, %c0_101, %c0_102] : memref<5x256x40xbf16, #tpu.memory_space<vmem>>, vector<1x256x40xbf16>
    %150 = vector.shape_cast %149 : vector<1x256x40xbf16> to vector<256x40xbf16>
    %cst_103 = arith.constant dense<0.000000e+00> : vector<8x40xf32>
    %151 = tpu.matmul %148, %150, %cst_103 {dimension_numbers = #tpu.dot_dimension_numbers<[1], [0], [0], [1], [0, 0, 1, 1], [], []>} : vector<8x256xbf16>, vector<256x40xbf16>, vector<8x40xf32> -> vector<8x40xf32>
    %c0_104 = arith.constant 0 : index
    %c0_105 = arith.constant 0 : index
    %c0_106 = arith.constant 0 : index
    %152 = vector.load %arg8[%c0_104, %c0_105, %c0_106] : memref<5x1x40xf32, #tpu.memory_space<vmem>>, vector<1x1x40xf32>
    %153 = vector.shape_cast %152 : vector<1x1x40xf32> to vector<1x40xf32>
    %154 = vector.broadcast %153 : vector<1x40xf32> to vector<8x40xf32>
    %155 = arith.addf %151, %154 : vector<8x40xf32>
    %c1_107 = arith.constant 1 : index
    %c0_108 = arith.constant 0 : index
    %c0_109 = arith.constant 0 : index
    %156 = vector.load %arg3[%c1_107, %c0_108, %c0_109] : memref<5x20x256xbf16, #tpu.memory_space<vmem>>, vector<1x20x256xbf16>
    %157 = vector.shape_cast %156 : vector<1x20x256xbf16> to vector<20x256xbf16>
    %cst_110 = arith.constant dense<0.000000e+00> : vector<8x256xf32>
    %158 = tpu.matmul %4, %157, %cst_110 {dimension_numbers = #tpu.dot_dimension_numbers<[1], [0], [0], [1], [0, 0, 1, 1], [], []>} : vector<8x20xbf16>, vector<20x256xbf16>, vector<8x256xf32> -> vector<8x256xf32>
    %c1_111 = arith.constant 1 : index
    %c0_112 = arith.constant 0 : index
    %c0_113 = arith.constant 0 : index
    %159 = vector.load %arg4[%c1_111, %c0_112, %c0_113] : memref<5x1x256xf32, #tpu.memory_space<vmem>>, vector<1x1x256xf32>
    %160 = vector.shape_cast %159 : vector<1x1x256xf32> to vector<1x256xf32>
    %161 = vector.broadcast %160 : vector<1x256xf32> to vector<8x256xf32>
    %162 = arith.addf %158, %161 : vector<8x256xf32>
    %cst_114 = arith.constant 5.000000e-01 : f32
    %163 = vector.broadcast %cst_114 : f32 to vector<8x256xf32>
    %164 = arith.mulf %163, %162 : vector<8x256xf32>
    %cst_115 = arith.constant 0.707106769 : f32
    %165 = vector.broadcast %cst_115 : f32 to vector<8x256xf32>
    %166 = arith.mulf %162, %165 : vector<8x256xf32>
    %167 = math.erf %166 : vector<8x256xf32>
    %cst_116 = arith.constant 1.000000e+00 : f32
    %168 = vector.broadcast %cst_116 : f32 to vector<8x256xf32>
    %169 = arith.addf %168, %167 : vector<8x256xf32>
    %170 = arith.mulf %164, %169 : vector<8x256xf32>
    %171 = arith.truncf %170 : vector<8x256xf32> to vector<8x256xbf16>
    %c1_117 = arith.constant 1 : index
    %c0_118 = arith.constant 0 : index
    %c0_119 = arith.constant 0 : index
    %c0_120 = arith.constant 0 : index
    %172 = vector.load %arg5[%c1_117, %c0_118, %c0_119, %c0_120] : memref<5x8x256x256xbf16, #tpu.memory_space<vmem>>, vector<1x1x256x256xbf16>
    %173 = vector.shape_cast %172 : vector<1x1x256x256xbf16> to vector<256x256xbf16>
    %cst_121 = arith.constant dense<0.000000e+00> : vector<8x256xf32>
    %174 = tpu.matmul %171, %173, %cst_121 {dimension_numbers = #tpu.dot_dimension_numbers<[1], [0], [0], [1], [0, 0, 1, 1], [], []>} : vector<8x256xbf16>, vector<256x256xbf16>, vector<8x256xf32> -> vector<8x256xf32>
    %c1_122 = arith.constant 1 : index
    %c0_123 = arith.constant 0 : index
    %c0_124 = arith.constant 0 : index
    %c0_125 = arith.constant 0 : index
    %175 = vector.load %arg6[%c1_122, %c0_123, %c0_124, %c0_125] : memref<5x8x1x256xf32, #tpu.memory_space<vmem>>, vector<1x1x1x256xf32>
    %176 = vector.shape_cast %175 : vector<1x1x1x256xf32> to vector<1x256xf32>
    %177 = vector.broadcast %176 : vector<1x256xf32> to vector<8x256xf32>
    %178 = arith.addf %174, %177 : vector<8x256xf32>
    %cst_126 = arith.constant 5.000000e-01 : f32
    %179 = vector.broadcast %cst_126 : f32 to vector<8x256xf32>
    %180 = arith.mulf %179, %178 : vector<8x256xf32>
    %cst_127 = arith.constant 0.707106769 : f32
    %181 = vector.broadcast %cst_127 : f32 to vector<8x256xf32>
    %182 = arith.mulf %178, %181 : vector<8x256xf32>
    %183 = math.erf %182 : vector<8x256xf32>
    %cst_128 = arith.constant 1.000000e+00 : f32
    %184 = vector.broadcast %cst_128 : f32 to vector<8x256xf32>
    %185 = arith.addf %184, %183 : vector<8x256xf32>
    %186 = arith.mulf %180, %185 : vector<8x256xf32>
    %187 = arith.truncf %186 : vector<8x256xf32> to vector<8x256xbf16>
    %c1_129 = arith.constant 1 : index
    %c1_130 = arith.constant 1 : index
    %c0_131 = arith.constant 0 : index
    %c0_132 = arith.constant 0 : index
    %188 = vector.load %arg5[%c1_129, %c1_130, %c0_131, %c0_132] : memref<5x8x256x256xbf16, #tpu.memory_space<vmem>>, vector<1x1x256x256xbf16>
    %189 = vector.shape_cast %188 : vector<1x1x256x256xbf16> to vector<256x256xbf16>
    %cst_133 = arith.constant dense<0.000000e+00> : vector<8x256xf32>
    %190 = tpu.matmul %187, %189, %cst_133 {dimension_numbers = #tpu.dot_dimension_numbers<[1], [0], [0], [1], [0, 0, 1, 1], [], []>} : vector<8x256xbf16>, vector<256x256xbf16>, vector<8x256xf32> -> vector<8x256xf32>
    %c1_134 = arith.constant 1 : index
    %c1_135 = arith.constant 1 : index
    %c0_136 = arith.constant 0 : index
    %c0_137 = arith.constant 0 : index
    %191 = vector.load %arg6[%c1_134, %c1_135, %c0_136, %c0_137] : memref<5x8x1x256xf32, #tpu.memory_space<vmem>>, vector<1x1x1x256xf32>
    %192 = vector.shape_cast %191 : vector<1x1x1x256xf32> to vector<1x256xf32>
    %193 = vector.broadcast %192 : vector<1x256xf32> to vector<8x256xf32>
    %194 = arith.addf %190, %193 : vector<8x256xf32>
    %cst_138 = arith.constant 5.000000e-01 : f32
    %195 = vector.broadcast %cst_138 : f32 to vector<8x256xf32>
    %196 = arith.mulf %195, %194 : vector<8x256xf32>
    %cst_139 = arith.constant 0.707106769 : f32
    %197 = vector.broadcast %cst_139 : f32 to vector<8x256xf32>
    %198 = arith.mulf %194, %197 : vector<8x256xf32>
    %199 = math.erf %198 : vector<8x256xf32>
    %cst_140 = arith.constant 1.000000e+00 : f32
    %200 = vector.broadcast %cst_140 : f32 to vector<8x256xf32>
    %201 = arith.addf %200, %199 : vector<8x256xf32>
    %202 = arith.mulf %196, %201 : vector<8x256xf32>
    %203 = arith.truncf %202 : vector<8x256xf32> to vector<8x256xbf16>
    %c1_141 = arith.constant 1 : index
    %c2_142 = arith.constant 2 : index
    %c0_143 = arith.constant 0 : index
    %c0_144 = arith.constant 0 : index
    %204 = vector.load %arg5[%c1_141, %c2_142, %c0_143, %c0_144] : memref<5x8x256x256xbf16, #tpu.memory_space<vmem>>, vector<1x1x256x256xbf16>
    %205 = vector.shape_cast %204 : vector<1x1x256x256xbf16> to vector<256x256xbf16>
    %cst_145 = arith.constant dense<0.000000e+00> : vector<8x256xf32>
    %206 = tpu.matmul %203, %205, %cst_145 {dimension_numbers = #tpu.dot_dimension_numbers<[1], [0], [0], [1], [0, 0, 1, 1], [], []>} : vector<8x256xbf16>, vector<256x256xbf16>, vector<8x256xf32> -> vector<8x256xf32>
    %c1_146 = arith.constant 1 : index
    %c2_147 = arith.constant 2 : index
    %c0_148 = arith.constant 0 : index
    %c0_149 = arith.constant 0 : index
    %207 = vector.load %arg6[%c1_146, %c2_147, %c0_148, %c0_149] : memref<5x8x1x256xf32, #tpu.memory_space<vmem>>, vector<1x1x1x256xf32>
    %208 = vector.shape_cast %207 : vector<1x1x1x256xf32> to vector<1x256xf32>
    %209 = vector.broadcast %208 : vector<1x256xf32> to vector<8x256xf32>
    %210 = arith.addf %206, %209 : vector<8x256xf32>
    %cst_150 = arith.constant 5.000000e-01 : f32
    %211 = vector.broadcast %cst_150 : f32 to vector<8x256xf32>
    %212 = arith.mulf %211, %210 : vector<8x256xf32>
    %cst_151 = arith.constant 0.707106769 : f32
    %213 = vector.broadcast %cst_151 : f32 to vector<8x256xf32>
    %214 = arith.mulf %210, %213 : vector<8x256xf32>
    %215 = math.erf %214 : vector<8x256xf32>
    %cst_152 = arith.constant 1.000000e+00 : f32
    %216 = vector.broadcast %cst_152 : f32 to vector<8x256xf32>
    %217 = arith.addf %216, %215 : vector<8x256xf32>
    %218 = arith.mulf %212, %217 : vector<8x256xf32>
    %219 = arith.truncf %218 : vector<8x256xf32> to vector<8x256xbf16>
    %c1_153 = arith.constant 1 : index
    %c3_154 = arith.constant 3 : index
    %c0_155 = arith.constant 0 : index
    %c0_156 = arith.constant 0 : index
    %220 = vector.load %arg5[%c1_153, %c3_154, %c0_155, %c0_156] : memref<5x8x256x256xbf16, #tpu.memory_space<vmem>>, vector<1x1x256x256xbf16>
    %221 = vector.shape_cast %220 : vector<1x1x256x256xbf16> to vector<256x256xbf16>
    %cst_157 = arith.constant dense<0.000000e+00> : vector<8x256xf32>
    %222 = tpu.matmul %219, %221, %cst_157 {dimension_numbers = #tpu.dot_dimension_numbers<[1], [0], [0], [1], [0, 0, 1, 1], [], []>} : vector<8x256xbf16>, vector<256x256xbf16>, vector<8x256xf32> -> vector<8x256xf32>
    %c1_158 = arith.constant 1 : index
    %c3_159 = arith.constant 3 : index
    %c0_160 = arith.constant 0 : index
    %c0_161 = arith.constant 0 : index
    %223 = vector.load %arg6[%c1_158, %c3_159, %c0_160, %c0_161] : memref<5x8x1x256xf32, #tpu.memory_space<vmem>>, vector<1x1x1x256xf32>
    %224 = vector.shape_cast %223 : vector<1x1x1x256xf32> to vector<1x256xf32>
    %225 = vector.broadcast %224 : vector<1x256xf32> to vector<8x256xf32>
    %226 = arith.addf %222, %225 : vector<8x256xf32>
    %cst_162 = arith.constant 5.000000e-01 : f32
    %227 = vector.broadcast %cst_162 : f32 to vector<8x256xf32>
    %228 = arith.mulf %227, %226 : vector<8x256xf32>
    %cst_163 = arith.constant 0.707106769 : f32
    %229 = vector.broadcast %cst_163 : f32 to vector<8x256xf32>
    %230 = arith.mulf %226, %229 : vector<8x256xf32>
    %231 = math.erf %230 : vector<8x256xf32>
    %cst_164 = arith.constant 1.000000e+00 : f32
    %232 = vector.broadcast %cst_164 : f32 to vector<8x256xf32>
    %233 = arith.addf %232, %231 : vector<8x256xf32>
    %234 = arith.mulf %228, %233 : vector<8x256xf32>
    %235 = arith.truncf %234 : vector<8x256xf32> to vector<8x256xbf16>
    %c1_165 = arith.constant 1 : index
    %c4_166 = arith.constant 4 : index
    %c0_167 = arith.constant 0 : index
    %c0_168 = arith.constant 0 : index
    %236 = vector.load %arg5[%c1_165, %c4_166, %c0_167, %c0_168] : memref<5x8x256x256xbf16, #tpu.memory_space<vmem>>, vector<1x1x256x256xbf16>
    %237 = vector.shape_cast %236 : vector<1x1x256x256xbf16> to vector<256x256xbf16>
    %cst_169 = arith.constant dense<0.000000e+00> : vector<8x256xf32>
    %238 = tpu.matmul %235, %237, %cst_169 {dimension_numbers = #tpu.dot_dimension_numbers<[1], [0], [0], [1], [0, 0, 1, 1], [], []>} : vector<8x256xbf16>, vector<256x256xbf16>, vector<8x256xf32> -> vector<8x256xf32>
    %c1_170 = arith.constant 1 : index
    %c4_171 = arith.constant 4 : index
    %c0_172 = arith.constant 0 : index
    %c0_173 = arith.constant 0 : index
    %239 = vector.load %arg6[%c1_170, %c4_171, %c0_172, %c0_173] : memref<5x8x1x256xf32, #tpu.memory_space<vmem>>, vector<1x1x1x256xf32>
    %240 = vector.shape_cast %239 : vector<1x1x1x256xf32> to vector<1x256xf32>
    %241 = vector.broadcast %240 : vector<1x256xf32> to vector<8x256xf32>
    %242 = arith.addf %238, %241 : vector<8x256xf32>
    %cst_174 = arith.constant 5.000000e-01 : f32
    %243 = vector.broadcast %cst_174 : f32 to vector<8x256xf32>
    %244 = arith.mulf %243, %242 : vector<8x256xf32>
    %cst_175 = arith.constant 0.707106769 : f32
    %245 = vector.broadcast %cst_175 : f32 to vector<8x256xf32>
    %246 = arith.mulf %242, %245 : vector<8x256xf32>
    %247 = math.erf %246 : vector<8x256xf32>
    %cst_176 = arith.constant 1.000000e+00 : f32
    %248 = vector.broadcast %cst_176 : f32 to vector<8x256xf32>
    %249 = arith.addf %248, %247 : vector<8x256xf32>
    %250 = arith.mulf %244, %249 : vector<8x256xf32>
    %251 = arith.truncf %250 : vector<8x256xf32> to vector<8x256xbf16>
    %c1_177 = arith.constant 1 : index
    %c5_178 = arith.constant 5 : index
    %c0_179 = arith.constant 0 : index
    %c0_180 = arith.constant 0 : index
    %252 = vector.load %arg5[%c1_177, %c5_178, %c0_179, %c0_180] : memref<5x8x256x256xbf16, #tpu.memory_space<vmem>>, vector<1x1x256x256xbf16>
    %253 = vector.shape_cast %252 : vector<1x1x256x256xbf16> to vector<256x256xbf16>
    %cst_181 = arith.constant dense<0.000000e+00> : vector<8x256xf32>
    %254 = tpu.matmul %251, %253, %cst_181 {dimension_numbers = #tpu.dot_dimension_numbers<[1], [0], [0], [1], [0, 0, 1, 1], [], []>} : vector<8x256xbf16>, vector<256x256xbf16>, vector<8x256xf32> -> vector<8x256xf32>
    %c1_182 = arith.constant 1 : index
    %c5_183 = arith.constant 5 : index
    %c0_184 = arith.constant 0 : index
    %c0_185 = arith.constant 0 : index
    %255 = vector.load %arg6[%c1_182, %c5_183, %c0_184, %c0_185] : memref<5x8x1x256xf32, #tpu.memory_space<vmem>>, vector<1x1x1x256xf32>
    %256 = vector.shape_cast %255 : vector<1x1x1x256xf32> to vector<1x256xf32>
    %257 = vector.broadcast %256 : vector<1x256xf32> to vector<8x256xf32>
    %258 = arith.addf %254, %257 : vector<8x256xf32>
    %cst_186 = arith.constant 5.000000e-01 : f32
    %259 = vector.broadcast %cst_186 : f32 to vector<8x256xf32>
    %260 = arith.mulf %259, %258 : vector<8x256xf32>
    %cst_187 = arith.constant 0.707106769 : f32
    %261 = vector.broadcast %cst_187 : f32 to vector<8x256xf32>
    %262 = arith.mulf %258, %261 : vector<8x256xf32>
    %263 = math.erf %262 : vector<8x256xf32>
    %cst_188 = arith.constant 1.000000e+00 : f32
    %264 = vector.broadcast %cst_188 : f32 to vector<8x256xf32>
    %265 = arith.addf %264, %263 : vector<8x256xf32>
    %266 = arith.mulf %260, %265 : vector<8x256xf32>
    %267 = arith.truncf %266 : vector<8x256xf32> to vector<8x256xbf16>
    %c1_189 = arith.constant 1 : index
    %c6_190 = arith.constant 6 : index
    %c0_191 = arith.constant 0 : index
    %c0_192 = arith.constant 0 : index
    %268 = vector.load %arg5[%c1_189, %c6_190, %c0_191, %c0_192] : memref<5x8x256x256xbf16, #tpu.memory_space<vmem>>, vector<1x1x256x256xbf16>
    %269 = vector.shape_cast %268 : vector<1x1x256x256xbf16> to vector<256x256xbf16>
    %cst_193 = arith.constant dense<0.000000e+00> : vector<8x256xf32>
    %270 = tpu.matmul %267, %269, %cst_193 {dimension_numbers = #tpu.dot_dimension_numbers<[1], [0], [0], [1], [0, 0, 1, 1], [], []>} : vector<8x256xbf16>, vector<256x256xbf16>, vector<8x256xf32> -> vector<8x256xf32>
    %c1_194 = arith.constant 1 : index
    %c6_195 = arith.constant 6 : index
    %c0_196 = arith.constant 0 : index
    %c0_197 = arith.constant 0 : index
    %271 = vector.load %arg6[%c1_194, %c6_195, %c0_196, %c0_197] : memref<5x8x1x256xf32, #tpu.memory_space<vmem>>, vector<1x1x1x256xf32>
    %272 = vector.shape_cast %271 : vector<1x1x1x256xf32> to vector<1x256xf32>
    %273 = vector.broadcast %272 : vector<1x256xf32> to vector<8x256xf32>
    %274 = arith.addf %270, %273 : vector<8x256xf32>
    %cst_198 = arith.constant 5.000000e-01 : f32
    %275 = vector.broadcast %cst_198 : f32 to vector<8x256xf32>
    %276 = arith.mulf %275, %274 : vector<8x256xf32>
    %cst_199 = arith.constant 0.707106769 : f32
    %277 = vector.broadcast %cst_199 : f32 to vector<8x256xf32>
    %278 = arith.mulf %274, %277 : vector<8x256xf32>
    %279 = math.erf %278 : vector<8x256xf32>
    %cst_200 = arith.constant 1.000000e+00 : f32
    %280 = vector.broadcast %cst_200 : f32 to vector<8x256xf32>
    %281 = arith.addf %280, %279 : vector<8x256xf32>
    %282 = arith.mulf %276, %281 : vector<8x256xf32>
    %283 = arith.truncf %282 : vector<8x256xf32> to vector<8x256xbf16>
    %c1_201 = arith.constant 1 : index
    %c7_202 = arith.constant 7 : index
    %c0_203 = arith.constant 0 : index
    %c0_204 = arith.constant 0 : index
    %284 = vector.load %arg5[%c1_201, %c7_202, %c0_203, %c0_204] : memref<5x8x256x256xbf16, #tpu.memory_space<vmem>>, vector<1x1x256x256xbf16>
    %285 = vector.shape_cast %284 : vector<1x1x256x256xbf16> to vector<256x256xbf16>
    %cst_205 = arith.constant dense<0.000000e+00> : vector<8x256xf32>
    %286 = tpu.matmul %283, %285, %cst_205 {dimension_numbers = #tpu.dot_dimension_numbers<[1], [0], [0], [1], [0, 0, 1, 1], [], []>} : vector<8x256xbf16>, vector<256x256xbf16>, vector<8x256xf32> -> vector<8x256xf32>
    %c1_206 = arith.constant 1 : index
    %c7_207 = arith.constant 7 : index
    %c0_208 = arith.constant 0 : index
    %c0_209 = arith.constant 0 : index
    %287 = vector.load %arg6[%c1_206, %c7_207, %c0_208, %c0_209] : memref<5x8x1x256xf32, #tpu.memory_space<vmem>>, vector<1x1x1x256xf32>
    %288 = vector.shape_cast %287 : vector<1x1x1x256xf32> to vector<1x256xf32>
    %289 = vector.broadcast %288 : vector<1x256xf32> to vector<8x256xf32>
    %290 = arith.addf %286, %289 : vector<8x256xf32>
    %cst_210 = arith.constant 5.000000e-01 : f32
    %291 = vector.broadcast %cst_210 : f32 to vector<8x256xf32>
    %292 = arith.mulf %291, %290 : vector<8x256xf32>
    %cst_211 = arith.constant 0.707106769 : f32
    %293 = vector.broadcast %cst_211 : f32 to vector<8x256xf32>
    %294 = arith.mulf %290, %293 : vector<8x256xf32>
    %295 = math.erf %294 : vector<8x256xf32>
    %cst_212 = arith.constant 1.000000e+00 : f32
    %296 = vector.broadcast %cst_212 : f32 to vector<8x256xf32>
    %297 = arith.addf %296, %295 : vector<8x256xf32>
    %298 = arith.mulf %292, %297 : vector<8x256xf32>
    %299 = arith.truncf %298 : vector<8x256xf32> to vector<8x256xbf16>
    %c1_213 = arith.constant 1 : index
    %c0_214 = arith.constant 0 : index
    %c0_215 = arith.constant 0 : index
    %300 = vector.load %arg7[%c1_213, %c0_214, %c0_215] : memref<5x256x40xbf16, #tpu.memory_space<vmem>>, vector<1x256x40xbf16>
    %301 = vector.shape_cast %300 : vector<1x256x40xbf16> to vector<256x40xbf16>
    %cst_216 = arith.constant dense<0.000000e+00> : vector<8x40xf32>
    %302 = tpu.matmul %299, %301, %cst_216 {dimension_numbers = #tpu.dot_dimension_numbers<[1], [0], [0], [1], [0, 0, 1, 1], [], []>} : vector<8x256xbf16>, vector<256x40xbf16>, vector<8x40xf32> -> vector<8x40xf32>
    %c1_217 = arith.constant 1 : index
    %c0_218 = arith.constant 0 : index
    %c0_219 = arith.constant 0 : index
    %303 = vector.load %arg8[%c1_217, %c0_218, %c0_219] : memref<5x1x40xf32, #tpu.memory_space<vmem>>, vector<1x1x40xf32>
    %304 = vector.shape_cast %303 : vector<1x1x40xf32> to vector<1x40xf32>
    %305 = vector.broadcast %304 : vector<1x40xf32> to vector<8x40xf32>
    %306 = arith.addf %302, %305 : vector<8x40xf32>
    %307 = arith.addf %155, %306 : vector<8x40xf32>
    %c2_220 = arith.constant 2 : index
    %c0_221 = arith.constant 0 : index
    %c0_222 = arith.constant 0 : index
    %308 = vector.load %arg3[%c2_220, %c0_221, %c0_222] : memref<5x20x256xbf16, #tpu.memory_space<vmem>>, vector<1x20x256xbf16>
    %309 = vector.shape_cast %308 : vector<1x20x256xbf16> to vector<20x256xbf16>
    %cst_223 = arith.constant dense<0.000000e+00> : vector<8x256xf32>
    %310 = tpu.matmul %4, %309, %cst_223 {dimension_numbers = #tpu.dot_dimension_numbers<[1], [0], [0], [1], [0, 0, 1, 1], [], []>} : vector<8x20xbf16>, vector<20x256xbf16>, vector<8x256xf32> -> vector<8x256xf32>
    %c2_224 = arith.constant 2 : index
    %c0_225 = arith.constant 0 : index
    %c0_226 = arith.constant 0 : index
    %311 = vector.load %arg4[%c2_224, %c0_225, %c0_226] : memref<5x1x256xf32, #tpu.memory_space<vmem>>, vector<1x1x256xf32>
    %312 = vector.shape_cast %311 : vector<1x1x256xf32> to vector<1x256xf32>
    %313 = vector.broadcast %312 : vector<1x256xf32> to vector<8x256xf32>
    %314 = arith.addf %310, %313 : vector<8x256xf32>
    %cst_227 = arith.constant 5.000000e-01 : f32
    %315 = vector.broadcast %cst_227 : f32 to vector<8x256xf32>
    %316 = arith.mulf %315, %314 : vector<8x256xf32>
    %cst_228 = arith.constant 0.707106769 : f32
    %317 = vector.broadcast %cst_228 : f32 to vector<8x256xf32>
    %318 = arith.mulf %314, %317 : vector<8x256xf32>
    %319 = math.erf %318 : vector<8x256xf32>
    %cst_229 = arith.constant 1.000000e+00 : f32
    %320 = vector.broadcast %cst_229 : f32 to vector<8x256xf32>
    %321 = arith.addf %320, %319 : vector<8x256xf32>
    %322 = arith.mulf %316, %321 : vector<8x256xf32>
    %323 = arith.truncf %322 : vector<8x256xf32> to vector<8x256xbf16>
    %c2_230 = arith.constant 2 : index
    %c0_231 = arith.constant 0 : index
    %c0_232 = arith.constant 0 : index
    %c0_233 = arith.constant 0 : index
    %324 = vector.load %arg5[%c2_230, %c0_231, %c0_232, %c0_233] : memref<5x8x256x256xbf16, #tpu.memory_space<vmem>>, vector<1x1x256x256xbf16>
    %325 = vector.shape_cast %324 : vector<1x1x256x256xbf16> to vector<256x256xbf16>
    %cst_234 = arith.constant dense<0.000000e+00> : vector<8x256xf32>
    %326 = tpu.matmul %323, %325, %cst_234 {dimension_numbers = #tpu.dot_dimension_numbers<[1], [0], [0], [1], [0, 0, 1, 1], [], []>} : vector<8x256xbf16>, vector<256x256xbf16>, vector<8x256xf32> -> vector<8x256xf32>
    %c2_235 = arith.constant 2 : index
    %c0_236 = arith.constant 0 : index
    %c0_237 = arith.constant 0 : index
    %c0_238 = arith.constant 0 : index
    %327 = vector.load %arg6[%c2_235, %c0_236, %c0_237, %c0_238] : memref<5x8x1x256xf32, #tpu.memory_space<vmem>>, vector<1x1x1x256xf32>
    %328 = vector.shape_cast %327 : vector<1x1x1x256xf32> to vector<1x256xf32>
    %329 = vector.broadcast %328 : vector<1x256xf32> to vector<8x256xf32>
    %330 = arith.addf %326, %329 : vector<8x256xf32>
    %cst_239 = arith.constant 5.000000e-01 : f32
    %331 = vector.broadcast %cst_239 : f32 to vector<8x256xf32>
    %332 = arith.mulf %331, %330 : vector<8x256xf32>
    %cst_240 = arith.constant 0.707106769 : f32
    %333 = vector.broadcast %cst_240 : f32 to vector<8x256xf32>
    %334 = arith.mulf %330, %333 : vector<8x256xf32>
    %335 = math.erf %334 : vector<8x256xf32>
    %cst_241 = arith.constant 1.000000e+00 : f32
    %336 = vector.broadcast %cst_241 : f32 to vector<8x256xf32>
    %337 = arith.addf %336, %335 : vector<8x256xf32>
    %338 = arith.mulf %332, %337 : vector<8x256xf32>
    %339 = arith.truncf %338 : vector<8x256xf32> to vector<8x256xbf16>
    %c2_242 = arith.constant 2 : index
    %c1_243 = arith.constant 1 : index
    %c0_244 = arith.constant 0 : index
    %c0_245 = arith.constant 0 : index
    %340 = vector.load %arg5[%c2_242, %c1_243, %c0_244, %c0_245] : memref<5x8x256x256xbf16, #tpu.memory_space<vmem>>, vector<1x1x256x256xbf16>
    %341 = vector.shape_cast %340 : vector<1x1x256x256xbf16> to vector<256x256xbf16>
    %cst_246 = arith.constant dense<0.000000e+00> : vector<8x256xf32>
    %342 = tpu.matmul %339, %341, %cst_246 {dimension_numbers = #tpu.dot_dimension_numbers<[1], [0], [0], [1], [0, 0, 1, 1], [], []>} : vector<8x256xbf16>, vector<256x256xbf16>, vector<8x256xf32> -> vector<8x256xf32>
    %c2_247 = arith.constant 2 : index
    %c1_248 = arith.constant 1 : index
    %c0_249 = arith.constant 0 : index
    %c0_250 = arith.constant 0 : index
    %343 = vector.load %arg6[%c2_247, %c1_248, %c0_249, %c0_250] : memref<5x8x1x256xf32, #tpu.memory_space<vmem>>, vector<1x1x1x256xf32>
    %344 = vector.shape_cast %343 : vector<1x1x1x256xf32> to vector<1x256xf32>
    %345 = vector.broadcast %344 : vector<1x256xf32> to vector<8x256xf32>
    %346 = arith.addf %342, %345 : vector<8x256xf32>
    %cst_251 = arith.constant 5.000000e-01 : f32
    %347 = vector.broadcast %cst_251 : f32 to vector<8x256xf32>
    %348 = arith.mulf %347, %346 : vector<8x256xf32>
    %cst_252 = arith.constant 0.707106769 : f32
    %349 = vector.broadcast %cst_252 : f32 to vector<8x256xf32>
    %350 = arith.mulf %346, %349 : vector<8x256xf32>
    %351 = math.erf %350 : vector<8x256xf32>
    %cst_253 = arith.constant 1.000000e+00 : f32
    %352 = vector.broadcast %cst_253 : f32 to vector<8x256xf32>
    %353 = arith.addf %352, %351 : vector<8x256xf32>
    %354 = arith.mulf %348, %353 : vector<8x256xf32>
    %355 = arith.truncf %354 : vector<8x256xf32> to vector<8x256xbf16>
    %c2_254 = arith.constant 2 : index
    %c2_255 = arith.constant 2 : index
    %c0_256 = arith.constant 0 : index
    %c0_257 = arith.constant 0 : index
    %356 = vector.load %arg5[%c2_254, %c2_255, %c0_256, %c0_257] : memref<5x8x256x256xbf16, #tpu.memory_space<vmem>>, vector<1x1x256x256xbf16>
    %357 = vector.shape_cast %356 : vector<1x1x256x256xbf16> to vector<256x256xbf16>
    %cst_258 = arith.constant dense<0.000000e+00> : vector<8x256xf32>
    %358 = tpu.matmul %355, %357, %cst_258 {dimension_numbers = #tpu.dot_dimension_numbers<[1], [0], [0], [1], [0, 0, 1, 1], [], []>} : vector<8x256xbf16>, vector<256x256xbf16>, vector<8x256xf32> -> vector<8x256xf32>
    %c2_259 = arith.constant 2 : index
    %c2_260 = arith.constant 2 : index
    %c0_261 = arith.constant 0 : index
    %c0_262 = arith.constant 0 : index
    %359 = vector.load %arg6[%c2_259, %c2_260, %c0_261, %c0_262] : memref<5x8x1x256xf32, #tpu.memory_space<vmem>>, vector<1x1x1x256xf32>
    %360 = vector.shape_cast %359 : vector<1x1x1x256xf32> to vector<1x256xf32>
    %361 = vector.broadcast %360 : vector<1x256xf32> to vector<8x256xf32>
    %362 = arith.addf %358, %361 : vector<8x256xf32>
    %cst_263 = arith.constant 5.000000e-01 : f32
    %363 = vector.broadcast %cst_263 : f32 to vector<8x256xf32>
    %364 = arith.mulf %363, %362 : vector<8x256xf32>
    %cst_264 = arith.constant 0.707106769 : f32
    %365 = vector.broadcast %cst_264 : f32 to vector<8x256xf32>
    %366 = arith.mulf %362, %365 : vector<8x256xf32>
    %367 = math.erf %366 : vector<8x256xf32>
    %cst_265 = arith.constant 1.000000e+00 : f32
    %368 = vector.broadcast %cst_265 : f32 to vector<8x256xf32>
    %369 = arith.addf %368, %367 : vector<8x256xf32>
    %370 = arith.mulf %364, %369 : vector<8x256xf32>
    %371 = arith.truncf %370 : vector<8x256xf32> to vector<8x256xbf16>
    %c2_266 = arith.constant 2 : index
    %c3_267 = arith.constant 3 : index
    %c0_268 = arith.constant 0 : index
    %c0_269 = arith.constant 0 : index
    %372 = vector.load %arg5[%c2_266, %c3_267, %c0_268, %c0_269] : memref<5x8x256x256xbf16, #tpu.memory_space<vmem>>, vector<1x1x256x256xbf16>
    %373 = vector.shape_cast %372 : vector<1x1x256x256xbf16> to vector<256x256xbf16>
    %cst_270 = arith.constant dense<0.000000e+00> : vector<8x256xf32>
    %374 = tpu.matmul %371, %373, %cst_270 {dimension_numbers = #tpu.dot_dimension_numbers<[1], [0], [0], [1], [0, 0, 1, 1], [], []>} : vector<8x256xbf16>, vector<256x256xbf16>, vector<8x256xf32> -> vector<8x256xf32>
    %c2_271 = arith.constant 2 : index
    %c3_272 = arith.constant 3 : index
    %c0_273 = arith.constant 0 : index
    %c0_274 = arith.constant 0 : index
    %375 = vector.load %arg6[%c2_271, %c3_272, %c0_273, %c0_274] : memref<5x8x1x256xf32, #tpu.memory_space<vmem>>, vector<1x1x1x256xf32>
    %376 = vector.shape_cast %375 : vector<1x1x1x256xf32> to vector<1x256xf32>
    %377 = vector.broadcast %376 : vector<1x256xf32> to vector<8x256xf32>
    %378 = arith.addf %374, %377 : vector<8x256xf32>
    %cst_275 = arith.constant 5.000000e-01 : f32
    %379 = vector.broadcast %cst_275 : f32 to vector<8x256xf32>
    %380 = arith.mulf %379, %378 : vector<8x256xf32>
    %cst_276 = arith.constant 0.707106769 : f32
    %381 = vector.broadcast %cst_276 : f32 to vector<8x256xf32>
    %382 = arith.mulf %378, %381 : vector<8x256xf32>
    %383 = math.erf %382 : vector<8x256xf32>
    %cst_277 = arith.constant 1.000000e+00 : f32
    %384 = vector.broadcast %cst_277 : f32 to vector<8x256xf32>
    %385 = arith.addf %384, %383 : vector<8x256xf32>
    %386 = arith.mulf %380, %385 : vector<8x256xf32>
    %387 = arith.truncf %386 : vector<8x256xf32> to vector<8x256xbf16>
    %c2_278 = arith.constant 2 : index
    %c4_279 = arith.constant 4 : index
    %c0_280 = arith.constant 0 : index
    %c0_281 = arith.constant 0 : index
    %388 = vector.load %arg5[%c2_278, %c4_279, %c0_280, %c0_281] : memref<5x8x256x256xbf16, #tpu.memory_space<vmem>>, vector<1x1x256x256xbf16>
    %389 = vector.shape_cast %388 : vector<1x1x256x256xbf16> to vector<256x256xbf16>
    %cst_282 = arith.constant dense<0.000000e+00> : vector<8x256xf32>
    %390 = tpu.matmul %387, %389, %cst_282 {dimension_numbers = #tpu.dot_dimension_numbers<[1], [0], [0], [1], [0, 0, 1, 1], [], []>} : vector<8x256xbf16>, vector<256x256xbf16>, vector<8x256xf32> -> vector<8x256xf32>
    %c2_283 = arith.constant 2 : index
    %c4_284 = arith.constant 4 : index
    %c0_285 = arith.constant 0 : index
    %c0_286 = arith.constant 0 : index
    %391 = vector.load %arg6[%c2_283, %c4_284, %c0_285, %c0_286] : memref<5x8x1x256xf32, #tpu.memory_space<vmem>>, vector<1x1x1x256xf32>
    %392 = vector.shape_cast %391 : vector<1x1x1x256xf32> to vector<1x256xf32>
    %393 = vector.broadcast %392 : vector<1x256xf32> to vector<8x256xf32>
    %394 = arith.addf %390, %393 : vector<8x256xf32>
    %cst_287 = arith.constant 5.000000e-01 : f32
    %395 = vector.broadcast %cst_287 : f32 to vector<8x256xf32>
    %396 = arith.mulf %395, %394 : vector<8x256xf32>
    %cst_288 = arith.constant 0.707106769 : f32
    %397 = vector.broadcast %cst_288 : f32 to vector<8x256xf32>
    %398 = arith.mulf %394, %397 : vector<8x256xf32>
    %399 = math.erf %398 : vector<8x256xf32>
    %cst_289 = arith.constant 1.000000e+00 : f32
    %400 = vector.broadcast %cst_289 : f32 to vector<8x256xf32>
    %401 = arith.addf %400, %399 : vector<8x256xf32>
    %402 = arith.mulf %396, %401 : vector<8x256xf32>
    %403 = arith.truncf %402 : vector<8x256xf32> to vector<8x256xbf16>
    %c2_290 = arith.constant 2 : index
    %c5_291 = arith.constant 5 : index
    %c0_292 = arith.constant 0 : index
    %c0_293 = arith.constant 0 : index
    %404 = vector.load %arg5[%c2_290, %c5_291, %c0_292, %c0_293] : memref<5x8x256x256xbf16, #tpu.memory_space<vmem>>, vector<1x1x256x256xbf16>
    %405 = vector.shape_cast %404 : vector<1x1x256x256xbf16> to vector<256x256xbf16>
    %cst_294 = arith.constant dense<0.000000e+00> : vector<8x256xf32>
    %406 = tpu.matmul %403, %405, %cst_294 {dimension_numbers = #tpu.dot_dimension_numbers<[1], [0], [0], [1], [0, 0, 1, 1], [], []>} : vector<8x256xbf16>, vector<256x256xbf16>, vector<8x256xf32> -> vector<8x256xf32>
    %c2_295 = arith.constant 2 : index
    %c5_296 = arith.constant 5 : index
    %c0_297 = arith.constant 0 : index
    %c0_298 = arith.constant 0 : index
    %407 = vector.load %arg6[%c2_295, %c5_296, %c0_297, %c0_298] : memref<5x8x1x256xf32, #tpu.memory_space<vmem>>, vector<1x1x1x256xf32>
    %408 = vector.shape_cast %407 : vector<1x1x1x256xf32> to vector<1x256xf32>
    %409 = vector.broadcast %408 : vector<1x256xf32> to vector<8x256xf32>
    %410 = arith.addf %406, %409 : vector<8x256xf32>
    %cst_299 = arith.constant 5.000000e-01 : f32
    %411 = vector.broadcast %cst_299 : f32 to vector<8x256xf32>
    %412 = arith.mulf %411, %410 : vector<8x256xf32>
    %cst_300 = arith.constant 0.707106769 : f32
    %413 = vector.broadcast %cst_300 : f32 to vector<8x256xf32>
    %414 = arith.mulf %410, %413 : vector<8x256xf32>
    %415 = math.erf %414 : vector<8x256xf32>
    %cst_301 = arith.constant 1.000000e+00 : f32
    %416 = vector.broadcast %cst_301 : f32 to vector<8x256xf32>
    %417 = arith.addf %416, %415 : vector<8x256xf32>
    %418 = arith.mulf %412, %417 : vector<8x256xf32>
    %419 = arith.truncf %418 : vector<8x256xf32> to vector<8x256xbf16>
    %c2_302 = arith.constant 2 : index
    %c6_303 = arith.constant 6 : index
    %c0_304 = arith.constant 0 : index
    %c0_305 = arith.constant 0 : index
    %420 = vector.load %arg5[%c2_302, %c6_303, %c0_304, %c0_305] : memref<5x8x256x256xbf16, #tpu.memory_space<vmem>>, vector<1x1x256x256xbf16>
    %421 = vector.shape_cast %420 : vector<1x1x256x256xbf16> to vector<256x256xbf16>
    %cst_306 = arith.constant dense<0.000000e+00> : vector<8x256xf32>
    %422 = tpu.matmul %419, %421, %cst_306 {dimension_numbers = #tpu.dot_dimension_numbers<[1], [0], [0], [1], [0, 0, 1, 1], [], []>} : vector<8x256xbf16>, vector<256x256xbf16>, vector<8x256xf32> -> vector<8x256xf32>
    %c2_307 = arith.constant 2 : index
    %c6_308 = arith.constant 6 : index
    %c0_309 = arith.constant 0 : index
    %c0_310 = arith.constant 0 : index
    %423 = vector.load %arg6[%c2_307, %c6_308, %c0_309, %c0_310] : memref<5x8x1x256xf32, #tpu.memory_space<vmem>>, vector<1x1x1x256xf32>
    %424 = vector.shape_cast %423 : vector<1x1x1x256xf32> to vector<1x256xf32>
    %425 = vector.broadcast %424 : vector<1x256xf32> to vector<8x256xf32>
    %426 = arith.addf %422, %425 : vector<8x256xf32>
    %cst_311 = arith.constant 5.000000e-01 : f32
    %427 = vector.broadcast %cst_311 : f32 to vector<8x256xf32>
    %428 = arith.mulf %427, %426 : vector<8x256xf32>
    %cst_312 = arith.constant 0.707106769 : f32
    %429 = vector.broadcast %cst_312 : f32 to vector<8x256xf32>
    %430 = arith.mulf %426, %429 : vector<8x256xf32>
    %431 = math.erf %430 : vector<8x256xf32>
    %cst_313 = arith.constant 1.000000e+00 : f32
    %432 = vector.broadcast %cst_313 : f32 to vector<8x256xf32>
    %433 = arith.addf %432, %431 : vector<8x256xf32>
    %434 = arith.mulf %428, %433 : vector<8x256xf32>
    %435 = arith.truncf %434 : vector<8x256xf32> to vector<8x256xbf16>
    %c2_314 = arith.constant 2 : index
    %c7_315 = arith.constant 7 : index
    %c0_316 = arith.constant 0 : index
    %c0_317 = arith.constant 0 : index
    %436 = vector.load %arg5[%c2_314, %c7_315, %c0_316, %c0_317] : memref<5x8x256x256xbf16, #tpu.memory_space<vmem>>, vector<1x1x256x256xbf16>
    %437 = vector.shape_cast %436 : vector<1x1x256x256xbf16> to vector<256x256xbf16>
    %cst_318 = arith.constant dense<0.000000e+00> : vector<8x256xf32>
    %438 = tpu.matmul %435, %437, %cst_318 {dimension_numbers = #tpu.dot_dimension_numbers<[1], [0], [0], [1], [0, 0, 1, 1], [], []>} : vector<8x256xbf16>, vector<256x256xbf16>, vector<8x256xf32> -> vector<8x256xf32>
    %c2_319 = arith.constant 2 : index
    %c7_320 = arith.constant 7 : index
    %c0_321 = arith.constant 0 : index
    %c0_322 = arith.constant 0 : index
    %439 = vector.load %arg6[%c2_319, %c7_320, %c0_321, %c0_322] : memref<5x8x1x256xf32, #tpu.memory_space<vmem>>, vector<1x1x1x256xf32>
    %440 = vector.shape_cast %439 : vector<1x1x1x256xf32> to vector<1x256xf32>
    %441 = vector.broadcast %440 : vector<1x256xf32> to vector<8x256xf32>
    %442 = arith.addf %438, %441 : vector<8x256xf32>
    %cst_323 = arith.constant 5.000000e-01 : f32
    %443 = vector.broadcast %cst_323 : f32 to vector<8x256xf32>
    %444 = arith.mulf %443, %442 : vector<8x256xf32>
    %cst_324 = arith.constant 0.707106769 : f32
    %445 = vector.broadcast %cst_324 : f32 to vector<8x256xf32>
    %446 = arith.mulf %442, %445 : vector<8x256xf32>
    %447 = math.erf %446 : vector<8x256xf32>
    %cst_325 = arith.constant 1.000000e+00 : f32
    %448 = vector.broadcast %cst_325 : f32 to vector<8x256xf32>
    %449 = arith.addf %448, %447 : vector<8x256xf32>
    %450 = arith.mulf %444, %449 : vector<8x256xf32>
    %451 = arith.truncf %450 : vector<8x256xf32> to vector<8x256xbf16>
    %c2_326 = arith.constant 2 : index
    %c0_327 = arith.constant 0 : index
    %c0_328 = arith.constant 0 : index
    %452 = vector.load %arg7[%c2_326, %c0_327, %c0_328] : memref<5x256x40xbf16, #tpu.memory_space<vmem>>, vector<1x256x40xbf16>
    %453 = vector.shape_cast %452 : vector<1x256x40xbf16> to vector<256x40xbf16>
    %cst_329 = arith.constant dense<0.000000e+00> : vector<8x40xf32>
    %454 = tpu.matmul %451, %453, %cst_329 {dimension_numbers = #tpu.dot_dimension_numbers<[1], [0], [0], [1], [0, 0, 1, 1], [], []>} : vector<8x256xbf16>, vector<256x40xbf16>, vector<8x40xf32> -> vector<8x40xf32>
    %c2_330 = arith.constant 2 : index
    %c0_331 = arith.constant 0 : index
    %c0_332 = arith.constant 0 : index
    %455 = vector.load %arg8[%c2_330, %c0_331, %c0_332] : memref<5x1x40xf32, #tpu.memory_space<vmem>>, vector<1x1x40xf32>
    %456 = vector.shape_cast %455 : vector<1x1x40xf32> to vector<1x40xf32>
    %457 = vector.broadcast %456 : vector<1x40xf32> to vector<8x40xf32>
    %458 = arith.addf %454, %457 : vector<8x40xf32>
    %459 = arith.addf %307, %458 : vector<8x40xf32>
    %c3_333 = arith.constant 3 : index
    %c0_334 = arith.constant 0 : index
    %c0_335 = arith.constant 0 : index
    %460 = vector.load %arg3[%c3_333, %c0_334, %c0_335] : memref<5x20x256xbf16, #tpu.memory_space<vmem>>, vector<1x20x256xbf16>
    %461 = vector.shape_cast %460 : vector<1x20x256xbf16> to vector<20x256xbf16>
    %cst_336 = arith.constant dense<0.000000e+00> : vector<8x256xf32>
    %462 = tpu.matmul %4, %461, %cst_336 {dimension_numbers = #tpu.dot_dimension_numbers<[1], [0], [0], [1], [0, 0, 1, 1], [], []>} : vector<8x20xbf16>, vector<20x256xbf16>, vector<8x256xf32> -> vector<8x256xf32>
    %c3_337 = arith.constant 3 : index
    %c0_338 = arith.constant 0 : index
    %c0_339 = arith.constant 0 : index
    %463 = vector.load %arg4[%c3_337, %c0_338, %c0_339] : memref<5x1x256xf32, #tpu.memory_space<vmem>>, vector<1x1x256xf32>
    %464 = vector.shape_cast %463 : vector<1x1x256xf32> to vector<1x256xf32>
    %465 = vector.broadcast %464 : vector<1x256xf32> to vector<8x256xf32>
    %466 = arith.addf %462, %465 : vector<8x256xf32>
    %cst_340 = arith.constant 5.000000e-01 : f32
    %467 = vector.broadcast %cst_340 : f32 to vector<8x256xf32>
    %468 = arith.mulf %467, %466 : vector<8x256xf32>
    %cst_341 = arith.constant 0.707106769 : f32
    %469 = vector.broadcast %cst_341 : f32 to vector<8x256xf32>
    %470 = arith.mulf %466, %469 : vector<8x256xf32>
    %471 = math.erf %470 : vector<8x256xf32>
    %cst_342 = arith.constant 1.000000e+00 : f32
    %472 = vector.broadcast %cst_342 : f32 to vector<8x256xf32>
    %473 = arith.addf %472, %471 : vector<8x256xf32>
    %474 = arith.mulf %468, %473 : vector<8x256xf32>
    %475 = arith.truncf %474 : vector<8x256xf32> to vector<8x256xbf16>
    %c3_343 = arith.constant 3 : index
    %c0_344 = arith.constant 0 : index
    %c0_345 = arith.constant 0 : index
    %c0_346 = arith.constant 0 : index
    %476 = vector.load %arg5[%c3_343, %c0_344, %c0_345, %c0_346] : memref<5x8x256x256xbf16, #tpu.memory_space<vmem>>, vector<1x1x256x256xbf16>
    %477 = vector.shape_cast %476 : vector<1x1x256x256xbf16> to vector<256x256xbf16>
    %cst_347 = arith.constant dense<0.000000e+00> : vector<8x256xf32>
    %478 = tpu.matmul %475, %477, %cst_347 {dimension_numbers = #tpu.dot_dimension_numbers<[1], [0], [0], [1], [0, 0, 1, 1], [], []>} : vector<8x256xbf16>, vector<256x256xbf16>, vector<8x256xf32> -> vector<8x256xf32>
    %c3_348 = arith.constant 3 : index
    %c0_349 = arith.constant 0 : index
    %c0_350 = arith.constant 0 : index
    %c0_351 = arith.constant 0 : index
    %479 = vector.load %arg6[%c3_348, %c0_349, %c0_350, %c0_351] : memref<5x8x1x256xf32, #tpu.memory_space<vmem>>, vector<1x1x1x256xf32>
    %480 = vector.shape_cast %479 : vector<1x1x1x256xf32> to vector<1x256xf32>
    %481 = vector.broadcast %480 : vector<1x256xf32> to vector<8x256xf32>
    %482 = arith.addf %478, %481 : vector<8x256xf32>
    %cst_352 = arith.constant 5.000000e-01 : f32
    %483 = vector.broadcast %cst_352 : f32 to vector<8x256xf32>
    %484 = arith.mulf %483, %482 : vector<8x256xf32>
    %cst_353 = arith.constant 0.707106769 : f32
    %485 = vector.broadcast %cst_353 : f32 to vector<8x256xf32>
    %486 = arith.mulf %482, %485 : vector<8x256xf32>
    %487 = math.erf %486 : vector<8x256xf32>
    %cst_354 = arith.constant 1.000000e+00 : f32
    %488 = vector.broadcast %cst_354 : f32 to vector<8x256xf32>
    %489 = arith.addf %488, %487 : vector<8x256xf32>
    %490 = arith.mulf %484, %489 : vector<8x256xf32>
    %491 = arith.truncf %490 : vector<8x256xf32> to vector<8x256xbf16>
    %c3_355 = arith.constant 3 : index
    %c1_356 = arith.constant 1 : index
    %c0_357 = arith.constant 0 : index
    %c0_358 = arith.constant 0 : index
    %492 = vector.load %arg5[%c3_355, %c1_356, %c0_357, %c0_358] : memref<5x8x256x256xbf16, #tpu.memory_space<vmem>>, vector<1x1x256x256xbf16>
    %493 = vector.shape_cast %492 : vector<1x1x256x256xbf16> to vector<256x256xbf16>
    %cst_359 = arith.constant dense<0.000000e+00> : vector<8x256xf32>
    %494 = tpu.matmul %491, %493, %cst_359 {dimension_numbers = #tpu.dot_dimension_numbers<[1], [0], [0], [1], [0, 0, 1, 1], [], []>} : vector<8x256xbf16>, vector<256x256xbf16>, vector<8x256xf32> -> vector<8x256xf32>
    %c3_360 = arith.constant 3 : index
    %c1_361 = arith.constant 1 : index
    %c0_362 = arith.constant 0 : index
    %c0_363 = arith.constant 0 : index
    %495 = vector.load %arg6[%c3_360, %c1_361, %c0_362, %c0_363] : memref<5x8x1x256xf32, #tpu.memory_space<vmem>>, vector<1x1x1x256xf32>
    %496 = vector.shape_cast %495 : vector<1x1x1x256xf32> to vector<1x256xf32>
    %497 = vector.broadcast %496 : vector<1x256xf32> to vector<8x256xf32>
    %498 = arith.addf %494, %497 : vector<8x256xf32>
    %cst_364 = arith.constant 5.000000e-01 : f32
    %499 = vector.broadcast %cst_364 : f32 to vector<8x256xf32>
    %500 = arith.mulf %499, %498 : vector<8x256xf32>
    %cst_365 = arith.constant 0.707106769 : f32
    %501 = vector.broadcast %cst_365 : f32 to vector<8x256xf32>
    %502 = arith.mulf %498, %501 : vector<8x256xf32>
    %503 = math.erf %502 : vector<8x256xf32>
    %cst_366 = arith.constant 1.000000e+00 : f32
    %504 = vector.broadcast %cst_366 : f32 to vector<8x256xf32>
    %505 = arith.addf %504, %503 : vector<8x256xf32>
    %506 = arith.mulf %500, %505 : vector<8x256xf32>
    %507 = arith.truncf %506 : vector<8x256xf32> to vector<8x256xbf16>
    %c3_367 = arith.constant 3 : index
    %c2_368 = arith.constant 2 : index
    %c0_369 = arith.constant 0 : index
    %c0_370 = arith.constant 0 : index
    %508 = vector.load %arg5[%c3_367, %c2_368, %c0_369, %c0_370] : memref<5x8x256x256xbf16, #tpu.memory_space<vmem>>, vector<1x1x256x256xbf16>
    %509 = vector.shape_cast %508 : vector<1x1x256x256xbf16> to vector<256x256xbf16>
    %cst_371 = arith.constant dense<0.000000e+00> : vector<8x256xf32>
    %510 = tpu.matmul %507, %509, %cst_371 {dimension_numbers = #tpu.dot_dimension_numbers<[1], [0], [0], [1], [0, 0, 1, 1], [], []>} : vector<8x256xbf16>, vector<256x256xbf16>, vector<8x256xf32> -> vector<8x256xf32>
    %c3_372 = arith.constant 3 : index
    %c2_373 = arith.constant 2 : index
    %c0_374 = arith.constant 0 : index
    %c0_375 = arith.constant 0 : index
    %511 = vector.load %arg6[%c3_372, %c2_373, %c0_374, %c0_375] : memref<5x8x1x256xf32, #tpu.memory_space<vmem>>, vector<1x1x1x256xf32>
    %512 = vector.shape_cast %511 : vector<1x1x1x256xf32> to vector<1x256xf32>
    %513 = vector.broadcast %512 : vector<1x256xf32> to vector<8x256xf32>
    %514 = arith.addf %510, %513 : vector<8x256xf32>
    %cst_376 = arith.constant 5.000000e-01 : f32
    %515 = vector.broadcast %cst_376 : f32 to vector<8x256xf32>
    %516 = arith.mulf %515, %514 : vector<8x256xf32>
    %cst_377 = arith.constant 0.707106769 : f32
    %517 = vector.broadcast %cst_377 : f32 to vector<8x256xf32>
    %518 = arith.mulf %514, %517 : vector<8x256xf32>
    %519 = math.erf %518 : vector<8x256xf32>
    %cst_378 = arith.constant 1.000000e+00 : f32
    %520 = vector.broadcast %cst_378 : f32 to vector<8x256xf32>
    %521 = arith.addf %520, %519 : vector<8x256xf32>
    %522 = arith.mulf %516, %521 : vector<8x256xf32>
    %523 = arith.truncf %522 : vector<8x256xf32> to vector<8x256xbf16>
    %c3_379 = arith.constant 3 : index
    %c3_380 = arith.constant 3 : index
    %c0_381 = arith.constant 0 : index
    %c0_382 = arith.constant 0 : index
    %524 = vector.load %arg5[%c3_379, %c3_380, %c0_381, %c0_382] : memref<5x8x256x256xbf16, #tpu.memory_space<vmem>>, vector<1x1x256x256xbf16>
    %525 = vector.shape_cast %524 : vector<1x1x256x256xbf16> to vector<256x256xbf16>
    %cst_383 = arith.constant dense<0.000000e+00> : vector<8x256xf32>
    %526 = tpu.matmul %523, %525, %cst_383 {dimension_numbers = #tpu.dot_dimension_numbers<[1], [0], [0], [1], [0, 0, 1, 1], [], []>} : vector<8x256xbf16>, vector<256x256xbf16>, vector<8x256xf32> -> vector<8x256xf32>
    %c3_384 = arith.constant 3 : index
    %c3_385 = arith.constant 3 : index
    %c0_386 = arith.constant 0 : index
    %c0_387 = arith.constant 0 : index
    %527 = vector.load %arg6[%c3_384, %c3_385, %c0_386, %c0_387] : memref<5x8x1x256xf32, #tpu.memory_space<vmem>>, vector<1x1x1x256xf32>
    %528 = vector.shape_cast %527 : vector<1x1x1x256xf32> to vector<1x256xf32>
    %529 = vector.broadcast %528 : vector<1x256xf32> to vector<8x256xf32>
    %530 = arith.addf %526, %529 : vector<8x256xf32>
    %cst_388 = arith.constant 5.000000e-01 : f32
    %531 = vector.broadcast %cst_388 : f32 to vector<8x256xf32>
    %532 = arith.mulf %531, %530 : vector<8x256xf32>
    %cst_389 = arith.constant 0.707106769 : f32
    %533 = vector.broadcast %cst_389 : f32 to vector<8x256xf32>
    %534 = arith.mulf %530, %533 : vector<8x256xf32>
    %535 = math.erf %534 : vector<8x256xf32>
    %cst_390 = arith.constant 1.000000e+00 : f32
    %536 = vector.broadcast %cst_390 : f32 to vector<8x256xf32>
    %537 = arith.addf %536, %535 : vector<8x256xf32>
    %538 = arith.mulf %532, %537 : vector<8x256xf32>
    %539 = arith.truncf %538 : vector<8x256xf32> to vector<8x256xbf16>
    %c3_391 = arith.constant 3 : index
    %c4_392 = arith.constant 4 : index
    %c0_393 = arith.constant 0 : index
    %c0_394 = arith.constant 0 : index
    %540 = vector.load %arg5[%c3_391, %c4_392, %c0_393, %c0_394] : memref<5x8x256x256xbf16, #tpu.memory_space<vmem>>, vector<1x1x256x256xbf16>
    %541 = vector.shape_cast %540 : vector<1x1x256x256xbf16> to vector<256x256xbf16>
    %cst_395 = arith.constant dense<0.000000e+00> : vector<8x256xf32>
    %542 = tpu.matmul %539, %541, %cst_395 {dimension_numbers = #tpu.dot_dimension_numbers<[1], [0], [0], [1], [0, 0, 1, 1], [], []>} : vector<8x256xbf16>, vector<256x256xbf16>, vector<8x256xf32> -> vector<8x256xf32>
    %c3_396 = arith.constant 3 : index
    %c4_397 = arith.constant 4 : index
    %c0_398 = arith.constant 0 : index
    %c0_399 = arith.constant 0 : index
    %543 = vector.load %arg6[%c3_396, %c4_397, %c0_398, %c0_399] : memref<5x8x1x256xf32, #tpu.memory_space<vmem>>, vector<1x1x1x256xf32>
    %544 = vector.shape_cast %543 : vector<1x1x1x256xf32> to vector<1x256xf32>
    %545 = vector.broadcast %544 : vector<1x256xf32> to vector<8x256xf32>
    %546 = arith.addf %542, %545 : vector<8x256xf32>
    %cst_400 = arith.constant 5.000000e-01 : f32
    %547 = vector.broadcast %cst_400 : f32 to vector<8x256xf32>
    %548 = arith.mulf %547, %546 : vector<8x256xf32>
    %cst_401 = arith.constant 0.707106769 : f32
    %549 = vector.broadcast %cst_401 : f32 to vector<8x256xf32>
    %550 = arith.mulf %546, %549 : vector<8x256xf32>
    %551 = math.erf %550 : vector<8x256xf32>
    %cst_402 = arith.constant 1.000000e+00 : f32
    %552 = vector.broadcast %cst_402 : f32 to vector<8x256xf32>
    %553 = arith.addf %552, %551 : vector<8x256xf32>
    %554 = arith.mulf %548, %553 : vector<8x256xf32>
    %555 = arith.truncf %554 : vector<8x256xf32> to vector<8x256xbf16>
    %c3_403 = arith.constant 3 : index
    %c5_404 = arith.constant 5 : index
    %c0_405 = arith.constant 0 : index
    %c0_406 = arith.constant 0 : index
    %556 = vector.load %arg5[%c3_403, %c5_404, %c0_405, %c0_406] : memref<5x8x256x256xbf16, #tpu.memory_space<vmem>>, vector<1x1x256x256xbf16>
    %557 = vector.shape_cast %556 : vector<1x1x256x256xbf16> to vector<256x256xbf16>
    %cst_407 = arith.constant dense<0.000000e+00> : vector<8x256xf32>
    %558 = tpu.matmul %555, %557, %cst_407 {dimension_numbers = #tpu.dot_dimension_numbers<[1], [0], [0], [1], [0, 0, 1, 1], [], []>} : vector<8x256xbf16>, vector<256x256xbf16>, vector<8x256xf32> -> vector<8x256xf32>
    %c3_408 = arith.constant 3 : index
    %c5_409 = arith.constant 5 : index
    %c0_410 = arith.constant 0 : index
    %c0_411 = arith.constant 0 : index
    %559 = vector.load %arg6[%c3_408, %c5_409, %c0_410, %c0_411] : memref<5x8x1x256xf32, #tpu.memory_space<vmem>>, vector<1x1x1x256xf32>
    %560 = vector.shape_cast %559 : vector<1x1x1x256xf32> to vector<1x256xf32>
    %561 = vector.broadcast %560 : vector<1x256xf32> to vector<8x256xf32>
    %562 = arith.addf %558, %561 : vector<8x256xf32>
    %cst_412 = arith.constant 5.000000e-01 : f32
    %563 = vector.broadcast %cst_412 : f32 to vector<8x256xf32>
    %564 = arith.mulf %563, %562 : vector<8x256xf32>
    %cst_413 = arith.constant 0.707106769 : f32
    %565 = vector.broadcast %cst_413 : f32 to vector<8x256xf32>
    %566 = arith.mulf %562, %565 : vector<8x256xf32>
    %567 = math.erf %566 : vector<8x256xf32>
    %cst_414 = arith.constant 1.000000e+00 : f32
    %568 = vector.broadcast %cst_414 : f32 to vector<8x256xf32>
    %569 = arith.addf %568, %567 : vector<8x256xf32>
    %570 = arith.mulf %564, %569 : vector<8x256xf32>
    %571 = arith.truncf %570 : vector<8x256xf32> to vector<8x256xbf16>
    %c3_415 = arith.constant 3 : index
    %c6_416 = arith.constant 6 : index
    %c0_417 = arith.constant 0 : index
    %c0_418 = arith.constant 0 : index
    %572 = vector.load %arg5[%c3_415, %c6_416, %c0_417, %c0_418] : memref<5x8x256x256xbf16, #tpu.memory_space<vmem>>, vector<1x1x256x256xbf16>
    %573 = vector.shape_cast %572 : vector<1x1x256x256xbf16> to vector<256x256xbf16>
    %cst_419 = arith.constant dense<0.000000e+00> : vector<8x256xf32>
    %574 = tpu.matmul %571, %573, %cst_419 {dimension_numbers = #tpu.dot_dimension_numbers<[1], [0], [0], [1], [0, 0, 1, 1], [], []>} : vector<8x256xbf16>, vector<256x256xbf16>, vector<8x256xf32> -> vector<8x256xf32>
    %c3_420 = arith.constant 3 : index
    %c6_421 = arith.constant 6 : index
    %c0_422 = arith.constant 0 : index
    %c0_423 = arith.constant 0 : index
    %575 = vector.load %arg6[%c3_420, %c6_421, %c0_422, %c0_423] : memref<5x8x1x256xf32, #tpu.memory_space<vmem>>, vector<1x1x1x256xf32>
    %576 = vector.shape_cast %575 : vector<1x1x1x256xf32> to vector<1x256xf32>
    %577 = vector.broadcast %576 : vector<1x256xf32> to vector<8x256xf32>
    %578 = arith.addf %574, %577 : vector<8x256xf32>
    %cst_424 = arith.constant 5.000000e-01 : f32
    %579 = vector.broadcast %cst_424 : f32 to vector<8x256xf32>
    %580 = arith.mulf %579, %578 : vector<8x256xf32>
    %cst_425 = arith.constant 0.707106769 : f32
    %581 = vector.broadcast %cst_425 : f32 to vector<8x256xf32>
    %582 = arith.mulf %578, %581 : vector<8x256xf32>
    %583 = math.erf %582 : vector<8x256xf32>
    %cst_426 = arith.constant 1.000000e+00 : f32
    %584 = vector.broadcast %cst_426 : f32 to vector<8x256xf32>
    %585 = arith.addf %584, %583 : vector<8x256xf32>
    %586 = arith.mulf %580, %585 : vector<8x256xf32>
    %587 = arith.truncf %586 : vector<8x256xf32> to vector<8x256xbf16>
    %c3_427 = arith.constant 3 : index
    %c7_428 = arith.constant 7 : index
    %c0_429 = arith.constant 0 : index
    %c0_430 = arith.constant 0 : index
    %588 = vector.load %arg5[%c3_427, %c7_428, %c0_429, %c0_430] : memref<5x8x256x256xbf16, #tpu.memory_space<vmem>>, vector<1x1x256x256xbf16>
    %589 = vector.shape_cast %588 : vector<1x1x256x256xbf16> to vector<256x256xbf16>
    %cst_431 = arith.constant dense<0.000000e+00> : vector<8x256xf32>
    %590 = tpu.matmul %587, %589, %cst_431 {dimension_numbers = #tpu.dot_dimension_numbers<[1], [0], [0], [1], [0, 0, 1, 1], [], []>} : vector<8x256xbf16>, vector<256x256xbf16>, vector<8x256xf32> -> vector<8x256xf32>
    %c3_432 = arith.constant 3 : index
    %c7_433 = arith.constant 7 : index
    %c0_434 = arith.constant 0 : index
    %c0_435 = arith.constant 0 : index
    %591 = vector.load %arg6[%c3_432, %c7_433, %c0_434, %c0_435] : memref<5x8x1x256xf32, #tpu.memory_space<vmem>>, vector<1x1x1x256xf32>
    %592 = vector.shape_cast %591 : vector<1x1x1x256xf32> to vector<1x256xf32>
    %593 = vector.broadcast %592 : vector<1x256xf32> to vector<8x256xf32>
    %594 = arith.addf %590, %593 : vector<8x256xf32>
    %cst_436 = arith.constant 5.000000e-01 : f32
    %595 = vector.broadcast %cst_436 : f32 to vector<8x256xf32>
    %596 = arith.mulf %595, %594 : vector<8x256xf32>
    %cst_437 = arith.constant 0.707106769 : f32
    %597 = vector.broadcast %cst_437 : f32 to vector<8x256xf32>
    %598 = arith.mulf %594, %597 : vector<8x256xf32>
    %599 = math.erf %598 : vector<8x256xf32>
    %cst_438 = arith.constant 1.000000e+00 : f32
    %600 = vector.broadcast %cst_438 : f32 to vector<8x256xf32>
    %601 = arith.addf %600, %599 : vector<8x256xf32>
    %602 = arith.mulf %596, %601 : vector<8x256xf32>
    %603 = arith.truncf %602 : vector<8x256xf32> to vector<8x256xbf16>
    %c3_439 = arith.constant 3 : index
    %c0_440 = arith.constant 0 : index
    %c0_441 = arith.constant 0 : index
    %604 = vector.load %arg7[%c3_439, %c0_440, %c0_441] : memref<5x256x40xbf16, #tpu.memory_space<vmem>>, vector<1x256x40xbf16>
    %605 = vector.shape_cast %604 : vector<1x256x40xbf16> to vector<256x40xbf16>
    %cst_442 = arith.constant dense<0.000000e+00> : vector<8x40xf32>
    %606 = tpu.matmul %603, %605, %cst_442 {dimension_numbers = #tpu.dot_dimension_numbers<[1], [0], [0], [1], [0, 0, 1, 1], [], []>} : vector<8x256xbf16>, vector<256x40xbf16>, vector<8x40xf32> -> vector<8x40xf32>
    %c3_443 = arith.constant 3 : index
    %c0_444 = arith.constant 0 : index
    %c0_445 = arith.constant 0 : index
    %607 = vector.load %arg8[%c3_443, %c0_444, %c0_445] : memref<5x1x40xf32, #tpu.memory_space<vmem>>, vector<1x1x40xf32>
    %608 = vector.shape_cast %607 : vector<1x1x40xf32> to vector<1x40xf32>
    %609 = vector.broadcast %608 : vector<1x40xf32> to vector<8x40xf32>
    %610 = arith.addf %606, %609 : vector<8x40xf32>
    %611 = arith.addf %459, %610 : vector<8x40xf32>
    %c4_446 = arith.constant 4 : index
    %c0_447 = arith.constant 0 : index
    %c0_448 = arith.constant 0 : index
    %612 = vector.load %arg3[%c4_446, %c0_447, %c0_448] : memref<5x20x256xbf16, #tpu.memory_space<vmem>>, vector<1x20x256xbf16>
    %613 = vector.shape_cast %612 : vector<1x20x256xbf16> to vector<20x256xbf16>
    %cst_449 = arith.constant dense<0.000000e+00> : vector<8x256xf32>
    %614 = tpu.matmul %4, %613, %cst_449 {dimension_numbers = #tpu.dot_dimension_numbers<[1], [0], [0], [1], [0, 0, 1, 1], [], []>} : vector<8x20xbf16>, vector<20x256xbf16>, vector<8x256xf32> -> vector<8x256xf32>
    %c4_450 = arith.constant 4 : index
    %c0_451 = arith.constant 0 : index
    %c0_452 = arith.constant 0 : index
    %615 = vector.load %arg4[%c4_450, %c0_451, %c0_452] : memref<5x1x256xf32, #tpu.memory_space<vmem>>, vector<1x1x256xf32>
    %616 = vector.shape_cast %615 : vector<1x1x256xf32> to vector<1x256xf32>
    %617 = vector.broadcast %616 : vector<1x256xf32> to vector<8x256xf32>
    %618 = arith.addf %614, %617 : vector<8x256xf32>
    %cst_453 = arith.constant 5.000000e-01 : f32
    %619 = vector.broadcast %cst_453 : f32 to vector<8x256xf32>
    %620 = arith.mulf %619, %618 : vector<8x256xf32>
    %cst_454 = arith.constant 0.707106769 : f32
    %621 = vector.broadcast %cst_454 : f32 to vector<8x256xf32>
    %622 = arith.mulf %618, %621 : vector<8x256xf32>
    %623 = math.erf %622 : vector<8x256xf32>
    %cst_455 = arith.constant 1.000000e+00 : f32
    %624 = vector.broadcast %cst_455 : f32 to vector<8x256xf32>
    %625 = arith.addf %624, %623 : vector<8x256xf32>
    %626 = arith.mulf %620, %625 : vector<8x256xf32>
    %627 = arith.truncf %626 : vector<8x256xf32> to vector<8x256xbf16>
    %c4_456 = arith.constant 4 : index
    %c0_457 = arith.constant 0 : index
    %c0_458 = arith.constant 0 : index
    %c0_459 = arith.constant 0 : index
    %628 = vector.load %arg5[%c4_456, %c0_457, %c0_458, %c0_459] : memref<5x8x256x256xbf16, #tpu.memory_space<vmem>>, vector<1x1x256x256xbf16>
    %629 = vector.shape_cast %628 : vector<1x1x256x256xbf16> to vector<256x256xbf16>
    %cst_460 = arith.constant dense<0.000000e+00> : vector<8x256xf32>
    %630 = tpu.matmul %627, %629, %cst_460 {dimension_numbers = #tpu.dot_dimension_numbers<[1], [0], [0], [1], [0, 0, 1, 1], [], []>} : vector<8x256xbf16>, vector<256x256xbf16>, vector<8x256xf32> -> vector<8x256xf32>
    %c4_461 = arith.constant 4 : index
    %c0_462 = arith.constant 0 : index
    %c0_463 = arith.constant 0 : index
    %c0_464 = arith.constant 0 : index
    %631 = vector.load %arg6[%c4_461, %c0_462, %c0_463, %c0_464] : memref<5x8x1x256xf32, #tpu.memory_space<vmem>>, vector<1x1x1x256xf32>
    %632 = vector.shape_cast %631 : vector<1x1x1x256xf32> to vector<1x256xf32>
    %633 = vector.broadcast %632 : vector<1x256xf32> to vector<8x256xf32>
    %634 = arith.addf %630, %633 : vector<8x256xf32>
    %cst_465 = arith.constant 5.000000e-01 : f32
    %635 = vector.broadcast %cst_465 : f32 to vector<8x256xf32>
    %636 = arith.mulf %635, %634 : vector<8x256xf32>
    %cst_466 = arith.constant 0.707106769 : f32
    %637 = vector.broadcast %cst_466 : f32 to vector<8x256xf32>
    %638 = arith.mulf %634, %637 : vector<8x256xf32>
    %639 = math.erf %638 : vector<8x256xf32>
    %cst_467 = arith.constant 1.000000e+00 : f32
    %640 = vector.broadcast %cst_467 : f32 to vector<8x256xf32>
    %641 = arith.addf %640, %639 : vector<8x256xf32>
    %642 = arith.mulf %636, %641 : vector<8x256xf32>
    %643 = arith.truncf %642 : vector<8x256xf32> to vector<8x256xbf16>
    %c4_468 = arith.constant 4 : index
    %c1_469 = arith.constant 1 : index
    %c0_470 = arith.constant 0 : index
    %c0_471 = arith.constant 0 : index
    %644 = vector.load %arg5[%c4_468, %c1_469, %c0_470, %c0_471] : memref<5x8x256x256xbf16, #tpu.memory_space<vmem>>, vector<1x1x256x256xbf16>
    %645 = vector.shape_cast %644 : vector<1x1x256x256xbf16> to vector<256x256xbf16>
    %cst_472 = arith.constant dense<0.000000e+00> : vector<8x256xf32>
    %646 = tpu.matmul %643, %645, %cst_472 {dimension_numbers = #tpu.dot_dimension_numbers<[1], [0], [0], [1], [0, 0, 1, 1], [], []>} : vector<8x256xbf16>, vector<256x256xbf16>, vector<8x256xf32> -> vector<8x256xf32>
    %c4_473 = arith.constant 4 : index
    %c1_474 = arith.constant 1 : index
    %c0_475 = arith.constant 0 : index
    %c0_476 = arith.constant 0 : index
    %647 = vector.load %arg6[%c4_473, %c1_474, %c0_475, %c0_476] : memref<5x8x1x256xf32, #tpu.memory_space<vmem>>, vector<1x1x1x256xf32>
    %648 = vector.shape_cast %647 : vector<1x1x1x256xf32> to vector<1x256xf32>
    %649 = vector.broadcast %648 : vector<1x256xf32> to vector<8x256xf32>
    %650 = arith.addf %646, %649 : vector<8x256xf32>
    %cst_477 = arith.constant 5.000000e-01 : f32
    %651 = vector.broadcast %cst_477 : f32 to vector<8x256xf32>
    %652 = arith.mulf %651, %650 : vector<8x256xf32>
    %cst_478 = arith.constant 0.707106769 : f32
    %653 = vector.broadcast %cst_478 : f32 to vector<8x256xf32>
    %654 = arith.mulf %650, %653 : vector<8x256xf32>
    %655 = math.erf %654 : vector<8x256xf32>
    %cst_479 = arith.constant 1.000000e+00 : f32
    %656 = vector.broadcast %cst_479 : f32 to vector<8x256xf32>
    %657 = arith.addf %656, %655 : vector<8x256xf32>
    %658 = arith.mulf %652, %657 : vector<8x256xf32>
    %659 = arith.truncf %658 : vector<8x256xf32> to vector<8x256xbf16>
    %c4_480 = arith.constant 4 : index
    %c2_481 = arith.constant 2 : index
    %c0_482 = arith.constant 0 : index
    %c0_483 = arith.constant 0 : index
    %660 = vector.load %arg5[%c4_480, %c2_481, %c0_482, %c0_483] : memref<5x8x256x256xbf16, #tpu.memory_space<vmem>>, vector<1x1x256x256xbf16>
    %661 = vector.shape_cast %660 : vector<1x1x256x256xbf16> to vector<256x256xbf16>
    %cst_484 = arith.constant dense<0.000000e+00> : vector<8x256xf32>
    %662 = tpu.matmul %659, %661, %cst_484 {dimension_numbers = #tpu.dot_dimension_numbers<[1], [0], [0], [1], [0, 0, 1, 1], [], []>} : vector<8x256xbf16>, vector<256x256xbf16>, vector<8x256xf32> -> vector<8x256xf32>
    %c4_485 = arith.constant 4 : index
    %c2_486 = arith.constant 2 : index
    %c0_487 = arith.constant 0 : index
    %c0_488 = arith.constant 0 : index
    %663 = vector.load %arg6[%c4_485, %c2_486, %c0_487, %c0_488] : memref<5x8x1x256xf32, #tpu.memory_space<vmem>>, vector<1x1x1x256xf32>
    %664 = vector.shape_cast %663 : vector<1x1x1x256xf32> to vector<1x256xf32>
    %665 = vector.broadcast %664 : vector<1x256xf32> to vector<8x256xf32>
    %666 = arith.addf %662, %665 : vector<8x256xf32>
    %cst_489 = arith.constant 5.000000e-01 : f32
    %667 = vector.broadcast %cst_489 : f32 to vector<8x256xf32>
    %668 = arith.mulf %667, %666 : vector<8x256xf32>
    %cst_490 = arith.constant 0.707106769 : f32
    %669 = vector.broadcast %cst_490 : f32 to vector<8x256xf32>
    %670 = arith.mulf %666, %669 : vector<8x256xf32>
    %671 = math.erf %670 : vector<8x256xf32>
    %cst_491 = arith.constant 1.000000e+00 : f32
    %672 = vector.broadcast %cst_491 : f32 to vector<8x256xf32>
    %673 = arith.addf %672, %671 : vector<8x256xf32>
    %674 = arith.mulf %668, %673 : vector<8x256xf32>
    %675 = arith.truncf %674 : vector<8x256xf32> to vector<8x256xbf16>
    %c4_492 = arith.constant 4 : index
    %c3_493 = arith.constant 3 : index
    %c0_494 = arith.constant 0 : index
    %c0_495 = arith.constant 0 : index
    %676 = vector.load %arg5[%c4_492, %c3_493, %c0_494, %c0_495] : memref<5x8x256x256xbf16, #tpu.memory_space<vmem>>, vector<1x1x256x256xbf16>
    %677 = vector.shape_cast %676 : vector<1x1x256x256xbf16> to vector<256x256xbf16>
    %cst_496 = arith.constant dense<0.000000e+00> : vector<8x256xf32>
    %678 = tpu.matmul %675, %677, %cst_496 {dimension_numbers = #tpu.dot_dimension_numbers<[1], [0], [0], [1], [0, 0, 1, 1], [], []>} : vector<8x256xbf16>, vector<256x256xbf16>, vector<8x256xf32> -> vector<8x256xf32>
    %c4_497 = arith.constant 4 : index
    %c3_498 = arith.constant 3 : index
    %c0_499 = arith.constant 0 : index
    %c0_500 = arith.constant 0 : index
    %679 = vector.load %arg6[%c4_497, %c3_498, %c0_499, %c0_500] : memref<5x8x1x256xf32, #tpu.memory_space<vmem>>, vector<1x1x1x256xf32>
    %680 = vector.shape_cast %679 : vector<1x1x1x256xf32> to vector<1x256xf32>
    %681 = vector.broadcast %680 : vector<1x256xf32> to vector<8x256xf32>
    %682 = arith.addf %678, %681 : vector<8x256xf32>
    %cst_501 = arith.constant 5.000000e-01 : f32
    %683 = vector.broadcast %cst_501 : f32 to vector<8x256xf32>
    %684 = arith.mulf %683, %682 : vector<8x256xf32>
    %cst_502 = arith.constant 0.707106769 : f32
    %685 = vector.broadcast %cst_502 : f32 to vector<8x256xf32>
    %686 = arith.mulf %682, %685 : vector<8x256xf32>
    %687 = math.erf %686 : vector<8x256xf32>
    %cst_503 = arith.constant 1.000000e+00 : f32
    %688 = vector.broadcast %cst_503 : f32 to vector<8x256xf32>
    %689 = arith.addf %688, %687 : vector<8x256xf32>
    %690 = arith.mulf %684, %689 : vector<8x256xf32>
    %691 = arith.truncf %690 : vector<8x256xf32> to vector<8x256xbf16>
    %c4_504 = arith.constant 4 : index
    %c4_505 = arith.constant 4 : index
    %c0_506 = arith.constant 0 : index
    %c0_507 = arith.constant 0 : index
    %692 = vector.load %arg5[%c4_504, %c4_505, %c0_506, %c0_507] : memref<5x8x256x256xbf16, #tpu.memory_space<vmem>>, vector<1x1x256x256xbf16>
    %693 = vector.shape_cast %692 : vector<1x1x256x256xbf16> to vector<256x256xbf16>
    %cst_508 = arith.constant dense<0.000000e+00> : vector<8x256xf32>
    %694 = tpu.matmul %691, %693, %cst_508 {dimension_numbers = #tpu.dot_dimension_numbers<[1], [0], [0], [1], [0, 0, 1, 1], [], []>} : vector<8x256xbf16>, vector<256x256xbf16>, vector<8x256xf32> -> vector<8x256xf32>
    %c4_509 = arith.constant 4 : index
    %c4_510 = arith.constant 4 : index
    %c0_511 = arith.constant 0 : index
    %c0_512 = arith.constant 0 : index
    %695 = vector.load %arg6[%c4_509, %c4_510, %c0_511, %c0_512] : memref<5x8x1x256xf32, #tpu.memory_space<vmem>>, vector<1x1x1x256xf32>
    %696 = vector.shape_cast %695 : vector<1x1x1x256xf32> to vector<1x256xf32>
    %697 = vector.broadcast %696 : vector<1x256xf32> to vector<8x256xf32>
    %698 = arith.addf %694, %697 : vector<8x256xf32>
    %cst_513 = arith.constant 5.000000e-01 : f32
    %699 = vector.broadcast %cst_513 : f32 to vector<8x256xf32>
    %700 = arith.mulf %699, %698 : vector<8x256xf32>
    %cst_514 = arith.constant 0.707106769 : f32
    %701 = vector.broadcast %cst_514 : f32 to vector<8x256xf32>
    %702 = arith.mulf %698, %701 : vector<8x256xf32>
    %703 = math.erf %702 : vector<8x256xf32>
    %cst_515 = arith.constant 1.000000e+00 : f32
    %704 = vector.broadcast %cst_515 : f32 to vector<8x256xf32>
    %705 = arith.addf %704, %703 : vector<8x256xf32>
    %706 = arith.mulf %700, %705 : vector<8x256xf32>
    %707 = arith.truncf %706 : vector<8x256xf32> to vector<8x256xbf16>
    %c4_516 = arith.constant 4 : index
    %c5_517 = arith.constant 5 : index
    %c0_518 = arith.constant 0 : index
    %c0_519 = arith.constant 0 : index
    %708 = vector.load %arg5[%c4_516, %c5_517, %c0_518, %c0_519] : memref<5x8x256x256xbf16, #tpu.memory_space<vmem>>, vector<1x1x256x256xbf16>
    %709 = vector.shape_cast %708 : vector<1x1x256x256xbf16> to vector<256x256xbf16>
    %cst_520 = arith.constant dense<0.000000e+00> : vector<8x256xf32>
    %710 = tpu.matmul %707, %709, %cst_520 {dimension_numbers = #tpu.dot_dimension_numbers<[1], [0], [0], [1], [0, 0, 1, 1], [], []>} : vector<8x256xbf16>, vector<256x256xbf16>, vector<8x256xf32> -> vector<8x256xf32>
    %c4_521 = arith.constant 4 : index
    %c5_522 = arith.constant 5 : index
    %c0_523 = arith.constant 0 : index
    %c0_524 = arith.constant 0 : index
    %711 = vector.load %arg6[%c4_521, %c5_522, %c0_523, %c0_524] : memref<5x8x1x256xf32, #tpu.memory_space<vmem>>, vector<1x1x1x256xf32>
    %712 = vector.shape_cast %711 : vector<1x1x1x256xf32> to vector<1x256xf32>
    %713 = vector.broadcast %712 : vector<1x256xf32> to vector<8x256xf32>
    %714 = arith.addf %710, %713 : vector<8x256xf32>
    %cst_525 = arith.constant 5.000000e-01 : f32
    %715 = vector.broadcast %cst_525 : f32 to vector<8x256xf32>
    %716 = arith.mulf %715, %714 : vector<8x256xf32>
    %cst_526 = arith.constant 0.707106769 : f32
    %717 = vector.broadcast %cst_526 : f32 to vector<8x256xf32>
    %718 = arith.mulf %714, %717 : vector<8x256xf32>
    %719 = math.erf %718 : vector<8x256xf32>
    %cst_527 = arith.constant 1.000000e+00 : f32
    %720 = vector.broadcast %cst_527 : f32 to vector<8x256xf32>
    %721 = arith.addf %720, %719 : vector<8x256xf32>
    %722 = arith.mulf %716, %721 : vector<8x256xf32>
    %723 = arith.truncf %722 : vector<8x256xf32> to vector<8x256xbf16>
    %c4_528 = arith.constant 4 : index
    %c6_529 = arith.constant 6 : index
    %c0_530 = arith.constant 0 : index
    %c0_531 = arith.constant 0 : index
    %724 = vector.load %arg5[%c4_528, %c6_529, %c0_530, %c0_531] : memref<5x8x256x256xbf16, #tpu.memory_space<vmem>>, vector<1x1x256x256xbf16>
    %725 = vector.shape_cast %724 : vector<1x1x256x256xbf16> to vector<256x256xbf16>
    %cst_532 = arith.constant dense<0.000000e+00> : vector<8x256xf32>
    %726 = tpu.matmul %723, %725, %cst_532 {dimension_numbers = #tpu.dot_dimension_numbers<[1], [0], [0], [1], [0, 0, 1, 1], [], []>} : vector<8x256xbf16>, vector<256x256xbf16>, vector<8x256xf32> -> vector<8x256xf32>
    %c4_533 = arith.constant 4 : index
    %c6_534 = arith.constant 6 : index
    %c0_535 = arith.constant 0 : index
    %c0_536 = arith.constant 0 : index
    %727 = vector.load %arg6[%c4_533, %c6_534, %c0_535, %c0_536] : memref<5x8x1x256xf32, #tpu.memory_space<vmem>>, vector<1x1x1x256xf32>
    %728 = vector.shape_cast %727 : vector<1x1x1x256xf32> to vector<1x256xf32>
    %729 = vector.broadcast %728 : vector<1x256xf32> to vector<8x256xf32>
    %730 = arith.addf %726, %729 : vector<8x256xf32>
    %cst_537 = arith.constant 5.000000e-01 : f32
    %731 = vector.broadcast %cst_537 : f32 to vector<8x256xf32>
    %732 = arith.mulf %731, %730 : vector<8x256xf32>
    %cst_538 = arith.constant 0.707106769 : f32
    %733 = vector.broadcast %cst_538 : f32 to vector<8x256xf32>
    %734 = arith.mulf %730, %733 : vector<8x256xf32>
    %735 = math.erf %734 : vector<8x256xf32>
    %cst_539 = arith.constant 1.000000e+00 : f32
    %736 = vector.broadcast %cst_539 : f32 to vector<8x256xf32>
    %737 = arith.addf %736, %735 : vector<8x256xf32>
    %738 = arith.mulf %732, %737 : vector<8x256xf32>
    %739 = arith.truncf %738 : vector<8x256xf32> to vector<8x256xbf16>
    %c4_540 = arith.constant 4 : index
    %c7_541 = arith.constant 7 : index
    %c0_542 = arith.constant 0 : index
    %c0_543 = arith.constant 0 : index
    %740 = vector.load %arg5[%c4_540, %c7_541, %c0_542, %c0_543] : memref<5x8x256x256xbf16, #tpu.memory_space<vmem>>, vector<1x1x256x256xbf16>
    %741 = vector.shape_cast %740 : vector<1x1x256x256xbf16> to vector<256x256xbf16>
    %cst_544 = arith.constant dense<0.000000e+00> : vector<8x256xf32>
    %742 = tpu.matmul %739, %741, %cst_544 {dimension_numbers = #tpu.dot_dimension_numbers<[1], [0], [0], [1], [0, 0, 1, 1], [], []>} : vector<8x256xbf16>, vector<256x256xbf16>, vector<8x256xf32> -> vector<8x256xf32>
    %c4_545 = arith.constant 4 : index
    %c7_546 = arith.constant 7 : index
    %c0_547 = arith.constant 0 : index
    %c0_548 = arith.constant 0 : index
    %743 = vector.load %arg6[%c4_545, %c7_546, %c0_547, %c0_548] : memref<5x8x1x256xf32, #tpu.memory_space<vmem>>, vector<1x1x1x256xf32>
    %744 = vector.shape_cast %743 : vector<1x1x1x256xf32> to vector<1x256xf32>
    %745 = vector.broadcast %744 : vector<1x256xf32> to vector<8x256xf32>
    %746 = arith.addf %742, %745 : vector<8x256xf32>
    %cst_549 = arith.constant 5.000000e-01 : f32
    %747 = vector.broadcast %cst_549 : f32 to vector<8x256xf32>
    %748 = arith.mulf %747, %746 : vector<8x256xf32>
    %cst_550 = arith.constant 0.707106769 : f32
    %749 = vector.broadcast %cst_550 : f32 to vector<8x256xf32>
    %750 = arith.mulf %746, %749 : vector<8x256xf32>
    %751 = math.erf %750 : vector<8x256xf32>
    %cst_551 = arith.constant 1.000000e+00 : f32
    %752 = vector.broadcast %cst_551 : f32 to vector<8x256xf32>
    %753 = arith.addf %752, %751 : vector<8x256xf32>
    %754 = arith.mulf %748, %753 : vector<8x256xf32>
    %755 = arith.truncf %754 : vector<8x256xf32> to vector<8x256xbf16>
    %c4_552 = arith.constant 4 : index
    %c0_553 = arith.constant 0 : index
    %c0_554 = arith.constant 0 : index
    %756 = vector.load %arg7[%c4_552, %c0_553, %c0_554] : memref<5x256x40xbf16, #tpu.memory_space<vmem>>, vector<1x256x40xbf16>
    %757 = vector.shape_cast %756 : vector<1x256x40xbf16> to vector<256x40xbf16>
    %cst_555 = arith.constant dense<0.000000e+00> : vector<8x40xf32>
    %758 = tpu.matmul %755, %757, %cst_555 {dimension_numbers = #tpu.dot_dimension_numbers<[1], [0], [0], [1], [0, 0, 1, 1], [], []>} : vector<8x256xbf16>, vector<256x40xbf16>, vector<8x40xf32> -> vector<8x40xf32>
    %c4_556 = arith.constant 4 : index
    %c0_557 = arith.constant 0 : index
    %c0_558 = arith.constant 0 : index
    %759 = vector.load %arg8[%c4_556, %c0_557, %c0_558] : memref<5x1x40xf32, #tpu.memory_space<vmem>>, vector<1x1x40xf32>
    %760 = vector.shape_cast %759 : vector<1x1x40xf32> to vector<1x40xf32>
    %761 = vector.broadcast %760 : vector<1x40xf32> to vector<8x40xf32>
    %762 = arith.addf %758, %761 : vector<8x40xf32>
    %763 = arith.addf %611, %762 : vector<8x40xf32>
    %c0_559 = arith.constant 0 : index
    %c0_560 = arith.constant 0 : index
    %764 = vector.load %arg17[%c0_559, %c0_560] : memref<8x40xf32, #tpu.memory_space<vmem>>, vector<8x40xf32>
    %765 = arith.addf %764, %763 : vector<8x40xf32>
    %c0_561 = arith.constant 0 : index
    %c0_562 = arith.constant 0 : index
    %766 = vector.load %arg17[%c0_561, %c0_562] : memref<8x40xf32, #tpu.memory_space<vmem>>, vector<8x40xf32>
    tpu.vector_store %arg17[%c0_561, %c0_562], %765 {strides = array<i32>} : memref<8x40xf32, #tpu.memory_space<vmem>>, vector<8x40xf32>,
    %c1_i32 = arith.constant 1 : i32
    %767 = arith.cmpi eq, %arg0, %c1_i32 : i32
    %768 = arith.extui %767 : i1 to i32
    %c0_i32_563 = arith.constant 0 : i32
    %769 = arith.cmpi ne, %768, %c0_i32_563 : i32
    scf.if %769 {
      %c0_564 = arith.constant 0 : index
      %c0_565 = arith.constant 0 : index
      %770 = vector.load %arg17[%c0_564, %c0_565] : memref<8x40xf32, #tpu.memory_space<vmem>>, vector<8x40xf32>
      %cst_566 = arith.constant 1.000000e-01 : f32
      %771 = vector.broadcast %cst_566 : f32 to vector<8x40xf32>
      %772 = arith.mulf %770, %771 : vector<8x40xf32>
      %c0_567 = arith.constant 0 : index
      %c0_568 = arith.constant 0 : index
      %773 = vector.load %arg9[%c0_567, %c0_568] : memref<1x40xf32, #tpu.memory_space<vmem>>, vector<1x40xf32>
      %774 = vector.broadcast %773 : vector<1x40xf32> to vector<8x40xf32>
      %775 = arith.mulf %772, %774 : vector<8x40xf32>
      %c0_569 = arith.constant 0 : index
      %c0_570 = arith.constant 0 : index
      %776 = vector.load %arg10[%c0_569, %c0_570] : memref<1x40xf32, #tpu.memory_space<vmem>>, vector<1x40xf32>
      %777 = vector.broadcast %776 : vector<1x40xf32> to vector<8x40xf32>
      %778 = arith.addf %775, %777 : vector<8x40xf32>
      %c0_571 = arith.constant 0 : index
      %c0_572 = arith.constant 0 : index
      %779 = vector.load %arg11[%c0_571, %c0_572] : memref<40x128xf32, #tpu.memory_space<vmem>>, vector<40x128xf32>
      %cst_573 = arith.constant dense<0.000000e+00> : vector<8x128xf32>
      %780 = tpu.matmul %778, %779, %cst_573 {dimension_numbers = #tpu.dot_dimension_numbers<[1], [0], [0], [1], [0, 0, 1, 1], [], []>} : vector<8x40xf32>, vector<40x128xf32>, vector<8x128xf32> -> vector<8x128xf32>
      %c0_574 = arith.constant 0 : index
      %c0_575 = arith.constant 0 : index
      %781 = vector.load %arg12[%c0_574, %c0_575] : memref<1x128xf32, #tpu.memory_space<vmem>>, vector<1x128xf32>
      %782 = vector.broadcast %781 : vector<1x128xf32> to vector<8x128xf32>
      %783 = arith.addf %780, %782 : vector<8x128xf32>
      %c0_576 = arith.constant 0 : index
      %c0_577 = arith.constant 0 : index
      %784 = vector.load %arg13[%c0_576, %c0_577] : memref<1x128xf32, #tpu.memory_space<vmem>>, vector<1x128xf32>
      %785 = vector.broadcast %784 : vector<1x128xf32> to vector<8x128xf32>
      %786 = arith.mulf %783, %785 : vector<8x128xf32>
      %c0_578 = arith.constant 0 : index
      %c0_579 = arith.constant 0 : index
      %787 = vector.load %arg14[%c0_578, %c0_579] : memref<1x128xf32, #tpu.memory_space<vmem>>, vector<1x128xf32>
      %788 = vector.broadcast %787 : vector<1x128xf32> to vector<8x128xf32>
      %789 = arith.addf %786, %788 : vector<8x128xf32>
      %cst_580 = arith.constant 2.30258512 : f32
      %790 = vector.broadcast %cst_580 : f32 to vector<8x128xf32>
      %791 = arith.mulf %789, %790 : vector<8x128xf32>
      %792 = math.exp %791 : vector<8x128xf32>
      %c0_581 = arith.constant 0 : index
      %c0_582 = arith.constant 0 : index
      %793 = vector.load %arg15[%c0_581, %c0_582] : memref<8x128xf32, #tpu.memory_space<vmem>>, vector<8x128xf32>
      tpu.vector_store %arg15[%c0_581, %c0_582], %792 {strides = array<i32>} : memref<8x128xf32, #tpu.memory_space<vmem>>, vector<8x128xf32>,
    } else {
    }
    return
  }
  func.func @transform_0(%arg0: i32) -> (i32, i32) {
    %c0_i32 = arith.constant 0 : i32
    %c0_i32_0 = arith.constant 0 : i32
    %c0_i32_1 = arith.constant 0 : i32
    return %c0_i32, %c0_i32_0 : i32, i32
  }
  func.func @transform_1(%arg0: i32) -> (i32, i32) {
    %c0_i32 = arith.constant 0 : i32
    %c0_i32_0 = arith.constant 0 : i32
    %c0_i32_1 = arith.constant 0 : i32
    return %c0_i32, %c0_i32_0 : i32, i32
  }
  func.func @transform_2(%arg0: i32) -> (i32, i32, i32) {
    %c0_i32 = arith.constant 0 : i32
    %c0_i32_0 = arith.constant 0 : i32
    %c0_i32_1 = arith.constant 0 : i32
    return %arg0, %c0_i32, %c0_i32_0 : i32, i32, i32
  }
  func.func @transform_3(%arg0: i32) -> (i32, i32, i32) {
    %c0_i32 = arith.constant 0 : i32
    %c0_i32_0 = arith.constant 0 : i32
    %c0_i32_1 = arith.constant 0 : i32
    return %arg0, %c0_i32, %c0_i32_0 : i32, i32, i32
  }
  func.func @transform_4(%arg0: i32) -> (i32, i32, i32, i32) {
    %c0_i32 = arith.constant 0 : i32
    %c0_i32_0 = arith.constant 0 : i32
    %c0_i32_1 = arith.constant 0 : i32
    %c0_i32_2 = arith.constant 0 : i32
    return %arg0, %c0_i32, %c0_i32_0, %c0_i32_1 : i32, i32, i32, i32
  }
  func.func @transform_5(%arg0: i32) -> (i32, i32, i32, i32) {
    %c0_i32 = arith.constant 0 : i32
    %c0_i32_0 = arith.constant 0 : i32
    %c0_i32_1 = arith.constant 0 : i32
    %c0_i32_2 = arith.constant 0 : i32
    return %arg0, %c0_i32, %c0_i32_0, %c0_i32_1 : i32, i32, i32, i32
  }
  func.func @transform_6(%arg0: i32) -> (i32, i32, i32) {
    %c0_i32 = arith.constant 0 : i32
    %c0_i32_0 = arith.constant 0 : i32
    %c0_i32_1 = arith.constant 0 : i32
    return %arg0, %c0_i32, %c0_i32_0 : i32, i32, i32
  }
  func.func @transform_7(%arg0: i32) -> (i32, i32, i32) {
    %c0_i32 = arith.constant 0 : i32
    %c0_i32_0 = arith.constant 0 : i32
    %c0_i32_1 = arith.constant 0 : i32
    return %arg0, %c0_i32, %c0_i32_0 : i32, i32, i32
  }
  func.func @transform_8(%arg0: i32) -> (i32, i32) {
    %c0_i32 = arith.constant 0 : i32
    %c0_i32_0 = arith.constant 0 : i32
    %c0_i32_1 = arith.constant 0 : i32
    return %c0_i32, %c0_i32_0 : i32, i32
  }
  func.func @transform_9(%arg0: i32) -> (i32, i32) {
    %c0_i32 = arith.constant 0 : i32
    %c0_i32_0 = arith.constant 0 : i32
    %c0_i32_1 = arith.constant 0 : i32
    return %c0_i32, %c0_i32_0 : i32, i32
  }
  func.func @transform_10(%arg0: i32) -> (i32, i32) {
    %c0_i32 = arith.constant 0 : i32
    %c0_i32_0 = arith.constant 0 : i32
    %c0_i32_1 = arith.constant 0 : i32
    return %c0_i32, %c0_i32_0 : i32, i32
  }
  func.func @transform_11(%arg0: i32) -> (i32, i32) {
    %c0_i32 = arith.constant 0 : i32
    %c0_i32_0 = arith.constant 0 : i32
    %c0_i32_1 = arith.constant 0 : i32
    return %c0_i32, %c0_i32_0 : i32, i32
  }
  func.func @transform_12(%arg0: i32) -> (i32, i32) {
    %c0_i32 = arith.constant 0 : i32
    %c0_i32_0 = arith.constant 0 : i32
    %c0_i32_1 = arith.constant 0 : i32
    return %c0_i32, %c0_i32_0 : i32, i32
  }
  func.func @transform_13(%arg0: i32) -> (i32, i32) {
    %c0_i32 = arith.constant 0 : i32
    %c0_i32_0 = arith.constant 0 : i32
    %c0_i32_1 = arith.constant 0 : i32
    return %c0_i32, %c0_i32_0 : i32, i32
  }
  func.func @transform_14(%arg0: i32) -> (i32, i32) {
    %c0_i32 = arith.constant 0 : i32
    %c0_i32_0 = arith.constant 0 : i32
    %c0_i32_1 = arith.constant 0 : i32
    return %c0_i32, %c0_i32_0 : i32, i32
  }
}

</mosaic_0001>

<bundles_post_ra>
// kernel: tpu_custom_call.1
= control target key start
LH: loop header
LB: loop body
LE: loop exit
PB: predicated region body
PF: predicated region fallthrough
CT: control target
= control target key end

     0   :  { %s20706_s0 = inlined_call_operand.hbm [shape: f32[8,20], index: 0, kind: input, shape index: {}]   ;;  %s20707_s1 = inlined_call_operand.hbm [shape: f32[1,20], index: 1, kind: input, shape index: {}]   ;;  %s20708_s2 = inlined_call_operand.hbm [shape: bf16[10,20,256], index: 2, kind: input, shape index: {}]   ;;  %s20709_s3 = inlined_call_operand.hbm [shape: f32[10,1,256], index: 3, kind: input, shape index: {}]   ;;  %s20710_s4 = inlined_call_operand.hbm [shape: bf16[10,8,256,256], index: 4, kind: input, shape index: {}]   ;;  %s20711_s5 = inlined_call_operand.hbm [shape: f32[10,8,1,256], index: 5, kind: input, shape index: {}]   ;;  %s20712_s6 = inlined_call_operand.vmem [shape: bf16[10,256,40], index: 6, kind: input, shape index: {}]   ;;  %s20713_s7 = inlined_call_operand.hbm [shape: f32[10,1,40], index: 7, kind: input, shape index: {}]   ;;  %s20714_s8 = inlined_call_operand.hbm [shape: f32[1,40], index: 8, kind: input, shape index: {}]   ;;  %s20715_s9 = inlined_call_operand.hbm [shape: f32[1,40], index: 9, kind: input, shape index: {}]   ;;  %s20716_s10 = inlined_call_operand.hbm [shape: f32[40,128], index: 10, kind: input, shape index: {}]   ;;  %s20717_s11 = inlined_call_operand.hbm [shape: f32[1,128], index: 11, kind: input, shape index: {}]   ;;  %s20718_s12 = inlined_call_operand.hbm [shape: f32[1,128], index: 12, kind: input, shape index: {}]   ;;  %s20719_s13 = inlined_call_operand.hbm [shape: f32[1,128], index: 13, kind: input, shape index: {}]   ;;  %s20720_s14 = inlined_call_operand.hbm [shape: f32[8,128], index: 14, kind: output, shape index: {}]  }
   0x1   :  { %20747 = sst [smem:[#allocation39_spill]] %s20706_s0 }
   0x2   :  { %20748 = sst [smem:[#allocation40_spill]] %s20707_s1 }
   0x3   :  { %20749 = sst [smem:[#allocation41_spill]] %s20708_s2 }
   0x4   :  { %20750 = sst [smem:[#allocation42_spill]] %s20709_s3 }
   0x5   :  { %20751 = sst [smem:[#allocation43_spill]] %s20712_s6 }
   0x6   :  { %20752 = sst [smem:[#allocation44_spill]] %s20720_s14 }
   0x7   :  { %19 = vsyncpa [#allocation5], 0 }
   0x8   :  { %20 = vsyncpa [#allocation8], 0 }
   0x9   :  { %21 = vsyncpa [#allocation16], 0 }
   0xa   :  { %22 = vsyncpa [#allocation19], 0 }
   0xb   :  { %23 = vsyncpa [#allocation22], 0 }
   0xc   :  { %24 = vsyncpa [#allocation6], 0  ;;  %s18766_s29 = smov 0   ;;  %s18768_s30 = smov 0  }
   0xd   :  { %s18770_s15 = smov 0   ;;  %s18772_s16 = smov 0  }
   0xe LB: > { %20753 = sst [smem:[#allocation32_spill]] %s18656_s30  ;;  %s18666_s17 = smov [#allocation4]   ;;  %s18664_s16 = sphi %s18772_s16, %s20802_s16   ;;  %s18660_s15 = sphi %s18770_s15, %s20805_s15   ;;  %s18656_s30 = sphi %s18768_s30, %s20804_s30   ;;  %s18652_s29 = sphi %s18766_s29, %s20803_s29  }
   0xf   : > { %20754 = sst [smem:[#allocation33_spill]] %s18660_s15  ;;  %s393_s18 = sshll.u32 %s18666_s17, 4  ;;  %s394_s18 = int_to_ptr.vmem [resolvable:$true] %s393_s18 }
  0x10   : > { %s18787_s19 = sadd.s32 4294967295, %s18664_s16   ;;  %p12840_p0 = scmp.ge.s32.totalorder %s18664_s16, 1 }
  0x11   : > { %20755 = sst [smem:[#allocation34_spill]] %s18787_s19  ;;  %p20727_p1 = scmp.eq.s32.totalorder %s18787_s19, 0 }
  0x12   : > { %p380_p2 = scmp.lt.s32.totalorder %s18664_s16, 3  ;;  %s18806_s22 = sadd.s32 1, %s18664_s16  }
  0x13   : > { %20759 = sst [smem:[#allocation36_spill]] %s18806_s22  ;;  %s76_s23 = ssub.s32 %s18664_s16, %s18806_s22 }
  0x14   : > { %p18793_p4 = pnand %p12840_p0, %p380_p2  ;;  %s18241_s25 = scalar_lea.vmem %s394_s18, 128 }
  0x15   : > { %p18242_p8 = scmp.ne.s32.totalorder %s394_s18, %s18241_s25  ;;  %p18249_p11 = scmp.lt.s32.totalorder %s394_s18, %s394_s18 }
  0x16   : > { %s20756_s20 = scalar_select %p18793_p4, 1, 0 }
  0x17   : > { %p15908_p5 = pneg %p18793_p4  ;;  %p18250_p12 = scmp.lt.s32.totalorder %s18241_s25, %s18241_s25 }
  0x18   : > { %20757 = sst [smem:[#allocation35_spill]] %s20756_s20 }
  0x19   : > { %p18801_p6 = pnand %p15908_p5, %p20727_p1  ;;  %p18251_p13 = por %p18250_p12, %p18249_p11 }
  0x1b   : > { %s20758_s21 = scalar_select %p18801_p6, 1, 0 }
  0x1c   : > { %p18812_p7 = pneg %p18801_p6 }
  0x1e   : > { %s20760_s24 = scalar_select %p18812_p7, 1, 0 }
  0x1f   : > { %p18244_p9 = pnand %p18242_p8, %p18812_p7 }
  0x21   : > { %p18245_p10 = pneg %p18244_p9 }
  0x23   : > { %p18252_p0 = pnand %p18251_p13, %p18245_p10 }
  0x25   : > { %18255 = shalt.err (!%p18252_p0)
}
  0x26   : > { %s20761_s0 = sld [smem:[#allocation39_spill]]  ;;  %p77_p2 = scmp.eq.s32.totalorder %s76_s23, 0 }
  0x27   : > { %s79_s28 = sadd.s32 1, %s18660_s15  ;;  %p86_p5 = scmp.ne.s32.totalorder %s18660_s15, %s18656_s30 }
  0x28   : > { %p87_p8 = scmp.eq.s32.totalorder %s18664_s16, 0  ;;  %p92_p10 = scmp.ne.s32.totalorder %s18656_s30, %s18652_s29 }
  0x29   : > { %s18828_s17 = scalar_select %p77_p2, %s18660_s15, %s79_s28  }
  0x2a   : > { %p88_p9 = por %p87_p8, %p86_p5  ;;  %p18834_p11 = por %p20727_p1, %p92_p10 }
  0x2b   : > { %20762 = sst [smem:[#allocation37_spill]] %s18828_s17  ;;  %p15957_p12 = scmp.lt.s32.totalorder %s18664_s16, 2 }
  0x2c   : > { %15911 = dma.hbm_to_vmem [thread:$0]  (!%p18801_p6), %s20761_s0, 128, %s394_s18, [#allocation5]  }
  0x2d   : > { %s20763_s25 = scalar_select %p18834_p11, 1, 0 }
  0x2e   : > { %s483_s26 = sand.u32 1, %s18664_s16   ;;  %s18841_s27 = sand.u32 1, %s18660_s15  }
  0x2f   : > { %20764 = sst [smem:[#allocation38_spill]] %s20763_s25  ;;  %s15851_s18 = smul.u32 120, %s18841_s27 }
  0x30   : > { %s15958_s23 = smul.u32 1920, %s18664_s16  ;;  %p18845_p13 = pnand %p15957_p12, %p88_p9 }
  0x31   : > { %s20766_s2 = sld [smem:[#allocation41_spill]]  ;;  %s487_s15 = scalar_lea.vmem [#allocation9], %s15851_s18 }
  0x32   : > { %s20765_s0 = scalar_select %p18845_p13, 1, 0 }
  0x33   : > { %s495_s14 = sshll.u32 %s487_s15, 4  ;;  %s18857_s6 = scalar_lea.sflag [#allocation5], %s483_s26  ;;  %s18855_s14 = int_to_ptr.vmem [resolvable:$true] %s495_s14 }
  0x34   : > { %p18863_p2 = pneg %p18845_p13 }
  0x37   : > { %s18853_s22 = scalar_lea.hbm %s20766_s2, %s15958_s23  ;;  %s18261_s18 = scalar_lea.hbm %s20766_s2, 3840 }
  0x38   : > { %s18256_s25 = scalar_lea.hbm %s18853_s22, 1920  ;;  %p18262_p9 = scmp.lt.s32.totalorder %s18853_s22, %s20766_s2 }
  0x39   : > { %p18257_p0 = scmp.ne.s32.totalorder %s18853_s22, %s18256_s25  ;;  %p18263_p10 = scmp.lt.s32.totalorder %s18261_s18, %s18256_s25 }
  0x3b   : > { %p18259_p5 = pnand %p18863_p2, %p18257_p0  ;;  %p18264_p12 = por %p18263_p10, %p18262_p9 }
  0x3d   : > { %p18260_p8 = pneg %p18259_p5 }
  0x3f   : > { %p18265_p3 = pnand %p18264_p12, %p18260_p8 }
  0x41   : > { %18268 = shalt.err (!%p18265_p3)
}
  0x42   : > { %s18269_s26 = scalar_lea.vmem %s18855_s14, 1920  ;;  %s18667_s28 = smov [#allocation9]  }
  0x43   : > { %p18270_p1 = scmp.ne.s32.totalorder %s18855_s14, %s18269_s26  ;;  %s18274_s17 = sshll.u32 %s18667_s28, 4  ;;  %s18275_s17 = int_to_ptr.vmem [resolvable:$false] %s18274_s17 }
  0x44   : > { %s18276_s23 = scalar_lea.vmem %s18275_s17, 3840  ;;  %p18277_p11 = scmp.lt.s32.totalorder %s18855_s14, %s18275_s17 }
  0x45   : > { %p18272_p0 = pnand %p18270_p1, %p18863_p2  ;;  %p18278_p4 = scmp.lt.s32.totalorder %s18276_s23, %s18269_s26 }
  0x47   : > { %p18273_p5 = pneg %p18272_p0  ;;  %p18279_p6 = por %p18278_p4, %p18277_p11 }
  0x49   : > { %p18280_p7 = pnand %p18279_p6, %p18273_p5 }
  0x4b   : > { %18283 = shalt.err (!%p18280_p7)
}
  0x4c   : > { %s20738_s25 = smov 128   ;;  %s20740_s18 = smov 8  }
  0x4d   : > { %15936 = dma.hbm_to_vmem [thread:$0]  (!%p18845_p13), %s18853_s22, 1920, %s18855_s14, %s18857_s6, %s20738_s25, %s20738_s25, %s20740_s18  }
  0x4e   : > { %s15719_s28 = smul.u32 160, %s18664_s16  ;;  %s20769_s3 = sld [smem:[#allocation42_spill]] }
  0x4f   : > { %s20768_s15 = smul.u32 10, %s18841_s27 }
  0x50   : > { %s15854_s19 = smul.u32 10240, %s18841_s27 }
  0x51   : > { %s509_s29 = scalar_lea.vmem [#allocation10], %s20768_s15 }
  0x52   : > { %s517_s26 = sshll.u32 %s509_s29, 4  ;;  %s18897_s26 = int_to_ptr.vmem [resolvable:$true] %s517_s26 }
  0x54   : > { %s18895_s2 = scalar_lea.hbm %s20769_s3, %s15719_s28  ;;  %s18289_s15 = scalar_lea.hbm %s20769_s3, 320 }
  0x55   : > { %s18284_s20 = scalar_lea.hbm %s18895_s2, 160  ;;  %p18290_p6 = scmp.lt.s32.totalorder %s18895_s2, %s20769_s3 }
  0x56   : > { %p18285_p1 = scmp.ne.s32.totalorder %s18895_s2, %s18284_s20  ;;  %p18291_p7 = scmp.lt.s32.totalorder %s18289_s15, %s18284_s20 }
  0x58   : > { %p18287_p3 = pnand %p18285_p1, %p18863_p2  ;;  %p18292_p11 = por %p18291_p7, %p18290_p6 }
  0x5a   : > { %p18288_p4 = pneg %p18287_p3 }
  0x5c   : > { %p18293_p8 = pnand %p18292_p11, %p18288_p4 }
  0x5e   : > { %18296 = shalt.err (!%p18293_p8)
}
  0x5f   : > { %s18297_s28 = scalar_lea.vmem %s18897_s26, 160  ;;  %s18670_s17 = smov [#allocation10]  }
  0x60   : > { %p18298_p9 = scmp.ne.s32.totalorder %s18897_s26, %s18297_s28  ;;  %s18302_s23 = sshll.u32 %s18670_s17, 4  ;;  %s18303_s23 = int_to_ptr.vmem [resolvable:$false] %s18302_s23 }
  0x61   : > { %s18304_s14 = scalar_lea.vmem %s18303_s23, 320  ;;  %p18305_p0 = scmp.lt.s32.totalorder %s18897_s26, %s18303_s23 }
  0x62   : > { %p18300_p10 = pnand %p18298_p9, %p18863_p2  ;;  %p18306_p5 = scmp.lt.s32.totalorder %s18304_s14, %s18297_s28 }
  0x64   : > { %p18301_p12 = pneg %p18300_p10  ;;  %p18307_p1 = por %p18306_p5, %p18305_p0 }
  0x66   : > { %p18308_p3 = pnand %p18307_p1, %p18301_p12 }
  0x68   : > { %18311 = shalt.err (!%p18308_p3)
}
  0x69   : > { %s20742_s20 = smov 32   ;;  %s20745_s25 = smov 2  }
  0x6a   : > { %15939 = dma.hbm_to_vmem [thread:$0]  (!%p18845_p13), %s18895_s2, 160, %s18897_s26, %s18857_s6, %s20742_s20, %s20742_s20, %s20745_s25  }
  0x6b   : > { %s15720_s22 = smul.u32 163840, %s18664_s16  ;;  %s531_s15 = scalar_lea.vmem [#allocation11], %s15854_s19 }
  0x6c   : > { %s539_s29 = sshll.u32 %s531_s15, 4  ;;  %s18317_s26 = scalar_lea.hbm %s20710_s4, 327680  ;;  %s540_s29 = int_to_ptr.vmem [resolvable:$true] %s539_s29 }
  0x6d   : > { %s18930_s23 = scalar_lea.hbm %s20710_s4, %s15720_s22 }
  0x6e   : > { %s18312_s14 = scalar_lea.hbm %s18930_s23, 163840  ;;  %p18318_p11 = scmp.lt.s32.totalorder %s18930_s23, %s20710_s4 }
  0x6f   : > { %p18313_p4 = scmp.ne.s32.totalorder %s18930_s23, %s18312_s14  ;;  %p18319_p8 = scmp.lt.s32.totalorder %s18317_s26, %s18312_s14 }
  0x71   : > { %p18315_p6 = pnand %p18313_p4, %p18863_p2  ;;  %p18320_p9 = por %p18319_p8, %p18318_p11 }
  0x73   : > { %p18316_p7 = pneg %p18315_p6 }
  0x75   : > { %p18321_p10 = pnand %p18320_p9, %p18316_p7 }
  0x77   : > { %18324 = shalt.err (!%p18321_p10)
}
  0x78   : > { %s18325_s22 = scalar_lea.vmem %s540_s29, 163840  ;;  %s18673_s28 = smov [#allocation11]  }
  0x79   : > { %p18326_p12 = scmp.ne.s32.totalorder %s540_s29, %s18325_s22  ;;  %s18330_s17 = sshll.u32 %s18673_s28, 4  ;;  %s18331_s17 = int_to_ptr.vmem [resolvable:$false] %s18330_s17 }
  0x7a   : > { %s18332_s20 = scalar_lea.vmem %s18331_s17, 327680  ;;  %p18333_p1 = scmp.lt.s32.totalorder %s540_s29, %s18331_s17 }
  0x7b   : > { %p18328_p0 = pnand %p18326_p12, %p18863_p2  ;;  %p18334_p3 = scmp.lt.s32.totalorder %s18332_s20, %s18325_s22 }
  0x7d   : > { %p18329_p5 = pneg %p18328_p0  ;;  %p18335_p4 = por %p18334_p3, %p18333_p1 }
  0x7f   : > { %p18336_p6 = pnand %p18335_p4, %p18329_p5 }
  0x81   : > { %18339 = shalt.err (!%p18336_p6)
}
  0x82   : > { %s20770_s18 = smov 8   ;;  %s20771_s14 = smov 128  }
  0x83   : > { %15942 = dma.hbm_to_vmem [thread:$0]  (!%p18845_p13), %s18930_s23, 163840, %s540_s29, %s18857_s6, %s20771_s14, %s20771_s14, %s20770_s18  }
  0x84   : > { %s18674_s2 = smov [#allocation7]   ;;  %s18675_s19 = smov [#allocation15]  }
  0x85   : > { %s404_s26 = sshll.u32 %s18674_s2, 4  ;;  %s426_s15 = sshll.u32 %s18675_s19, 4  ;;  %s405_s26 = int_to_ptr.vmem [resolvable:$true] %s404_s26  ;;  %s427_s15 = int_to_ptr.vmem [resolvable:$true] %s426_s15 }
  0x86   : > { %s18351_s28 = scalar_lea.vmem %s405_s26, 16  ;;  %p20772_p11 = scmp.ne.s32.totalorder %s20760_s24, 0 }
  0x87   : > { %p18352_p7 = scmp.ne.s32.totalorder %s405_s26, %s18351_s28  ;;  %s18358_s20 = scalar_lea.vmem %s405_s26, 32 }
  0x88   : > { %p18359_p10 = scmp.lt.s32.totalorder %s405_s26, %s405_s26  ;;  %p18360_p12 = scmp.lt.s32.totalorder %s18358_s20, %s18351_s28 }
  0x89   : > { %p18354_p8 = pnand %p18352_p7, %p20772_p11 }
  0x8a   : > { %p18361_p0 = por %p18360_p12, %p18359_p10 }
  0x8b   : > { %p18355_p9 = pneg %p18354_p8 }
  0x8d   : > { %p18362_p5 = pnand %p18361_p0, %p18355_p9 }
  0x8f   : > { %18365 = shalt.err (!%p18362_p5)
}
  0x90   : > { %p20773_p1 = scmp.ne.s32.totalorder %s20758_s21, 0  ;;  %s20774_s1 = sld [smem:[#allocation40_spill]] }
  0x91   : > { %s18377_s23 = scalar_lea.vmem %s427_s15, 16  ;;  %s18384_s17 = scalar_lea.vmem %s427_s15, 32 }
  0x92   : > { %p18378_p3 = scmp.ne.s32.totalorder %s427_s15, %s18377_s23  ;;  %p18385_p7 = scmp.lt.s32.totalorder %s427_s15, %s427_s15 }
  0x93   : > { %p18386_p8 = scmp.lt.s32.totalorder %s18384_s17, %s18377_s23 }
  0x94   : > { %p18380_p4 = pnand %p18378_p3, %p20772_p11 }
  0x95   : > { %p18387_p13 = por %p18386_p8, %p18385_p7 }
  0x96   : > { %15914 = dma.hbm_to_vmem [thread:$0]  (!%p20773_p1), %s20774_s1, 16, %s405_s26, [#allocation8]  }
  0x97   : > { %p18381_p6 = pneg %p18380_p4 }
  0x99   : > { %p18388_p10 = pnand %p18387_p13, %p18381_p6 }
  0x9b   : > { %18391 = shalt.err (!%p18388_p10)
}
  0x9c   : > { %15920 = dma.hbm_to_vmem [thread:$0]  (!%p20773_p1), %s20715_s9, 16, %s427_s15, [#allocation16]  }
  0x9d   : > { %s18676_s26 = smov [#allocation18]   ;;  %s15855_s20 = smul.u32 80, %s18841_s27 }
  0x9e   : > { %s450_s28 = sshll.u32 %s18676_s26, 4  ;;  %s15721_s22 = smul.u32 1280, %s18664_s16  ;;  %s451_s28 = int_to_ptr.vmem [resolvable:$true] %s450_s28 }
  0x9f   : > { %s18403_s29 = scalar_lea.vmem %s451_s28, 16  ;;  %s18410_s23 = scalar_lea.vmem %s451_s28, 32 }
  0xa0   : > { %p18404_p9 = scmp.ne.s32.totalorder %s451_s28, %s18403_s29  ;;  %p18411_p0 = scmp.lt.s32.totalorder %s451_s28, %s451_s28 }
  0xa1   : > { %p18412_p5 = scmp.lt.s32.totalorder %s18410_s23, %s18403_s29 }
  0xa2   : > { %p18406_p12 = pnand %p18404_p9, %p20772_p11 }
  0xa3   : > { %p18413_p3 = por %p18412_p5, %p18411_p0 }
  0xa4   : > { %p18407_p13 = pneg %p18406_p12 }
  0xa6   : > { %p18414_p4 = pnand %p18413_p3, %p18407_p13 }
  0xa8   : > { %18417 = shalt.err (!%p18414_p4)
}
  0xa9   : > { %15926 = dma.hbm_to_vmem [thread:$0]  (!%p20773_p1), %s20717_s11, 16, %s451_s28, [#allocation19]  }
  0xaa   : > { %s18978_s26 = scalar_lea.hbm %s20711_s5, %s15721_s22  ;;  %s553_s25 = scalar_lea.vmem [#allocation12], %s15855_s20 }
  0xab   : > { %s561_s29 = sshll.u32 %s553_s25, 4  ;;  %s18677_s23 = smov [#allocation14]   ;;  %s18980_s29 = int_to_ptr.vmem [resolvable:$true] %s561_s29 }
  0xac   : > { %s18982_s1 = sshll.u32 %s18677_s23, 4  ;;  %s18418_s3 = scalar_lea.hbm %s18978_s26, 1280  ;;  %s416_s1 = int_to_ptr.vmem [resolvable:$true] %s18982_s1 }
  0xad   : > { %p18419_p6 = scmp.ne.s32.totalorder %s18978_s26, %s18418_s3  ;;  %s18423_s22 = scalar_lea.hbm %s20711_s5, 2560 }
  0xae   : > { %p18424_p10 = scmp.lt.s32.totalorder %s18978_s26, %s20711_s5  ;;  %p18425_p9 = scmp.lt.s32.totalorder %s18423_s22, %s18418_s3 }
  0xaf   : > { %p18421_p7 = pnand %p18419_p6, %p18863_p2 }
  0xb0   : > { %p18426_p12 = por %p18425_p9, %p18424_p10 }
  0xb1   : > { %p18422_p8 = pneg %p18421_p7 }
  0xb3   : > { %p18427_p13 = pnand %p18426_p12, %p18422_p8 }
  0xb5   : > { %18430 = shalt.err (!%p18427_p13)
}
  0xb6   : > { %s18431_s25 = scalar_lea.vmem %s18980_s29, 1280  ;;  %s18678_s20 = smov [#allocation12]  }
  0xb7   : > { %p18432_p0 = scmp.ne.s32.totalorder %s18980_s29, %s18431_s25  ;;  %s18436_s19 = sshll.u32 %s18678_s20, 4  ;;  %s18437_s19 = int_to_ptr.vmem [resolvable:$false] %s18436_s19 }
  0xb8   : > { %s18438_s23 = scalar_lea.vmem %s18437_s19, 2560  ;;  %p18439_p4 = scmp.lt.s32.totalorder %s18980_s29, %s18437_s19 }
  0xb9   : > { %p18434_p5 = pnand %p18432_p0, %p18863_p2  ;;  %p18440_p6 = scmp.lt.s32.totalorder %s18438_s23, %s18431_s25 }
  0xbb   : > { %p18435_p3 = pneg %p18434_p5  ;;  %p18441_p7 = por %p18440_p6, %p18439_p4 }
  0xbd   : > { %p18442_p1 = pnand %p18441_p7, %p18435_p3 }
  0xbf   : > { %18445 = shalt.err (!%p18442_p1)
}
  0xc0   : > { %p20775_p8 = scmp.ne.s32.totalorder %s20765_s0, 0  ;;  %s20776_s3 = smov 2  }
  0xc1   : > { %s20777_s28 = smov 32   ;;  %s18457_s17 = scalar_lea.vmem %s416_s1, 16 }
  0xc2   : > { %15945 = dma.hbm_to_vmem [thread:$0]  (!%p20775_p8), %s18978_s26, 1280, %s18980_s29, %s18857_s6, %s20777_s28, %s20777_s28, %s20776_s3  }
  0xc3   : > { %p18458_p10 = scmp.ne.s32.totalorder %s416_s1, %s18457_s17  ;;  %s18464_s22 = scalar_lea.vmem %s416_s1, 32 }
  0xc4   : > { %p18465_p13 = scmp.lt.s32.totalorder %s416_s1, %s416_s1  ;;  %p18466_p1 = scmp.lt.s32.totalorder %s18464_s22, %s18457_s17 }
  0xc5   : > { %p18460_p9 = pnand %p18458_p10, %p20772_p11 }
  0xc6   : > { %p18467_p0 = por %p18466_p1, %p18465_p13 }
  0xc7   : > { %p18461_p12 = pneg %p18460_p9 }
  0xc9   : > { %p18468_p5 = pnand %p18467_p0, %p18461_p12 }
  0xcb   : > { %18471 = shalt.err (!%p18468_p5)
}
  0xcc   : > { %p20778_p3 = scmp.ne.s32.totalorder %s20758_s21, 0  ;;  %s18679_s26 = smov [#allocation17]  }
  0xcd   : > { %s436_s29 = sshll.u32 %s18679_s26, 4  ;;  %s18680_s25 = smov [#allocation20]   ;;  %s437_s29 = int_to_ptr.vmem [resolvable:$true] %s436_s29 }
  0xce   : > { %15917 = dma.hbm_to_vmem [thread:$0]  (!%p20778_p3), %s20714_s8, 16, %s416_s1, [#allocation8]  }
  0xcf   : > { %s461_s20 = sshll.u32 %s18680_s25, 4  ;;  %s18483_s19 = scalar_lea.vmem %s437_s29, 640  ;;  %s462_s20 = int_to_ptr.vmem [resolvable:$true] %s461_s20 }
  0xd0   : > { %p18484_p4 = scmp.ne.s32.totalorder %s437_s29, %s18483_s19  ;;  %p18491_p10 = scmp.lt.s32.totalorder %s437_s29, %s437_s29 }
  0xd1   : > { %p18492_p9 = scmp.lt.s32.totalorder %s18483_s19, %s18483_s19 }
  0xd2   : > { %p18486_p6 = pnand %p18484_p4, %p20772_p11 }
  0xd3   : > { %p18493_p12 = por %p18492_p9, %p18491_p10 }
  0xd4   : > { %p18487_p7 = pneg %p18486_p6 }
  0xd6   : > { %p18494_p13 = pnand %p18493_p12, %p18487_p7 }
  0xd8   : > { %18497 = shalt.err (!%p18494_p13)
}
  0xd9   : > { %15923 = dma.hbm_to_vmem [thread:$0]  (!%p20778_p3), %s20716_s10, 640, %s437_s29, [#allocation16], %s20771_s14, %s20771_s14, %s20770_s18  }
  0xda   : > { %s18509_s3 = scalar_lea.vmem %s462_s20, 16  ;;  %s18516_s28 = scalar_lea.vmem %s462_s20, 32 }
  0xdb   : > { %p18510_p1 = scmp.ne.s32.totalorder %s462_s20, %s18509_s3  ;;  %p18517_p4 = scmp.lt.s32.totalorder %s462_s20, %s462_s20 }
  0xdc   : > { %p18518_p6 = scmp.lt.s32.totalorder %s18516_s28, %s18509_s3 }
  0xdd   : > { %p18512_p0 = pnand %p18510_p1, %p20772_p11 }
  0xde   : > { %p18519_p7 = por %p18518_p6, %p18517_p4 }
  0xdf   : > { %p18513_p5 = pneg %p18512_p0 }
  0xe1   : > { %p18520_p10 = pnand %p18519_p7, %p18513_p5 }
  0xe3   : > { %18523 = shalt.err (!%p18520_p10)
}
  0xe4   : > { %15929 = dma.hbm_to_vmem [thread:$0]  (!%p20778_p3), %s20718_s12, 16, %s462_s20, [#allocation19]  }
  0xe5   : > { %s18681_s18 = smov [#allocation21]   ;;  %s15856_s15 = smul.u32 5, %s18841_s27 }
  0xe6   : > { %s472_s14 = sshll.u32 %s18681_s18, 4  ;;  %s15717_s2 = smul.u32 80, %s18664_s16  ;;  %s473_s14 = int_to_ptr.vmem [resolvable:$true] %s472_s14 }
  0xe7   : > { %s18535_s26 = scalar_lea.vmem %s473_s14, 16  ;;  %s18542_s29 = scalar_lea.vmem %s473_s14, 32 }
  0xe8   : > { %p18536_p9 = scmp.ne.s32.totalorder %s473_s14, %s18535_s26  ;;  %p18543_p1 = scmp.lt.s32.totalorder %s473_s14, %s473_s14 }
  0xe9   : > { %p18544_p0 = scmp.lt.s32.totalorder %s18542_s29, %s18535_s26 }
  0xea   : > { %p18538_p12 = pnand %p18536_p9, %p20772_p11 }
  0xeb   : > { %p18545_p5 = por %p18544_p0, %p18543_p1 }
  0xec   : > { %p18539_p13 = pneg %p18538_p12 }
  0xee   : > { %p18546_p4 = pnand %p18545_p5, %p18539_p13 }
  0xf0   : > { %18549 = shalt.err (!%p18546_p4)
}
  0xf1   : > { %15932 = dma.hbm_to_vmem [thread:$0]  (!%p20778_p3), %s20719_s13, 16, %s473_s14, [#allocation22]  }
  0xf2   : > { %s19045_s19 = scalar_lea.hbm %s20713_s7, %s15717_s2  ;;  %s585_s24 = scalar_lea.vmem [#allocation13], %s15856_s15 }
  0xf3   : > { %s592_s1 = sshll.u32 %s585_s24, 4  ;;  %s18550_s23 = scalar_lea.hbm %s19045_s19, 80  ;;  %s19047_s1 = int_to_ptr.vmem [resolvable:$true] %s592_s1 }
  0xf4   : > { %p18551_p11 = scmp.ne.s32.totalorder %s19045_s19, %s18550_s23  ;;  %s18555_s28 = scalar_lea.hbm %s20713_s7, 160 }
  0xf5   : > { %p18556_p3 = scmp.lt.s32.totalorder %s19045_s19, %s20713_s7  ;;  %p18557_p10 = scmp.lt.s32.totalorder %s18555_s28, %s18550_s23 }
  0xf6   : > { %p18553_p6 = pnand %p18551_p11, %p18863_p2 }
  0xf7   : > { %p18558_p9 = por %p18557_p10, %p18556_p3 }
  0xf8   : > { %p18554_p7 = pneg %p18553_p6 }
  0xfa   : > { %p18559_p12 = pnand %p18558_p9, %p18554_p7 }
  0xfc   : > { %18562 = shalt.err (!%p18559_p12)
}
  0xfd   : > { %s18563_s18 = scalar_lea.vmem %s19047_s1, 80  ;;  %s18682_s14 = smov [#allocation13]  }
  0xfe   : > { %p18564_p13 = scmp.ne.s32.totalorder %s19047_s1, %s18563_s18  ;;  %s18568_s15 = sshll.u32 %s18682_s14, 4  ;;  %s18569_s15 = int_to_ptr.vmem [resolvable:$false] %s18568_s15 }
  0xff   : > { %s18570_s2 = scalar_lea.vmem %s18569_s15, 160  ;;  %p18571_p5 = scmp.lt.s32.totalorder %s19047_s1, %s18569_s15 }
 0x100   : > { %p18566_p1 = pnand %p18564_p13, %p18863_p2  ;;  %p18572_p4 = scmp.lt.s32.totalorder %s18570_s2, %s18563_s18 }
 0x102   : > { %p18567_p0 = pneg %p18566_p1  ;;  %p18573_p11 = por %p18572_p4, %p18571_p5 }
 0x104   : > { %p18574_p6 = pnand %p18573_p11, %p18567_p0 }
 0x106   : > { %18577 = shalt.err (!%p18574_p6)
}
 0x107   : > { %s18683_s26 = smov 16   ;;  %s18684_s29 = smov 1  }
 0x108   : > { %15948 = dma.hbm_to_vmem [thread:$0]  (!%p20775_p8), %s19045_s19, 80, %s19047_s1, %s18857_s6, %s18683_s26, %s18683_s26, %s18684_s29  }
 0x109   : > { %s20779_s30 = sld [smem:[#allocation35_spill]] }
 0x10f   : > { %p20780_p2 = scmp.ne.s32.totalorder %s20779_s30, 0 }
 0x110   : > { %s20781_s25 = sld [smem:[#allocation34_spill]] (!%p20780_p2) }
 0x111   : > { %604 = sbr.rel (%p20780_p2) target bundleno = 10084 (0x2764), region = 76 }
 0x116   : > { %p20782_p7 = scmp.eq.s32.totalorder %s20781_s25, 0 }
 0x118   : > { %18619 = dma.done.wait (%p20782_p7), [#allocation5], 128   ;;  %p20783_p3 = pmov %p20782_p7 }
 0x11a   : > { %18621 = vsyncadd (%p20783_p3), [#allocation5], 4294967168  ;;  %p20784_p10 = pmov %p20783_p3 }
 0x11b   : > { %p20785_p9 = pmov %p20783_p3 }
 0x11c   : > { %18623 = dma.done.wait (%p20784_p10), [#allocation8], 16  }
 0x11d   : > { %18625 = vsyncadd (%p20785_p9), [#allocation8], 4294967280  ;;  %s20786_s20 = sld [smem:[#allocation32_spill]]  ;;  %s614_s0 = sand.u32 1, %s20781_s25  }
 0x11e   : > { %s20787_s27 = sld [smem:[#allocation38_spill]]  ;;  %s615_s19 = scalar_lea.sflag [#allocation5], %s614_s0 }
 0x123   : > { %s616_s6 = sand.u32 1, %s20786_s20  }
 0x124   : > { %s15857_s16 = smul.u32 120, %s616_s6  ;;  %p20788_p8 = scmp.ne.s32.totalorder %s20787_s27, 0 }
 0x126   : > { %s19082_s24 = scalar_lea.vmem [#allocation9], %s15857_s16 }
 0x127   : > { %18627 = dma.done.wait (%p20788_p8), %s615_s19, 167280  }
 0x128   : > { %18629 = vsyncadd (%p20788_p8), %s615_s19, 4294800016  ;;  %s15858_s1 = smul.u32 10, %s616_s6  ;;  %p20789_p12 = pmov %p20783_p3 }
 0x129   : > { %s15859_s23 = smul.u32 10240, %s616_s6 }
 0x12a   : > { %s15860_s21 = smul.u32 80, %s616_s6  ;;  %s19088_s28 = scalar_lea.vmem [#allocation10], %s15858_s1 }
 0x12b   : > { %s15861_s3 = smul.u32 5, %s616_s6  ;;  %s19090_s17 = scalar_lea.vmem [#allocation11], %s15859_s23 }
 0x12c   : > { %s19092_s22 = scalar_lea.vmem [#allocation12], %s15860_s21 }
 0x12d   : > { %s19094_s18 = scalar_lea.vmem [#allocation13], %s15861_s3 }
 0x12e   : > { %18631 = dma.done.wait (%p20789_p12), [#allocation8], 16   ;;  %p20790_p13 = pmov %p20783_p3 }
 0x12f   : > { %p20791_p1 = pmov %p20783_p3 }
 0x130   : > { %18633 = vsyncadd (%p20790_p13), [#allocation8], 4294967280 }
 0x131   : > { %18635 = dma.done.wait (%p20791_p1), [#allocation16], 656   ;;  %p20792_p0 = pmov %p20791_p1 }
 0x133   : > { %18637 = vsyncadd (%p20792_p0), [#allocation16], 4294966640  ;;  %p20793_p5 = pmov %p20792_p0 }
 0x134   : > { %p20794_p4 = pmov %p20792_p0 }
 0x135   : > { %18639 = dma.done.wait (%p20793_p5), [#allocation19], 32  }
 0x136   : > { %18641 = vsyncadd (%p20794_p4), [#allocation19], 4294967264  ;;  %p20795_p11 = pmov %p20792_p0 }
 0x137   : > { %p20796_p6 = pmov %p20792_p0 }
 0x138   : > { %18643 = dma.done.wait (%p20795_p11), [#allocation22], 16  }
 0x139   : > { %18645 = vsyncadd (%p20796_p6), [#allocation22], 4294967280  ;;  %s748_s14 = smul.u32 5, %s20781_s25  ;;  %s20797_s29 = sld [smem:[#allocation43_spill]] }
 0x13a   : > { %p20798_p7 = scmp.ne.s32.totalorder %s20781_s25, 0 }
 0x13b   : > { %p749_p2 = scmp.lt.s32.totalorder %s748_s14, 9 }
 0x13c   : > { %760 = sbr.rel (%p20798_p7) target bundleno = 342 (0x156), region = 132 }
 0x13d   : > { %s20807_s14 = smov (!%p749_p2, %s748_s14), 9 }
 0x13e   : > { %s15718_s15 = sshll.u32 %s20807_s14, 7 }
 0x13f   : > { %s19116_s30 = scalar_lea.vmem %s20797_s29, %s15718_s15 }
 0x141   : > { %v761_v0 = vld [vmem:[#allocation4] sm:$0xff]  ;;  %v768_v1 = vlaneseq  ;;  %vm776_vm0 = vcmask 326656   ;;  %v18685_v2 = vmov 0.0   ;;  %v762_v3 = vld [vmem:[#allocation7] sm:$0x1]  ;;  %v18686_v6 = vmov 0  }
 0x142   : > { %16021 = vlog2.f32 %v761_v0  ;;  %777 = vst.msk [vmem:[#allocation3] sm:$0xff] %vm776_vm0, %v18685_v2  ;;  %vm763_vm1 = vcmp.gt.f32.partialorder %v762_v3, 0.0  ;;  %vm774_vm3 = vcmask 162816  }
 0x143   : > { %v769_v4 = vshrl.u32 %v768_v1, 7  ;;  %v767_v7 = vsel %vm763_vm1, 1, %v18686_v6 }
 0x145   : > { %v770_v5 = vsub.s32 0, %v769_v4 }
 0x147   : > { %v771_v8 = vrot.slane %v767_v7, %v770_v5 }
 0x149   : > { %vm772_vm2 = vcmp.eq.s32.totalorder %v771_v8, 1 }
 0x14f   : > { %v16022_v9 = vpop.eup %16021 }
 0x150   : > { %v765_v10 = vmul.f32 0.6931472, %v16022_v9 }
 0x152   : > { %v766_v11 = vmul.f32 0.4342945, %v765_v10 }
 0x154   : > { %v773_v12 = vsel %vm772_vm2, %v766_v11, %v761_v0 }
 0x155   : > { %775 = vst.msk [vmem:[#allocation2] sm:$0xff] %vm774_vm3, %v773_v12 }
 0x156 PF: > { %v782_v13 = vld [vmem:[%s19082_s24 + $0x10] sm:$0x33]  ;;  %vm814_vm4 = vcmask 1041408   ;;  %v16025_v16 = vld [vmem:[%s19082_s24 + $0x4] ss:$8 sps:$4 sm:$0xff]   ;;  %v18687_v17 = vmov 0   ;;  %v785_v8 = vlaneseq }
 0x157   : > { %v12873_v14 = vcombine.high %v782_v13, %v782_v13  ;;  %v12872_v15 = vcombine.low %v782_v13, %v782_v13  ;;  %853 = vmatprep.mubr.bf16.mxu0 %v18687_v17  ;;  %v16027_v18 = vld [vmem:[%s19082_s24] ss:$8 sps:$4 sm:$0xff]   ;;  %v16030_v21 = vld [vmem:[%s19090_s17 + $0x70] ss:$8 sps:$4 sm:$0xff]   ;;  %v16033_v24 = vld [vmem:[%s19090_s17 + $0x60] ss:$8 sps:$4 sm:$0xff]  }
 0x158   : > { %v16028_v19 = vld [vmem:[%s19090_s17 + $0x74] ss:$8 sps:$4 sm:$0xff]   ;;  %v16031_v23 = vld [vmem:[%s19090_s17 + $0x64] ss:$8 sps:$4 sm:$0xff]   ;;  %vm810_vm5 = vcmask 162816   ;;  %v786_v9 = vshrl.u32 %v785_v8, 7 }
 0x159   : > { %12874 = vmatprep.subr.msk.bf16.mxu0 %vm814_vm4, %v12873_v14  ;;  %v816_v20 = vsel %vm814_vm4, %v12872_v15, 0  ;;  %1078 = vmatprep.subr.bf16.mxu1 %v16028_v19  ;;  %v16034_v25 = vld [vmem:[%s19090_s17 + $0x54] ss:$8 sps:$4 sm:$0xff]   ;;  %v16036_v27 = vld [vmem:[%s19090_s17 + $0x50] ss:$8 sps:$4 sm:$0xff]   ;;  %vm12485_vm6 = vcmask 326656  }
 0x15a   : > { %834 = vmatpush1.bf16.msra.mxu0 %v816_v20  ;;  %1079 = vmatpush1.bf16.msra.mxu1 %v16030_v21  ;;  %v16037_v28 = vld [vmem:[%s19090_s17 + $0x44] ss:$8 sps:$4 sm:$0xff]   ;;  %v16039_v29 = vld [vmem:[%s19090_s17 + $0x40] ss:$8 sps:$4 sm:$0xff]   ;;  %v16040_v30 = vld [vmem:[%s19090_s17 + $0x34] ss:$8 sps:$4 sm:$0xff]  }
 0x15b   : > { %835 = vmatprep.subr.bf16.mxu0 %v16025_v16  ;;  %1080 = vmatprep.subr.bf16.mxu1 %v16031_v23  ;;  %v16042_v31 = vld [vmem:[%s19090_s17 + $0x30] ss:$8 sps:$4 sm:$0xff]   ;;  %v16043_v32 = vld [vmem:[%s19090_s17 + $0x24] ss:$8 sps:$4 sm:$0xff]   ;;  %v16045_v33 = vld [vmem:[%s19090_s17 + $0x20] ss:$8 sps:$4 sm:$0xff]  }
 0x15c   : > { %v778_v22 = vld [vmem:[#allocation2] sm:$0xff]  ;;  %v16046_v34 = vld [vmem:[%s19090_s17 + $0x14] ss:$8 sps:$4 sm:$0xff]   ;;  %v16048_v35 = vld [vmem:[%s19090_s17 + $0x10] ss:$8 sps:$4 sm:$0xff]   ;;  %v19181_v11 = vsub.s32 0, %v786_v9 }
 0x15d   : > { %v19131_v26 = vpack.c.bf16 %v778_v22, %v778_v22  ;;  %v16049_v36 = vld [vmem:[%s19090_s17 + $0x4] ss:$8 sps:$4 sm:$0xff]   ;;  %v16051_v37 = vld [vmem:[%s19090_s17] ss:$8 sps:$4 sm:$0xff]   ;;  %v16052_v38 = vld [vmem:[%s19090_s17 + $0xf4] ss:$8 sps:$4 sm:$0xff]  }
 0x15e   : > { %836 = vmatpush1.bf16.msra.mxu0 %v16027_v18  ;;  %1081 = vmatpush1.bf16.msra.mxu1 %v16033_v24  ;;  %v16054_v39 = vld [vmem:[%s19090_s17 + $0xf0] ss:$8 sps:$4 sm:$0xff]   ;;  %v16055_v40 = vld [vmem:[%s19090_s17 + $0xe4] ss:$8 sps:$4 sm:$0xff]   ;;  %v16057_v41 = vld [vmem:[%s19090_s17 + $0xe0] ss:$8 sps:$4 sm:$0xff]  }
 0x15f   : > { %1082 = vmatprep.subr.bf16.mxu1 %v16034_v25  ;;  %v16058_v42 = vld [vmem:[%s19090_s17 + $0xd4] ss:$8 sps:$4 sm:$0xff]   ;;  %v16060_v43 = vld [vmem:[%s19090_s17 + $0xd0] ss:$8 sps:$4 sm:$0xff]   ;;  %v16061_v44 = vld [vmem:[%s19090_s17 + $0xc4] ss:$8 sps:$4 sm:$0xff]  }
 0x160   : > { %v16063_v45 = vld [vmem:[%s19090_s17 + $0xc0] ss:$8 sps:$4 sm:$0xff]   ;;  %v16064_v46 = vld [vmem:[%s19090_s17 + $0xb4] ss:$8 sps:$4 sm:$0xff]   ;;  %v16066_v47 = vld [vmem:[%s19090_s17 + $0xb0] ss:$8 sps:$4 sm:$0xff]  }
 0x161   : > { %12875 = vmatmul.mubr.msk.bf16.vlgmr.msra.gmra.mxu0 %vm810_vm5, %v19131_v26  ;;  %v16067_v48 = vld [vmem:[%s19090_s17 + $0xa4] ss:$8 sps:$4 sm:$0xff]   ;;  %v16069_v49 = vld [vmem:[%s19090_s17 + $0xa0] ss:$8 sps:$4 sm:$0xff]   ;;  %v16070_v50 = vld [vmem:[%s19090_s17 + $0x94] ss:$8 sps:$4 sm:$0xff]  }
 0x162   : > { %1083 = vmatpush1.bf16.msra.mxu1 %v16036_v27  ;;  %v16072_v51 = vld [vmem:[%s19090_s17 + $0x90] ss:$8 sps:$4 sm:$0xff]   ;;  %v16073_v52 = vld [vmem:[%s19090_s17 + $0x84] ss:$8 sps:$4 sm:$0xff]   ;;  %v16075_v53 = vld [vmem:[%s19090_s17 + $0x80] ss:$8 sps:$4 sm:$0xff]  }
 0x163   : > { %1084 = vmatprep.subr.bf16.mxu1 %v16037_v28  ;;  %v16076_v54 = vld [vmem:[%s19090_s17 + $0x170] ss:$8 sps:$4 sm:$0xff]   ;;  %v16078_v55 = vld [vmem:[%s19090_s17 + $0x174] ss:$8 sps:$4 sm:$0xff]   ;;  %v16081_v56 = vld [vmem:[%s19090_s17 + $0x164] ss:$8 sps:$4 sm:$0xff]  }
 0x164   : > { %1337 = vmatprep.subr.bf16.mxu0 %v16078_v55  ;;  %v16079_v57 = vld [vmem:[%s19090_s17 + $0x160] ss:$8 sps:$4 sm:$0xff]   ;;  %v16084_v58 = vld [vmem:[%s19090_s17 + $0x154] ss:$8 sps:$4 sm:$0xff]   ;;  %v16082_v59 = vld [vmem:[%s19090_s17 + $0x150] ss:$8 sps:$4 sm:$0xff]  }
 0x165   : > { %1338 = vmatpush1.bf16.msra.mxu0 %v16076_v54  ;;  %v16087_v60 = vld [vmem:[%s19090_s17 + $0x144] ss:$8 sps:$4 sm:$0xff]   ;;  %v16085_v61 = vld [vmem:[%s19090_s17 + $0x140] ss:$8 sps:$4 sm:$0xff]   ;;  %v16090_v62 = vld [vmem:[%s19090_s17 + $0x134] ss:$8 sps:$4 sm:$0xff]  }
 0x166   : > { %1085 = vmatpush1.bf16.msra.mxu1 %v16039_v29  ;;  %1339 = vmatprep.subr.bf16.mxu0 %v16081_v56  ;;  %v16088_v63 = vld [vmem:[%s19090_s17 + $0x130] ss:$8 sps:$4 sm:$0xff]   ;;  %v16093_v0 = vld [vmem:[%s19090_s17 + $0x124] ss:$8 sps:$4 sm:$0xff]   ;;  %v16091_v1 = vld [vmem:[%s19090_s17 + $0x120] ss:$8 sps:$4 sm:$0xff]  }
 0x167   : > { %1086 = vmatprep.subr.bf16.mxu1 %v16040_v30  ;;  %v16096_v2 = vld [vmem:[%s19090_s17 + $0x114] ss:$8 sps:$4 sm:$0xff]   ;;  %v16094_v3 = vld [vmem:[%s19090_s17 + $0x110] ss:$8 sps:$4 sm:$0xff]   ;;  %v16099_v4 = vld [vmem:[%s19090_s17 + $0x104] ss:$8 sps:$4 sm:$0xff]  }
 0x168   : > { %v16097_v5 = vld [vmem:[%s19090_s17 + $0x100] ss:$8 sps:$4 sm:$0xff]   ;;  %v16102_v6 = vld [vmem:[%s19090_s17 + $0x1f4] ss:$8 sps:$4 sm:$0xff]   ;;  %v16100_v7 = vld [vmem:[%s19090_s17 + $0x1f0] ss:$8 sps:$4 sm:$0xff]  }
 0x169   : > { %1340 = vmatpush1.bf16.msra.mxu0 %v16079_v57  ;;  %v783_v10 = vld [vmem:[%s19088_s28] sm:$0x3]  ;;  %v19183_v12 = vsub.s32 1, %v786_v9  ;;  %v16130_v54 = vld [vmem:[%s19090_s17 + $0x250] ss:$8 sps:$4 sm:$0xff]   ;;  %s20799_s25 = sld [smem:[#allocation34_spill]] }
 0x16a   : > { %1087 = vmatpush1.bf16.msra.mxu1 %v16042_v31  ;;  %1341 = vmatprep.subr.bf16.mxu0 %v16084_v58  ;;  %v788_v13 = vrot.slane %v783_v10, %v19181_v11  ;;  %v16135_v55 = vld [vmem:[%s19090_s17 + $0x244] ss:$8 sps:$4 sm:$0xff]   ;;  %v16133_v56 = vld [vmem:[%s19090_s17 + $0x240] ss:$8 sps:$4 sm:$0xff]   ;;  %v16138_v57 = vld [vmem:[%s19090_s17 + $0x234] ss:$8 sps:$4 sm:$0xff]  }
 0x16b   : > { %1088 = vmatprep.subr.bf16.mxu1 %v16043_v32  ;;  %v792_v14 = vrot.slane %v783_v10, %v19183_v12  ;;  %v16136_v58 = vld [vmem:[%s19090_s17 + $0x230] ss:$8 sps:$4 sm:$0xff]  }
 0x16d   : > { %1342 = vmatpush1.bf16.msra.mxu0 %v16082_v59  ;;  %v16141_v59 = vld [vmem:[%s19090_s17 + $0x224] ss:$8 sps:$4 sm:$0xff]  }
 0x16e   : > { %1089 = vmatpush1.bf16.msra.mxu1 %v16045_v33  ;;  %1343 = vmatprep.subr.bf16.mxu0 %v16087_v60  ;;  %v16139_v60 = vld [vmem:[%s19090_s17 + $0x220] ss:$8 sps:$4 sm:$0xff]  }
 0x16f   : > { %1090 = vmatprep.subr.bf16.mxu1 %v16046_v34  ;;  %p15700_p3 = scmp.ne.s32.totalorder %s20799_s25, 1 }
 0x171   : > { %1344 = vmatpush1.bf16.msra.mxu0 %v16085_v61  ;;  %v16144_v61 = vld [vmem:[%s19090_s17 + $0x214] ss:$8 sps:$4 sm:$0xff]  }
 0x172   : > { %1091 = vmatpush1.bf16.msra.mxu1 %v16048_v35  ;;  %1345 = vmatprep.subr.bf16.mxu0 %v16090_v62  ;;  %v16105_v35 = vld [vmem:[%s19090_s17 + $0x1e4] ss:$8 sps:$4 sm:$0xff]   ;;  %v16142_v62 = vld [vmem:[%s19090_s17 + $0x210] ss:$8 sps:$4 sm:$0xff]  }
 0x173   : > { %1092 = vmatprep.subr.bf16.mxu1 %v16049_v36  ;;  %v16103_v36 = vld [vmem:[%s19090_s17 + $0x1e0] ss:$8 sps:$4 sm:$0xff]  }
 0x175   : > { %1346 = vmatpush1.bf16.msra.mxu0 %v16088_v63  ;;  %v16147_v63 = vld [vmem:[%s19090_s17 + $0x204] ss:$8 sps:$4 sm:$0xff]  }
 0x176   : > { %1093 = vmatpush1.bf16.msra.mxu1 %v16051_v37  ;;  %1347 = vmatprep.subr.bf16.mxu0 %v16093_v0  ;;  %v16108_v37 = vld [vmem:[%s19090_s17 + $0x1d4] ss:$8 sps:$4 sm:$0xff]   ;;  %v16145_v0 = vld [vmem:[%s19090_s17 + $0x200] ss:$8 sps:$4 sm:$0xff]  }
 0x177   : > { %1094 = vmatprep.subr.bf16.mxu1 %v16052_v38  ;;  %v16106_v38 = vld [vmem:[%s19090_s17 + $0x1d0] ss:$8 sps:$4 sm:$0xff]  }
 0x179   : > { %1348 = vmatpush1.bf16.msra.mxu0 %v16091_v1  ;;  %v16150_v1 = vld [vmem:[%s19090_s17 + $0x2f4] ss:$8 sps:$4 sm:$0xff]  }
 0x17a   : > { %1095 = vmatpush2.bf16.msra.mxu1 %v16054_v39  ;;  %1349 = vmatprep.subr.bf16.mxu0 %v16096_v2  ;;  %v16111_v39 = vld [vmem:[%s19090_s17 + $0x1c4] ss:$8 sps:$4 sm:$0xff]   ;;  %v16148_v2 = vld [vmem:[%s19090_s17 + $0x2f0] ss:$8 sps:$4 sm:$0xff]  }
 0x17b   : > { %1096 = vmatprep.subr.bf16.mxu1 %v16055_v40  ;;  %v16109_v40 = vld [vmem:[%s19090_s17 + $0x1c0] ss:$8 sps:$4 sm:$0xff]  }
 0x17d   : > { %1350 = vmatpush1.bf16.msra.mxu0 %v16094_v3  ;;  %v906_v3 = vld [vmem:[%s19092_s22] sm:$0x3] }
 0x17e   : > { %1097 = vmatpush2.bf16.msra.mxu1 %v16057_v41  ;;  %1351 = vmatprep.subr.bf16.mxu0 %v16099_v4  ;;  %v16114_v41 = vld [vmem:[%s19090_s17 + $0x1b4] ss:$8 sps:$4 sm:$0xff]   ;;  %v911_v4 = vrot.slane %v906_v3, %v19181_v11 }
 0x17f   : > { %1098 = vmatprep.subr.bf16.mxu1 %v16058_v42  ;;  %v16112_v42 = vld [vmem:[%s19090_s17 + $0x1b0] ss:$8 sps:$4 sm:$0xff]  }
 0x181   : > { %1352 = vmatpush1.bf16.msra.mxu0 %v16097_v5  ;;  %v915_v5 = vrot.slane %v906_v3, %v19183_v12 }
 0x182   : > { %1099 = vmatpush2.bf16.msra.mxu1 %v16060_v43  ;;  %1353 = vmatprep.subr.bf16.mxu0 %v16102_v6  ;;  %v16117_v43 = vld [vmem:[%s19090_s17 + $0x1a4] ss:$8 sps:$4 sm:$0xff]  }
 0x183   : > { %1100 = vmatprep.subr.bf16.mxu1 %v16061_v44  ;;  %v16115_v44 = vld [vmem:[%s19090_s17 + $0x1a0] ss:$8 sps:$4 sm:$0xff]  }
 0x185   : > { %1354 = vmatpush2.bf16.msra.mxu0 %v16100_v7 }
 0x186   : > { %1101 = vmatpush2.bf16.msra.mxu1 %v16063_v45  ;;  %1355 = vmatprep.subr.bf16.mxu0 %v16105_v35  ;;  %v16120_v45 = vld [vmem:[%s19090_s17 + $0x194] ss:$8 sps:$4 sm:$0xff]   ;;  %v16160_v35 = vld [vmem:[%s19090_s17 + $0x2b0] ss:$8 sps:$4 sm:$0xff]  }
 0x187   : > { %1102 = vmatprep.subr.bf16.mxu1 %v16064_v46  ;;  %v16118_v46 = vld [vmem:[%s19090_s17 + $0x190] ss:$8 sps:$4 sm:$0xff]  }
 0x189   : > { %1356 = vmatpush2.bf16.msra.mxu0 %v16103_v36  ;;  %v16165_v36 = vld [vmem:[%s19090_s17 + $0x2a4] ss:$8 sps:$4 sm:$0xff]  }
 0x18a   : > { %1103 = vmatpush2.bf16.msra.mxu1 %v16066_v47  ;;  %1357 = vmatprep.subr.bf16.mxu0 %v16108_v37  ;;  %v16123_v47 = vld [vmem:[%s19090_s17 + $0x184] ss:$8 sps:$4 sm:$0xff]   ;;  %v16163_v37 = vld [vmem:[%s19090_s17 + $0x2a0] ss:$8 sps:$4 sm:$0xff]  }
 0x18b   : > { %1104 = vmatprep.subr.bf16.mxu1 %v16067_v48  ;;  %v16121_v48 = vld [vmem:[%s19090_s17 + $0x180] ss:$8 sps:$4 sm:$0xff]  }
 0x18d   : > { %1358 = vmatpush2.bf16.msra.mxu0 %v16106_v38  ;;  %v16168_v38 = vld [vmem:[%s19090_s17 + $0x294] ss:$8 sps:$4 sm:$0xff]  }
 0x18e   : > { %1105 = vmatpush2.bf16.msra.mxu1 %v16069_v49  ;;  %1359 = vmatprep.subr.bf16.mxu0 %v16111_v39  ;;  %v16124_v49 = vld [vmem:[%s19090_s17 + $0x270] ss:$8 sps:$4 sm:$0xff]  }
 0x18f   : > { %1106 = vmatprep.subr.bf16.mxu1 %v16070_v50  ;;  %v16126_v50 = vld [vmem:[%s19090_s17 + $0x274] ss:$8 sps:$4 sm:$0xff]   ;;  %v16166_v39 = vld [vmem:[%s19090_s17 + $0x290] ss:$8 sps:$4 sm:$0xff]  }
 0x191   : > { %1360 = vmatpush2.bf16.msra.mxu0 %v16109_v40  ;;  %v16171_v40 = vld [vmem:[%s19090_s17 + $0x284] ss:$8 sps:$4 sm:$0xff]  }
 0x192   : > { %1107 = vmatpush2.bf16.msra.mxu1 %v16072_v51  ;;  %1361 = vmatprep.subr.bf16.mxu0 %v16114_v41  ;;  %v16129_v51 = vld [vmem:[%s19090_s17 + $0x264] ss:$8 sps:$4 sm:$0xff]   ;;  %v16169_v41 = vld [vmem:[%s19090_s17 + $0x280] ss:$8 sps:$4 sm:$0xff]  }
 0x193   : > { %1108 = vmatprep.subr.bf16.mxu1 %v16073_v52  ;;  %v16127_v52 = vld [vmem:[%s19090_s17 + $0x260] ss:$8 sps:$4 sm:$0xff]  }
 0x195   : > { %1362 = vmatpush2.bf16.msra.mxu0 %v16112_v42  ;;  %v16172_v42 = vld [vmem:[%s19090_s17 + $0x370] ss:$8 sps:$4 sm:$0xff]  }
 0x196   : > { %1109 = vmatpush2.bf16.msra.mxu1 %v16075_v53  ;;  %1363 = vmatprep.subr.bf16.mxu0 %v16117_v43  ;;  %v16132_v53 = vld [vmem:[%s19090_s17 + $0x254] ss:$8 sps:$4 sm:$0xff]  }
 0x197   : > { %1596 = vmatprep.subr.bf16.mxu1 %v16126_v50  ;;  %v16174_v43 = vld [vmem:[%s19090_s17 + $0x374] ss:$8 sps:$4 sm:$0xff]  }
 0x198   : > { %v16186_v50 = vld [vmem:[%s19090_s17 + $0x334] ss:$8 sps:$4 sm:$0xff]  }
 0x199   : > { %1364 = vmatpush2.bf16.msra.mxu0 %v16115_v44  ;;  %v16177_v44 = vld [vmem:[%s19090_s17 + $0x364] ss:$8 sps:$4 sm:$0xff]  }
 0x19a   : > { %1365 = vmatprep.subr.bf16.mxu0 %v16120_v45  ;;  %v16175_v45 = vld [vmem:[%s19090_s17 + $0x360] ss:$8 sps:$4 sm:$0xff]  }
 0x19d   : > { %1366 = vmatpush2.bf16.msra.mxu0 %v16118_v46  ;;  %v16180_v46 = vld [vmem:[%s19090_s17 + $0x354] ss:$8 sps:$4 sm:$0xff]  }
 0x19e   : > { %1367 = vmatprep.subr.bf16.mxu0 %v16123_v47  ;;  %v16178_v47 = vld [vmem:[%s19090_s17 + $0x350] ss:$8 sps:$4 sm:$0xff]  }
 0x1a1   : > { %1368 = vmatpush2.bf16.msra.mxu0 %v16121_v48  ;;  %v16183_v48 = vld [vmem:[%s19090_s17 + $0x344] ss:$8 sps:$4 sm:$0xff]  }
 0x1a2   : > { %1855 = vmatprep.subr.bf16.mxu0 %v16174_v43  ;;  %v16234_v43 = vld [vmem:[%s19090_s17 + $0x434] ss:$8 sps:$4 sm:$0xff]  }
 0x221   : > { %v855_v15 = vpop.f32.mrf.mxu0 }
 0x222   : > { %v856_v16 = vadd.f32 %v855_v15, %v788_v13 }
 0x223   : > { %v857_v18 = vpop.f32.mrf.mxu0 }
 0x224   : > { %v864_v19 = vmul.f32 0.70710677, %v856_v16  ;;  %v858_v20 = vadd.f32 %v857_v18, %v792_v14  ;;  %v862_v28 = vmul.f32 0.5, %v856_v16 }
 0x225   : > { %v859_v21 = vpop.f32.mrf.mxu0 }
 0x226   : > { %18048 = verf.f32 %v864_v19  ;;  %v865_v22 = vmul.f32 0.70710677, %v858_v20  ;;  %v863_v29 = vmul.f32 0.5, %v858_v20 }
 0x227   : > { %v860_v23 = vpop.f32.mrf.mxu0 }
 0x228   : > { %18050 = verf.f32 %v865_v22 }
 0x233   : > { %v18049_v24 = vpop.eup %18048 }
 0x234   : > { %v868_v25 = vadd.f32 1.0, %v18049_v24 }
 0x235   : > { %v18051_v27 = vpop.eup %18050 }
 0x236   : > { %v869_v30 = vadd.f32 1.0, %v18051_v27  ;;  %v870_v31 = vmul.f32 %v868_v25, %v862_v28  ;;  %v16153_v28 = vld [vmem:[%s19090_s17 + $0x2e4] ss:$8 sps:$4 sm:$0xff]  }
 0x238   : > { %v871_v32 = vmul.f32 %v869_v30, %v863_v29  ;;  %v872_v34 = vpack.c.bf16 %v870_v31, %v870_v31  ;;  %v16151_v29 = vld [vmem:[%s19090_s17 + $0x2e0] ss:$8 sps:$4 sm:$0xff]   ;;  %v16156_v30 = vld [vmem:[%s19090_s17 + $0x2d4] ss:$8 sps:$4 sm:$0xff]   ;;  %v16154_v31 = vld [vmem:[%s19090_s17 + $0x2d0] ss:$8 sps:$4 sm:$0xff]  }
 0x23a   : > { %v873_v33 = vpack.c.bf16 %v871_v32, %v871_v32  ;;  %v16159_v32 = vld [vmem:[%s19090_s17 + $0x2c4] ss:$8 sps:$4 sm:$0xff]  }
 0x23c   : > { %1110 = vmatprep.mubr.bf16.mxu1 %v873_v33  ;;  %v16157_v33 = vld [vmem:[%s19090_s17 + $0x2c0] ss:$8 sps:$4 sm:$0xff]  }
 0x23d   : > { %1111 = vmatmul.mubr.bf16.vlgmr.msra.gmra.mxu1 %v872_v34  ;;  %v16162_v34 = vld [vmem:[%s19090_s17 + $0x2b4] ss:$8 sps:$4 sm:$0xff]  }
 0x23e   : > { %1597 = vmatpush1.bf16.msra.mxu1 %v16124_v49  ;;  %v16181_v49 = vld [vmem:[%s19090_s17 + $0x340] ss:$8 sps:$4 sm:$0xff]  }
 0x23f   : > { %1598 = vmatprep.subr.bf16.mxu1 %v16129_v51  ;;  %v16184_v51 = vld [vmem:[%s19090_s17 + $0x330] ss:$8 sps:$4 sm:$0xff]  }
 0x242   : > { %1599 = vmatpush1.bf16.msra.mxu1 %v16127_v52  ;;  %v16189_v52 = vld [vmem:[%s19090_s17 + $0x324] ss:$8 sps:$4 sm:$0xff]  }
 0x243   : > { %1600 = vmatprep.subr.bf16.mxu1 %v16132_v53  ;;  %v16187_v53 = vld [vmem:[%s19090_s17 + $0x320] ss:$8 sps:$4 sm:$0xff]  }
 0x246   : > { %1601 = vmatpush1.bf16.msra.mxu1 %v16130_v54  ;;  %v16192_v54 = vld [vmem:[%s19090_s17 + $0x314] ss:$8 sps:$4 sm:$0xff]  }
 0x247   : > { %1602 = vmatprep.subr.bf16.mxu1 %v16135_v55  ;;  %v16190_v55 = vld [vmem:[%s19090_s17 + $0x310] ss:$8 sps:$4 sm:$0xff]  }
 0x24a   : > { %1603 = vmatpush1.bf16.msra.mxu1 %v16133_v56  ;;  %v16195_v56 = vld [vmem:[%s19090_s17 + $0x304] ss:$8 sps:$4 sm:$0xff]  }
 0x24b   : > { %1604 = vmatprep.subr.bf16.mxu1 %v16138_v57  ;;  %v16193_v57 = vld [vmem:[%s19090_s17 + $0x300] ss:$8 sps:$4 sm:$0xff]  }
 0x24e   : > { %1605 = vmatpush1.bf16.msra.mxu1 %v16136_v58  ;;  %v16198_v58 = vld [vmem:[%s19090_s17 + $0x3f4] ss:$8 sps:$4 sm:$0xff]  }
 0x24f   : > { %1606 = vmatprep.subr.bf16.mxu1 %v16141_v59  ;;  %v16196_v59 = vld [vmem:[%s19090_s17 + $0x3f0] ss:$8 sps:$4 sm:$0xff]  }
 0x252   : > { %1607 = vmatpush1.bf16.msra.mxu1 %v16139_v60  ;;  %v12940_v60 = vld [vmem:[%s19092_s22 + $0x2] sm:$0x3] }
 0x253   : > { %1608 = vmatprep.subr.bf16.mxu1 %v16144_v61  ;;  %v1170_v61 = vrot.slane %v12940_v60, %v19181_v11 }
 0x256   : > { %1609 = vmatpush1.bf16.msra.mxu1 %v16142_v62  ;;  %v1174_v62 = vrot.slane %v12940_v60, %v19183_v12 }
 0x257   : > { %1610 = vmatprep.subr.bf16.mxu1 %v16147_v63 }
 0x25a   : > { %1611 = vmatpush1.bf16.msra.mxu1 %v16145_v0 }
 0x25b   : > { %1612 = vmatprep.subr.bf16.mxu1 %v16150_v1 }
 0x25e   : > { %1613 = vmatpush2.bf16.msra.mxu1 %v16148_v2 }
 0x25f   : > { %1614 = vmatprep.subr.bf16.mxu1 %v16153_v28  ;;  %v16208_v28 = vld [vmem:[%s19090_s17 + $0x3b0] ss:$8 sps:$4 sm:$0xff]  }
 0x262   : > { %1615 = vmatpush2.bf16.msra.mxu1 %v16151_v29  ;;  %v16213_v29 = vld [vmem:[%s19090_s17 + $0x3a4] ss:$8 sps:$4 sm:$0xff]  }
 0x263   : > { %1616 = vmatprep.subr.bf16.mxu1 %v16156_v30  ;;  %v16211_v30 = vld [vmem:[%s19090_s17 + $0x3a0] ss:$8 sps:$4 sm:$0xff]  }
 0x266   : > { %1617 = vmatpush2.bf16.msra.mxu1 %v16154_v31  ;;  %v16216_v31 = vld [vmem:[%s19090_s17 + $0x394] ss:$8 sps:$4 sm:$0xff]  }
 0x267   : > { %1618 = vmatprep.subr.bf16.mxu1 %v16159_v32  ;;  %v16214_v32 = vld [vmem:[%s19090_s17 + $0x390] ss:$8 sps:$4 sm:$0xff]  }
 0x26a   : > { %1619 = vmatpush2.bf16.msra.mxu1 %v16157_v33  ;;  %v16219_v33 = vld [vmem:[%s19090_s17 + $0x384] ss:$8 sps:$4 sm:$0xff]  }
 0x26b   : > { %1620 = vmatprep.subr.bf16.mxu1 %v16162_v34  ;;  %v16217_v34 = vld [vmem:[%s19090_s17 + $0x380] ss:$8 sps:$4 sm:$0xff]  }
 0x26e   : > { %1621 = vmatpush2.bf16.msra.mxu1 %v16160_v35  ;;  %v16220_v35 = vld [vmem:[%s19090_s17 + $0x470] ss:$8 sps:$4 sm:$0xff]  }
 0x26f   : > { %1622 = vmatprep.subr.bf16.mxu1 %v16165_v36  ;;  %v16222_v36 = vld [vmem:[%s19090_s17 + $0x474] ss:$8 sps:$4 sm:$0xff]  }
 0x272   : > { %1623 = vmatpush2.bf16.msra.mxu1 %v16163_v37  ;;  %v16225_v37 = vld [vmem:[%s19090_s17 + $0x464] ss:$8 sps:$4 sm:$0xff]  }
 0x273   : > { %1624 = vmatprep.subr.bf16.mxu1 %v16168_v38  ;;  %v16223_v38 = vld [vmem:[%s19090_s17 + $0x460] ss:$8 sps:$4 sm:$0xff]  }
 0x276   : > { %1625 = vmatpush2.bf16.msra.mxu1 %v16166_v39  ;;  %v16228_v39 = vld [vmem:[%s19090_s17 + $0x454] ss:$8 sps:$4 sm:$0xff]  }
 0x277   : > { %1626 = vmatprep.subr.bf16.mxu1 %v16171_v40  ;;  %v16226_v40 = vld [vmem:[%s19090_s17 + $0x450] ss:$8 sps:$4 sm:$0xff]  }
 0x27a   : > { %1627 = vmatpush2.bf16.msra.mxu1 %v16169_v41  ;;  %v16231_v41 = vld [vmem:[%s19090_s17 + $0x444] ss:$8 sps:$4 sm:$0xff]  }
 0x27b   : > { %2114 = vmatprep.subr.bf16.mxu1 %v16222_v36  ;;  %v16282_v36 = vld [vmem:[%s19090_s17 + $0x534] ss:$8 sps:$4 sm:$0xff]  }
 0x2fd   : > { %v1112_v6 = vpop.f32.mrf.mxu1 }
 0x2fe   : > { %v1113_v7 = vadd.f32 %v1112_v6, %v911_v4 }
 0x2ff   : > { %v1114_v8 = vpop.f32.mrf.mxu1 }
 0x300   : > { %v1121_v9 = vmul.f32 0.70710677, %v1113_v7  ;;  %v1115_v10 = vadd.f32 %v1114_v8, %v915_v5  ;;  %v1119_v20 = vmul.f32 0.5, %v1113_v7 }
 0x301   : > { %v1116_v13 = vpop.f32.mrf.mxu1 }
 0x302   : > { %18052 = verf.f32 %v1121_v9  ;;  %v1122_v14 = vmul.f32 0.70710677, %v1115_v10  ;;  %v1120_v21 = vmul.f32 0.5, %v1115_v10 }
 0x303   : > { %v1117_v15 = vpop.f32.mrf.mxu1 }
 0x304   : > { %18054 = verf.f32 %v1122_v14 }
 0x30f   : > { %v18053_v16 = vpop.eup %18052 }
 0x310   : > { %v1125_v18 = vadd.f32 1.0, %v18053_v16 }
 0x311   : > { %v18055_v19 = vpop.eup %18054 }
 0x312   : > { %v1126_v22 = vadd.f32 1.0, %v18055_v19  ;;  %v1127_v23 = vmul.f32 %v1125_v18, %v1119_v20  ;;  %v16201_v20 = vld [vmem:[%s19090_s17 + $0x3e4] ss:$8 sps:$4 sm:$0xff]  }
 0x314   : > { %v1128_v24 = vmul.f32 %v1126_v22, %v1120_v21  ;;  %v1129_v27 = vpack.c.bf16 %v1127_v23, %v1127_v23  ;;  %v16199_v21 = vld [vmem:[%s19090_s17 + $0x3e0] ss:$8 sps:$4 sm:$0xff]   ;;  %v16204_v22 = vld [vmem:[%s19090_s17 + $0x3d4] ss:$8 sps:$4 sm:$0xff]   ;;  %v16202_v23 = vld [vmem:[%s19090_s17 + $0x3d0] ss:$8 sps:$4 sm:$0xff]  }
 0x316   : > { %v1130_v25 = vpack.c.bf16 %v1128_v24, %v1128_v24  ;;  %v16207_v24 = vld [vmem:[%s19090_s17 + $0x3c4] ss:$8 sps:$4 sm:$0xff]  }
 0x318   : > { %1369 = vmatprep.mubr.bf16.mxu0 %v1130_v25  ;;  %v16205_v25 = vld [vmem:[%s19090_s17 + $0x3c0] ss:$8 sps:$4 sm:$0xff]  }
 0x319   : > { %1370 = vmatmul.mubr.bf16.vlgmr.msra.gmra.mxu0 %v1129_v27  ;;  %v16210_v27 = vld [vmem:[%s19090_s17 + $0x3b4] ss:$8 sps:$4 sm:$0xff]  }
 0x31a   : > { %1856 = vmatpush1.bf16.msra.mxu0 %v16172_v42  ;;  %v16229_v42 = vld [vmem:[%s19090_s17 + $0x440] ss:$8 sps:$4 sm:$0xff]  }
 0x31b   : > { %1857 = vmatprep.subr.bf16.mxu0 %v16177_v44  ;;  %v16232_v44 = vld [vmem:[%s19090_s17 + $0x430] ss:$8 sps:$4 sm:$0xff]  }
 0x31e   : > { %1858 = vmatpush1.bf16.msra.mxu0 %v16175_v45  ;;  %v16237_v45 = vld [vmem:[%s19090_s17 + $0x424] ss:$8 sps:$4 sm:$0xff]  }
 0x31f   : > { %1859 = vmatprep.subr.bf16.mxu0 %v16180_v46  ;;  %v16235_v46 = vld [vmem:[%s19090_s17 + $0x420] ss:$8 sps:$4 sm:$0xff]  }
 0x322   : > { %1860 = vmatpush1.bf16.msra.mxu0 %v16178_v47  ;;  %v16240_v47 = vld [vmem:[%s19090_s17 + $0x414] ss:$8 sps:$4 sm:$0xff]  }
 0x323   : > { %1861 = vmatprep.subr.bf16.mxu0 %v16183_v48  ;;  %v16238_v48 = vld [vmem:[%s19090_s17 + $0x410] ss:$8 sps:$4 sm:$0xff]  }
 0x326   : > { %1862 = vmatpush1.bf16.msra.mxu0 %v16181_v49  ;;  %v16243_v49 = vld [vmem:[%s19090_s17 + $0x404] ss:$8 sps:$4 sm:$0xff]  }
 0x327   : > { %1863 = vmatprep.subr.bf16.mxu0 %v16186_v50  ;;  %v16241_v50 = vld [vmem:[%s19090_s17 + $0x400] ss:$8 sps:$4 sm:$0xff]  }
 0x32a   : > { %1864 = vmatpush1.bf16.msra.mxu0 %v16184_v51  ;;  %v16246_v51 = vld [vmem:[%s19090_s17 + $0x4f4] ss:$8 sps:$4 sm:$0xff]  }
 0x32b   : > { %1865 = vmatprep.subr.bf16.mxu0 %v16189_v52  ;;  %v16244_v52 = vld [vmem:[%s19090_s17 + $0x4f0] ss:$8 sps:$4 sm:$0xff]  }
 0x32e   : > { %1866 = vmatpush1.bf16.msra.mxu0 %v16187_v53  ;;  %v13005_v53 = vld [vmem:[%s19092_s22 + $0x4] sm:$0x3] }
 0x32f   : > { %1867 = vmatprep.subr.bf16.mxu0 %v16192_v54  ;;  %v1429_v54 = vrot.slane %v13005_v53, %v19181_v11 }
 0x332   : > { %1868 = vmatpush1.bf16.msra.mxu0 %v16190_v55  ;;  %v1433_v55 = vrot.slane %v13005_v53, %v19183_v12 }
 0x333   : > { %1869 = vmatprep.subr.bf16.mxu0 %v16195_v56 }
 0x336   : > { %1870 = vmatpush1.bf16.msra.mxu0 %v16193_v57 }
 0x337   : > { %1871 = vmatprep.subr.bf16.mxu0 %v16198_v58 }
 0x33a   : > { %1872 = vmatpush2.bf16.msra.mxu0 %v16196_v59 }
 0x33b   : > { %1873 = vmatprep.subr.bf16.mxu0 %v16201_v20  ;;  %v16256_v20 = vld [vmem:[%s19090_s17 + $0x4b0] ss:$8 sps:$4 sm:$0xff]  }
 0x33e   : > { %1874 = vmatpush2.bf16.msra.mxu0 %v16199_v21  ;;  %v16261_v21 = vld [vmem:[%s19090_s17 + $0x4a4] ss:$8 sps:$4 sm:$0xff]  }
 0x33f   : > { %1875 = vmatprep.subr.bf16.mxu0 %v16204_v22  ;;  %v16259_v22 = vld [vmem:[%s19090_s17 + $0x4a0] ss:$8 sps:$4 sm:$0xff]  }
 0x342   : > { %1876 = vmatpush2.bf16.msra.mxu0 %v16202_v23  ;;  %v16264_v23 = vld [vmem:[%s19090_s17 + $0x494] ss:$8 sps:$4 sm:$0xff]  }
 0x343   : > { %1877 = vmatprep.subr.bf16.mxu0 %v16207_v24  ;;  %v16262_v24 = vld [vmem:[%s19090_s17 + $0x490] ss:$8 sps:$4 sm:$0xff]  }
 0x346   : > { %1878 = vmatpush2.bf16.msra.mxu0 %v16205_v25  ;;  %v16267_v25 = vld [vmem:[%s19090_s17 + $0x484] ss:$8 sps:$4 sm:$0xff]  }
 0x347   : > { %1879 = vmatprep.subr.bf16.mxu0 %v16210_v27  ;;  %v16265_v27 = vld [vmem:[%s19090_s17 + $0x480] ss:$8 sps:$4 sm:$0xff]  }
 0x34a   : > { %1880 = vmatpush2.bf16.msra.mxu0 %v16208_v28  ;;  %v16268_v28 = vld [vmem:[%s19090_s17 + $0x570] ss:$8 sps:$4 sm:$0xff]  }
 0x34b   : > { %1881 = vmatprep.subr.bf16.mxu0 %v16213_v29  ;;  %v16270_v29 = vld [vmem:[%s19090_s17 + $0x574] ss:$8 sps:$4 sm:$0xff]  }
 0x34e   : > { %1882 = vmatpush2.bf16.msra.mxu0 %v16211_v30  ;;  %v16273_v30 = vld [vmem:[%s19090_s17 + $0x564] ss:$8 sps:$4 sm:$0xff]  }
 0x34f   : > { %1883 = vmatprep.subr.bf16.mxu0 %v16216_v31  ;;  %v16271_v31 = vld [vmem:[%s19090_s17 + $0x560] ss:$8 sps:$4 sm:$0xff]  }
 0x352   : > { %1884 = vmatpush2.bf16.msra.mxu0 %v16214_v32  ;;  %v16276_v32 = vld [vmem:[%s19090_s17 + $0x554] ss:$8 sps:$4 sm:$0xff]  }
 0x353   : > { %1885 = vmatprep.subr.bf16.mxu0 %v16219_v33  ;;  %v16274_v33 = vld [vmem:[%s19090_s17 + $0x550] ss:$8 sps:$4 sm:$0xff]  }
 0x356   : > { %1886 = vmatpush2.bf16.msra.mxu0 %v16217_v34  ;;  %v16279_v34 = vld [vmem:[%s19090_s17 + $0x544] ss:$8 sps:$4 sm:$0xff]  }
 0x357   : > { %2373 = vmatprep.subr.bf16.mxu0 %v16270_v29  ;;  %v16330_v29 = vld [vmem:[%s19090_s17 + $0x634] ss:$8 sps:$4 sm:$0xff]  }
 0x3d9   : > { %v1371_v63 = vpop.f32.mrf.mxu0 }
 0x3da   : > { %v1372_v0 = vadd.f32 %v1371_v63, %v1170_v61 }
 0x3db   : > { %v1373_v1 = vpop.f32.mrf.mxu0 }
 0x3dc   : > { %v1380_v2 = vmul.f32 0.70710677, %v1372_v0  ;;  %v1374_v3 = vadd.f32 %v1373_v1, %v1174_v62  ;;  %v1378_v10 = vmul.f32 0.5, %v1372_v0 }
 0x3dd   : > { %v1375_v4 = vpop.f32.mrf.mxu0 }
 0x3de   : > { %18056 = verf.f32 %v1380_v2  ;;  %v1381_v5 = vmul.f32 0.70710677, %v1374_v3  ;;  %v1379_v13 = vmul.f32 0.5, %v1374_v3 }
 0x3df   : > { %v1376_v6 = vpop.f32.mrf.mxu0 }
 0x3e0   : > { %18058 = verf.f32 %v1381_v5 }
 0x3eb   : > { %v18057_v7 = vpop.eup %18056 }
 0x3ec   : > { %v1384_v8 = vadd.f32 1.0, %v18057_v7 }
 0x3ed   : > { %v18059_v9 = vpop.eup %18058 }
 0x3ee   : > { %v1385_v14 = vadd.f32 1.0, %v18059_v9  ;;  %v1386_v15 = vmul.f32 %v1384_v8, %v1378_v10  ;;  %v16249_v10 = vld [vmem:[%s19090_s17 + $0x4e4] ss:$8 sps:$4 sm:$0xff]  }
 0x3f0   : > { %v1387_v16 = vmul.f32 %v1385_v14, %v1379_v13  ;;  %v1388_v19 = vpack.c.bf16 %v1386_v15, %v1386_v15  ;;  %v16247_v13 = vld [vmem:[%s19090_s17 + $0x4e0] ss:$8 sps:$4 sm:$0xff]   ;;  %v16252_v14 = vld [vmem:[%s19090_s17 + $0x4d4] ss:$8 sps:$4 sm:$0xff]   ;;  %v16250_v15 = vld [vmem:[%s19090_s17 + $0x4d0] ss:$8 sps:$4 sm:$0xff]  }
 0x3f2   : > { %v1389_v18 = vpack.c.bf16 %v1387_v16, %v1387_v16  ;;  %v16255_v16 = vld [vmem:[%s19090_s17 + $0x4c4] ss:$8 sps:$4 sm:$0xff]  }
 0x3f4   : > { %1628 = vmatprep.mubr.bf16.mxu1 %v1389_v18  ;;  %v16253_v18 = vld [vmem:[%s19090_s17 + $0x4c0] ss:$8 sps:$4 sm:$0xff]  }
 0x3f5   : > { %1629 = vmatmul.mubr.bf16.vlgmr.msra.gmra.mxu1 %v1388_v19  ;;  %v16258_v19 = vld [vmem:[%s19090_s17 + $0x4b4] ss:$8 sps:$4 sm:$0xff]  }
 0x3f6   : > { %2115 = vmatpush1.bf16.msra.mxu1 %v16220_v35  ;;  %v16277_v35 = vld [vmem:[%s19090_s17 + $0x540] ss:$8 sps:$4 sm:$0xff]  }
 0x3f7   : > { %2116 = vmatprep.subr.bf16.mxu1 %v16225_v37  ;;  %v16280_v37 = vld [vmem:[%s19090_s17 + $0x530] ss:$8 sps:$4 sm:$0xff]  }
 0x3fa   : > { %2117 = vmatpush1.bf16.msra.mxu1 %v16223_v38  ;;  %v16285_v38 = vld [vmem:[%s19090_s17 + $0x524] ss:$8 sps:$4 sm:$0xff]  }
 0x3fb   : > { %2118 = vmatprep.subr.bf16.mxu1 %v16228_v39  ;;  %v16283_v39 = vld [vmem:[%s19090_s17 + $0x520] ss:$8 sps:$4 sm:$0xff]  }
 0x3fe   : > { %2119 = vmatpush1.bf16.msra.mxu1 %v16226_v40  ;;  %v16288_v40 = vld [vmem:[%s19090_s17 + $0x514] ss:$8 sps:$4 sm:$0xff]  }
 0x3ff   : > { %2120 = vmatprep.subr.bf16.mxu1 %v16231_v41  ;;  %v16286_v41 = vld [vmem:[%s19090_s17 + $0x510] ss:$8 sps:$4 sm:$0xff]  }
 0x402   : > { %2121 = vmatpush1.bf16.msra.mxu1 %v16229_v42  ;;  %v16291_v42 = vld [vmem:[%s19090_s17 + $0x504] ss:$8 sps:$4 sm:$0xff]  }
 0x403   : > { %2122 = vmatprep.subr.bf16.mxu1 %v16234_v43  ;;  %v16289_v43 = vld [vmem:[%s19090_s17 + $0x500] ss:$8 sps:$4 sm:$0xff]  }
 0x406   : > { %2123 = vmatpush1.bf16.msra.mxu1 %v16232_v44  ;;  %v16294_v44 = vld [vmem:[%s19090_s17 + $0x5f4] ss:$8 sps:$4 sm:$0xff]  }
 0x407   : > { %2124 = vmatprep.subr.bf16.mxu1 %v16237_v45  ;;  %v16292_v45 = vld [vmem:[%s19090_s17 + $0x5f0] ss:$8 sps:$4 sm:$0xff]  }
 0x40a   : > { %2125 = vmatpush1.bf16.msra.mxu1 %v16235_v46  ;;  %v13070_v46 = vld [vmem:[%s19092_s22 + $0x6] sm:$0x3] }
 0x40b   : > { %2126 = vmatprep.subr.bf16.mxu1 %v16240_v47  ;;  %v1688_v47 = vrot.slane %v13070_v46, %v19181_v11 }
 0x40e   : > { %2127 = vmatpush1.bf16.msra.mxu1 %v16238_v48  ;;  %v1692_v48 = vrot.slane %v13070_v46, %v19183_v12 }
 0x40f   : > { %2128 = vmatprep.subr.bf16.mxu1 %v16243_v49 }
 0x412   : > { %2129 = vmatpush1.bf16.msra.mxu1 %v16241_v50 }
 0x413   : > { %2130 = vmatprep.subr.bf16.mxu1 %v16246_v51 }
 0x416   : > { %2131 = vmatpush2.bf16.msra.mxu1 %v16244_v52 }
 0x417   : > { %2132 = vmatprep.subr.bf16.mxu1 %v16249_v10  ;;  %v16304_v10 = vld [vmem:[%s19090_s17 + $0x5b0] ss:$8 sps:$4 sm:$0xff]  }
 0x41a   : > { %2133 = vmatpush2.bf16.msra.mxu1 %v16247_v13  ;;  %v16309_v13 = vld [vmem:[%s19090_s17 + $0x5a4] ss:$8 sps:$4 sm:$0xff]  }
 0x41b   : > { %2134 = vmatprep.subr.bf16.mxu1 %v16252_v14  ;;  %v16307_v14 = vld [vmem:[%s19090_s17 + $0x5a0] ss:$8 sps:$4 sm:$0xff]  }
 0x41e   : > { %2135 = vmatpush2.bf16.msra.mxu1 %v16250_v15  ;;  %v16312_v15 = vld [vmem:[%s19090_s17 + $0x594] ss:$8 sps:$4 sm:$0xff]  }
 0x41f   : > { %2136 = vmatprep.subr.bf16.mxu1 %v16255_v16  ;;  %v16310_v16 = vld [vmem:[%s19090_s17 + $0x590] ss:$8 sps:$4 sm:$0xff]  }
 0x422   : > { %2137 = vmatpush2.bf16.msra.mxu1 %v16253_v18  ;;  %v16315_v18 = vld [vmem:[%s19090_s17 + $0x584] ss:$8 sps:$4 sm:$0xff]  }
 0x423   : > { %2138 = vmatprep.subr.bf16.mxu1 %v16258_v19  ;;  %v16313_v19 = vld [vmem:[%s19090_s17 + $0x580] ss:$8 sps:$4 sm:$0xff]  }
 0x426   : > { %2139 = vmatpush2.bf16.msra.mxu1 %v16256_v20  ;;  %v16316_v20 = vld [vmem:[%s19090_s17 + $0x670] ss:$8 sps:$4 sm:$0xff]  }
 0x427   : > { %2140 = vmatprep.subr.bf16.mxu1 %v16261_v21  ;;  %v16318_v21 = vld [vmem:[%s19090_s17 + $0x674] ss:$8 sps:$4 sm:$0xff]  }
 0x42a   : > { %2141 = vmatpush2.bf16.msra.mxu1 %v16259_v22  ;;  %v16321_v22 = vld [vmem:[%s19090_s17 + $0x664] ss:$8 sps:$4 sm:$0xff]  }
 0x42b   : > { %2142 = vmatprep.subr.bf16.mxu1 %v16264_v23  ;;  %v16319_v23 = vld [vmem:[%s19090_s17 + $0x660] ss:$8 sps:$4 sm:$0xff]  }
 0x42e   : > { %2143 = vmatpush2.bf16.msra.mxu1 %v16262_v24  ;;  %v16324_v24 = vld [vmem:[%s19090_s17 + $0x654] ss:$8 sps:$4 sm:$0xff]  }
 0x42f   : > { %2144 = vmatprep.subr.bf16.mxu1 %v16267_v25  ;;  %v16322_v25 = vld [vmem:[%s19090_s17 + $0x650] ss:$8 sps:$4 sm:$0xff]  }
 0x432   : > { %2145 = vmatpush2.bf16.msra.mxu1 %v16265_v27  ;;  %v16327_v27 = vld [vmem:[%s19090_s17 + $0x644] ss:$8 sps:$4 sm:$0xff]  }
 0x433   : > { %2632 = vmatprep.subr.bf16.mxu1 %v16318_v21  ;;  %v16378_v21 = vld [vmem:[%s19090_s17 + $0x734] ss:$8 sps:$4 sm:$0xff]  }
 0x4b5   : > { %v1630_v56 = vpop.f32.mrf.mxu1 }
 0x4b6   : > { %v1631_v57 = vadd.f32 %v1630_v56, %v1429_v54 }
 0x4b7   : > { %v1632_v58 = vpop.f32.mrf.mxu1 }
 0x4b8   : > { %v1639_v59 = vmul.f32 0.70710677, %v1631_v57  ;;  %v1633_v60 = vadd.f32 %v1632_v58, %v1433_v55  ;;  %v1637_v3 = vmul.f32 0.5, %v1631_v57 }
 0x4b9   : > { %v1634_v61 = vpop.f32.mrf.mxu1 }
 0x4ba   : > { %18060 = verf.f32 %v1639_v59  ;;  %v1640_v62 = vmul.f32 0.70710677, %v1633_v60  ;;  %v1638_v4 = vmul.f32 0.5, %v1633_v60 }
 0x4bb   : > { %v1635_v63 = vpop.f32.mrf.mxu1 }
 0x4bc   : > { %18062 = verf.f32 %v1640_v62 }
 0x4c7   : > { %v18061_v0 = vpop.eup %18060 }
 0x4c8   : > { %v1643_v1 = vadd.f32 1.0, %v18061_v0 }
 0x4c9   : > { %v18063_v2 = vpop.eup %18062 }
 0x4ca   : > { %v1644_v5 = vadd.f32 1.0, %v18063_v2  ;;  %v1645_v6 = vmul.f32 %v1643_v1, %v1637_v3  ;;  %v16297_v3 = vld [vmem:[%s19090_s17 + $0x5e4] ss:$8 sps:$4 sm:$0xff]  }
 0x4cc   : > { %v1646_v7 = vmul.f32 %v1644_v5, %v1638_v4  ;;  %v1647_v9 = vpack.c.bf16 %v1645_v6, %v1645_v6  ;;  %v16295_v4 = vld [vmem:[%s19090_s17 + $0x5e0] ss:$8 sps:$4 sm:$0xff]   ;;  %v16300_v5 = vld [vmem:[%s19090_s17 + $0x5d4] ss:$8 sps:$4 sm:$0xff]   ;;  %v16298_v6 = vld [vmem:[%s19090_s17 + $0x5d0] ss:$8 sps:$4 sm:$0xff]  }
 0x4ce   : > { %v1648_v8 = vpack.c.bf16 %v1646_v7, %v1646_v7  ;;  %v16303_v7 = vld [vmem:[%s19090_s17 + $0x5c4] ss:$8 sps:$4 sm:$0xff]  }
 0x4d0   : > { %1887 = vmatprep.mubr.bf16.mxu0 %v1648_v8  ;;  %v16301_v8 = vld [vmem:[%s19090_s17 + $0x5c0] ss:$8 sps:$4 sm:$0xff]  }
 0x4d1   : > { %1888 = vmatmul.mubr.bf16.vlgmr.msra.gmra.mxu0 %v1647_v9  ;;  %v16306_v9 = vld [vmem:[%s19090_s17 + $0x5b4] ss:$8 sps:$4 sm:$0xff]  }
 0x4d2   : > { %2374 = vmatpush1.bf16.msra.mxu0 %v16268_v28  ;;  %v16325_v28 = vld [vmem:[%s19090_s17 + $0x640] ss:$8 sps:$4 sm:$0xff]  }
 0x4d3   : > { %2375 = vmatprep.subr.bf16.mxu0 %v16273_v30  ;;  %v16328_v30 = vld [vmem:[%s19090_s17 + $0x630] ss:$8 sps:$4 sm:$0xff]  }
 0x4d6   : > { %2376 = vmatpush1.bf16.msra.mxu0 %v16271_v31  ;;  %v16333_v31 = vld [vmem:[%s19090_s17 + $0x624] ss:$8 sps:$4 sm:$0xff]  }
 0x4d7   : > { %2377 = vmatprep.subr.bf16.mxu0 %v16276_v32  ;;  %v16331_v32 = vld [vmem:[%s19090_s17 + $0x620] ss:$8 sps:$4 sm:$0xff]  }
 0x4da   : > { %2378 = vmatpush1.bf16.msra.mxu0 %v16274_v33  ;;  %v16336_v33 = vld [vmem:[%s19090_s17 + $0x614] ss:$8 sps:$4 sm:$0xff]  }
 0x4db   : > { %2379 = vmatprep.subr.bf16.mxu0 %v16279_v34  ;;  %v16334_v34 = vld [vmem:[%s19090_s17 + $0x610] ss:$8 sps:$4 sm:$0xff]  }
 0x4de   : > { %2380 = vmatpush1.bf16.msra.mxu0 %v16277_v35  ;;  %v16339_v35 = vld [vmem:[%s19090_s17 + $0x604] ss:$8 sps:$4 sm:$0xff]  }
 0x4df   : > { %2381 = vmatprep.subr.bf16.mxu0 %v16282_v36  ;;  %v16337_v36 = vld [vmem:[%s19090_s17 + $0x600] ss:$8 sps:$4 sm:$0xff]  }
 0x4e2   : > { %2382 = vmatpush1.bf16.msra.mxu0 %v16280_v37  ;;  %v16342_v37 = vld [vmem:[%s19090_s17 + $0x6f4] ss:$8 sps:$4 sm:$0xff]  }
 0x4e3   : > { %2383 = vmatprep.subr.bf16.mxu0 %v16285_v38  ;;  %v16340_v38 = vld [vmem:[%s19090_s17 + $0x6f0] ss:$8 sps:$4 sm:$0xff]  }
 0x4e6   : > { %2384 = vmatpush1.bf16.msra.mxu0 %v16283_v39  ;;  %v13135_v39 = vld [vmem:[%s19092_s22 + $0x8] sm:$0x3] }
 0x4e7   : > { %2385 = vmatprep.subr.bf16.mxu0 %v16288_v40  ;;  %v1947_v40 = vrot.slane %v13135_v39, %v19181_v11 }
 0x4ea   : > { %2386 = vmatpush1.bf16.msra.mxu0 %v16286_v41  ;;  %v1951_v41 = vrot.slane %v13135_v39, %v19183_v12 }
 0x4eb   : > { %2387 = vmatprep.subr.bf16.mxu0 %v16291_v42 }
 0x4ee   : > { %2388 = vmatpush1.bf16.msra.mxu0 %v16289_v43 }
 0x4ef   : > { %2389 = vmatprep.subr.bf16.mxu0 %v16294_v44 }
 0x4f2   : > { %2390 = vmatpush2.bf16.msra.mxu0 %v16292_v45 }
 0x4f3   : > { %2391 = vmatprep.subr.bf16.mxu0 %v16297_v3  ;;  %v16352_v3 = vld [vmem:[%s19090_s17 + $0x6b0] ss:$8 sps:$4 sm:$0xff]  }
 0x4f6   : > { %2392 = vmatpush2.bf16.msra.mxu0 %v16295_v4  ;;  %v16357_v4 = vld [vmem:[%s19090_s17 + $0x6a4] ss:$8 sps:$4 sm:$0xff]  }
 0x4f7   : > { %2393 = vmatprep.subr.bf16.mxu0 %v16300_v5  ;;  %v16355_v5 = vld [vmem:[%s19090_s17 + $0x6a0] ss:$8 sps:$4 sm:$0xff]  }
 0x4fa   : > { %2394 = vmatpush2.bf16.msra.mxu0 %v16298_v6  ;;  %v16360_v6 = vld [vmem:[%s19090_s17 + $0x694] ss:$8 sps:$4 sm:$0xff]  }
 0x4fb   : > { %2395 = vmatprep.subr.bf16.mxu0 %v16303_v7  ;;  %v16358_v7 = vld [vmem:[%s19090_s17 + $0x690] ss:$8 sps:$4 sm:$0xff]  }
 0x4fe   : > { %2396 = vmatpush2.bf16.msra.mxu0 %v16301_v8  ;;  %v16363_v8 = vld [vmem:[%s19090_s17 + $0x684] ss:$8 sps:$4 sm:$0xff]  }
 0x4ff   : > { %2397 = vmatprep.subr.bf16.mxu0 %v16306_v9  ;;  %v16361_v9 = vld [vmem:[%s19090_s17 + $0x680] ss:$8 sps:$4 sm:$0xff]  }
 0x502   : > { %2398 = vmatpush2.bf16.msra.mxu0 %v16304_v10  ;;  %v16364_v10 = vld [vmem:[%s19090_s17 + $0x770] ss:$8 sps:$4 sm:$0xff]  }
 0x503   : > { %2399 = vmatprep.subr.bf16.mxu0 %v16309_v13  ;;  %v16366_v13 = vld [vmem:[%s19090_s17 + $0x774] ss:$8 sps:$4 sm:$0xff]  }
 0x506   : > { %2400 = vmatpush2.bf16.msra.mxu0 %v16307_v14  ;;  %v16369_v14 = vld [vmem:[%s19090_s17 + $0x764] ss:$8 sps:$4 sm:$0xff]  }
 0x507   : > { %2401 = vmatprep.subr.bf16.mxu0 %v16312_v15  ;;  %v16367_v15 = vld [vmem:[%s19090_s17 + $0x760] ss:$8 sps:$4 sm:$0xff]  }
 0x50a   : > { %2402 = vmatpush2.bf16.msra.mxu0 %v16310_v16  ;;  %v16372_v16 = vld [vmem:[%s19090_s17 + $0x754] ss:$8 sps:$4 sm:$0xff]  }
 0x50b   : > { %2403 = vmatprep.subr.bf16.mxu0 %v16315_v18  ;;  %v16370_v18 = vld [vmem:[%s19090_s17 + $0x750] ss:$8 sps:$4 sm:$0xff]  }
 0x50e   : > { %2404 = vmatpush2.bf16.msra.mxu0 %v16313_v19  ;;  %v16375_v19 = vld [vmem:[%s19090_s17 + $0x744] ss:$8 sps:$4 sm:$0xff]  }
 0x50f   : > { %2891 = vmatprep.subr.bf16.mxu0 %v16366_v13 }
 0x591   : > { %v1889_v49 = vpop.f32.mrf.mxu0 }
 0x592   : > { %v1890_v50 = vadd.f32 %v1889_v49, %v1688_v47 }
 0x593   : > { %v1891_v51 = vpop.f32.mrf.mxu0 }
 0x594   : > { %v1898_v52 = vmul.f32 0.70710677, %v1890_v50  ;;  %v1892_v53 = vadd.f32 %v1891_v51, %v1692_v48  ;;  %v1896_v60 = vmul.f32 0.5, %v1890_v50 }
 0x595   : > { %v1893_v54 = vpop.f32.mrf.mxu0 }
 0x596   : > { %18064 = verf.f32 %v1898_v52  ;;  %v1899_v55 = vmul.f32 0.70710677, %v1892_v53  ;;  %v1897_v61 = vmul.f32 0.5, %v1892_v53 }
 0x597   : > { %v1894_v56 = vpop.f32.mrf.mxu0 }
 0x598   : > { %18066 = verf.f32 %v1899_v55 }
 0x5a3   : > { %v18065_v57 = vpop.eup %18064 }
 0x5a4   : > { %v1902_v58 = vadd.f32 1.0, %v18065_v57 }
 0x5a5   : > { %v18067_v59 = vpop.eup %18066 }
 0x5a6   : > { %v1903_v62 = vadd.f32 1.0, %v18067_v59  ;;  %v1904_v63 = vmul.f32 %v1902_v58, %v1896_v60  ;;  %v16345_v60 = vld [vmem:[%s19090_s17 + $0x6e4] ss:$8 sps:$4 sm:$0xff]  }
 0x5a8   : > { %v1905_v0 = vmul.f32 %v1903_v62, %v1897_v61  ;;  %v1906_v2 = vpack.c.bf16 %v1904_v63, %v1904_v63  ;;  %v16343_v61 = vld [vmem:[%s19090_s17 + $0x6e0] ss:$8 sps:$4 sm:$0xff]   ;;  %v16348_v62 = vld [vmem:[%s19090_s17 + $0x6d4] ss:$8 sps:$4 sm:$0xff]   ;;  %v16346_v63 = vld [vmem:[%s19090_s17 + $0x6d0] ss:$8 sps:$4 sm:$0xff]  }
 0x5aa   : > { %v1907_v1 = vpack.c.bf16 %v1905_v0, %v1905_v0  ;;  %v16351_v0 = vld [vmem:[%s19090_s17 + $0x6c4] ss:$8 sps:$4 sm:$0xff]  }
 0x5ac   : > { %2146 = vmatprep.mubr.bf16.mxu1 %v1907_v1  ;;  %v16349_v1 = vld [vmem:[%s19090_s17 + $0x6c0] ss:$8 sps:$4 sm:$0xff]  }
 0x5ad   : > { %2147 = vmatmul.mubr.bf16.vlgmr.msra.gmra.mxu1 %v1906_v2  ;;  %v16354_v2 = vld [vmem:[%s19090_s17 + $0x6b4] ss:$8 sps:$4 sm:$0xff]  }
 0x5ae   : > { %2633 = vmatpush1.bf16.msra.mxu1 %v16316_v20  ;;  %v16373_v20 = vld [vmem:[%s19090_s17 + $0x740] ss:$8 sps:$4 sm:$0xff]  }
 0x5af   : > { %2634 = vmatprep.subr.bf16.mxu1 %v16321_v22  ;;  %v16376_v22 = vld [vmem:[%s19090_s17 + $0x730] ss:$8 sps:$4 sm:$0xff]  }
 0x5b2   : > { %2635 = vmatpush1.bf16.msra.mxu1 %v16319_v23  ;;  %v16381_v23 = vld [vmem:[%s19090_s17 + $0x724] ss:$8 sps:$4 sm:$0xff]  }
 0x5b3   : > { %2636 = vmatprep.subr.bf16.mxu1 %v16324_v24  ;;  %v16379_v24 = vld [vmem:[%s19090_s17 + $0x720] ss:$8 sps:$4 sm:$0xff]  }
 0x5b6   : > { %2637 = vmatpush1.bf16.msra.mxu1 %v16322_v25  ;;  %v16384_v25 = vld [vmem:[%s19090_s17 + $0x714] ss:$8 sps:$4 sm:$0xff]  }
 0x5b7   : > { %2638 = vmatprep.subr.bf16.mxu1 %v16327_v27  ;;  %v16382_v27 = vld [vmem:[%s19090_s17 + $0x710] ss:$8 sps:$4 sm:$0xff]  }
 0x5ba   : > { %2639 = vmatpush1.bf16.msra.mxu1 %v16325_v28  ;;  %v16387_v28 = vld [vmem:[%s19090_s17 + $0x704] ss:$8 sps:$4 sm:$0xff]  }
 0x5bb   : > { %2640 = vmatprep.subr.bf16.mxu1 %v16330_v29  ;;  %v16385_v29 = vld [vmem:[%s19090_s17 + $0x700] ss:$8 sps:$4 sm:$0xff]  }
 0x5be   : > { %2641 = vmatpush1.bf16.msra.mxu1 %v16328_v30  ;;  %v16390_v30 = vld [vmem:[%s19090_s17 + $0x7f4] ss:$8 sps:$4 sm:$0xff]  }
 0x5bf   : > { %2642 = vmatprep.subr.bf16.mxu1 %v16333_v31  ;;  %v16388_v31 = vld [vmem:[%s19090_s17 + $0x7f0] ss:$8 sps:$4 sm:$0xff]  }
 0x5c2   : > { %2643 = vmatpush1.bf16.msra.mxu1 %v16331_v32  ;;  %v16393_v32 = vld [vmem:[%s19090_s17 + $0x7e4] ss:$8 sps:$4 sm:$0xff]  }
 0x5c3   : > { %2644 = vmatprep.subr.bf16.mxu1 %v16336_v33  ;;  %v16391_v33 = vld [vmem:[%s19090_s17 + $0x7e0] ss:$8 sps:$4 sm:$0xff]  }
 0x5c6   : > { %2645 = vmatpush1.bf16.msra.mxu1 %v16334_v34  ;;  %v13200_v34 = vld [vmem:[%s19092_s22 + $0xa] sm:$0x3] }
 0x5c7   : > { %2646 = vmatprep.subr.bf16.mxu1 %v16339_v35  ;;  %v2206_v35 = vrot.slane %v13200_v34, %v19181_v11 }
 0x5ca   : > { %2647 = vmatpush1.bf16.msra.mxu1 %v16337_v36  ;;  %v2210_v36 = vrot.slane %v13200_v34, %v19183_v12  ;;  %v16416_v34 = vld [vmem:[%s19082_s24 + $0x1c] ss:$8 sps:$4 sm:$0xff]  }
 0x5cb   : > { %2648 = vmatprep.subr.bf16.mxu1 %v16342_v37 }
 0x5ce   : > { %2649 = vmatpush2.bf16.msra.mxu1 %v16340_v38 }
 0x5cf   : > { %2650 = vmatprep.subr.bf16.mxu1 %v16345_v60  ;;  %v16400_v60 = vld [vmem:[%s19090_s17 + $0x7b0] ss:$8 sps:$4 sm:$0xff]  }
 0x5d2   : > { %2651 = vmatpush2.bf16.msra.mxu1 %v16343_v61  ;;  %v16405_v61 = vld [vmem:[%s19090_s17 + $0x7a4] ss:$8 sps:$4 sm:$0xff]  }
 0x5d3   : > { %2652 = vmatprep.subr.bf16.mxu1 %v16348_v62  ;;  %v16403_v62 = vld [vmem:[%s19090_s17 + $0x7a0] ss:$8 sps:$4 sm:$0xff]  }
 0x5d6   : > { %2653 = vmatpush2.bf16.msra.mxu1 %v16346_v63  ;;  %v16408_v63 = vld [vmem:[%s19090_s17 + $0x794] ss:$8 sps:$4 sm:$0xff]  }
 0x5d7   : > { %2654 = vmatprep.subr.bf16.mxu1 %v16351_v0  ;;  %v16406_v0 = vld [vmem:[%s19090_s17 + $0x790] ss:$8 sps:$4 sm:$0xff]  }
 0x5da   : > { %2655 = vmatpush2.bf16.msra.mxu1 %v16349_v1  ;;  %v16411_v1 = vld [vmem:[%s19090_s17 + $0x784] ss:$8 sps:$4 sm:$0xff]  }
 0x5db   : > { %2656 = vmatprep.subr.bf16.mxu1 %v16354_v2  ;;  %v16409_v2 = vld [vmem:[%s19090_s17 + $0x780] ss:$8 sps:$4 sm:$0xff]  }
 0x5de   : > { %2657 = vmatpush2.bf16.msra.mxu1 %v16352_v3  ;;  %v13382_v3 = vld [vmem:[%s19082_s24 + $0x28] sm:$0x33] }
 0x5df   : > { %2658 = vmatprep.subr.bf16.mxu1 %v16357_v4  ;;  %v13387_v4 = vcombine.high %v13382_v3, %v13382_v3 }
 0x5e2   : > { %2659 = vmatpush2.bf16.msra.mxu1 %v16355_v5  ;;  %v16435_v5 = vld [vmem:[%s19116_s30 + $0x78] sm:$0xff]  }
 0x5e3   : > { %2660 = vmatprep.subr.bf16.mxu1 %v16360_v6  ;;  %v16439_v6 = vld [vmem:[%s19116_s30 + $0x38] sm:$0xff]  }
 0x5e6   : > { %2661 = vmatpush2.bf16.msra.mxu1 %v16358_v7  ;;  %v13265_v7 = vld [vmem:[%s19092_s22 + $0xc] sm:$0x3] }
 0x5e7   : > { %2662 = vmatprep.subr.bf16.mxu1 %v16363_v8  ;;  %v2465_v8 = vrot.slane %v13265_v7, %v19181_v11 }
 0x5ea   : > { %2663 = vmatpush2.bf16.msra.mxu1 %v16361_v9  ;;  %v2469_v9 = vrot.slane %v13265_v7, %v19183_v12  ;;  %v16468_v7 = vld [vmem:[%s19090_s17 + $0x8b4] ss:$8 sps:$4 sm:$0xff]  }
 0x5eb   : > { %15722 = vmatprep.subr.bf16.mxu1 %v16435_v5  ;;  %v16464_v5 = vld [vmem:[%s19116_s30 + $0x10] sm:$0xff]  }
 0x66d   : > { %v2148_v42 = vpop.f32.mrf.mxu1 }
 0x66e   : > { %v2149_v43 = vadd.f32 %v2148_v42, %v1947_v40 }
 0x66f   : > { %v2150_v44 = vpop.f32.mrf.mxu1 }
 0x670   : > { %v2157_v45 = vmul.f32 0.70710677, %v2149_v43  ;;  %v2151_v46 = vadd.f32 %v2150_v44, %v1951_v41  ;;  %v2155_v53 = vmul.f32 0.5, %v2149_v43 }
 0x671   : > { %v2152_v47 = vpop.f32.mrf.mxu1 }
 0x672   : > { %18068 = verf.f32 %v2157_v45  ;;  %v2158_v48 = vmul.f32 0.70710677, %v2151_v46  ;;  %v2156_v54 = vmul.f32 0.5, %v2151_v46 }
 0x673   : > { %v2153_v49 = vpop.f32.mrf.mxu1 }
 0x674   : > { %18070 = verf.f32 %v2158_v48 }
 0x67f   : > { %v18069_v50 = vpop.eup %18068 }
 0x680   : > { %v2161_v51 = vadd.f32 1.0, %v18069_v50 }
 0x681   : > { %v18071_v52 = vpop.eup %18070 }
 0x682   : > { %v2162_v55 = vadd.f32 1.0, %v18071_v52  ;;  %v2163_v56 = vmul.f32 %v2161_v51, %v2155_v53 }
 0x684   : > { %v2164_v57 = vmul.f32 %v2162_v55, %v2156_v54  ;;  %v2165_v59 = vpack.c.bf16 %v2163_v56, %v2163_v56  ;;  %v16396_v55 = vld [vmem:[%s19090_s17 + $0x7d4] ss:$8 sps:$4 sm:$0xff]   ;;  %v16394_v56 = vld [vmem:[%s19090_s17 + $0x7d0] ss:$8 sps:$4 sm:$0xff]  }
 0x686   : > { %v2166_v58 = vpack.c.bf16 %v2164_v57, %v2164_v57  ;;  %v16399_v57 = vld [vmem:[%s19090_s17 + $0x7c4] ss:$8 sps:$4 sm:$0xff]  }
 0x688   : > { %2405 = vmatprep.mubr.bf16.mxu0 %v2166_v58  ;;  %v16397_v58 = vld [vmem:[%s19090_s17 + $0x7c0] ss:$8 sps:$4 sm:$0xff]  }
 0x689   : > { %2406 = vmatmul.mubr.bf16.vlgmr.msra.gmra.mxu0 %v2165_v59  ;;  %v16402_v59 = vld [vmem:[%s19090_s17 + $0x7b4] ss:$8 sps:$4 sm:$0xff]  }
 0x68a   : > { %2892 = vmatpush1.bf16.msra.mxu0 %v16364_v10 }
 0x68b   : > { %2893 = vmatprep.subr.bf16.mxu0 %v16369_v14 }
 0x68e   : > { %2894 = vmatpush1.bf16.msra.mxu0 %v16367_v15 }
 0x68f   : > { %2895 = vmatprep.subr.bf16.mxu0 %v16372_v16 }
 0x692   : > { %2896 = vmatpush1.bf16.msra.mxu0 %v16370_v18 }
 0x693   : > { %2897 = vmatprep.subr.bf16.mxu0 %v16375_v19 }
 0x696   : > { %2898 = vmatpush1.bf16.msra.mxu0 %v16373_v20 }
 0x697   : > { %2899 = vmatprep.subr.bf16.mxu0 %v16378_v21 }
 0x69a   : > { %2900 = vmatpush1.bf16.msra.mxu0 %v16376_v22 }
 0x69b   : > { %2901 = vmatprep.subr.bf16.mxu0 %v16381_v23 }
 0x69e   : > { %2902 = vmatpush1.bf16.msra.mxu0 %v16379_v24 }
 0x69f   : > { %2903 = vmatprep.subr.bf16.mxu0 %v16384_v25 }
 0x6a2   : > { %2904 = vmatpush1.bf16.msra.mxu0 %v16382_v27 }
 0x6a3   : > { %2905 = vmatprep.subr.bf16.mxu0 %v16387_v28 }
 0x6a6   : > { %2906 = vmatpush1.bf16.msra.mxu0 %v16385_v29  ;;  %v13386_v29 = vcombine.low %v13382_v3, %v13382_v3  ;;  %v16463_v3 = vld [vmem:[%s19090_s17 + $0x8c4] ss:$8 sps:$4 sm:$0xff]  }
 0x6a7   : > { %2907 = vmatprep.subr.bf16.mxu0 %v16390_v30 }
 0x6aa   : > { %2908 = vmatpush2.bf16.msra.mxu0 %v16388_v31 }
 0x6ab   : > { %2909 = vmatprep.subr.bf16.mxu0 %v16393_v32 }
 0x6ae   : > { %2910 = vmatpush2.bf16.msra.mxu0 %v16391_v33  ;;  %v3152_v33 = vsel %vm814_vm4, %v13386_v29, 0  ;;  %v13383_v29 = vld [vmem:[%s19088_s28 + $0x2] sm:$0x3] }
 0x6af   : > { %2911 = vmatprep.subr.bf16.mxu0 %v16396_v55  ;;  %v16448_v55 = vld [vmem:[%s19090_s17 + $0x8f4] ss:$8 sps:$4 sm:$0xff]  }
 0x6b2   : > { %2912 = vmatpush2.bf16.msra.mxu0 %v16394_v56  ;;  %v16446_v56 = vld [vmem:[%s19090_s17 + $0x8f0] ss:$8 sps:$4 sm:$0xff]  }
 0x6b3   : > { %2913 = vmatprep.subr.bf16.mxu0 %v16399_v57  ;;  %v16449_v57 = vld [vmem:[%s19116_s30 + $0x28] sm:$0xff]  }
 0x6b6   : > { %2914 = vmatpush2.bf16.msra.mxu0 %v16397_v58  ;;  %v16450_v58 = vld [vmem:[%s19116_s30 + $0x60] sm:$0xff]  }
 0x6b7   : > { %2915 = vmatprep.subr.bf16.mxu0 %v16402_v59  ;;  %v16453_v59 = vld [vmem:[%s19090_s17 + $0x8e4] ss:$8 sps:$4 sm:$0xff]  }
 0x6ba   : > { %2916 = vmatpush2.bf16.msra.mxu0 %v16400_v60  ;;  %v16451_v60 = vld [vmem:[%s19090_s17 + $0x8e0] ss:$8 sps:$4 sm:$0xff]  }
 0x6bb   : > { %2917 = vmatprep.subr.bf16.mxu0 %v16405_v61  ;;  %v16454_v61 = vld [vmem:[%s19116_s30 + $0x20] sm:$0xff]  }
 0x6be   : > { %2918 = vmatpush2.bf16.msra.mxu0 %v16403_v62  ;;  %v16455_v62 = vld [vmem:[%s19116_s30 + $0x58] sm:$0xff]  }
 0x6bf   : > { %2919 = vmatprep.subr.bf16.mxu0 %v16408_v63  ;;  %v16458_v63 = vld [vmem:[%s19090_s17 + $0x8d4] ss:$8 sps:$4 sm:$0xff]  }
 0x6c2   : > { %2920 = vmatpush2.bf16.msra.mxu0 %v16406_v0  ;;  %v16456_v0 = vld [vmem:[%s19090_s17 + $0x8d0] ss:$8 sps:$4 sm:$0xff]  }
 0x6c3   : > { %2921 = vmatprep.subr.bf16.mxu0 %v16411_v1  ;;  %v16459_v1 = vld [vmem:[%s19116_s30 + $0x18] sm:$0xff]  }
 0x6c6   : > { %2922 = vmatpush2.bf16.msra.mxu0 %v16409_v2  ;;  %v16460_v2 = vld [vmem:[%s19116_s30 + $0x50] sm:$0xff]  }
 0x6c7   : > { %13388 = vmatprep.subr.msk.bf16.mxu0 %vm814_vm4, %v13387_v4  ;;  %v16461_v4 = vld [vmem:[%s19090_s17 + $0x8c0] ss:$8 sps:$4 sm:$0xff]  }
 0x749   : > { %v2407_v37 = vpop.f32.mrf.mxu0 }
 0x74a   : > { %v2408_v38 = vadd.f32 %v2407_v37, %v2206_v35  ;;  %v16414_v35 = vld [vmem:[%s19082_s24 + $0x18] ss:$8 sps:$4 sm:$0xff]   ;;  %v16417_v37 = vld [vmem:[%s19090_s17 + $0x870] ss:$8 sps:$4 sm:$0xff]  }
 0x74b   : > { %v2409_v39 = vpop.f32.mrf.mxu0 }
 0x74c   : > { %v2416_v40 = vmul.f32 0.70710677, %v2408_v38  ;;  %v2410_v41 = vadd.f32 %v2409_v39, %v2210_v36  ;;  %v2414_v48 = vmul.f32 0.5, %v2408_v38  ;;  %v16419_v36 = vld [vmem:[%s19090_s17 + $0x874] ss:$8 sps:$4 sm:$0xff]  }
 0x74d   : > { %v2411_v42 = vpop.f32.mrf.mxu0  ;;  %v16422_v38 = vld [vmem:[%s19090_s17 + $0x864] ss:$8 sps:$4 sm:$0xff]   ;;  %v16420_v39 = vld [vmem:[%s19090_s17 + $0x860] ss:$8 sps:$4 sm:$0xff]  }
 0x74e   : > { %18072 = verf.f32 %v2416_v40  ;;  %v2417_v43 = vmul.f32 0.70710677, %v2410_v41  ;;  %v2415_v49 = vmul.f32 0.5, %v2410_v41  ;;  %v16425_v40 = vld [vmem:[%s19090_s17 + $0x854] ss:$8 sps:$4 sm:$0xff]  }
 0x74f   : > { %v2412_v44 = vpop.f32.mrf.mxu0  ;;  %v16423_v41 = vld [vmem:[%s19090_s17 + $0x850] ss:$8 sps:$4 sm:$0xff]   ;;  %v16428_v42 = vld [vmem:[%s19090_s17 + $0x844] ss:$8 sps:$4 sm:$0xff]  }
 0x750   : > { %18074 = verf.f32 %v2417_v43  ;;  %v16426_v43 = vld [vmem:[%s19090_s17 + $0x840] ss:$8 sps:$4 sm:$0xff]   ;;  %v16431_v44 = vld [vmem:[%s19090_s17 + $0x834] ss:$8 sps:$4 sm:$0xff]  }
 0x75b   : > { %v18073_v45 = vpop.eup %18072 }
 0x75c   : > { %v2420_v46 = vadd.f32 1.0, %v18073_v45  ;;  %v16429_v45 = vld [vmem:[%s19090_s17 + $0x830] ss:$8 sps:$4 sm:$0xff]  }
 0x75d   : > { %v18075_v47 = vpop.eup %18074 }
 0x75e   : > { %v2421_v50 = vadd.f32 1.0, %v18075_v47  ;;  %v2422_v51 = vmul.f32 %v2420_v46, %v2414_v48  ;;  %v16434_v46 = vld [vmem:[%s19090_s17 + $0x824] ss:$8 sps:$4 sm:$0xff]   ;;  %v16432_v47 = vld [vmem:[%s19090_s17 + $0x820] ss:$8 sps:$4 sm:$0xff]  }
 0x75f   : > { %v16438_v48 = vld [vmem:[%s19090_s17 + $0x814] ss:$8 sps:$4 sm:$0xff]  }
 0x760   : > { %v2423_v52 = vmul.f32 %v2421_v50, %v2415_v49  ;;  %v2424_v54 = vpack.c.bf16 %v2422_v51, %v2422_v51  ;;  %v16436_v49 = vld [vmem:[%s19090_s17 + $0x810] ss:$8 sps:$4 sm:$0xff]   ;;  %v16443_v51 = vld [vmem:[%s19090_s17 + $0x804] ss:$8 sps:$4 sm:$0xff]  }
 0x761   : > { %v16440_v50 = vld [vmem:[%s19116_s30 + $0x70] sm:$0xff]  }
 0x762   : > { %v2425_v53 = vpack.c.bf16 %v2423_v52, %v2423_v52  ;;  %v16441_v52 = vld [vmem:[%s19090_s17 + $0x800] ss:$8 sps:$4 sm:$0xff]  }
 0x764   : > { %2664 = vmatprep.mubr.bf16.mxu1 %v2425_v53  ;;  %v16444_v53 = vld [vmem:[%s19116_s30 + $0x30] sm:$0xff]  }
 0x765   : > { %2665 = vmatmul.mubr.bf16.vlgmr.msra.gmra.mxu1 %v2424_v54  ;;  %v16445_v54 = vld [vmem:[%s19116_s30 + $0x68] sm:$0xff]  }
 0x766   : > { %15723 = vmatpush3.bf16.msra.mxu1 %v16439_v6  ;;  %v16465_v6 = vld [vmem:[%s19116_s30 + $0x48] sm:$0xff]  }
 0x767   : > { %15724 = vmatprep.subr.bf16.mxu1 %v16440_v50 }
 0x76a   : > { %15725 = vmatpush3.bf16.msra.mxu1 %v16444_v53 }
 0x76b   : > { %15726 = vmatprep.subr.bf16.mxu1 %v16445_v54  ;;  %v16481_v54 = vld [vmem:[%s19090_s17 + $0x970] ss:$8 sps:$4 sm:$0xff]  }
 0x76e   : > { %15727 = vmatpush3.bf16.msra.mxu1 %v16449_v57  ;;  %v16486_v57 = vld [vmem:[%s19090_s17 + $0x964] ss:$8 sps:$4 sm:$0xff]  }
 0x76f   : > { %15728 = vmatprep.subr.bf16.mxu1 %v16450_v58 }
 0x772   : > { %15729 = vmatpush3.bf16.msra.mxu1 %v16454_v61 }
 0x773   : > { %15730 = vmatprep.subr.bf16.mxu1 %v16455_v62 }
 0x776   : > { %15731 = vmatpush3.bf16.msra.mxu1 %v16459_v1  ;;  %v16489_v1 = vld [vmem:[%s19090_s17 + $0x954] ss:$8 sps:$4 sm:$0xff]  }
 0x777   : > { %15732 = vmatprep.subr.bf16.mxu1 %v16460_v2 }
 0x77a   : > { %15733 = vmatpush3.bf16.msra.mxu1 %v16464_v5 }
 0x77b   : > { %15734 = vmatprep.subr.bf16.mxu1 %v16465_v6  ;;  %v16492_v6 = vld [vmem:[%s19090_s17 + $0x944] ss:$8 sps:$4 sm:$0xff]  }
 0x825   : > { %v2666_v10 = vpop.f32.mrf.mxu1 }
 0x826   : > { %v2667_v13 = vadd.f32 %v2666_v10, %v2465_v8  ;;  %v16466_v8 = vld [vmem:[%s19090_s17 + $0x8b0] ss:$8 sps:$4 sm:$0xff]   ;;  %v16470_v10 = vld [vmem:[%s19116_s30 + $0x40] sm:$0xff]  }
 0x827   : > { %v2668_v14 = vpop.f32.mrf.mxu1 }
 0x828   : > { %v2675_v15 = vmul.f32 0.70710677, %v2667_v13  ;;  %v2669_v16 = vadd.f32 %v2668_v14, %v2469_v9  ;;  %v2673_v24 = vmul.f32 0.5, %v2667_v13  ;;  %v16469_v9 = vld [vmem:[%s19116_s30 + $0x8] sm:$0xff]  }
 0x829   : > { %v2670_v18 = vpop.f32.mrf.mxu1  ;;  %15735 = vmatpush3.bf16.msra.mxu1 %v16469_v9  ;;  %v16473_v13 = vld [vmem:[%s19090_s17 + $0x8a4] ss:$8 sps:$4 sm:$0xff]   ;;  %v16471_v14 = vld [vmem:[%s19090_s17 + $0x8a0] ss:$8 sps:$4 sm:$0xff]   ;;  %v16493_v9 = vld [vmem:[%s19090_s17 + $0x930] ss:$8 sps:$4 sm:$0xff]  }
 0x82a   : > { %18076 = verf.f32 %v2675_v15  ;;  %v2676_v19 = vmul.f32 0.70710677, %v2669_v16  ;;  %v2674_v25 = vmul.f32 0.5, %v2669_v16  ;;  %v16474_v15 = vld [vmem:[%s19116_s30] sm:$0xff]   ;;  %15736 = vmatprep.subr.bf16.mxu1 %v16470_v10  ;;  %v16477_v16 = vld [vmem:[%s19090_s17 + $0x894] ss:$8 sps:$4 sm:$0xff]  }
 0x82b   : > { %v2671_v20 = vpop.f32.mrf.mxu1  ;;  %v16475_v18 = vld [vmem:[%s19090_s17 + $0x890] ss:$8 sps:$4 sm:$0xff]   ;;  %v16498_v10 = vld [vmem:[%s19090_s17 + $0x924] ss:$8 sps:$4 sm:$0xff]  }
 0x82c   : > { %18078 = verf.f32 %v2676_v19  ;;  %v16480_v19 = vld [vmem:[%s19090_s17 + $0x884] ss:$8 sps:$4 sm:$0xff]   ;;  %v16478_v20 = vld [vmem:[%s19090_s17 + $0x880] ss:$8 sps:$4 sm:$0xff]  }
 0x82d   : > { %15737 = vmatpush3.bf16.msra.mxu1 %v16474_v15  ;;  %v16499_v15 = vld [vmem:[%s19090_s17 + $0x910] ss:$8 sps:$4 sm:$0xff]  }
 0x837   : > { %v18077_v21 = vpop.eup %18076 }
 0x838   : > { %v2679_v22 = vadd.f32 1.0, %v18077_v21  ;;  %v16483_v21 = vld [vmem:[%s19090_s17 + $0x974] ss:$8 sps:$4 sm:$0xff]  }
 0x839   : > { %v18079_v23 = vpop.eup %18078  ;;  %3675 = vmatprep.subr.bf16.mxu1 %v16483_v21  ;;  %v16510_v21 = vld [vmem:[%s19090_s17 + $0x9e4] ss:$8 sps:$4 sm:$0xff]  }
 0x83a   : > { %v2680_v27 = vadd.f32 1.0, %v18079_v23  ;;  %v2681_v28 = vmul.f32 %v2679_v22, %v2673_v24  ;;  %v13330_v22 = vld [vmem:[%s19092_s22 + $0xe] sm:$0x3] }
 0x83b   : > { %v2724_v23 = vrot.slane %v13330_v22, %v19181_v11  ;;  %v2728_v24 = vrot.slane %v13330_v22, %v19183_v12  ;;  %v16508_v22 = vld [vmem:[%s19090_s17 + $0x9e0] ss:$8 sps:$4 sm:$0xff]  }
 0x83c   : > { %v2682_v30 = vmul.f32 %v2680_v27, %v2674_v25  ;;  %v2683_v32 = vpack.c.bf16 %v2681_v28, %v2681_v28 }
 0x83e   : > { %v2684_v31 = vpack.c.bf16 %v2682_v30, %v2682_v30 }
 0x840   : > { %2923 = vmatprep.mubr.bf16.mxu0 %v2684_v31 }
 0x841   : > { %2924 = vmatmul.mubr.bf16.vlgmr.msra.gmra.mxu0 %v2683_v32 }
 0x842   : > { %3170 = vmatpush1.bf16.msra.mxu0 %v3152_v33  ;;  %3189 = vmatprep.mubr.bf16.mxu0 %v18687_v17 }
 0x843   : > { %3171 = vmatprep.subr.bf16.mxu0 %v16416_v34  ;;  %v3129_v34 = vrot.slane %v13383_v29, %v19181_v11 }
 0x846   : > { %3172 = vmatpush1.bf16.msra.mxu0 %v16414_v35 }
 0x847   : > { %3416 = vmatprep.subr.bf16.mxu0 %v16419_v36  ;;  %v3133_v36 = vrot.slane %v13383_v29, %v19183_v12  ;;  %v16517_v29 = vld [vmem:[%s19090_s17 + $0x9b0] ss:$8 sps:$4 sm:$0xff]  }
 0x849   : > { %13389 = vmatmul.mubr.msk.bf16.vlgmr.msra.gmra.mxu0 %vm810_vm5, %v19131_v26 }
 0x84a   : > { %3417 = vmatpush1.bf16.msra.mxu0 %v16417_v37 }
 0x84b   : > { %3418 = vmatprep.subr.bf16.mxu0 %v16422_v38 }
 0x84e   : > { %3419 = vmatpush1.bf16.msra.mxu0 %v16420_v39 }
 0x84f   : > { %3420 = vmatprep.subr.bf16.mxu0 %v16425_v40 }
 0x852   : > { %3421 = vmatpush1.bf16.msra.mxu0 %v16423_v41 }
 0x853   : > { %3422 = vmatprep.subr.bf16.mxu0 %v16428_v42 }
 0x856   : > { %3423 = vmatpush1.bf16.msra.mxu0 %v16426_v43 }
 0x857   : > { %3424 = vmatprep.subr.bf16.mxu0 %v16431_v44 }
 0x85a   : > { %3425 = vmatpush1.bf16.msra.mxu0 %v16429_v45 }
 0x85b   : > { %3426 = vmatprep.subr.bf16.mxu0 %v16434_v46 }
 0x85e   : > { %3427 = vmatpush1.bf16.msra.mxu0 %v16432_v47 }
 0x85f   : > { %3428 = vmatprep.subr.bf16.mxu0 %v16438_v48 }
 0x862   : > { %3429 = vmatpush1.bf16.msra.mxu0 %v16436_v49 }
 0x863   : > { %3430 = vmatprep.subr.bf16.mxu0 %v16443_v51 }
 0x866   : > { %3431 = vmatpush1.bf16.msra.mxu0 %v16441_v52 }
 0x867   : > { %3432 = vmatprep.subr.bf16.mxu0 %v16448_v55 }
 0x86a   : > { %3433 = vmatpush2.bf16.msra.mxu0 %v16446_v56 }
 0x86b   : > { %3434 = vmatprep.subr.bf16.mxu0 %v16453_v59 }
 0x86e   : > { %3435 = vmatpush2.bf16.msra.mxu0 %v16451_v60 }
 0x86f   : > { %3436 = vmatprep.subr.bf16.mxu0 %v16458_v63  ;;  %v16484_v63 = vld [vmem:[%s19090_s17 + $0x960] ss:$8 sps:$4 sm:$0xff]  }
 0x872   : > { %3437 = vmatpush2.bf16.msra.mxu0 %v16456_v0 }
 0x873   : > { %3438 = vmatprep.subr.bf16.mxu0 %v16463_v3 }
 0x876   : > { %3439 = vmatpush2.bf16.msra.mxu0 %v16461_v4  ;;  %v16487_v4 = vld [vmem:[%s19090_s17 + $0x950] ss:$8 sps:$4 sm:$0xff]  }
 0x877   : > { %3440 = vmatprep.subr.bf16.mxu0 %v16468_v7  ;;  %v16490_v7 = vld [vmem:[%s19090_s17 + $0x940] ss:$8 sps:$4 sm:$0xff]  }
 0x87a   : > { %3441 = vmatpush2.bf16.msra.mxu0 %v16466_v8  ;;  %v16495_v8 = vld [vmem:[%s19090_s17 + $0x934] ss:$8 sps:$4 sm:$0xff]  }
 0x87b   : > { %3442 = vmatprep.subr.bf16.mxu0 %v16473_v13  ;;  %v16496_v13 = vld [vmem:[%s19090_s17 + $0x920] ss:$8 sps:$4 sm:$0xff]  }
 0x87e   : > { %3443 = vmatpush2.bf16.msra.mxu0 %v16471_v14  ;;  %v16501_v14 = vld [vmem:[%s19090_s17 + $0x914] ss:$8 sps:$4 sm:$0xff]  }
 0x87f   : > { %3444 = vmatprep.subr.bf16.mxu0 %v16477_v16  ;;  %v16504_v16 = vld [vmem:[%s19090_s17 + $0x904] ss:$8 sps:$4 sm:$0xff]  }
 0x882   : > { %3445 = vmatpush2.bf16.msra.mxu0 %v16475_v18  ;;  %v16502_v18 = vld [vmem:[%s19090_s17 + $0x900] ss:$8 sps:$4 sm:$0xff]  }
 0x883   : > { %3446 = vmatprep.subr.bf16.mxu0 %v16480_v19  ;;  %v16507_v19 = vld [vmem:[%s19090_s17 + $0x9f4] ss:$8 sps:$4 sm:$0xff]  }
 0x886   : > { %3447 = vmatpush2.bf16.msra.mxu0 %v16478_v20  ;;  %v16505_v20 = vld [vmem:[%s19090_s17 + $0x9f0] ss:$8 sps:$4 sm:$0xff]  }
 0x901   : > { %v2925_v25 = vpop.f32.mrf.mxu0 }
 0x902   : > { %v2926_v27 = vadd.f32 %v2925_v25, %v2724_v23  ;;  %v16513_v23 = vld [vmem:[%s19090_s17 + $0x9d4] ss:$8 sps:$4 sm:$0xff]   ;;  %v16516_v25 = vld [vmem:[%s19090_s17 + $0x9c4] ss:$8 sps:$4 sm:$0xff]  }
 0x903   : > { %v2927_v28 = vpop.f32.mrf.mxu0 }
 0x904   : > { %v2934_v30 = vmul.f32 0.70710677, %v2926_v27  ;;  %v2928_v31 = vadd.f32 %v2927_v28, %v2728_v24  ;;  %v2932_v48 = vmul.f32 0.5, %v2926_v27  ;;  %v16511_v24 = vld [vmem:[%s19090_s17 + $0x9d0] ss:$8 sps:$4 sm:$0xff]  }
 0x905   : > { %v2929_v32 = vpop.f32.mrf.mxu0  ;;  %v16514_v27 = vld [vmem:[%s19090_s17 + $0x9c0] ss:$8 sps:$4 sm:$0xff]   ;;  %v16519_v28 = vld [vmem:[%s19090_s17 + $0x9b4] ss:$8 sps:$4 sm:$0xff]  }
 0x906   : > { %18080 = verf.f32 %v2934_v30  ;;  %v2935_v33 = vmul.f32 0.70710677, %v2928_v31  ;;  %v2933_v49 = vmul.f32 0.5, %v2928_v31  ;;  %v16522_v30 = vld [vmem:[%s19090_s17 + $0x9a4] ss:$8 sps:$4 sm:$0xff]  }
 0x907   : > { %v2930_v35 = vpop.f32.mrf.mxu0  ;;  %v16520_v31 = vld [vmem:[%s19090_s17 + $0x9a0] ss:$8 sps:$4 sm:$0xff]   ;;  %v16525_v32 = vld [vmem:[%s19090_s17 + $0x994] ss:$8 sps:$4 sm:$0xff]  }
 0x908   : > { %18082 = verf.f32 %v2935_v33  ;;  %v16523_v33 = vld [vmem:[%s19090_s17 + $0x990] ss:$8 sps:$4 sm:$0xff]   ;;  %v16526_v35 = vld [vmem:[%s19090_s17 + $0x980] ss:$8 sps:$4 sm:$0xff]  }
 0x909   : > { %v3191_v37 = vpop.f32.mrf.mxu0 }
 0x90a   : > { %v3192_v38 = vadd.f32 %v3191_v37, %v3129_v34  ;;  %v16528_v34 = vld [vmem:[%s19090_s17 + $0x984] ss:$8 sps:$4 sm:$0xff]   ;;  %v16531_v37 = vld [vmem:[%s19090_s17 + $0xa74] ss:$8 sps:$4 sm:$0xff]  }
 0x90b   : > { %v3193_v39 = vpop.f32.mrf.mxu0  ;;  %3934 = vmatprep.subr.bf16.mxu0 %v16531_v37  ;;  %v16580_v37 = vld [vmem:[%s19090_s17 + $0xb60] ss:$8 sps:$4 sm:$0xff]  }
 0x90c   : > { %v3200_v40 = vmul.f32 0.70710677, %v3192_v38  ;;  %v3194_v41 = vadd.f32 %v3193_v39, %v3133_v36  ;;  %v3198_v60 = vmul.f32 0.5, %v3192_v38  ;;  %v16529_v36 = vld [vmem:[%s19090_s17 + $0xa70] ss:$8 sps:$4 sm:$0xff]  }
 0x90d   : > { %v3195_v42 = vpop.f32.mrf.mxu0  ;;  %v16534_v38 = vld [vmem:[%s19090_s17 + $0xa64] ss:$8 sps:$4 sm:$0xff]   ;;  %v16532_v39 = vld [vmem:[%s19090_s17 + $0xa60] ss:$8 sps:$4 sm:$0xff]  }
 0x90e   : > { %18084 = verf.f32 %v3200_v40  ;;  %v3201_v43 = vmul.f32 0.70710677, %v3194_v41  ;;  %v3199_v61 = vmul.f32 0.5, %v3194_v41  ;;  %v16537_v40 = vld [vmem:[%s19090_s17 + $0xa54] ss:$8 sps:$4 sm:$0xff]  }
 0x90f   : > { %v3196_v44 = vpop.f32.mrf.mxu0  ;;  %v16535_v41 = vld [vmem:[%s19090_s17 + $0xa50] ss:$8 sps:$4 sm:$0xff]   ;;  %v16540_v42 = vld [vmem:[%s19090_s17 + $0xa44] ss:$8 sps:$4 sm:$0xff]  }
 0x910   : > { %18086 = verf.f32 %v3201_v43  ;;  %v16538_v43 = vld [vmem:[%s19090_s17 + $0xa40] ss:$8 sps:$4 sm:$0xff]   ;;  %v16543_v44 = vld [vmem:[%s19090_s17 + $0xa34] ss:$8 sps:$4 sm:$0xff]  }
 0x913   : > { %v18081_v45 = vpop.eup %18080 }
 0x914   : > { %v2938_v46 = vadd.f32 1.0, %v18081_v45  ;;  %v16541_v45 = vld [vmem:[%s19090_s17 + $0xa30] ss:$8 sps:$4 sm:$0xff]  }
 0x915   : > { %v18083_v47 = vpop.eup %18082 }
 0x916   : > { %v2939_v50 = vadd.f32 1.0, %v18083_v47  ;;  %v2940_v51 = vmul.f32 %v2938_v46, %v2932_v48  ;;  %v16546_v46 = vld [vmem:[%s19090_s17 + $0xa24] ss:$8 sps:$4 sm:$0xff]   ;;  %v16544_v47 = vld [vmem:[%s19090_s17 + $0xa20] ss:$8 sps:$4 sm:$0xff]  }
 0x917   : > { %v16549_v48 = vld [vmem:[%s19090_s17 + $0xa14] ss:$8 sps:$4 sm:$0xff]  }
 0x918   : > { %v2941_v52 = vmul.f32 %v2939_v50, %v2933_v49  ;;  %v2942_v56 = vpack.c.bf16 %v2940_v51, %v2940_v51  ;;  %v16547_v49 = vld [vmem:[%s19090_s17 + $0xa10] ss:$8 sps:$4 sm:$0xff]   ;;  %v16552_v50 = vld [vmem:[%s19090_s17 + $0xa04] ss:$8 sps:$4 sm:$0xff]   ;;  %v16550_v51 = vld [vmem:[%s19090_s17 + $0xa00] ss:$8 sps:$4 sm:$0xff]  }
 0x91a   : > { %v2943_v53 = vpack.c.bf16 %v2941_v52, %v2941_v52  ;;  %v16555_v52 = vld [vmem:[%s19090_s17 + $0xaf4] ss:$8 sps:$4 sm:$0xff]  }
 0x91b   : > { %v18085_v55 = vpop.eup %18084 }
 0x91c   : > { %v3204_v58 = vadd.f32 1.0, %v18085_v55  ;;  %3111 = vmatprep.mubr.bf16.mxu1 %v2943_v53  ;;  %v16553_v53 = vld [vmem:[%s19090_s17 + $0xaf0] ss:$8 sps:$4 sm:$0xff]  }
 0x91d   : > { %v18087_v59 = vpop.eup %18086  ;;  %3112 = vmatmul.mubr.bf16.vlgmr.msra.gmra.mxu1 %v2942_v56  ;;  %v13422_v56 = vld [vmem:[%s19092_s22 + $0x10] sm:$0x3] }
 0x91e   : > { %v3205_v62 = vadd.f32 1.0, %v18087_v59  ;;  %3676 = vmatpush1.bf16.msra.mxu1 %v16481_v54  ;;  %v3206_v0 = vmul.f32 %v3204_v58, %v3198_v60  ;;  %v3249_v59 = vrot.slane %v13422_v56, %v19181_v11 }
 0x91f   : > { %3677 = vmatprep.subr.bf16.mxu1 %v16486_v57 }
 0x920   : > { %v3207_v2 = vmul.f32 %v3205_v62, %v3199_v61  ;;  %v3208_v5 = vpack.c.bf16 %v3206_v0, %v3206_v0  ;;  %v3253_v61 = vrot.slane %v13422_v56, %v19183_v12 }
 0x922   : > { %v3209_v3 = vpack.c.bf16 %v3207_v2, %v3207_v2  ;;  %3678 = vmatpush1.bf16.msra.mxu1 %v16484_v63 }
 0x923   : > { %3679 = vmatprep.subr.bf16.mxu1 %v16489_v1 }
 0x924   : > { %3448 = vmatprep.mubr.bf16.mxu0 %v3209_v3 }
 0x925   : > { %3449 = vmatmul.mubr.bf16.vlgmr.msra.gmra.mxu0 %v3208_v5 }
 0x926   : > { %3680 = vmatpush1.bf16.msra.mxu1 %v16487_v4  ;;  %3935 = vmatpush1.bf16.msra.mxu0 %v16529_v36  ;;  %v16582_v36 = vld [vmem:[%s19090_s17 + $0xb64] ss:$8 sps:$4 sm:$0xff]  }
 0x927   : > { %3681 = vmatprep.subr.bf16.mxu1 %v16492_v6  ;;  %3936 = vmatprep.subr.bf16.mxu0 %v16534_v38  ;;  %v16585_v38 = vld [vmem:[%s19090_s17 + $0xb54] ss:$8 sps:$4 sm:$0xff]  }
 0x92a   : > { %3682 = vmatpush1.bf16.msra.mxu1 %v16490_v7  ;;  %3937 = vmatpush1.bf16.msra.mxu0 %v16532_v39  ;;  %v16583_v39 = vld [vmem:[%s19090_s17 + $0xb50] ss:$8 sps:$4 sm:$0xff]  }
 0x92b   : > { %3683 = vmatprep.subr.bf16.mxu1 %v16495_v8  ;;  %3938 = vmatprep.subr.bf16.mxu0 %v16537_v40  ;;  %v16588_v40 = vld [vmem:[%s19090_s17 + $0xb44] ss:$8 sps:$4 sm:$0xff]  }
 0x92e   : > { %3684 = vmatpush1.bf16.msra.mxu1 %v16493_v9  ;;  %3939 = vmatpush1.bf16.msra.mxu0 %v16535_v41  ;;  %v16586_v41 = vld [vmem:[%s19090_s17 + $0xb40] ss:$8 sps:$4 sm:$0xff]  }
 0x92f   : > { %3685 = vmatprep.subr.bf16.mxu1 %v16498_v10  ;;  %3940 = vmatprep.subr.bf16.mxu0 %v16540_v42  ;;  %v16591_v42 = vld [vmem:[%s19090_s17 + $0xb34] ss:$8 sps:$4 sm:$0xff]  }
 0x932   : > { %3686 = vmatpush1.bf16.msra.mxu1 %v16496_v13  ;;  %3941 = vmatpush1.bf16.msra.mxu0 %v16538_v43  ;;  %v16589_v43 = vld [vmem:[%s19090_s17 + $0xb30] ss:$8 sps:$4 sm:$0xff]  }
 0x933   : > { %3687 = vmatprep.subr.bf16.mxu1 %v16501_v14  ;;  %3942 = vmatprep.subr.bf16.mxu0 %v16543_v44  ;;  %v16594_v44 = vld [vmem:[%s19090_s17 + $0xb24] ss:$8 sps:$4 sm:$0xff]  }
 0x936   : > { %3688 = vmatpush1.bf16.msra.mxu1 %v16499_v15  ;;  %3943 = vmatpush1.bf16.msra.mxu0 %v16541_v45  ;;  %v16592_v45 = vld [vmem:[%s19090_s17 + $0xb20] ss:$8 sps:$4 sm:$0xff]  }
 0x937   : > { %3689 = vmatprep.subr.bf16.mxu1 %v16504_v16  ;;  %3944 = vmatprep.subr.bf16.mxu0 %v16546_v46  ;;  %v16597_v46 = vld [vmem:[%s19090_s17 + $0xb14] ss:$8 sps:$4 sm:$0xff]  }
 0x93a   : > { %3690 = vmatpush1.bf16.msra.mxu1 %v16502_v18  ;;  %3945 = vmatpush1.bf16.msra.mxu0 %v16544_v47  ;;  %v16595_v47 = vld [vmem:[%s19090_s17 + $0xb10] ss:$8 sps:$4 sm:$0xff]  }
 0x93b   : > { %3691 = vmatprep.subr.bf16.mxu1 %v16507_v19  ;;  %3946 = vmatprep.subr.bf16.mxu0 %v16549_v48  ;;  %v16558_v19 = vld [vmem:[%s19090_s17 + $0xae4] ss:$8 sps:$4 sm:$0xff]  }
 0x93c   : > { %v16600_v48 = vld [vmem:[%s19090_s17 + $0xb04] ss:$8 sps:$4 sm:$0xff]  }
 0x93e   : > { %3692 = vmatpush2.bf16.msra.mxu1 %v16505_v20  ;;  %3947 = vmatpush1.bf16.msra.mxu0 %v16547_v49  ;;  %v16556_v20 = vld [vmem:[%s19090_s17 + $0xae0] ss:$8 sps:$4 sm:$0xff]  }
 0x93f   : > { %3693 = vmatprep.subr.bf16.mxu1 %v16510_v21  ;;  %3948 = vmatprep.subr.bf16.mxu0 %v16552_v50  ;;  %v16561_v21 = vld [vmem:[%s19090_s17 + $0xad4] ss:$8 sps:$4 sm:$0xff]   ;;  %v16598_v49 = vld [vmem:[%s19090_s17 + $0xb00] ss:$8 sps:$4 sm:$0xff]  }
 0x940   : > { %v16603_v50 = vld [vmem:[%s19090_s17 + $0xbf4] ss:$8 sps:$4 sm:$0xff]  }
 0x942   : > { %3694 = vmatpush2.bf16.msra.mxu1 %v16508_v22  ;;  %3949 = vmatpush1.bf16.msra.mxu0 %v16550_v51  ;;  %v16559_v22 = vld [vmem:[%s19090_s17 + $0xad0] ss:$8 sps:$4 sm:$0xff]  }
 0x943   : > { %3695 = vmatprep.subr.bf16.mxu1 %v16513_v23  ;;  %3950 = vmatprep.subr.bf16.mxu0 %v16555_v52  ;;  %v16564_v23 = vld [vmem:[%s19090_s17 + $0xac4] ss:$8 sps:$4 sm:$0xff]   ;;  %v16601_v51 = vld [vmem:[%s19090_s17 + $0xbf0] ss:$8 sps:$4 sm:$0xff]  }
 0x944   : > { %v13487_v52 = vld [vmem:[%s19092_s22 + $0x12] sm:$0x3] }
 0x946   : > { %3696 = vmatpush2.bf16.msra.mxu1 %v16511_v24  ;;  %3951 = vmatpush2.bf16.msra.mxu0 %v16553_v53  ;;  %v16562_v24 = vld [vmem:[%s19090_s17 + $0xac0] ss:$8 sps:$4 sm:$0xff]   ;;  %v3508_v53 = vrot.slane %v13487_v52, %v19181_v11 }
 0x947   : > { %3697 = vmatprep.subr.bf16.mxu1 %v16516_v25  ;;  %3952 = vmatprep.subr.bf16.mxu0 %v16558_v19  ;;  %v16567_v25 = vld [vmem:[%s19090_s17 + $0xab4] ss:$8 sps:$4 sm:$0xff]  }
 0x948   : > { %v16615_v19 = vld [vmem:[%s19090_s17 + $0xbb4] ss:$8 sps:$4 sm:$0xff]  }
 0x94a   : > { %3698 = vmatpush2.bf16.msra.mxu1 %v16514_v27  ;;  %3953 = vmatpush2.bf16.msra.mxu0 %v16556_v20  ;;  %v16565_v27 = vld [vmem:[%s19090_s17 + $0xab0] ss:$8 sps:$4 sm:$0xff]  }
 0x94b   : > { %3699 = vmatprep.subr.bf16.mxu1 %v16519_v28  ;;  %3954 = vmatprep.subr.bf16.mxu0 %v16561_v21  ;;  %v16570_v28 = vld [vmem:[%s19090_s17 + $0xaa4] ss:$8 sps:$4 sm:$0xff]   ;;  %v16613_v20 = vld [vmem:[%s19090_s17 + $0xbb0] ss:$8 sps:$4 sm:$0xff]  }
 0x94c   : > { %v16618_v21 = vld [vmem:[%s19090_s17 + $0xba4] ss:$8 sps:$4 sm:$0xff]  }
 0x94e   : > { %3700 = vmatpush2.bf16.msra.mxu1 %v16517_v29  ;;  %3955 = vmatpush2.bf16.msra.mxu0 %v16559_v22  ;;  %v16568_v29 = vld [vmem:[%s19090_s17 + $0xaa0] ss:$8 sps:$4 sm:$0xff]  }
 0x94f   : > { %3701 = vmatprep.subr.bf16.mxu1 %v16522_v30  ;;  %3956 = vmatprep.subr.bf16.mxu0 %v16564_v23  ;;  %v16573_v30 = vld [vmem:[%s19090_s17 + $0xa94] ss:$8 sps:$4 sm:$0xff]   ;;  %v16616_v22 = vld [vmem:[%s19090_s17 + $0xba0] ss:$8 sps:$4 sm:$0xff]  }
 0x950   : > { %v16621_v23 = vld [vmem:[%s19090_s17 + $0xb94] ss:$8 sps:$4 sm:$0xff]  }
 0x952   : > { %3702 = vmatpush2.bf16.msra.mxu1 %v16520_v31  ;;  %3957 = vmatpush2.bf16.msra.mxu0 %v16562_v24  ;;  %v16571_v31 = vld [vmem:[%s19090_s17 + $0xa90] ss:$8 sps:$4 sm:$0xff]  }
 0x953   : > { %3703 = vmatprep.subr.bf16.mxu1 %v16525_v32  ;;  %3958 = vmatprep.subr.bf16.mxu0 %v16567_v25  ;;  %v16576_v32 = vld [vmem:[%s19090_s17 + $0xa84] ss:$8 sps:$4 sm:$0xff]   ;;  %v16619_v24 = vld [vmem:[%s19090_s17 + $0xb90] ss:$8 sps:$4 sm:$0xff]  }
 0x954   : > { %v16624_v25 = vld [vmem:[%s19090_s17 + $0xb84] ss:$8 sps:$4 sm:$0xff]  }
 0x956   : > { %3704 = vmatpush2.bf16.msra.mxu1 %v16523_v33  ;;  %3959 = vmatpush2.bf16.msra.mxu0 %v16565_v27  ;;  %v16574_v33 = vld [vmem:[%s19090_s17 + $0xa80] ss:$8 sps:$4 sm:$0xff]  }
 0x957   : > { %3705 = vmatprep.subr.bf16.mxu1 %v16528_v34  ;;  %3960 = vmatprep.subr.bf16.mxu0 %v16570_v28  ;;  %v16577_v34 = vld [vmem:[%s19090_s17 + $0xb70] ss:$8 sps:$4 sm:$0xff]   ;;  %v16622_v27 = vld [vmem:[%s19090_s17 + $0xb80] ss:$8 sps:$4 sm:$0xff]  }
 0x958   : > { %v16625_v28 = vld [vmem:[%s19090_s17 + $0xc70] ss:$8 sps:$4 sm:$0xff]  }
 0x95a   : > { %3706 = vmatpush2.bf16.msra.mxu1 %v16526_v35  ;;  %3961 = vmatpush2.bf16.msra.mxu0 %v16568_v29  ;;  %v16579_v35 = vld [vmem:[%s19090_s17 + $0xb74] ss:$8 sps:$4 sm:$0xff]  }
 0x95b   : > { %3962 = vmatprep.subr.bf16.mxu0 %v16573_v30  ;;  %4193 = vmatprep.subr.bf16.mxu1 %v16579_v35  ;;  %v16627_v29 = vld [vmem:[%s19090_s17 + $0xc74] ss:$8 sps:$4 sm:$0xff]   ;;  %v16630_v30 = vld [vmem:[%s19090_s17 + $0xc64] ss:$8 sps:$4 sm:$0xff]   ;;  %v16634_v35 = vld [vmem:[%s19090_s17 + $0xc40] ss:$8 sps:$4 sm:$0xff]  }
 0x95e   : > { %3963 = vmatpush2.bf16.msra.mxu0 %v16571_v31  ;;  %v16628_v31 = vld [vmem:[%s19090_s17 + $0xc60] ss:$8 sps:$4 sm:$0xff]  }
 0x95f   : > { %3964 = vmatprep.subr.bf16.mxu0 %v16576_v32  ;;  %v16633_v32 = vld [vmem:[%s19090_s17 + $0xc54] ss:$8 sps:$4 sm:$0xff]  }
 0x962   : > { %3965 = vmatpush2.bf16.msra.mxu0 %v16574_v33  ;;  %v16631_v33 = vld [vmem:[%s19090_s17 + $0xc50] ss:$8 sps:$4 sm:$0xff]  }
 0x963   : > { %4452 = vmatprep.subr.bf16.mxu0 %v16627_v29  ;;  %v16682_v29 = vld [vmem:[%s19090_s17 + $0xd40] ss:$8 sps:$4 sm:$0xff]  }
 0x9dd   : > { %v15738_v54 = vpop.f32.mrf.mxu1 }
 0x9df   : > { %v15739_v55 = vpop.f32.mrf.mxu1 }
 0x9e0   : > { %v19527_v57 = vadd.f32 %v15739_v55, %v15738_v54  ;;  %v3512_v54 = vrot.slane %v13487_v52, %v19183_v12 }
 0x9e1   : > { %v15741_v58 = vpop.f32.mrf.mxu1 }
 0x9e3   : > { %v15742_v60 = vpop.f32.mrf.mxu1 }
 0x9e5   : > { %v3450_v62 = vpop.f32.mrf.mxu0 }
 0x9e6   : > { %v3451_v63 = vadd.f32 %v3450_v62, %v3249_v59 }
 0x9e7   : > { %v3452_v0 = vpop.f32.mrf.mxu0 }
 0x9e8   : > { %v3459_v1 = vmul.f32 0.70710677, %v3451_v63  ;;  %v3453_v2 = vadd.f32 %v3452_v0, %v3253_v61  ;;  %v3457_v9 = vmul.f32 0.5, %v3451_v63 }
 0x9e9   : > { %v3454_v3 = vpop.f32.mrf.mxu0 }
 0x9ea   : > { %18088 = verf.f32 %v3459_v1  ;;  %v3460_v4 = vmul.f32 0.70710677, %v3453_v2  ;;  %v3458_v10 = vmul.f32 0.5, %v3453_v2 }
 0x9eb   : > { %v3455_v5 = vpop.f32.mrf.mxu0 }
 0x9ec   : > { %18090 = verf.f32 %v3460_v4 }
 0x9f7   : > { %v18089_v6 = vpop.eup %18088 }
 0x9f8   : > { %v3463_v7 = vadd.f32 1.0, %v18089_v6 }
 0x9f9   : > { %v18091_v8 = vpop.eup %18090 }
 0x9fa   : > { %v3464_v13 = vadd.f32 1.0, %v18091_v8  ;;  %v3465_v14 = vmul.f32 %v3463_v7, %v3457_v9 }
 0x9fc   : > { %v3466_v15 = vmul.f32 %v3464_v13, %v3458_v10  ;;  %v3467_v18 = vpack.c.bf16 %v3465_v14, %v3465_v14  ;;  %v16606_v10 = vld [vmem:[%s19090_s17 + $0xbe4] ss:$8 sps:$4 sm:$0xff]   ;;  %v16604_v13 = vld [vmem:[%s19090_s17 + $0xbe0] ss:$8 sps:$4 sm:$0xff]   ;;  %v16609_v14 = vld [vmem:[%s19090_s17 + $0xbd4] ss:$8 sps:$4 sm:$0xff]  }
 0x9fe   : > { %v3468_v16 = vpack.c.bf16 %v3466_v15, %v3466_v15  ;;  %v16607_v15 = vld [vmem:[%s19090_s17 + $0xbd0] ss:$8 sps:$4 sm:$0xff]  }
 0xa00   : > { %3707 = vmatprep.mubr.bf16.mxu1 %v3468_v16  ;;  %v16612_v16 = vld [vmem:[%s19090_s17 + $0xbc4] ss:$8 sps:$4 sm:$0xff]  }
 0xa01   : > { %3708 = vmatmul.mubr.bf16.vlgmr.msra.gmra.mxu1 %v3467_v18  ;;  %v16610_v18 = vld [vmem:[%s19090_s17 + $0xbc0] ss:$8 sps:$4 sm:$0xff]  }
 0xa02   : > { %4194 = vmatpush1.bf16.msra.mxu1 %v16577_v34  ;;  %v16636_v34 = vld [vmem:[%s19090_s17 + $0xc44] ss:$8 sps:$4 sm:$0xff]  }
 0xa03   : > { %4195 = vmatprep.subr.bf16.mxu1 %v16582_v36  ;;  %v16639_v36 = vld [vmem:[%s19090_s17 + $0xc34] ss:$8 sps:$4 sm:$0xff]  }
 0xa06   : > { %4196 = vmatpush1.bf16.msra.mxu1 %v16580_v37  ;;  %v16637_v37 = vld [vmem:[%s19090_s17 + $0xc30] ss:$8 sps:$4 sm:$0xff]  }
 0xa07   : > { %4197 = vmatprep.subr.bf16.mxu1 %v16585_v38  ;;  %v16642_v38 = vld [vmem:[%s19090_s17 + $0xc24] ss:$8 sps:$4 sm:$0xff]  }
 0xa0a   : > { %4198 = vmatpush1.bf16.msra.mxu1 %v16583_v39  ;;  %v16640_v39 = vld [vmem:[%s19090_s17 + $0xc20] ss:$8 sps:$4 sm:$0xff]  }
 0xa0b   : > { %4199 = vmatprep.subr.bf16.mxu1 %v16588_v40  ;;  %v16645_v40 = vld [vmem:[%s19090_s17 + $0xc14] ss:$8 sps:$4 sm:$0xff]  }
 0xa0e   : > { %4200 = vmatpush1.bf16.msra.mxu1 %v16586_v41  ;;  %v16643_v41 = vld [vmem:[%s19090_s17 + $0xc10] ss:$8 sps:$4 sm:$0xff]  }
 0xa0f   : > { %4201 = vmatprep.subr.bf16.mxu1 %v16591_v42  ;;  %v16648_v42 = vld [vmem:[%s19090_s17 + $0xc04] ss:$8 sps:$4 sm:$0xff]  }
 0xa12   : > { %4202 = vmatpush1.bf16.msra.mxu1 %v16589_v43  ;;  %v16646_v43 = vld [vmem:[%s19090_s17 + $0xc00] ss:$8 sps:$4 sm:$0xff]  }
 0xa13   : > { %4203 = vmatprep.subr.bf16.mxu1 %v16594_v44  ;;  %v16651_v44 = vld [vmem:[%s19090_s17 + $0xcf4] ss:$8 sps:$4 sm:$0xff]  }
 0xa16   : > { %4204 = vmatpush1.bf16.msra.mxu1 %v16592_v45  ;;  %v16649_v45 = vld [vmem:[%s19090_s17 + $0xcf0] ss:$8 sps:$4 sm:$0xff]  }
 0xa17   : > { %4205 = vmatprep.subr.bf16.mxu1 %v16597_v46  ;;  %v13552_v46 = vld [vmem:[%s19092_s22 + $0x14] sm:$0x3] }
 0xa1a   : > { %4206 = vmatpush1.bf16.msra.mxu1 %v16595_v47  ;;  %v3767_v47 = vrot.slane %v13552_v46, %v19181_v11 }
 0xa1b   : > { %4207 = vmatprep.subr.bf16.mxu1 %v16600_v48  ;;  %v3771_v48 = vrot.slane %v13552_v46, %v19183_v12 }
 0xa1e   : > { %4208 = vmatpush1.bf16.msra.mxu1 %v16598_v49 }
 0xa1f   : > { %4209 = vmatprep.subr.bf16.mxu1 %v16603_v50 }
 0xa22   : > { %4210 = vmatpush2.bf16.msra.mxu1 %v16601_v51 }
 0xa23   : > { %4211 = vmatprep.subr.bf16.mxu1 %v16606_v10  ;;  %v16663_v10 = vld [vmem:[%s19090_s17 + $0xcb4] ss:$8 sps:$4 sm:$0xff]  }
 0xa26   : > { %4212 = vmatpush2.bf16.msra.mxu1 %v16604_v13  ;;  %v16661_v13 = vld [vmem:[%s19090_s17 + $0xcb0] ss:$8 sps:$4 sm:$0xff]  }
 0xa27   : > { %4213 = vmatprep.subr.bf16.mxu1 %v16609_v14  ;;  %v16666_v14 = vld [vmem:[%s19090_s17 + $0xca4] ss:$8 sps:$4 sm:$0xff]  }
 0xa2a   : > { %4214 = vmatpush2.bf16.msra.mxu1 %v16607_v15  ;;  %v16664_v15 = vld [vmem:[%s19090_s17 + $0xca0] ss:$8 sps:$4 sm:$0xff]  }
 0xa2b   : > { %4215 = vmatprep.subr.bf16.mxu1 %v16612_v16  ;;  %v16669_v16 = vld [vmem:[%s19090_s17 + $0xc94] ss:$8 sps:$4 sm:$0xff]  }
 0xa2e   : > { %4216 = vmatpush2.bf16.msra.mxu1 %v16610_v18  ;;  %v16667_v18 = vld [vmem:[%s19090_s17 + $0xc90] ss:$8 sps:$4 sm:$0xff]  }
 0xa2f   : > { %4217 = vmatprep.subr.bf16.mxu1 %v16615_v19  ;;  %v16672_v19 = vld [vmem:[%s19090_s17 + $0xc84] ss:$8 sps:$4 sm:$0xff]  }
 0xa32   : > { %4218 = vmatpush2.bf16.msra.mxu1 %v16613_v20  ;;  %v16670_v20 = vld [vmem:[%s19090_s17 + $0xc80] ss:$8 sps:$4 sm:$0xff]  }
 0xa33   : > { %4219 = vmatprep.subr.bf16.mxu1 %v16618_v21  ;;  %v16673_v21 = vld [vmem:[%s19090_s17 + $0xd70] ss:$8 sps:$4 sm:$0xff]  }
 0xa36   : > { %4220 = vmatpush2.bf16.msra.mxu1 %v16616_v22  ;;  %v16675_v22 = vld [vmem:[%s19090_s17 + $0xd74] ss:$8 sps:$4 sm:$0xff]  }
 0xa37   : > { %4221 = vmatprep.subr.bf16.mxu1 %v16621_v23  ;;  %v16678_v23 = vld [vmem:[%s19090_s17 + $0xd64] ss:$8 sps:$4 sm:$0xff]  }
 0xa3a   : > { %4222 = vmatpush2.bf16.msra.mxu1 %v16619_v24  ;;  %v16676_v24 = vld [vmem:[%s19090_s17 + $0xd60] ss:$8 sps:$4 sm:$0xff]  }
 0xa3b   : > { %4223 = vmatprep.subr.bf16.mxu1 %v16624_v25  ;;  %v16681_v25 = vld [vmem:[%s19090_s17 + $0xd54] ss:$8 sps:$4 sm:$0xff]  }
 0xa3e   : > { %4224 = vmatpush2.bf16.msra.mxu1 %v16622_v27  ;;  %v16679_v27 = vld [vmem:[%s19090_s17 + $0xd50] ss:$8 sps:$4 sm:$0xff]  }
 0xa3f   : > { %4711 = vmatprep.subr.bf16.mxu1 %v16675_v22  ;;  %v16730_v22 = vld [vmem:[%s19090_s17 + $0xe40] ss:$8 sps:$4 sm:$0xff]  }
 0xac1   : > { %v3709_v55 = vpop.f32.mrf.mxu1 }
 0xac2   : > { %v3710_v56 = vadd.f32 %v3709_v55, %v3508_v53 }
 0xac3   : > { %v3711_v58 = vpop.f32.mrf.mxu1 }
 0xac4   : > { %v3718_v59 = vmul.f32 0.70710677, %v3710_v56  ;;  %v3712_v60 = vadd.f32 %v3711_v58, %v3512_v54  ;;  %v3716_v3 = vmul.f32 0.5, %v3710_v56 }
 0xac5   : > { %v3713_v61 = vpop.f32.mrf.mxu1 }
 0xac6   : > { %18092 = verf.f32 %v3718_v59  ;;  %v3719_v62 = vmul.f32 0.70710677, %v3712_v60  ;;  %v3717_v4 = vmul.f32 0.5, %v3712_v60 }
 0xac7   : > { %v3714_v63 = vpop.f32.mrf.mxu1 }
 0xac8   : > { %18094 = verf.f32 %v3719_v62 }
 0xad3   : > { %v18093_v0 = vpop.eup %18092 }
 0xad4   : > { %v3722_v1 = vadd.f32 1.0, %v18093_v0 }
 0xad5   : > { %v18095_v2 = vpop.eup %18094 }
 0xad6   : > { %v3723_v5 = vadd.f32 1.0, %v18095_v2  ;;  %v3724_v6 = vmul.f32 %v3722_v1, %v3716_v3 }
 0xad8   : > { %v3725_v7 = vmul.f32 %v3723_v5, %v3717_v4  ;;  %v3726_v9 = vpack.c.bf16 %v3724_v6, %v3724_v6  ;;  %v16654_v4 = vld [vmem:[%s19090_s17 + $0xce4] ss:$8 sps:$4 sm:$0xff]   ;;  %v16652_v5 = vld [vmem:[%s19090_s17 + $0xce0] ss:$8 sps:$4 sm:$0xff]   ;;  %v16657_v6 = vld [vmem:[%s19090_s17 + $0xcd4] ss:$8 sps:$4 sm:$0xff]  }
 0xada   : > { %v3727_v8 = vpack.c.bf16 %v3725_v7, %v3725_v7  ;;  %v16655_v7 = vld [vmem:[%s19090_s17 + $0xcd0] ss:$8 sps:$4 sm:$0xff]  }
 0xadc   : > { %3966 = vmatprep.mubr.bf16.mxu0 %v3727_v8  ;;  %v16660_v8 = vld [vmem:[%s19090_s17 + $0xcc4] ss:$8 sps:$4 sm:$0xff]  }
 0xadd   : > { %3967 = vmatmul.mubr.bf16.vlgmr.msra.gmra.mxu0 %v3726_v9  ;;  %v16658_v9 = vld [vmem:[%s19090_s17 + $0xcc0] ss:$8 sps:$4 sm:$0xff]  }
 0xade   : > { %4453 = vmatpush1.bf16.msra.mxu0 %v16625_v28  ;;  %v16684_v28 = vld [vmem:[%s19090_s17 + $0xd44] ss:$8 sps:$4 sm:$0xff]  }
 0xadf   : > { %4454 = vmatprep.subr.bf16.mxu0 %v16630_v30  ;;  %v16687_v30 = vld [vmem:[%s19090_s17 + $0xd34] ss:$8 sps:$4 sm:$0xff]  }
 0xae2   : > { %4455 = vmatpush1.bf16.msra.mxu0 %v16628_v31  ;;  %v16685_v31 = vld [vmem:[%s19090_s17 + $0xd30] ss:$8 sps:$4 sm:$0xff]  }
 0xae3   : > { %4456 = vmatprep.subr.bf16.mxu0 %v16633_v32  ;;  %v16690_v32 = vld [vmem:[%s19090_s17 + $0xd24] ss:$8 sps:$4 sm:$0xff]  }
 0xae6   : > { %4457 = vmatpush1.bf16.msra.mxu0 %v16631_v33  ;;  %v16688_v33 = vld [vmem:[%s19090_s17 + $0xd20] ss:$8 sps:$4 sm:$0xff]  }
 0xae7   : > { %4458 = vmatprep.subr.bf16.mxu0 %v16636_v34  ;;  %v16693_v34 = vld [vmem:[%s19090_s17 + $0xd14] ss:$8 sps:$4 sm:$0xff]  }
 0xaea   : > { %4459 = vmatpush1.bf16.msra.mxu0 %v16634_v35  ;;  %v16691_v35 = vld [vmem:[%s19090_s17 + $0xd10] ss:$8 sps:$4 sm:$0xff]  }
 0xaeb   : > { %4460 = vmatprep.subr.bf16.mxu0 %v16639_v36  ;;  %v16696_v36 = vld [vmem:[%s19090_s17 + $0xd04] ss:$8 sps:$4 sm:$0xff]  }
 0xaee   : > { %4461 = vmatpush1.bf16.msra.mxu0 %v16637_v37  ;;  %v16694_v37 = vld [vmem:[%s19090_s17 + $0xd00] ss:$8 sps:$4 sm:$0xff]  }
 0xaef   : > { %4462 = vmatprep.subr.bf16.mxu0 %v16642_v38  ;;  %v16699_v38 = vld [vmem:[%s19090_s17 + $0xdf4] ss:$8 sps:$4 sm:$0xff]  }
 0xaf2   : > { %4463 = vmatpush1.bf16.msra.mxu0 %v16640_v39  ;;  %v16697_v39 = vld [vmem:[%s19090_s17 + $0xdf0] ss:$8 sps:$4 sm:$0xff]  }
 0xaf3   : > { %4464 = vmatprep.subr.bf16.mxu0 %v16645_v40  ;;  %v13617_v40 = vld [vmem:[%s19092_s22 + $0x16] sm:$0x3] }
 0xaf6   : > { %4465 = vmatpush1.bf16.msra.mxu0 %v16643_v41  ;;  %v4026_v41 = vrot.slane %v13617_v40, %v19181_v11 }
 0xaf7   : > { %4466 = vmatprep.subr.bf16.mxu0 %v16648_v42  ;;  %v4030_v42 = vrot.slane %v13617_v40, %v19183_v12 }
 0xafa   : > { %4467 = vmatpush1.bf16.msra.mxu0 %v16646_v43 }
 0xafb   : > { %4468 = vmatprep.subr.bf16.mxu0 %v16651_v44 }
 0xafe   : > { %4469 = vmatpush2.bf16.msra.mxu0 %v16649_v45 }
 0xaff   : > { %4470 = vmatprep.subr.bf16.mxu0 %v16654_v4  ;;  %v16711_v4 = vld [vmem:[%s19090_s17 + $0xdb4] ss:$8 sps:$4 sm:$0xff]  }
 0xb02   : > { %4471 = vmatpush2.bf16.msra.mxu0 %v16652_v5  ;;  %v16709_v5 = vld [vmem:[%s19090_s17 + $0xdb0] ss:$8 sps:$4 sm:$0xff]  }
 0xb03   : > { %4472 = vmatprep.subr.bf16.mxu0 %v16657_v6  ;;  %v16714_v6 = vld [vmem:[%s19090_s17 + $0xda4] ss:$8 sps:$4 sm:$0xff]  }
 0xb06   : > { %4473 = vmatpush2.bf16.msra.mxu0 %v16655_v7  ;;  %v16712_v7 = vld [vmem:[%s19090_s17 + $0xda0] ss:$8 sps:$4 sm:$0xff]  }
 0xb07   : > { %4474 = vmatprep.subr.bf16.mxu0 %v16660_v8  ;;  %v16717_v8 = vld [vmem:[%s19090_s17 + $0xd94] ss:$8 sps:$4 sm:$0xff]  }
 0xb0a   : > { %4475 = vmatpush2.bf16.msra.mxu0 %v16658_v9  ;;  %v16715_v9 = vld [vmem:[%s19090_s17 + $0xd90] ss:$8 sps:$4 sm:$0xff]  }
 0xb0b   : > { %4476 = vmatprep.subr.bf16.mxu0 %v16663_v10  ;;  %v16720_v10 = vld [vmem:[%s19090_s17 + $0xd84] ss:$8 sps:$4 sm:$0xff]  }
 0xb0e   : > { %4477 = vmatpush2.bf16.msra.mxu0 %v16661_v13  ;;  %v16718_v13 = vld [vmem:[%s19090_s17 + $0xd80] ss:$8 sps:$4 sm:$0xff]  }
 0xb0f   : > { %4478 = vmatprep.subr.bf16.mxu0 %v16666_v14  ;;  %v16721_v14 = vld [vmem:[%s19090_s17 + $0xe70] ss:$8 sps:$4 sm:$0xff]  }
 0xb12   : > { %4479 = vmatpush2.bf16.msra.mxu0 %v16664_v15  ;;  %v16723_v15 = vld [vmem:[%s19090_s17 + $0xe74] ss:$8 sps:$4 sm:$0xff]  }
 0xb13   : > { %4480 = vmatprep.subr.bf16.mxu0 %v16669_v16  ;;  %v16726_v16 = vld [vmem:[%s19090_s17 + $0xe64] ss:$8 sps:$4 sm:$0xff]  }
 0xb16   : > { %4481 = vmatpush2.bf16.msra.mxu0 %v16667_v18  ;;  %v16724_v18 = vld [vmem:[%s19090_s17 + $0xe60] ss:$8 sps:$4 sm:$0xff]  }
 0xb17   : > { %4482 = vmatprep.subr.bf16.mxu0 %v16672_v19  ;;  %v16729_v19 = vld [vmem:[%s19090_s17 + $0xe54] ss:$8 sps:$4 sm:$0xff]  }
 0xb1a   : > { %4483 = vmatpush2.bf16.msra.mxu0 %v16670_v20  ;;  %v16727_v20 = vld [vmem:[%s19090_s17 + $0xe50] ss:$8 sps:$4 sm:$0xff]  }
 0xb1b   : > { %4970 = vmatprep.subr.bf16.mxu0 %v16723_v15  ;;  %v16778_v15 = vld [vmem:[%s19090_s17 + $0xf40] ss:$8 sps:$4 sm:$0xff]  }
 0xb9d   : > { %v3968_v49 = vpop.f32.mrf.mxu0 }
 0xb9e   : > { %v3969_v50 = vadd.f32 %v3968_v49, %v3767_v47 }
 0xb9f   : > { %v3970_v51 = vpop.f32.mrf.mxu0 }
 0xba0   : > { %v3977_v52 = vmul.f32 0.70710677, %v3969_v50  ;;  %v3971_v53 = vadd.f32 %v3970_v51, %v3771_v48  ;;  %v3975_v61 = vmul.f32 0.5, %v3969_v50 }
 0xba1   : > { %v3972_v54 = vpop.f32.mrf.mxu0 }
 0xba2   : > { %18096 = verf.f32 %v3977_v52  ;;  %v3978_v55 = vmul.f32 0.70710677, %v3971_v53  ;;  %v3976_v62 = vmul.f32 0.5, %v3971_v53 }
 0xba3   : > { %v3973_v56 = vpop.f32.mrf.mxu0 }
 0xba4   : > { %18098 = verf.f32 %v3978_v55 }
 0xbaf   : > { %v18097_v58 = vpop.eup %18096 }
 0xbb0   : > { %v3981_v59 = vadd.f32 1.0, %v18097_v58 }
 0xbb1   : > { %v18099_v60 = vpop.eup %18098 }
 0xbb2   : > { %v3982_v63 = vadd.f32 1.0, %v18099_v60  ;;  %v3983_v0 = vmul.f32 %v3981_v59, %v3975_v61 }
 0xbb4   : > { %v3984_v1 = vmul.f32 %v3982_v63, %v3976_v62  ;;  %v3985_v3 = vpack.c.bf16 %v3983_v0, %v3983_v0  ;;  %v16702_v62 = vld [vmem:[%s19090_s17 + $0xde4] ss:$8 sps:$4 sm:$0xff]   ;;  %v16700_v63 = vld [vmem:[%s19090_s17 + $0xde0] ss:$8 sps:$4 sm:$0xff]   ;;  %v16705_v0 = vld [vmem:[%s19090_s17 + $0xdd4] ss:$8 sps:$4 sm:$0xff]  }
 0xbb6   : > { %v3986_v2 = vpack.c.bf16 %v3984_v1, %v3984_v1  ;;  %v16703_v1 = vld [vmem:[%s19090_s17 + $0xdd0] ss:$8 sps:$4 sm:$0xff]  }
 0xbb8   : > { %4225 = vmatprep.mubr.bf16.mxu1 %v3986_v2  ;;  %v16708_v2 = vld [vmem:[%s19090_s17 + $0xdc4] ss:$8 sps:$4 sm:$0xff]  }
 0xbb9   : > { %4226 = vmatmul.mubr.bf16.vlgmr.msra.gmra.mxu1 %v3985_v3  ;;  %v16706_v3 = vld [vmem:[%s19090_s17 + $0xdc0] ss:$8 sps:$4 sm:$0xff]  }
 0xbba   : > { %4712 = vmatpush1.bf16.msra.mxu1 %v16673_v21  ;;  %v16732_v21 = vld [vmem:[%s19090_s17 + $0xe44] ss:$8 sps:$4 sm:$0xff]  }
 0xbbb   : > { %4713 = vmatprep.subr.bf16.mxu1 %v16678_v23  ;;  %v16735_v23 = vld [vmem:[%s19090_s17 + $0xe34] ss:$8 sps:$4 sm:$0xff]  }
 0xbbe   : > { %4714 = vmatpush1.bf16.msra.mxu1 %v16676_v24  ;;  %v16733_v24 = vld [vmem:[%s19090_s17 + $0xe30] ss:$8 sps:$4 sm:$0xff]  }
 0xbbf   : > { %4715 = vmatprep.subr.bf16.mxu1 %v16681_v25  ;;  %v16738_v25 = vld [vmem:[%s19090_s17 + $0xe24] ss:$8 sps:$4 sm:$0xff]  }
 0xbc2   : > { %4716 = vmatpush1.bf16.msra.mxu1 %v16679_v27  ;;  %v16736_v27 = vld [vmem:[%s19090_s17 + $0xe20] ss:$8 sps:$4 sm:$0xff]  }
 0xbc3   : > { %4717 = vmatprep.subr.bf16.mxu1 %v16684_v28  ;;  %v16741_v28 = vld [vmem:[%s19090_s17 + $0xe14] ss:$8 sps:$4 sm:$0xff]  }
 0xbc6   : > { %4718 = vmatpush1.bf16.msra.mxu1 %v16682_v29  ;;  %v16739_v29 = vld [vmem:[%s19090_s17 + $0xe10] ss:$8 sps:$4 sm:$0xff]  }
 0xbc7   : > { %4719 = vmatprep.subr.bf16.mxu1 %v16687_v30  ;;  %v16744_v30 = vld [vmem:[%s19090_s17 + $0xe04] ss:$8 sps:$4 sm:$0xff]  }
 0xbca   : > { %4720 = vmatpush1.bf16.msra.mxu1 %v16685_v31  ;;  %v16742_v31 = vld [vmem:[%s19090_s17 + $0xe00] ss:$8 sps:$4 sm:$0xff]  }
 0xbcb   : > { %4721 = vmatprep.subr.bf16.mxu1 %v16690_v32  ;;  %v16747_v32 = vld [vmem:[%s19090_s17 + $0xef4] ss:$8 sps:$4 sm:$0xff]  }
 0xbce   : > { %4722 = vmatpush1.bf16.msra.mxu1 %v16688_v33  ;;  %v16745_v33 = vld [vmem:[%s19090_s17 + $0xef0] ss:$8 sps:$4 sm:$0xff]  }
 0xbcf   : > { %4723 = vmatprep.subr.bf16.mxu1 %v16693_v34  ;;  %v13682_v34 = vld [vmem:[%s19092_s22 + $0x18] sm:$0x3] }
 0xbd2   : > { %4724 = vmatpush1.bf16.msra.mxu1 %v16691_v35  ;;  %v4285_v35 = vrot.slane %v13682_v34, %v19181_v11 }
 0xbd3   : > { %4725 = vmatprep.subr.bf16.mxu1 %v16696_v36  ;;  %v4289_v36 = vrot.slane %v13682_v34, %v19183_v12 }
 0xbd6   : > { %4726 = vmatpush1.bf16.msra.mxu1 %v16694_v37 }
 0xbd7   : > { %4727 = vmatprep.subr.bf16.mxu1 %v16699_v38 }
 0xbda   : > { %4728 = vmatpush2.bf16.msra.mxu1 %v16697_v39 }
 0xbdb   : > { %4729 = vmatprep.subr.bf16.mxu1 %v16702_v62  ;;  %v16759_v62 = vld [vmem:[%s19090_s17 + $0xeb4] ss:$8 sps:$4 sm:$0xff]  }
 0xbde   : > { %4730 = vmatpush2.bf16.msra.mxu1 %v16700_v63  ;;  %v16757_v63 = vld [vmem:[%s19090_s17 + $0xeb0] ss:$8 sps:$4 sm:$0xff]  }
 0xbdf   : > { %4731 = vmatprep.subr.bf16.mxu1 %v16705_v0  ;;  %v16762_v0 = vld [vmem:[%s19090_s17 + $0xea4] ss:$8 sps:$4 sm:$0xff]  }
 0xbe2   : > { %4732 = vmatpush2.bf16.msra.mxu1 %v16703_v1  ;;  %v16760_v1 = vld [vmem:[%s19090_s17 + $0xea0] ss:$8 sps:$4 sm:$0xff]  }
 0xbe3   : > { %4733 = vmatprep.subr.bf16.mxu1 %v16708_v2  ;;  %v16765_v2 = vld [vmem:[%s19090_s17 + $0xe94] ss:$8 sps:$4 sm:$0xff]  }
 0xbe6   : > { %4734 = vmatpush2.bf16.msra.mxu1 %v16706_v3  ;;  %v16763_v3 = vld [vmem:[%s19090_s17 + $0xe90] ss:$8 sps:$4 sm:$0xff]  }
 0xbe7   : > { %4735 = vmatprep.subr.bf16.mxu1 %v16711_v4  ;;  %v16768_v4 = vld [vmem:[%s19090_s17 + $0xe84] ss:$8 sps:$4 sm:$0xff]  }
 0xbea   : > { %4736 = vmatpush2.bf16.msra.mxu1 %v16709_v5  ;;  %v16766_v5 = vld [vmem:[%s19090_s17 + $0xe80] ss:$8 sps:$4 sm:$0xff]  }
 0xbeb   : > { %4737 = vmatprep.subr.bf16.mxu1 %v16714_v6  ;;  %v16769_v6 = vld [vmem:[%s19090_s17 + $0xf70] ss:$8 sps:$4 sm:$0xff]  }
 0xbee   : > { %4738 = vmatpush2.bf16.msra.mxu1 %v16712_v7  ;;  %v16771_v7 = vld [vmem:[%s19090_s17 + $0xf74] ss:$8 sps:$4 sm:$0xff]  }
 0xbef   : > { %4739 = vmatprep.subr.bf16.mxu1 %v16717_v8  ;;  %v16774_v8 = vld [vmem:[%s19090_s17 + $0xf64] ss:$8 sps:$4 sm:$0xff]  }
 0xbf2   : > { %4740 = vmatpush2.bf16.msra.mxu1 %v16715_v9  ;;  %v16772_v9 = vld [vmem:[%s19090_s17 + $0xf60] ss:$8 sps:$4 sm:$0xff]  }
 0xbf3   : > { %4741 = vmatprep.subr.bf16.mxu1 %v16720_v10  ;;  %v16777_v10 = vld [vmem:[%s19090_s17 + $0xf54] ss:$8 sps:$4 sm:$0xff]  }
 0xbf6   : > { %4742 = vmatpush2.bf16.msra.mxu1 %v16718_v13  ;;  %v16775_v13 = vld [vmem:[%s19090_s17 + $0xf50] ss:$8 sps:$4 sm:$0xff]  }
 0xbf7   : > { %5229 = vmatprep.subr.bf16.mxu1 %v16771_v7 }
 0xc79   : > { %v4227_v43 = vpop.f32.mrf.mxu1 }
 0xc7a   : > { %v4228_v44 = vadd.f32 %v4227_v43, %v4026_v41 }
 0xc7b   : > { %v4229_v45 = vpop.f32.mrf.mxu1 }
 0xc7c   : > { %v4236_v46 = vmul.f32 0.70710677, %v4228_v44  ;;  %v4230_v47 = vadd.f32 %v4229_v45, %v4030_v42  ;;  %v4234_v54 = vmul.f32 0.5, %v4228_v44 }
 0xc7d   : > { %v4231_v48 = vpop.f32.mrf.mxu1 }
 0xc7e   : > { %18100 = verf.f32 %v4236_v46  ;;  %v4237_v49 = vmul.f32 0.70710677, %v4230_v47  ;;  %v4235_v55 = vmul.f32 0.5, %v4230_v47 }
 0xc7f   : > { %v4232_v50 = vpop.f32.mrf.mxu1 }
 0xc80   : > { %18102 = verf.f32 %v4237_v49 }
 0xc8b   : > { %v18101_v51 = vpop.eup %18100 }
 0xc8c   : > { %v4240_v52 = vadd.f32 1.0, %v18101_v51 }
 0xc8d   : > { %v18103_v53 = vpop.eup %18102 }
 0xc8e   : > { %v4241_v56 = vadd.f32 1.0, %v18103_v53  ;;  %v4242_v58 = vmul.f32 %v4240_v52, %v4234_v54 }
 0xc90   : > { %v4243_v59 = vmul.f32 %v4241_v56, %v4235_v55  ;;  %v4244_v61 = vpack.c.bf16 %v4242_v58, %v4242_v58  ;;  %v16750_v55 = vld [vmem:[%s19090_s17 + $0xee4] ss:$8 sps:$4 sm:$0xff]   ;;  %v16748_v56 = vld [vmem:[%s19090_s17 + $0xee0] ss:$8 sps:$4 sm:$0xff]   ;;  %v16753_v58 = vld [vmem:[%s19090_s17 + $0xed4] ss:$8 sps:$4 sm:$0xff]  }
 0xc92   : > { %v4245_v60 = vpack.c.bf16 %v4243_v59, %v4243_v59  ;;  %v16751_v59 = vld [vmem:[%s19090_s17 + $0xed0] ss:$8 sps:$4 sm:$0xff]  }
 0xc94   : > { %4484 = vmatprep.mubr.bf16.mxu0 %v4245_v60  ;;  %v16756_v60 = vld [vmem:[%s19090_s17 + $0xec4] ss:$8 sps:$4 sm:$0xff]  }
 0xc95   : > { %4485 = vmatmul.mubr.bf16.vlgmr.msra.gmra.mxu0 %v4244_v61  ;;  %v16754_v61 = vld [vmem:[%s19090_s17 + $0xec0] ss:$8 sps:$4 sm:$0xff]  }
 0xc96   : > { %4971 = vmatpush1.bf16.msra.mxu0 %v16721_v14  ;;  %v16780_v14 = vld [vmem:[%s19090_s17 + $0xf44] ss:$8 sps:$4 sm:$0xff]  }
 0xc97   : > { %4972 = vmatprep.subr.bf16.mxu0 %v16726_v16  ;;  %v16783_v16 = vld [vmem:[%s19090_s17 + $0xf34] ss:$8 sps:$4 sm:$0xff]  }
 0xc9a   : > { %4973 = vmatpush1.bf16.msra.mxu0 %v16724_v18  ;;  %v16781_v18 = vld [vmem:[%s19090_s17 + $0xf30] ss:$8 sps:$4 sm:$0xff]  }
 0xc9b   : > { %4974 = vmatprep.subr.bf16.mxu0 %v16729_v19  ;;  %v16786_v19 = vld [vmem:[%s19090_s17 + $0xf24] ss:$8 sps:$4 sm:$0xff]  }
 0xc9e   : > { %4975 = vmatpush1.bf16.msra.mxu0 %v16727_v20  ;;  %v16784_v20 = vld [vmem:[%s19090_s17 + $0xf20] ss:$8 sps:$4 sm:$0xff]  }
 0xc9f   : > { %4976 = vmatprep.subr.bf16.mxu0 %v16732_v21  ;;  %v16789_v21 = vld [vmem:[%s19090_s17 + $0xf14] ss:$8 sps:$4 sm:$0xff]  }
 0xca2   : > { %4977 = vmatpush1.bf16.msra.mxu0 %v16730_v22  ;;  %v16787_v22 = vld [vmem:[%s19090_s17 + $0xf10] ss:$8 sps:$4 sm:$0xff]  }
 0xca3   : > { %4978 = vmatprep.subr.bf16.mxu0 %v16735_v23  ;;  %v16792_v23 = vld [vmem:[%s19090_s17 + $0xf04] ss:$8 sps:$4 sm:$0xff]  }
 0xca6   : > { %4979 = vmatpush1.bf16.msra.mxu0 %v16733_v24  ;;  %v16790_v24 = vld [vmem:[%s19090_s17 + $0xf00] ss:$8 sps:$4 sm:$0xff]  }
 0xca7   : > { %4980 = vmatprep.subr.bf16.mxu0 %v16738_v25  ;;  %v16795_v25 = vld [vmem:[%s19090_s17 + $0xff4] ss:$8 sps:$4 sm:$0xff]  }
 0xcaa   : > { %4981 = vmatpush1.bf16.msra.mxu0 %v16736_v27  ;;  %v16793_v27 = vld [vmem:[%s19090_s17 + $0xff0] ss:$8 sps:$4 sm:$0xff]  }
 0xcab   : > { %4982 = vmatprep.subr.bf16.mxu0 %v16741_v28  ;;  %v13747_v28 = vld [vmem:[%s19092_s22 + $0x1a] sm:$0x3] }
 0xcae   : > { %4983 = vmatpush1.bf16.msra.mxu0 %v16739_v29  ;;  %v4544_v29 = vrot.slane %v13747_v28, %v19181_v11 }
 0xcaf   : > { %4984 = vmatprep.subr.bf16.mxu0 %v16744_v30  ;;  %v4548_v30 = vrot.slane %v13747_v28, %v19183_v12  ;;  %v16820_v28 = vld [vmem:[%s19116_s30 + $0xb0] sm:$0xff]  }
 0xcb2   : > { %4985 = vmatpush1.bf16.msra.mxu0 %v16742_v31 }
 0xcb3   : > { %4986 = vmatprep.subr.bf16.mxu0 %v16747_v32 }
 0xcb6   : > { %4987 = vmatpush2.bf16.msra.mxu0 %v16745_v33 }
 0xcb7   : > { %4988 = vmatprep.subr.bf16.mxu0 %v16750_v55  ;;  %v16807_v55 = vld [vmem:[%s19090_s17 + $0xfb4] ss:$8 sps:$4 sm:$0xff]  }
 0xcba   : > { %4989 = vmatpush2.bf16.msra.mxu0 %v16748_v56  ;;  %v16805_v56 = vld [vmem:[%s19090_s17 + $0xfb0] ss:$8 sps:$4 sm:$0xff]  }
 0xcbb   : > { %4990 = vmatprep.subr.bf16.mxu0 %v16753_v58  ;;  %v16810_v58 = vld [vmem:[%s19090_s17 + $0xfa4] ss:$8 sps:$4 sm:$0xff]  }
 0xcbe   : > { %4991 = vmatpush2.bf16.msra.mxu0 %v16751_v59  ;;  %v16808_v59 = vld [vmem:[%s19090_s17 + $0xfa0] ss:$8 sps:$4 sm:$0xff]  }
 0xcbf   : > { %4992 = vmatprep.subr.bf16.mxu0 %v16756_v60  ;;  %v16813_v60 = vld [vmem:[%s19090_s17 + $0xf94] ss:$8 sps:$4 sm:$0xff]  }
 0xcc2   : > { %4993 = vmatpush2.bf16.msra.mxu0 %v16754_v61  ;;  %v16811_v61 = vld [vmem:[%s19090_s17 + $0xf90] ss:$8 sps:$4 sm:$0xff]  }
 0xcc3   : > { %4994 = vmatprep.subr.bf16.mxu0 %v16759_v62  ;;  %v16816_v62 = vld [vmem:[%s19090_s17 + $0xf84] ss:$8 sps:$4 sm:$0xff]  }
 0xcc6   : > { %4995 = vmatpush2.bf16.msra.mxu0 %v16757_v63  ;;  %v16814_v63 = vld [vmem:[%s19090_s17 + $0xf80] ss:$8 sps:$4 sm:$0xff]  }
 0xcc7   : > { %4996 = vmatprep.subr.bf16.mxu0 %v16762_v0  ;;  %v16817_v0 = vld [vmem:[%s19116_s30 + $0xf8] sm:$0xff]  }
 0xcca   : > { %4997 = vmatpush2.bf16.msra.mxu0 %v16760_v1  ;;  %v16818_v1 = vld [vmem:[%s19116_s30 + $0xb8] sm:$0xff]  }
 0xccb   : > { %4998 = vmatprep.subr.bf16.mxu0 %v16765_v2  ;;  %v16819_v2 = vld [vmem:[%s19116_s30 + $0xf0] sm:$0xff]  }
 0xcce   : > { %4999 = vmatpush2.bf16.msra.mxu0 %v16763_v3  ;;  %v13812_v3 = vld [vmem:[%s19092_s22 + $0x1c] sm:$0x3] }
 0xccf   : > { %5000 = vmatprep.subr.bf16.mxu0 %v16768_v4  ;;  %v4803_v4 = vrot.slane %v13812_v3, %v19181_v11 }
 0xcd2   : > { %5001 = vmatpush2.bf16.msra.mxu0 %v16766_v5  ;;  %v4807_v5 = vrot.slane %v13812_v3, %v19183_v12 }
 0xcd3   : > { %15744 = vmatprep.subr.bf16.mxu0 %v16817_v0 }
 0xd55   : > { %v4486_v37 = vpop.f32.mrf.mxu0 }
 0xd56   : > { %v4487_v38 = vadd.f32 %v4486_v37, %v4285_v35 }
 0xd57   : > { %v4488_v39 = vpop.f32.mrf.mxu0 }
 0xd58   : > { %v4495_v40 = vmul.f32 0.70710677, %v4487_v38  ;;  %v4489_v41 = vadd.f32 %v4488_v39, %v4289_v36  ;;  %v4493_v48 = vmul.f32 0.5, %v4487_v38 }
 0xd59   : > { %v4490_v42 = vpop.f32.mrf.mxu0 }
 0xd5a   : > { %18104 = verf.f32 %v4495_v40  ;;  %v4496_v43 = vmul.f32 0.70710677, %v4489_v41  ;;  %v4494_v49 = vmul.f32 0.5, %v4489_v41 }
 0xd5b   : > { %v4491_v44 = vpop.f32.mrf.mxu0 }
 0xd5c   : > { %18106 = verf.f32 %v4496_v43 }
 0xd67   : > { %v18105_v45 = vpop.eup %18104 }
 0xd68   : > { %v4499_v46 = vadd.f32 1.0, %v18105_v45 }
 0xd69   : > { %v18107_v47 = vpop.eup %18106 }
 0xd6a   : > { %v4500_v50 = vadd.f32 1.0, %v18107_v47  ;;  %v4501_v51 = vmul.f32 %v4499_v46, %v4493_v48 }
 0xd6c   : > { %v4502_v52 = vmul.f32 %v4500_v50, %v4494_v49  ;;  %v4503_v54 = vpack.c.bf16 %v4501_v51, %v4501_v51  ;;  %v16798_v49 = vld [vmem:[%s19090_s17 + $0xfe4] ss:$8 sps:$4 sm:$0xff]   ;;  %v16796_v50 = vld [vmem:[%s19090_s17 + $0xfe0] ss:$8 sps:$4 sm:$0xff]   ;;  %v16801_v51 = vld [vmem:[%s19090_s17 + $0xfd4] ss:$8 sps:$4 sm:$0xff]  }
 0xd6e   : > { %v4504_v53 = vpack.c.bf16 %v4502_v52, %v4502_v52  ;;  %v16799_v52 = vld [vmem:[%s19090_s17 + $0xfd0] ss:$8 sps:$4 sm:$0xff]  }
 0xd70   : > { %4743 = vmatprep.mubr.bf16.mxu1 %v4504_v53  ;;  %v16804_v53 = vld [vmem:[%s19090_s17 + $0xfc4] ss:$8 sps:$4 sm:$0xff]  }
 0xd71   : > { %4744 = vmatmul.mubr.bf16.vlgmr.msra.gmra.mxu1 %v4503_v54  ;;  %v16802_v54 = vld [vmem:[%s19090_s17 + $0xfc0] ss:$8 sps:$4 sm:$0xff]  }
 0xd72   : > { %5230 = vmatpush1.bf16.msra.mxu1 %v16769_v6 }
 0xd73   : > { %5231 = vmatprep.subr.bf16.mxu1 %v16774_v8 }
 0xd76   : > { %5232 = vmatpush1.bf16.msra.mxu1 %v16772_v9 }
 0xd77   : > { %5233 = vmatprep.subr.bf16.mxu1 %v16777_v10 }
 0xd7a   : > { %5234 = vmatpush1.bf16.msra.mxu1 %v16775_v13 }
 0xd7b   : > { %5235 = vmatprep.subr.bf16.mxu1 %v16780_v14 }
 0xd7e   : > { %5236 = vmatpush1.bf16.msra.mxu1 %v16778_v15 }
 0xd7f   : > { %5237 = vmatprep.subr.bf16.mxu1 %v16783_v16 }
 0xd82   : > { %5238 = vmatpush1.bf16.msra.mxu1 %v16781_v18 }
 0xd83   : > { %5239 = vmatprep.subr.bf16.mxu1 %v16786_v19 }
 0xd86   : > { %5240 = vmatpush1.bf16.msra.mxu1 %v16784_v20 }
 0xd87   : > { %5241 = vmatprep.subr.bf16.mxu1 %v16789_v21 }
 0xd8a   : > { %5242 = vmatpush1.bf16.msra.mxu1 %v16787_v22 }
 0xd8b   : > { %5243 = vmatprep.subr.bf16.mxu1 %v16792_v23 }
 0xd8e   : > { %5244 = vmatpush1.bf16.msra.mxu1 %v16790_v24 }
 0xd8f   : > { %5245 = vmatprep.subr.bf16.mxu1 %v16795_v25 }
 0xd92   : > { %5246 = vmatpush2.bf16.msra.mxu1 %v16793_v27 }
 0xd93   : > { %5247 = vmatprep.subr.bf16.mxu1 %v16798_v49  ;;  %v16849_v49 = vld [vmem:[%s19090_s17 + $0x1044] ss:$8 sps:$4 sm:$0xff]  }
 0xd96   : > { %5248 = vmatpush2.bf16.msra.mxu1 %v16796_v50  ;;  %v16847_v50 = vld [vmem:[%s19090_s17 + $0x1040] ss:$8 sps:$4 sm:$0xff]  }
 0xd97   : > { %5249 = vmatprep.subr.bf16.mxu1 %v16801_v51  ;;  %v16852_v51 = vld [vmem:[%s19090_s17 + $0x1034] ss:$8 sps:$4 sm:$0xff]  }
 0xd9a   : > { %5250 = vmatpush2.bf16.msra.mxu1 %v16799_v52  ;;  %v16850_v52 = vld [vmem:[%s19090_s17 + $0x1030] ss:$8 sps:$4 sm:$0xff]  }
 0xd9b   : > { %5251 = vmatprep.subr.bf16.mxu1 %v16804_v53  ;;  %v16855_v53 = vld [vmem:[%s19090_s17 + $0x1024] ss:$8 sps:$4 sm:$0xff]  }
 0xd9e   : > { %5252 = vmatpush2.bf16.msra.mxu1 %v16802_v54  ;;  %v16853_v54 = vld [vmem:[%s19090_s17 + $0x1020] ss:$8 sps:$4 sm:$0xff]  }
 0xd9f   : > { %5253 = vmatprep.subr.bf16.mxu1 %v16807_v55  ;;  %v16858_v55 = vld [vmem:[%s19090_s17 + $0x1014] ss:$8 sps:$4 sm:$0xff]  }
 0xda2   : > { %5254 = vmatpush2.bf16.msra.mxu1 %v16805_v56  ;;  %v16856_v56 = vld [vmem:[%s19090_s17 + $0x1010] ss:$8 sps:$4 sm:$0xff]  }
 0xda3   : > { %5255 = vmatprep.subr.bf16.mxu1 %v16810_v58  ;;  %v13877_v58 = vld [vmem:[%s19092_s22 + $0x1e] sm:$0x3] }
 0xda6   : > { %5256 = vmatpush2.bf16.msra.mxu1 %v16808_v59  ;;  %v5062_v59 = vrot.slane %v13877_v58, %v19181_v11 }
 0xda7   : > { %5257 = vmatprep.subr.bf16.mxu1 %v16813_v60  ;;  %v5066_v60 = vrot.slane %v13877_v58, %v19183_v12  ;;  %v16912_v58 = vld [vmem:[%s19090_s17 + $0x11f4] ss:$8 sps:$4 sm:$0xff]  }
 0xdaa   : > { %5258 = vmatpush2.bf16.msra.mxu1 %v16811_v61 }
 0xdab   : > { %5259 = vmatprep.subr.bf16.mxu1 %v16816_v62 }
 0xdae   : > { %5260 = vmatpush2.bf16.msra.mxu1 %v16814_v63 }
 0xe31   : > { %v4745_v31 = vpop.f32.mrf.mxu1 }
 0xe32   : > { %v4746_v32 = vadd.f32 %v4745_v31, %v4544_v29  ;;  %v16821_v29 = vld [vmem:[%s19116_s30 + $0xe8] sm:$0xff]   ;;  %v16823_v31 = vld [vmem:[%s19116_s30 + $0xe0] sm:$0xff]  }
 0xe33   : > { %v4747_v33 = vpop.f32.mrf.mxu1 }
 0xe34   : > { %v4754_v34 = vmul.f32 0.70710677, %v4746_v32  ;;  %v4748_v35 = vadd.f32 %v4747_v33, %v4548_v30  ;;  %v4752_v42 = vmul.f32 0.5, %v4746_v32  ;;  %v16822_v30 = vld [vmem:[%s19116_s30 + $0xa8] sm:$0xff]   ;;  %v16824_v32 = vld [vmem:[%s19116_s30 + $0xa0] sm:$0xff]   ;;  %v16825_v33 = vld [vmem:[%s19116_s30 + $0xd8] sm:$0xff]  }
 0xe35   : > { %v4749_v36 = vpop.f32.mrf.mxu1 }
 0xe36   : > { %18108 = verf.f32 %v4754_v34  ;;  %v4755_v37 = vmul.f32 0.70710677, %v4748_v35  ;;  %v4753_v43 = vmul.f32 0.5, %v4748_v35  ;;  %v16826_v34 = vld [vmem:[%s19116_s30 + $0x98] sm:$0xff]   ;;  %v16827_v35 = vld [vmem:[%s19116_s30 + $0xd0] sm:$0xff]  }
 0xe37   : > { %v4750_v38 = vpop.f32.mrf.mxu1  ;;  %v16828_v36 = vld [vmem:[%s19116_s30 + $0x90] sm:$0xff]  }
 0xe38   : > { %18110 = verf.f32 %v4755_v37  ;;  %v16829_v37 = vld [vmem:[%s19116_s30 + $0xc8] sm:$0xff]  }
 0xe39   : > { %v16830_v38 = vld [vmem:[%s19116_s30 + $0x88] sm:$0xff]  }
 0xe43   : > { %v18109_v39 = vpop.eup %18108 }
 0xe44   : > { %v4758_v40 = vadd.f32 1.0, %v18109_v39  ;;  %v16831_v39 = vld [vmem:[%s19116_s30 + $0xc0] sm:$0xff]  }
 0xe45   : > { %v18111_v41 = vpop.eup %18110 }
 0xe46   : > { %v4759_v44 = vadd.f32 1.0, %v18111_v41  ;;  %v4760_v45 = vmul.f32 %v4758_v40, %v4752_v42  ;;  %v16832_v40 = vld [vmem:[%s19116_s30 + $0x80] sm:$0xff]   ;;  %v13962_v41 = vld [vmem:[%s19082_s24 + $0x40] sm:$0x33] }
 0xe47   : > { %v13967_v42 = vcombine.high %v13962_v41, %v13962_v41 }
 0xe48   : > { %v4761_v46 = vmul.f32 %v4759_v44, %v4753_v43  ;;  %v4762_v48 = vpack.c.bf16 %v4760_v45, %v4760_v45  ;;  %v16838_v43 = vld [vmem:[%s19090_s17 + $0x1070] ss:$8 sps:$4 sm:$0xff]   ;;  %v16840_v44 = vld [vmem:[%s19090_s17 + $0x1074] ss:$8 sps:$4 sm:$0xff]   ;;  %v16843_v45 = vld [vmem:[%s19090_s17 + $0x1064] ss:$8 sps:$4 sm:$0xff]  }
 0xe49   : > { %5757 = vmatprep.subr.bf16.mxu1 %v16840_v44  ;;  %v16889_v44 = vld [vmem:[%s19090_s17 + $0x1160] ss:$8 sps:$4 sm:$0xff]  }
 0xe4a   : > { %v4763_v47 = vpack.c.bf16 %v4761_v46, %v4761_v46  ;;  %v16841_v46 = vld [vmem:[%s19090_s17 + $0x1060] ss:$8 sps:$4 sm:$0xff]  }
 0xe4c   : > { %5002 = vmatprep.mubr.bf16.mxu0 %v4763_v47  ;;  %v16846_v47 = vld [vmem:[%s19090_s17 + $0x1054] ss:$8 sps:$4 sm:$0xff]  }
 0xe4d   : > { %5003 = vmatmul.mubr.bf16.vlgmr.msra.gmra.mxu0 %v4762_v48  ;;  %v16844_v48 = vld [vmem:[%s19090_s17 + $0x1050] ss:$8 sps:$4 sm:$0xff]  }
 0xe4e   : > { %15745 = vmatpush3.bf16.msra.mxu0 %v16818_v1 }
 0xe4f   : > { %15746 = vmatprep.subr.bf16.mxu0 %v16819_v2 }
 0xe52   : > { %15747 = vmatpush3.bf16.msra.mxu0 %v16820_v28  ;;  %v16865_v28 = vld [vmem:[%s19090_s17 + $0x10e0] ss:$8 sps:$4 sm:$0xff]  }
 0xe53   : > { %15748 = vmatprep.subr.bf16.mxu0 %v16821_v29  ;;  %v16870_v29 = vld [vmem:[%s19090_s17 + $0x10d4] ss:$8 sps:$4 sm:$0xff]  }
 0xe56   : > { %15749 = vmatpush3.bf16.msra.mxu0 %v16822_v30  ;;  %v16868_v30 = vld [vmem:[%s19090_s17 + $0x10d0] ss:$8 sps:$4 sm:$0xff]  }
 0xe57   : > { %15750 = vmatprep.subr.bf16.mxu0 %v16823_v31  ;;  %v16873_v31 = vld [vmem:[%s19090_s17 + $0x10c4] ss:$8 sps:$4 sm:$0xff]  }
 0xe5a   : > { %15751 = vmatpush3.bf16.msra.mxu0 %v16824_v32  ;;  %v16871_v32 = vld [vmem:[%s19090_s17 + $0x10c0] ss:$8 sps:$4 sm:$0xff]  }
 0xe5b   : > { %15752 = vmatprep.subr.bf16.mxu0 %v16825_v33  ;;  %v16876_v33 = vld [vmem:[%s19090_s17 + $0x10b4] ss:$8 sps:$4 sm:$0xff]  }
 0xe5e   : > { %15753 = vmatpush3.bf16.msra.mxu0 %v16826_v34  ;;  %v16874_v34 = vld [vmem:[%s19090_s17 + $0x10b0] ss:$8 sps:$4 sm:$0xff]  }
 0xe5f   : > { %15754 = vmatprep.subr.bf16.mxu0 %v16827_v35  ;;  %v16879_v35 = vld [vmem:[%s19090_s17 + $0x10a4] ss:$8 sps:$4 sm:$0xff]  }
 0xe62   : > { %15755 = vmatpush3.bf16.msra.mxu0 %v16828_v36  ;;  %v16877_v36 = vld [vmem:[%s19090_s17 + $0x10a0] ss:$8 sps:$4 sm:$0xff]  }
 0xe63   : > { %15756 = vmatprep.subr.bf16.mxu0 %v16829_v37  ;;  %v16882_v37 = vld [vmem:[%s19090_s17 + $0x1094] ss:$8 sps:$4 sm:$0xff]  }
 0xe66   : > { %15757 = vmatpush3.bf16.msra.mxu0 %v16830_v38  ;;  %v16880_v38 = vld [vmem:[%s19090_s17 + $0x1090] ss:$8 sps:$4 sm:$0xff]  }
 0xe67   : > { %15758 = vmatprep.subr.bf16.mxu0 %v16831_v39  ;;  %v16885_v39 = vld [vmem:[%s19090_s17 + $0x1084] ss:$8 sps:$4 sm:$0xff]  }
 0xe6a   : > { %15759 = vmatpush3.bf16.msra.mxu0 %v16832_v40  ;;  %v16883_v40 = vld [vmem:[%s19090_s17 + $0x1080] ss:$8 sps:$4 sm:$0xff]  }
 0xe6b   : > { %13968 = vmatprep.subr.msk.bf16.mxu0 %vm814_vm4, %v13967_v42  ;;  %v16888_v42 = vld [vmem:[%s19090_s17 + $0x1174] ss:$8 sps:$4 sm:$0xff]  }
 0xf0d   : > { %v5004_v6 = vpop.f32.mrf.mxu0 }
 0xf0e   : > { %v5005_v7 = vadd.f32 %v5004_v6, %v4803_v4 }
 0xf0f   : > { %v5006_v8 = vpop.f32.mrf.mxu0 }
 0xf10   : > { %v5013_v9 = vmul.f32 0.70710677, %v5005_v7  ;;  %v5007_v10 = vadd.f32 %v5006_v8, %v4807_v5  ;;  %v5011_v20 = vmul.f32 0.5, %v5005_v7 }
 0xf11   : > { %v5008_v13 = vpop.f32.mrf.mxu0 }
 0xf12   : > { %18112 = verf.f32 %v5013_v9  ;;  %v5014_v14 = vmul.f32 0.70710677, %v5007_v10  ;;  %v5012_v21 = vmul.f32 0.5, %v5007_v10 }
 0xf13   : > { %v5009_v15 = vpop.f32.mrf.mxu0 }
 0xf14   : > { %18114 = verf.f32 %v5014_v14  ;;  %v13966_v14 = vcombine.low %v13962_v41, %v13962_v41  ;;  %v16886_v41 = vld [vmem:[%s19090_s17 + $0x1170] ss:$8 sps:$4 sm:$0xff]  }
 0xf1f   : > { %v18113_v16 = vpop.eup %18112 }
 0xf20   : > { %v5017_v18 = vadd.f32 1.0, %v18113_v16 }
 0xf21   : > { %v18115_v19 = vpop.eup %18114 }
 0xf22   : > { %v5018_v22 = vadd.f32 1.0, %v18115_v19  ;;  %v5019_v23 = vmul.f32 %v5017_v18, %v5011_v20  ;;  %v5493_v19 = vsel %vm814_vm4, %v13966_v14, 0  ;;  %v16837_v20 = vld [vmem:[%s19082_s24 + $0x34] ss:$8 sps:$4 sm:$0xff]  }
 0xf24   : > { %v5020_v24 = vmul.f32 %v5018_v22, %v5012_v21  ;;  %v5021_v27 = vpack.c.bf16 %v5019_v23, %v5019_v23  ;;  %v16835_v21 = vld [vmem:[%s19082_s24 + $0x30] ss:$8 sps:$4 sm:$0xff]   ;;  %v16859_v23 = vld [vmem:[%s19090_s17 + $0x1000] ss:$8 sps:$4 sm:$0xff]  }
 0xf25   : > { %v16861_v22 = vld [vmem:[%s19090_s17 + $0x1004] ss:$8 sps:$4 sm:$0xff]  }
 0xf26   : > { %v5022_v25 = vpack.c.bf16 %v5020_v24, %v5020_v24  ;;  %v16864_v24 = vld [vmem:[%s19090_s17 + $0x10f4] ss:$8 sps:$4 sm:$0xff]  }
 0xf28   : > { %5261 = vmatprep.mubr.bf16.mxu1 %v5022_v25  ;;  %v16862_v25 = vld [vmem:[%s19090_s17 + $0x10f0] ss:$8 sps:$4 sm:$0xff]  }
 0xf29   : > { %5262 = vmatmul.mubr.bf16.vlgmr.msra.gmra.mxu1 %v5021_v27  ;;  %v16867_v27 = vld [vmem:[%s19090_s17 + $0x10e4] ss:$8 sps:$4 sm:$0xff]  }
 0xf2a   : > { %5758 = vmatpush1.bf16.msra.mxu1 %v16838_v43  ;;  %v16891_v43 = vld [vmem:[%s19090_s17 + $0x1164] ss:$8 sps:$4 sm:$0xff]  }
 0xf2b   : > { %5759 = vmatprep.subr.bf16.mxu1 %v16843_v45  ;;  %v16894_v45 = vld [vmem:[%s19090_s17 + $0x1154] ss:$8 sps:$4 sm:$0xff]  }
 0xf2e   : > { %5760 = vmatpush1.bf16.msra.mxu1 %v16841_v46  ;;  %v16892_v46 = vld [vmem:[%s19090_s17 + $0x1150] ss:$8 sps:$4 sm:$0xff]  }
 0xf2f   : > { %5761 = vmatprep.subr.bf16.mxu1 %v16846_v47  ;;  %v16897_v47 = vld [vmem:[%s19090_s17 + $0x1144] ss:$8 sps:$4 sm:$0xff]  }
 0xf32   : > { %5762 = vmatpush1.bf16.msra.mxu1 %v16844_v48  ;;  %v16895_v48 = vld [vmem:[%s19090_s17 + $0x1140] ss:$8 sps:$4 sm:$0xff]  }
 0xf33   : > { %5763 = vmatprep.subr.bf16.mxu1 %v16849_v49  ;;  %v16900_v49 = vld [vmem:[%s19090_s17 + $0x1134] ss:$8 sps:$4 sm:$0xff]  }
 0xf36   : > { %5764 = vmatpush1.bf16.msra.mxu1 %v16847_v50  ;;  %v16898_v50 = vld [vmem:[%s19090_s17 + $0x1130] ss:$8 sps:$4 sm:$0xff]  }
 0xf37   : > { %5765 = vmatprep.subr.bf16.mxu1 %v16852_v51  ;;  %v16903_v51 = vld [vmem:[%s19090_s17 + $0x1124] ss:$8 sps:$4 sm:$0xff]  }
 0xf3a   : > { %5766 = vmatpush1.bf16.msra.mxu1 %v16850_v52  ;;  %v16901_v52 = vld [vmem:[%s19090_s17 + $0x1120] ss:$8 sps:$4 sm:$0xff]  }
 0xf3b   : > { %5767 = vmatprep.subr.bf16.mxu1 %v16855_v53  ;;  %v16906_v53 = vld [vmem:[%s19090_s17 + $0x1114] ss:$8 sps:$4 sm:$0xff]  }
 0xf3e   : > { %5768 = vmatpush1.bf16.msra.mxu1 %v16853_v54  ;;  %v16904_v54 = vld [vmem:[%s19090_s17 + $0x1110] ss:$8 sps:$4 sm:$0xff]  }
 0xf3f   : > { %5769 = vmatprep.subr.bf16.mxu1 %v16858_v55  ;;  %v16909_v55 = vld [vmem:[%s19090_s17 + $0x1104] ss:$8 sps:$4 sm:$0xff]  }
 0xf42   : > { %5770 = vmatpush1.bf16.msra.mxu1 %v16856_v56  ;;  %v16907_v56 = vld [vmem:[%s19090_s17 + $0x1100] ss:$8 sps:$4 sm:$0xff]  }
 0xf43   : > { %5771 = vmatprep.subr.bf16.mxu1 %v16861_v22 }
 0xf46   : > { %5772 = vmatpush1.bf16.msra.mxu1 %v16859_v23 }
 0xf47   : > { %5773 = vmatprep.subr.bf16.mxu1 %v16864_v24 }
 0xf4a   : > { %5774 = vmatpush2.bf16.msra.mxu1 %v16862_v25 }
 0xf4b   : > { %5775 = vmatprep.subr.bf16.mxu1 %v16867_v27 }
 0xf4e   : > { %5776 = vmatpush2.bf16.msra.mxu1 %v16865_v28 }
 0xf4f   : > { %5777 = vmatprep.subr.bf16.mxu1 %v16870_v29 }
 0xf52   : > { %5778 = vmatpush2.bf16.msra.mxu1 %v16868_v30  ;;  %v16915_v30 = vld [vmem:[%s19090_s17 + $0x11e4] ss:$8 sps:$4 sm:$0xff]  }
 0xf53   : > { %5779 = vmatprep.subr.bf16.mxu1 %v16873_v31  ;;  %v16913_v31 = vld [vmem:[%s19090_s17 + $0x11e0] ss:$8 sps:$4 sm:$0xff]  }
 0xf56   : > { %5780 = vmatpush2.bf16.msra.mxu1 %v16871_v32  ;;  %v16918_v32 = vld [vmem:[%s19090_s17 + $0x11d4] ss:$8 sps:$4 sm:$0xff]  }
 0xf57   : > { %5781 = vmatprep.subr.bf16.mxu1 %v16876_v33  ;;  %v16916_v33 = vld [vmem:[%s19090_s17 + $0x11d0] ss:$8 sps:$4 sm:$0xff]  }
 0xf5a   : > { %5782 = vmatpush2.bf16.msra.mxu1 %v16874_v34  ;;  %v16921_v34 = vld [vmem:[%s19090_s17 + $0x11c4] ss:$8 sps:$4 sm:$0xff]  }
 0xf5b   : > { %5783 = vmatprep.subr.bf16.mxu1 %v16879_v35  ;;  %v16919_v35 = vld [vmem:[%s19090_s17 + $0x11c0] ss:$8 sps:$4 sm:$0xff]  }
 0xf5e   : > { %5784 = vmatpush2.bf16.msra.mxu1 %v16877_v36  ;;  %v16924_v36 = vld [vmem:[%s19090_s17 + $0x11b4] ss:$8 sps:$4 sm:$0xff]  }
 0xf5f   : > { %5785 = vmatprep.subr.bf16.mxu1 %v16882_v37  ;;  %v16922_v37 = vld [vmem:[%s19090_s17 + $0x11b0] ss:$8 sps:$4 sm:$0xff]  }
 0xf62   : > { %5786 = vmatpush2.bf16.msra.mxu1 %v16880_v38  ;;  %v16927_v38 = vld [vmem:[%s19090_s17 + $0x11a4] ss:$8 sps:$4 sm:$0xff]  }
 0xf63   : > { %5787 = vmatprep.subr.bf16.mxu1 %v16885_v39  ;;  %v16925_v39 = vld [vmem:[%s19090_s17 + $0x11a0] ss:$8 sps:$4 sm:$0xff]  }
 0xf66   : > { %5788 = vmatpush2.bf16.msra.mxu1 %v16883_v40  ;;  %v16930_v40 = vld [vmem:[%s19090_s17 + $0x1194] ss:$8 sps:$4 sm:$0xff]  }
 0xfe9   : > { %v5263_v61 = vpop.f32.mrf.mxu1 }
 0xfea   : > { %v5264_v62 = vadd.f32 %v5263_v61, %v5062_v59  ;;  %v16910_v59 = vld [vmem:[%s19090_s17 + $0x11f0] ss:$8 sps:$4 sm:$0xff]   ;;  %v13363_v61 = vld [vmem:[%s19094_s18] ss:$0 sm:$0xff] }
 0xfeb   : > { %v5265_v63 = vpop.f32.mrf.mxu1 }
 0xfec   : > { %v5272_v0 = vmul.f32 0.70710677, %v5264_v62  ;;  %v5266_v1 = vadd.f32 %v5265_v63, %v5066_v60  ;;  %v5270_v8 = vmul.f32 0.5, %v5264_v62  ;;  %v13943_v62 = vld [vmem:[%s19094_s18 + $0x1] ss:$0 sm:$0xff] }
 0xfed   : > { %v5267_v2 = vpop.f32.mrf.mxu1 }
 0xfee   : > { %18116 = verf.f32 %v5272_v0  ;;  %v5273_v3 = vmul.f32 0.70710677, %v5266_v1  ;;  %v5271_v9 = vmul.f32 0.5, %v5266_v1  ;;  %v13963_v0 = vld [vmem:[%s19088_s28 + $0x4] sm:$0x3] }
 0xfef   : > { %v5268_v4 = vpop.f32.mrf.mxu1 }
 0xff0   : > { %18118 = verf.f32 %v5273_v3  ;;  %v3114_v3 = vadd.f32 %v19527_v57, %v13363_v61  ;;  %v16960_v61 = vld [vmem:[%s19090_s17 + $0x12f4] ss:$8 sps:$4 sm:$0xff]  }
 0xffb   : > { %v18117_v5 = vpop.eup %18116 }
 0xffc   : > { %v5276_v6 = vadd.f32 1.0, %v18117_v5  ;;  %v5470_v5 = vrot.slane %v13963_v0, %v19181_v11 }
 0xffd   : > { %v18119_v7 = vpop.eup %18118 }
 0xffe   : > { %v5277_v10 = vadd.f32 1.0, %v18119_v7  ;;  %v5278_v13 = vmul.f32 %v5276_v6, %v5270_v8  ;;  %v5474_v8 = vrot.slane %v13963_v0, %v19183_v12 }
0x1000   : > { %v5279_v15 = vmul.f32 %v5277_v10, %v5271_v9  ;;  %v5280_v18 = vpack.c.bf16 %v5278_v13, %v5278_v13 }
0x1002   : > { %v5281_v16 = vpack.c.bf16 %v5279_v15, %v5279_v15 }
0x1004   : > { %5451 = vmatprep.mubr.bf16.mxu0 %v5281_v16 }
0x1005   : > { %5452 = vmatmul.mubr.bf16.vlgmr.msra.gmra.mxu0 %v5280_v18 }
0x1006   : > { %5511 = vmatpush1.bf16.msra.mxu0 %v5493_v19  ;;  %5530 = vmatprep.mubr.bf16.mxu0 %v18687_v17 }
0x1007   : > { %5512 = vmatprep.subr.bf16.mxu0 %v16837_v20 }
0x100a   : > { %5513 = vmatpush1.bf16.msra.mxu0 %v16835_v21 }
0x100b   : > { %6016 = vmatprep.subr.bf16.mxu0 %v16888_v42  ;;  %v16933_v42 = vld [vmem:[%s19090_s17 + $0x1184] ss:$8 sps:$4 sm:$0xff]  }
0x100d   : > { %13969 = vmatmul.mubr.msk.bf16.vlgmr.msra.gmra.mxu0 %vm810_vm5, %v19131_v26 }
0x100e   : > { %6017 = vmatpush1.bf16.msra.mxu0 %v16886_v41  ;;  %v16928_v41 = vld [vmem:[%s19090_s17 + $0x1190] ss:$8 sps:$4 sm:$0xff]  }
0x100f   : > { %6018 = vmatprep.subr.bf16.mxu0 %v16891_v43  ;;  %v16931_v43 = vld [vmem:[%s19090_s17 + $0x1180] ss:$8 sps:$4 sm:$0xff]  }
0x1012   : > { %6019 = vmatpush1.bf16.msra.mxu0 %v16889_v44  ;;  %v16934_v44 = vld [vmem:[%s19090_s17 + $0x1270] ss:$8 sps:$4 sm:$0xff]  }
0x1013   : > { %6020 = vmatprep.subr.bf16.mxu0 %v16894_v45  ;;  %v16936_v45 = vld [vmem:[%s19090_s17 + $0x1274] ss:$8 sps:$4 sm:$0xff]  }
0x1014   : > { %6275 = vmatprep.subr.bf16.mxu1 %v16936_v45  ;;  %v16991_v45 = vld [vmem:[%s19090_s17 + $0x1340] ss:$8 sps:$4 sm:$0xff]  }
0x1016   : > { %6021 = vmatpush1.bf16.msra.mxu0 %v16892_v46  ;;  %v16939_v46 = vld [vmem:[%s19090_s17 + $0x1264] ss:$8 sps:$4 sm:$0xff]  }
0x1017   : > { %6022 = vmatprep.subr.bf16.mxu0 %v16897_v47  ;;  %v16937_v47 = vld [vmem:[%s19090_s17 + $0x1260] ss:$8 sps:$4 sm:$0xff]  }
0x101a   : > { %6023 = vmatpush1.bf16.msra.mxu0 %v16895_v48  ;;  %v16942_v48 = vld [vmem:[%s19090_s17 + $0x1254] ss:$8 sps:$4 sm:$0xff]  }
0x101b   : > { %6024 = vmatprep.subr.bf16.mxu0 %v16900_v49  ;;  %v16940_v49 = vld [vmem:[%s19090_s17 + $0x1250] ss:$8 sps:$4 sm:$0xff]  }
0x101e   : > { %6025 = vmatpush1.bf16.msra.mxu0 %v16898_v50  ;;  %v16945_v50 = vld [vmem:[%s19090_s17 + $0x1244] ss:$8 sps:$4 sm:$0xff]  }
0x101f   : > { %6026 = vmatprep.subr.bf16.mxu0 %v16903_v51  ;;  %v16943_v51 = vld [vmem:[%s19090_s17 + $0x1240] ss:$8 sps:$4 sm:$0xff]  }
0x1022   : > { %6027 = vmatpush1.bf16.msra.mxu0 %v16901_v52  ;;  %v16948_v52 = vld [vmem:[%s19090_s17 + $0x1234] ss:$8 sps:$4 sm:$0xff]  }
0x1023   : > { %6028 = vmatprep.subr.bf16.mxu0 %v16906_v53  ;;  %v16946_v53 = vld [vmem:[%s19090_s17 + $0x1230] ss:$8 sps:$4 sm:$0xff]  }
0x1026   : > { %6029 = vmatpush1.bf16.msra.mxu0 %v16904_v54  ;;  %v16951_v54 = vld [vmem:[%s19090_s17 + $0x1224] ss:$8 sps:$4 sm:$0xff]  }
0x1027   : > { %6030 = vmatprep.subr.bf16.mxu0 %v16909_v55  ;;  %v16949_v55 = vld [vmem:[%s19090_s17 + $0x1220] ss:$8 sps:$4 sm:$0xff]  }
0x102a   : > { %6031 = vmatpush1.bf16.msra.mxu0 %v16907_v56  ;;  %v16954_v56 = vld [vmem:[%s19090_s17 + $0x1214] ss:$8 sps:$4 sm:$0xff]  }
0x102b   : > { %6032 = vmatprep.subr.bf16.mxu0 %v16912_v58  ;;  %v16952_v58 = vld [vmem:[%s19090_s17 + $0x1210] ss:$8 sps:$4 sm:$0xff]  }
0x102e   : > { %6033 = vmatpush2.bf16.msra.mxu0 %v16910_v59  ;;  %v16957_v59 = vld [vmem:[%s19090_s17 + $0x1204] ss:$8 sps:$4 sm:$0xff]  }
0x102f   : > { %6034 = vmatprep.subr.bf16.mxu0 %v16915_v30  ;;  %v16972_v30 = vld [vmem:[%s19090_s17 + $0x12b4] ss:$8 sps:$4 sm:$0xff]  }
0x1032   : > { %6035 = vmatpush2.bf16.msra.mxu0 %v16913_v31  ;;  %v16970_v31 = vld [vmem:[%s19090_s17 + $0x12b0] ss:$8 sps:$4 sm:$0xff]  }
0x1033   : > { %6036 = vmatprep.subr.bf16.mxu0 %v16918_v32  ;;  %v16975_v32 = vld [vmem:[%s19090_s17 + $0x12a4] ss:$8 sps:$4 sm:$0xff]  }
0x1036   : > { %6037 = vmatpush2.bf16.msra.mxu0 %v16916_v33  ;;  %v16973_v33 = vld [vmem:[%s19090_s17 + $0x12a0] ss:$8 sps:$4 sm:$0xff]  }
0x1037   : > { %6038 = vmatprep.subr.bf16.mxu0 %v16921_v34  ;;  %v16978_v34 = vld [vmem:[%s19090_s17 + $0x1294] ss:$8 sps:$4 sm:$0xff]  }
0x103a   : > { %6039 = vmatpush2.bf16.msra.mxu0 %v16919_v35  ;;  %v16976_v35 = vld [vmem:[%s19090_s17 + $0x1290] ss:$8 sps:$4 sm:$0xff]  }
0x103b   : > { %6040 = vmatprep.subr.bf16.mxu0 %v16924_v36  ;;  %v16981_v36 = vld [vmem:[%s19090_s17 + $0x1284] ss:$8 sps:$4 sm:$0xff]  }
0x103e   : > { %6041 = vmatpush2.bf16.msra.mxu0 %v16922_v37  ;;  %v16979_v37 = vld [vmem:[%s19090_s17 + $0x1280] ss:$8 sps:$4 sm:$0xff]  }
0x103f   : > { %6042 = vmatprep.subr.bf16.mxu0 %v16927_v38  ;;  %v16982_v38 = vld [vmem:[%s19090_s17 + $0x1370] ss:$8 sps:$4 sm:$0xff]  }
0x1042   : > { %6043 = vmatpush2.bf16.msra.mxu0 %v16925_v39  ;;  %v16984_v39 = vld [vmem:[%s19090_s17 + $0x1374] ss:$8 sps:$4 sm:$0xff]  }
0x1043   : > { %6044 = vmatprep.subr.bf16.mxu0 %v16930_v40  ;;  %v16987_v40 = vld [vmem:[%s19090_s17 + $0x1364] ss:$8 sps:$4 sm:$0xff]  }
0x1046   : > { %6045 = vmatpush2.bf16.msra.mxu0 %v16928_v41  ;;  %v16985_v41 = vld [vmem:[%s19090_s17 + $0x1360] ss:$8 sps:$4 sm:$0xff]  }
0x1047   : > { %6046 = vmatprep.subr.bf16.mxu0 %v16933_v42  ;;  %v16990_v42 = vld [vmem:[%s19090_s17 + $0x1354] ss:$8 sps:$4 sm:$0xff]  }
0x104a   : > { %6047 = vmatpush2.bf16.msra.mxu0 %v16931_v43  ;;  %v16988_v43 = vld [vmem:[%s19090_s17 + $0x1350] ss:$8 sps:$4 sm:$0xff]  }
0x104b   : > { %6534 = vmatprep.subr.bf16.mxu0 %v16984_v39  ;;  %v17039_v39 = vld [vmem:[%s19090_s17 + $0x1440] ss:$8 sps:$4 sm:$0xff]  }
0x10c5   : > { %v15760_v60 = vpop.f32.mrf.mxu0 }
0x10c7   : > { %v15761_v63 = vpop.f32.mrf.mxu0 }
0x10c8   : > { %v15762_v1 = vadd.f32 %v15761_v63, %v15760_v60  ;;  %v16955_v60 = vld [vmem:[%s19090_s17 + $0x1200] ss:$8 sps:$4 sm:$0xff]  }
0x10c9   : > { %v15763_v2 = vpop.f32.mrf.mxu0  ;;  %v14002_v63 = vld [vmem:[%s19092_s22 + $0x20] sm:$0x3] }
0x10ca   : > { %v5454_v4 = vadd.f32 %v15762_v1, %v13943_v62  ;;  %v16958_v62 = vld [vmem:[%s19090_s17 + $0x12f0] ss:$8 sps:$4 sm:$0xff]   ;;  %v5590_v0 = vrot.slane %v14002_v63, %v19181_v11  ;;  %v5594_v1 = vrot.slane %v14002_v63, %v19183_v12 }
0x10cb   : > { %v15764_v6 = vpop.f32.mrf.mxu0 }
0x10cc   : > { %v19805_v7 = vadd.f32 %v5454_v4, %v3114_v3 }
0x10cd   : > { %v5532_v9 = vpop.f32.mrf.mxu0 }
0x10ce   : > { %v5533_v10 = vadd.f32 %v5532_v9, %v5470_v5 }
0x10cf   : > { %v5534_v13 = vpop.f32.mrf.mxu0 }
0x10d0   : > { %v5541_v14 = vmul.f32 0.70710677, %v5533_v10  ;;  %v5535_v15 = vadd.f32 %v5534_v13, %v5474_v8  ;;  %v5539_v22 = vmul.f32 0.5, %v5533_v10 }
0x10d1   : > { %v5536_v16 = vpop.f32.mrf.mxu0 }
0x10d2   : > { %18120 = verf.f32 %v5541_v14  ;;  %v5542_v18 = vmul.f32 0.70710677, %v5535_v15  ;;  %v5540_v23 = vmul.f32 0.5, %v5535_v15 }
0x10d3   : > { %v5537_v19 = vpop.f32.mrf.mxu0 }
0x10d4   : > { %18122 = verf.f32 %v5542_v18 }
0x10df   : > { %v18121_v57 = vpop.eup %18120 }
0x10e0   : > { %v5545_v20 = vadd.f32 1.0, %v18121_v57 }
0x10e1   : > { %v18123_v21 = vpop.eup %18122 }
0x10e2   : > { %v5546_v24 = vadd.f32 1.0, %v18123_v21  ;;  %v5547_v25 = vmul.f32 %v5545_v20, %v5539_v22 }
0x10e4   : > { %v5548_v27 = vmul.f32 %v5546_v24, %v5540_v23  ;;  %v5549_v29 = vpack.c.bf16 %v5547_v25, %v5547_v25  ;;  %v16963_v23 = vld [vmem:[%s19090_s17 + $0x12e4] ss:$8 sps:$4 sm:$0xff]   ;;  %v16961_v24 = vld [vmem:[%s19090_s17 + $0x12e0] ss:$8 sps:$4 sm:$0xff]   ;;  %v16966_v25 = vld [vmem:[%s19090_s17 + $0x12d4] ss:$8 sps:$4 sm:$0xff]  }
0x10e6   : > { %v5550_v28 = vpack.c.bf16 %v5548_v27, %v5548_v27  ;;  %v16964_v27 = vld [vmem:[%s19090_s17 + $0x12d0] ss:$8 sps:$4 sm:$0xff]  }
0x10e8   : > { %5789 = vmatprep.mubr.bf16.mxu1 %v5550_v28  ;;  %v16969_v28 = vld [vmem:[%s19090_s17 + $0x12c4] ss:$8 sps:$4 sm:$0xff]  }
0x10e9   : > { %5790 = vmatmul.mubr.bf16.vlgmr.msra.gmra.mxu1 %v5549_v29  ;;  %v16967_v29 = vld [vmem:[%s19090_s17 + $0x12c0] ss:$8 sps:$4 sm:$0xff]  }
0x10ea   : > { %6276 = vmatpush1.bf16.msra.mxu1 %v16934_v44  ;;  %v16993_v44 = vld [vmem:[%s19090_s17 + $0x1344] ss:$8 sps:$4 sm:$0xff]  }
0x10eb   : > { %6277 = vmatprep.subr.bf16.mxu1 %v16939_v46  ;;  %v16996_v46 = vld [vmem:[%s19090_s17 + $0x1334] ss:$8 sps:$4 sm:$0xff]  }
0x10ee   : > { %6278 = vmatpush1.bf16.msra.mxu1 %v16937_v47  ;;  %v16994_v47 = vld [vmem:[%s19090_s17 + $0x1330] ss:$8 sps:$4 sm:$0xff]  }
0x10ef   : > { %6279 = vmatprep.subr.bf16.mxu1 %v16942_v48  ;;  %v16999_v48 = vld [vmem:[%s19090_s17 + $0x1324] ss:$8 sps:$4 sm:$0xff]  }
0x10f2   : > { %6280 = vmatpush1.bf16.msra.mxu1 %v16940_v49  ;;  %v16997_v49 = vld [vmem:[%s19090_s17 + $0x1320] ss:$8 sps:$4 sm:$0xff]  }
0x10f3   : > { %6281 = vmatprep.subr.bf16.mxu1 %v16945_v50  ;;  %v17002_v50 = vld [vmem:[%s19090_s17 + $0x1314] ss:$8 sps:$4 sm:$0xff]  }
0x10f6   : > { %6282 = vmatpush1.bf16.msra.mxu1 %v16943_v51  ;;  %v17000_v51 = vld [vmem:[%s19090_s17 + $0x1310] ss:$8 sps:$4 sm:$0xff]  }
0x10f7   : > { %6283 = vmatprep.subr.bf16.mxu1 %v16948_v52  ;;  %v17005_v52 = vld [vmem:[%s19090_s17 + $0x1304] ss:$8 sps:$4 sm:$0xff]  }
0x10fa   : > { %6284 = vmatpush1.bf16.msra.mxu1 %v16946_v53  ;;  %v17003_v53 = vld [vmem:[%s19090_s17 + $0x1300] ss:$8 sps:$4 sm:$0xff]  }
0x10fb   : > { %6285 = vmatprep.subr.bf16.mxu1 %v16951_v54  ;;  %v17008_v54 = vld [vmem:[%s19090_s17 + $0x13f4] ss:$8 sps:$4 sm:$0xff]  }
0x10fe   : > { %6286 = vmatpush1.bf16.msra.mxu1 %v16949_v55  ;;  %v17006_v55 = vld [vmem:[%s19090_s17 + $0x13f0] ss:$8 sps:$4 sm:$0xff]  }
0x10ff   : > { %6287 = vmatprep.subr.bf16.mxu1 %v16954_v56  ;;  %v14067_v56 = vld [vmem:[%s19092_s22 + $0x22] sm:$0x3] }
0x1102   : > { %6288 = vmatpush1.bf16.msra.mxu1 %v16952_v58  ;;  %v5849_v58 = vrot.slane %v14067_v56, %v19181_v11 }
0x1103   : > { %6289 = vmatprep.subr.bf16.mxu1 %v16957_v59  ;;  %v5853_v59 = vrot.slane %v14067_v56, %v19183_v12 }
0x1106   : > { %6290 = vmatpush1.bf16.msra.mxu1 %v16955_v60 }
0x1107   : > { %6291 = vmatprep.subr.bf16.mxu1 %v16960_v61 }
0x110a   : > { %6292 = vmatpush2.bf16.msra.mxu1 %v16958_v62 }
0x110b   : > { %6293 = vmatprep.subr.bf16.mxu1 %v16963_v23  ;;  %v17020_v23 = vld [vmem:[%s19090_s17 + $0x13b4] ss:$8 sps:$4 sm:$0xff]  }
0x110e   : > { %6294 = vmatpush2.bf16.msra.mxu1 %v16961_v24  ;;  %v17018_v24 = vld [vmem:[%s19090_s17 + $0x13b0] ss:$8 sps:$4 sm:$0xff]  }
0x110f   : > { %6295 = vmatprep.subr.bf16.mxu1 %v16966_v25  ;;  %v17023_v25 = vld [vmem:[%s19090_s17 + $0x13a4] ss:$8 sps:$4 sm:$0xff]  }
0x1112   : > { %6296 = vmatpush2.bf16.msra.mxu1 %v16964_v27  ;;  %v17021_v27 = vld [vmem:[%s19090_s17 + $0x13a0] ss:$8 sps:$4 sm:$0xff]  }
0x1113   : > { %6297 = vmatprep.subr.bf16.mxu1 %v16969_v28  ;;  %v17026_v28 = vld [vmem:[%s19090_s17 + $0x1394] ss:$8 sps:$4 sm:$0xff]  }
0x1116   : > { %6298 = vmatpush2.bf16.msra.mxu1 %v16967_v29  ;;  %v17024_v29 = vld [vmem:[%s19090_s17 + $0x1390] ss:$8 sps:$4 sm:$0xff]  }
0x1117   : > { %6299 = vmatprep.subr.bf16.mxu1 %v16972_v30  ;;  %v17029_v30 = vld [vmem:[%s19090_s17 + $0x1384] ss:$8 sps:$4 sm:$0xff]  }
0x111a   : > { %6300 = vmatpush2.bf16.msra.mxu1 %v16970_v31  ;;  %v17027_v31 = vld [vmem:[%s19090_s17 + $0x1380] ss:$8 sps:$4 sm:$0xff]  }
0x111b   : > { %6301 = vmatprep.subr.bf16.mxu1 %v16975_v32  ;;  %v17030_v32 = vld [vmem:[%s19090_s17 + $0x1470] ss:$8 sps:$4 sm:$0xff]  }
0x111e   : > { %6302 = vmatpush2.bf16.msra.mxu1 %v16973_v33  ;;  %v17032_v33 = vld [vmem:[%s19090_s17 + $0x1474] ss:$8 sps:$4 sm:$0xff]  }
0x111f   : > { %6303 = vmatprep.subr.bf16.mxu1 %v16978_v34  ;;  %v17035_v34 = vld [vmem:[%s19090_s17 + $0x1464] ss:$8 sps:$4 sm:$0xff]  }
0x1122   : > { %6304 = vmatpush2.bf16.msra.mxu1 %v16976_v35  ;;  %v17033_v35 = vld [vmem:[%s19090_s17 + $0x1460] ss:$8 sps:$4 sm:$0xff]  }
0x1123   : > { %6305 = vmatprep.subr.bf16.mxu1 %v16981_v36  ;;  %v17038_v36 = vld [vmem:[%s19090_s17 + $0x1454] ss:$8 sps:$4 sm:$0xff]  }
0x1126   : > { %6306 = vmatpush2.bf16.msra.mxu1 %v16979_v37  ;;  %v17036_v37 = vld [vmem:[%s19090_s17 + $0x1450] ss:$8 sps:$4 sm:$0xff]  }
0x1127   : > { %6793 = vmatprep.subr.bf16.mxu1 %v17032_v33  ;;  %v17087_v33 = vld [vmem:[%s19090_s17 + $0x1540] ss:$8 sps:$4 sm:$0xff]  }
0x11a9   : > { %v5791_v2 = vpop.f32.mrf.mxu1 }
0x11aa   : > { %v5792_v3 = vadd.f32 %v5791_v2, %v5590_v0 }
0x11ab   : > { %v5793_v4 = vpop.f32.mrf.mxu1 }
0x11ac   : > { %v5800_v5 = vmul.f32 0.70710677, %v5792_v3  ;;  %v5794_v6 = vadd.f32 %v5793_v4, %v5594_v1  ;;  %v5798_v16 = vmul.f32 0.5, %v5792_v3 }
0x11ad   : > { %v5795_v8 = vpop.f32.mrf.mxu1 }
0x11ae   : > { %18124 = verf.f32 %v5800_v5  ;;  %v5801_v9 = vmul.f32 0.70710677, %v5794_v6  ;;  %v5799_v18 = vmul.f32 0.5, %v5794_v6 }
0x11af   : > { %v5796_v10 = vpop.f32.mrf.mxu1 }
0x11b0   : > { %18126 = verf.f32 %v5801_v9 }
0x11bb   : > { %v18125_v13 = vpop.eup %18124 }
0x11bc   : > { %v5804_v14 = vadd.f32 1.0, %v18125_v13 }
0x11bd   : > { %v18127_v15 = vpop.eup %18126 }
0x11be   : > { %v5805_v19 = vadd.f32 1.0, %v18127_v15  ;;  %v5806_v57 = vmul.f32 %v5804_v14, %v5798_v16 }
0x11c0   : > { %v5807_v20 = vmul.f32 %v5805_v19, %v5799_v18  ;;  %v5808_v22 = vpack.c.bf16 %v5806_v57, %v5806_v57  ;;  %v17011_v18 = vld [vmem:[%s19090_s17 + $0x13e4] ss:$8 sps:$4 sm:$0xff]   ;;  %v17009_v19 = vld [vmem:[%s19090_s17 + $0x13e0] ss:$8 sps:$4 sm:$0xff]   ;;  %v17014_v57 = vld [vmem:[%s19090_s17 + $0x13d4] ss:$8 sps:$4 sm:$0xff]  }
0x11c2   : > { %v5809_v21 = vpack.c.bf16 %v5807_v20, %v5807_v20  ;;  %v17012_v20 = vld [vmem:[%s19090_s17 + $0x13d0] ss:$8 sps:$4 sm:$0xff]  }
0x11c4   : > { %6048 = vmatprep.mubr.bf16.mxu0 %v5809_v21  ;;  %v17017_v21 = vld [vmem:[%s19090_s17 + $0x13c4] ss:$8 sps:$4 sm:$0xff]  }
0x11c5   : > { %6049 = vmatmul.mubr.bf16.vlgmr.msra.gmra.mxu0 %v5808_v22  ;;  %v17015_v22 = vld [vmem:[%s19090_s17 + $0x13c0] ss:$8 sps:$4 sm:$0xff]  }
0x11c6   : > { %6535 = vmatpush1.bf16.msra.mxu0 %v16982_v38  ;;  %v17041_v38 = vld [vmem:[%s19090_s17 + $0x1444] ss:$8 sps:$4 sm:$0xff]  }
0x11c7   : > { %6536 = vmatprep.subr.bf16.mxu0 %v16987_v40  ;;  %v17044_v40 = vld [vmem:[%s19090_s17 + $0x1434] ss:$8 sps:$4 sm:$0xff]  }
0x11ca   : > { %6537 = vmatpush1.bf16.msra.mxu0 %v16985_v41  ;;  %v17042_v41 = vld [vmem:[%s19090_s17 + $0x1430] ss:$8 sps:$4 sm:$0xff]  }
0x11cb   : > { %6538 = vmatprep.subr.bf16.mxu0 %v16990_v42  ;;  %v17047_v42 = vld [vmem:[%s19090_s17 + $0x1424] ss:$8 sps:$4 sm:$0xff]  }
0x11ce   : > { %6539 = vmatpush1.bf16.msra.mxu0 %v16988_v43  ;;  %v17045_v43 = vld [vmem:[%s19090_s17 + $0x1420] ss:$8 sps:$4 sm:$0xff]  }
0x11cf   : > { %6540 = vmatprep.subr.bf16.mxu0 %v16993_v44  ;;  %v17050_v44 = vld [vmem:[%s19090_s17 + $0x1414] ss:$8 sps:$4 sm:$0xff]  }
0x11d2   : > { %6541 = vmatpush1.bf16.msra.mxu0 %v16991_v45  ;;  %v17048_v45 = vld [vmem:[%s19090_s17 + $0x1410] ss:$8 sps:$4 sm:$0xff]  }
0x11d3   : > { %6542 = vmatprep.subr.bf16.mxu0 %v16996_v46  ;;  %v17053_v46 = vld [vmem:[%s19090_s17 + $0x1404] ss:$8 sps:$4 sm:$0xff]  }
0x11d6   : > { %6543 = vmatpush1.bf16.msra.mxu0 %v16994_v47  ;;  %v17051_v47 = vld [vmem:[%s19090_s17 + $0x1400] ss:$8 sps:$4 sm:$0xff]  }
0x11d7   : > { %6544 = vmatprep.subr.bf16.mxu0 %v16999_v48  ;;  %v17056_v48 = vld [vmem:[%s19090_s17 + $0x14f4] ss:$8 sps:$4 sm:$0xff]  }
0x11da   : > { %6545 = vmatpush1.bf16.msra.mxu0 %v16997_v49  ;;  %v17054_v49 = vld [vmem:[%s19090_s17 + $0x14f0] ss:$8 sps:$4 sm:$0xff]  }
0x11db   : > { %6546 = vmatprep.subr.bf16.mxu0 %v17002_v50  ;;  %v14132_v50 = vld [vmem:[%s19092_s22 + $0x24] sm:$0x3] }
0x11de   : > { %6547 = vmatpush1.bf16.msra.mxu0 %v17000_v51  ;;  %v6108_v51 = vrot.slane %v14132_v50, %v19181_v11 }
0x11df   : > { %6548 = vmatprep.subr.bf16.mxu0 %v17005_v52  ;;  %v6112_v52 = vrot.slane %v14132_v50, %v19183_v12 }
0x11e2   : > { %6549 = vmatpush1.bf16.msra.mxu0 %v17003_v53 }
0x11e3   : > { %6550 = vmatprep.subr.bf16.mxu0 %v17008_v54 }
0x11e6   : > { %6551 = vmatpush2.bf16.msra.mxu0 %v17006_v55 }
0x11e7   : > { %6552 = vmatprep.subr.bf16.mxu0 %v17011_v18  ;;  %v17068_v18 = vld [vmem:[%s19090_s17 + $0x14b4] ss:$8 sps:$4 sm:$0xff]  }
0x11ea   : > { %6553 = vmatpush2.bf16.msra.mxu0 %v17009_v19  ;;  %v17066_v19 = vld [vmem:[%s19090_s17 + $0x14b0] ss:$8 sps:$4 sm:$0xff]  }
0x11eb   : > { %6554 = vmatprep.subr.bf16.mxu0 %v17014_v57  ;;  %v17071_v57 = vld [vmem:[%s19090_s17 + $0x14a4] ss:$8 sps:$4 sm:$0xff]  }
0x11ee   : > { %6555 = vmatpush2.bf16.msra.mxu0 %v17012_v20  ;;  %v17069_v20 = vld [vmem:[%s19090_s17 + $0x14a0] ss:$8 sps:$4 sm:$0xff]  }
0x11ef   : > { %6556 = vmatprep.subr.bf16.mxu0 %v17017_v21  ;;  %v17074_v21 = vld [vmem:[%s19090_s17 + $0x1494] ss:$8 sps:$4 sm:$0xff]  }
0x11f2   : > { %6557 = vmatpush2.bf16.msra.mxu0 %v17015_v22  ;;  %v17072_v22 = vld [vmem:[%s19090_s17 + $0x1490] ss:$8 sps:$4 sm:$0xff]  }
0x11f3   : > { %6558 = vmatprep.subr.bf16.mxu0 %v17020_v23  ;;  %v17077_v23 = vld [vmem:[%s19090_s17 + $0x1484] ss:$8 sps:$4 sm:$0xff]  }
0x11f6   : > { %6559 = vmatpush2.bf16.msra.mxu0 %v17018_v24  ;;  %v17075_v24 = vld [vmem:[%s19090_s17 + $0x1480] ss:$8 sps:$4 sm:$0xff]  }
0x11f7   : > { %6560 = vmatprep.subr.bf16.mxu0 %v17023_v25  ;;  %v17078_v25 = vld [vmem:[%s19090_s17 + $0x1570] ss:$8 sps:$4 sm:$0xff]  }
0x11fa   : > { %6561 = vmatpush2.bf16.msra.mxu0 %v17021_v27  ;;  %v17080_v27 = vld [vmem:[%s19090_s17 + $0x1574] ss:$8 sps:$4 sm:$0xff]  }
0x11fb   : > { %6562 = vmatprep.subr.bf16.mxu0 %v17026_v28  ;;  %v17083_v28 = vld [vmem:[%s19090_s17 + $0x1564] ss:$8 sps:$4 sm:$0xff]  }
0x11fe   : > { %6563 = vmatpush2.bf16.msra.mxu0 %v17024_v29  ;;  %v17081_v29 = vld [vmem:[%s19090_s17 + $0x1560] ss:$8 sps:$4 sm:$0xff]  }
0x11ff   : > { %6564 = vmatprep.subr.bf16.mxu0 %v17029_v30  ;;  %v17086_v30 = vld [vmem:[%s19090_s17 + $0x1554] ss:$8 sps:$4 sm:$0xff]  }
0x1202   : > { %6565 = vmatpush2.bf16.msra.mxu0 %v17027_v31  ;;  %v17084_v31 = vld [vmem:[%s19090_s17 + $0x1550] ss:$8 sps:$4 sm:$0xff]  }
0x1203   : > { %7052 = vmatprep.subr.bf16.mxu0 %v17080_v27  ;;  %v17135_v27 = vld [vmem:[%s19090_s17 + $0x1640] ss:$8 sps:$4 sm:$0xff]  }
0x1285   : > { %v6050_v60 = vpop.f32.mrf.mxu0 }
0x1286   : > { %v6051_v61 = vadd.f32 %v6050_v60, %v5849_v58 }
0x1287   : > { %v6052_v62 = vpop.f32.mrf.mxu0 }
0x1288   : > { %v6059_v63 = vmul.f32 0.70710677, %v6051_v61  ;;  %v6053_v0 = vadd.f32 %v6052_v62, %v5853_v59  ;;  %v6057_v8 = vmul.f32 0.5, %v6051_v61 }
0x1289   : > { %v6054_v1 = vpop.f32.mrf.mxu0 }
0x128a   : > { %18128 = verf.f32 %v6059_v63  ;;  %v6060_v2 = vmul.f32 0.70710677, %v6053_v0  ;;  %v6058_v9 = vmul.f32 0.5, %v6053_v0 }
0x128b   : > { %v6055_v3 = vpop.f32.mrf.mxu0 }
0x128c   : > { %18130 = verf.f32 %v6060_v2 }
0x1297   : > { %v18129_v4 = vpop.eup %18128 }
0x1298   : > { %v6063_v5 = vadd.f32 1.0, %v18129_v4 }
0x1299   : > { %v18131_v6 = vpop.eup %18130 }
0x129a   : > { %v6064_v10 = vadd.f32 1.0, %v18131_v6  ;;  %v6065_v13 = vmul.f32 %v6063_v5, %v6057_v8 }
0x129c   : > { %v6066_v14 = vmul.f32 %v6064_v10, %v6058_v9  ;;  %v6067_v16 = vpack.c.bf16 %v6065_v13, %v6065_v13  ;;  %v17059_v9 = vld [vmem:[%s19090_s17 + $0x14e4] ss:$8 sps:$4 sm:$0xff]   ;;  %v17057_v10 = vld [vmem:[%s19090_s17 + $0x14e0] ss:$8 sps:$4 sm:$0xff]   ;;  %v17062_v13 = vld [vmem:[%s19090_s17 + $0x14d4] ss:$8 sps:$4 sm:$0xff]  }
0x129e   : > { %v6068_v15 = vpack.c.bf16 %v6066_v14, %v6066_v14  ;;  %v17060_v14 = vld [vmem:[%s19090_s17 + $0x14d0] ss:$8 sps:$4 sm:$0xff]  }
0x12a0   : > { %6307 = vmatprep.mubr.bf16.mxu1 %v6068_v15  ;;  %v17065_v15 = vld [vmem:[%s19090_s17 + $0x14c4] ss:$8 sps:$4 sm:$0xff]  }
0x12a1   : > { %6308 = vmatmul.mubr.bf16.vlgmr.msra.gmra.mxu1 %v6067_v16  ;;  %v17063_v16 = vld [vmem:[%s19090_s17 + $0x14c0] ss:$8 sps:$4 sm:$0xff]  }
0x12a2   : > { %6794 = vmatpush1.bf16.msra.mxu1 %v17030_v32  ;;  %v17089_v32 = vld [vmem:[%s19090_s17 + $0x1544] ss:$8 sps:$4 sm:$0xff]  }
0x12a3   : > { %6795 = vmatprep.subr.bf16.mxu1 %v17035_v34  ;;  %v17092_v34 = vld [vmem:[%s19090_s17 + $0x1534] ss:$8 sps:$4 sm:$0xff]  }
0x12a6   : > { %6796 = vmatpush1.bf16.msra.mxu1 %v17033_v35  ;;  %v17090_v35 = vld [vmem:[%s19090_s17 + $0x1530] ss:$8 sps:$4 sm:$0xff]  }
0x12a7   : > { %6797 = vmatprep.subr.bf16.mxu1 %v17038_v36  ;;  %v17095_v36 = vld [vmem:[%s19090_s17 + $0x1524] ss:$8 sps:$4 sm:$0xff]  }
0x12aa   : > { %6798 = vmatpush1.bf16.msra.mxu1 %v17036_v37  ;;  %v17093_v37 = vld [vmem:[%s19090_s17 + $0x1520] ss:$8 sps:$4 sm:$0xff]  }
0x12ab   : > { %6799 = vmatprep.subr.bf16.mxu1 %v17041_v38  ;;  %v17098_v38 = vld [vmem:[%s19090_s17 + $0x1514] ss:$8 sps:$4 sm:$0xff]  }
0x12ae   : > { %6800 = vmatpush1.bf16.msra.mxu1 %v17039_v39  ;;  %v17096_v39 = vld [vmem:[%s19090_s17 + $0x1510] ss:$8 sps:$4 sm:$0xff]  }
0x12af   : > { %6801 = vmatprep.subr.bf16.mxu1 %v17044_v40  ;;  %v17101_v40 = vld [vmem:[%s19090_s17 + $0x1504] ss:$8 sps:$4 sm:$0xff]  }
0x12b2   : > { %6802 = vmatpush1.bf16.msra.mxu1 %v17042_v41  ;;  %v17099_v41 = vld [vmem:[%s19090_s17 + $0x1500] ss:$8 sps:$4 sm:$0xff]  }
0x12b3   : > { %6803 = vmatprep.subr.bf16.mxu1 %v17047_v42  ;;  %v17104_v42 = vld [vmem:[%s19090_s17 + $0x15f4] ss:$8 sps:$4 sm:$0xff]  }
0x12b6   : > { %6804 = vmatpush1.bf16.msra.mxu1 %v17045_v43  ;;  %v17102_v43 = vld [vmem:[%s19090_s17 + $0x15f0] ss:$8 sps:$4 sm:$0xff]  }
0x12b7   : > { %6805 = vmatprep.subr.bf16.mxu1 %v17050_v44  ;;  %v14197_v44 = vld [vmem:[%s19092_s22 + $0x26] sm:$0x3] }
0x12ba   : > { %6806 = vmatpush1.bf16.msra.mxu1 %v17048_v45  ;;  %v6367_v45 = vrot.slane %v14197_v44, %v19181_v11 }
0x12bb   : > { %6807 = vmatprep.subr.bf16.mxu1 %v17053_v46  ;;  %v6371_v46 = vrot.slane %v14197_v44, %v19183_v12 }
0x12be   : > { %6808 = vmatpush1.bf16.msra.mxu1 %v17051_v47 }
0x12bf   : > { %6809 = vmatprep.subr.bf16.mxu1 %v17056_v48 }
0x12c2   : > { %6810 = vmatpush2.bf16.msra.mxu1 %v17054_v49 }
0x12c3   : > { %6811 = vmatprep.subr.bf16.mxu1 %v17059_v9  ;;  %v17116_v9 = vld [vmem:[%s19090_s17 + $0x15b4] ss:$8 sps:$4 sm:$0xff]  }
0x12c6   : > { %6812 = vmatpush2.bf16.msra.mxu1 %v17057_v10  ;;  %v17114_v10 = vld [vmem:[%s19090_s17 + $0x15b0] ss:$8 sps:$4 sm:$0xff]  }
0x12c7   : > { %6813 = vmatprep.subr.bf16.mxu1 %v17062_v13  ;;  %v17119_v13 = vld [vmem:[%s19090_s17 + $0x15a4] ss:$8 sps:$4 sm:$0xff]  }
0x12ca   : > { %6814 = vmatpush2.bf16.msra.mxu1 %v17060_v14  ;;  %v17117_v14 = vld [vmem:[%s19090_s17 + $0x15a0] ss:$8 sps:$4 sm:$0xff]  }
0x12cb   : > { %6815 = vmatprep.subr.bf16.mxu1 %v17065_v15  ;;  %v17122_v15 = vld [vmem:[%s19090_s17 + $0x1594] ss:$8 sps:$4 sm:$0xff]  }
0x12ce   : > { %6816 = vmatpush2.bf16.msra.mxu1 %v17063_v16  ;;  %v17120_v16 = vld [vmem:[%s19090_s17 + $0x1590] ss:$8 sps:$4 sm:$0xff]  }
0x12cf   : > { %6817 = vmatprep.subr.bf16.mxu1 %v17068_v18  ;;  %v17125_v18 = vld [vmem:[%s19090_s17 + $0x1584] ss:$8 sps:$4 sm:$0xff]  }
0x12d2   : > { %6818 = vmatpush2.bf16.msra.mxu1 %v17066_v19  ;;  %v17123_v19 = vld [vmem:[%s19090_s17 + $0x1580] ss:$8 sps:$4 sm:$0xff]  }
0x12d3   : > { %6819 = vmatprep.subr.bf16.mxu1 %v17071_v57  ;;  %v17126_v57 = vld [vmem:[%s19090_s17 + $0x1670] ss:$8 sps:$4 sm:$0xff]  }
0x12d6   : > { %6820 = vmatpush2.bf16.msra.mxu1 %v17069_v20  ;;  %v17128_v20 = vld [vmem:[%s19090_s17 + $0x1674] ss:$8 sps:$4 sm:$0xff]  }
0x12d7   : > { %6821 = vmatprep.subr.bf16.mxu1 %v17074_v21  ;;  %v17131_v21 = vld [vmem:[%s19090_s17 + $0x1664] ss:$8 sps:$4 sm:$0xff]  }
0x12da   : > { %6822 = vmatpush2.bf16.msra.mxu1 %v17072_v22  ;;  %v17129_v22 = vld [vmem:[%s19090_s17 + $0x1660] ss:$8 sps:$4 sm:$0xff]  }
0x12db   : > { %6823 = vmatprep.subr.bf16.mxu1 %v17077_v23  ;;  %v17134_v23 = vld [vmem:[%s19090_s17 + $0x1654] ss:$8 sps:$4 sm:$0xff]  }
0x12de   : > { %6824 = vmatpush2.bf16.msra.mxu1 %v17075_v24  ;;  %v17132_v24 = vld [vmem:[%s19090_s17 + $0x1650] ss:$8 sps:$4 sm:$0xff]  }
0x12df   : > { %7311 = vmatprep.subr.bf16.mxu1 %v17128_v20  ;;  %v17183_v20 = vld [vmem:[%s19090_s17 + $0x1740] ss:$8 sps:$4 sm:$0xff]  }
0x1361   : > { %v6309_v53 = vpop.f32.mrf.mxu1 }
0x1362   : > { %v6310_v54 = vadd.f32 %v6309_v53, %v6108_v51 }
0x1363   : > { %v6311_v55 = vpop.f32.mrf.mxu1 }
0x1364   : > { %v6318_v56 = vmul.f32 0.70710677, %v6310_v54  ;;  %v6312_v58 = vadd.f32 %v6311_v55, %v6112_v52  ;;  %v6316_v1 = vmul.f32 0.5, %v6310_v54 }
0x1365   : > { %v6313_v59 = vpop.f32.mrf.mxu1 }
0x1366   : > { %18132 = verf.f32 %v6318_v56  ;;  %v6319_v60 = vmul.f32 0.70710677, %v6312_v58  ;;  %v6317_v2 = vmul.f32 0.5, %v6312_v58 }
0x1367   : > { %v6314_v61 = vpop.f32.mrf.mxu1 }
0x1368   : > { %18134 = verf.f32 %v6319_v60 }
0x1373   : > { %v18133_v62 = vpop.eup %18132 }
0x1374   : > { %v6322_v63 = vadd.f32 1.0, %v18133_v62 }
0x1375   : > { %v18135_v0 = vpop.eup %18134 }
0x1376   : > { %v6323_v3 = vadd.f32 1.0, %v18135_v0  ;;  %v6324_v4 = vmul.f32 %v6322_v63, %v6316_v1 }
0x1378   : > { %v6325_v5 = vmul.f32 %v6323_v3, %v6317_v2  ;;  %v6326_v8 = vpack.c.bf16 %v6324_v4, %v6324_v4  ;;  %v17107_v2 = vld [vmem:[%s19090_s17 + $0x15e4] ss:$8 sps:$4 sm:$0xff]   ;;  %v17105_v3 = vld [vmem:[%s19090_s17 + $0x15e0] ss:$8 sps:$4 sm:$0xff]   ;;  %v17110_v4 = vld [vmem:[%s19090_s17 + $0x15d4] ss:$8 sps:$4 sm:$0xff]  }
0x137a   : > { %v6327_v6 = vpack.c.bf16 %v6325_v5, %v6325_v5  ;;  %v17108_v5 = vld [vmem:[%s19090_s17 + $0x15d0] ss:$8 sps:$4 sm:$0xff]  }
0x137c   : > { %6566 = vmatprep.mubr.bf16.mxu0 %v6327_v6  ;;  %v17113_v6 = vld [vmem:[%s19090_s17 + $0x15c4] ss:$8 sps:$4 sm:$0xff]  }
0x137d   : > { %6567 = vmatmul.mubr.bf16.vlgmr.msra.gmra.mxu0 %v6326_v8  ;;  %v17111_v8 = vld [vmem:[%s19090_s17 + $0x15c0] ss:$8 sps:$4 sm:$0xff]  }
0x137e   : > { %7053 = vmatpush1.bf16.msra.mxu0 %v17078_v25  ;;  %v17137_v25 = vld [vmem:[%s19090_s17 + $0x1644] ss:$8 sps:$4 sm:$0xff]  }
0x137f   : > { %7054 = vmatprep.subr.bf16.mxu0 %v17083_v28  ;;  %v17140_v28 = vld [vmem:[%s19090_s17 + $0x1634] ss:$8 sps:$4 sm:$0xff]  }
0x1382   : > { %7055 = vmatpush1.bf16.msra.mxu0 %v17081_v29  ;;  %v17138_v29 = vld [vmem:[%s19090_s17 + $0x1630] ss:$8 sps:$4 sm:$0xff]  }
0x1383   : > { %7056 = vmatprep.subr.bf16.mxu0 %v17086_v30  ;;  %v17143_v30 = vld [vmem:[%s19090_s17 + $0x1624] ss:$8 sps:$4 sm:$0xff]  }
0x1386   : > { %7057 = vmatpush1.bf16.msra.mxu0 %v17084_v31  ;;  %v17141_v31 = vld [vmem:[%s19090_s17 + $0x1620] ss:$8 sps:$4 sm:$0xff]  }
0x1387   : > { %7058 = vmatprep.subr.bf16.mxu0 %v17089_v32  ;;  %v17146_v32 = vld [vmem:[%s19090_s17 + $0x1614] ss:$8 sps:$4 sm:$0xff]  }
0x138a   : > { %7059 = vmatpush1.bf16.msra.mxu0 %v17087_v33  ;;  %v17144_v33 = vld [vmem:[%s19090_s17 + $0x1610] ss:$8 sps:$4 sm:$0xff]  }
0x138b   : > { %7060 = vmatprep.subr.bf16.mxu0 %v17092_v34  ;;  %v17149_v34 = vld [vmem:[%s19090_s17 + $0x1604] ss:$8 sps:$4 sm:$0xff]  }
0x138e   : > { %7061 = vmatpush1.bf16.msra.mxu0 %v17090_v35  ;;  %v17147_v35 = vld [vmem:[%s19090_s17 + $0x1600] ss:$8 sps:$4 sm:$0xff]  }
0x138f   : > { %7062 = vmatprep.subr.bf16.mxu0 %v17095_v36  ;;  %v17152_v36 = vld [vmem:[%s19090_s17 + $0x16f4] ss:$8 sps:$4 sm:$0xff]  }
0x1392   : > { %7063 = vmatpush1.bf16.msra.mxu0 %v17093_v37  ;;  %v17150_v37 = vld [vmem:[%s19090_s17 + $0x16f0] ss:$8 sps:$4 sm:$0xff]  }
0x1393   : > { %7064 = vmatprep.subr.bf16.mxu0 %v17098_v38  ;;  %v14262_v38 = vld [vmem:[%s19092_s22 + $0x28] sm:$0x3] }
0x1396   : > { %7065 = vmatpush1.bf16.msra.mxu0 %v17096_v39  ;;  %v6626_v39 = vrot.slane %v14262_v38, %v19181_v11 }
0x1397   : > { %7066 = vmatprep.subr.bf16.mxu0 %v17101_v40  ;;  %v6630_v40 = vrot.slane %v14262_v38, %v19183_v12 }
0x139a   : > { %7067 = vmatpush1.bf16.msra.mxu0 %v17099_v41 }
0x139b   : > { %7068 = vmatprep.subr.bf16.mxu0 %v17104_v42 }
0x139e   : > { %7069 = vmatpush2.bf16.msra.mxu0 %v17102_v43 }
0x139f   : > { %7070 = vmatprep.subr.bf16.mxu0 %v17107_v2  ;;  %v17164_v2 = vld [vmem:[%s19090_s17 + $0x16b4] ss:$8 sps:$4 sm:$0xff]  }
0x13a2   : > { %7071 = vmatpush2.bf16.msra.mxu0 %v17105_v3  ;;  %v17162_v3 = vld [vmem:[%s19090_s17 + $0x16b0] ss:$8 sps:$4 sm:$0xff]  }
0x13a3   : > { %7072 = vmatprep.subr.bf16.mxu0 %v17110_v4  ;;  %v17167_v4 = vld [vmem:[%s19090_s17 + $0x16a4] ss:$8 sps:$4 sm:$0xff]  }
0x13a6   : > { %7073 = vmatpush2.bf16.msra.mxu0 %v17108_v5  ;;  %v17165_v5 = vld [vmem:[%s19090_s17 + $0x16a0] ss:$8 sps:$4 sm:$0xff]  }
0x13a7   : > { %7074 = vmatprep.subr.bf16.mxu0 %v17113_v6  ;;  %v17170_v6 = vld [vmem:[%s19090_s17 + $0x1694] ss:$8 sps:$4 sm:$0xff]  }
0x13aa   : > { %7075 = vmatpush2.bf16.msra.mxu0 %v17111_v8  ;;  %v17168_v8 = vld [vmem:[%s19090_s17 + $0x1690] ss:$8 sps:$4 sm:$0xff]  }
0x13ab   : > { %7076 = vmatprep.subr.bf16.mxu0 %v17116_v9  ;;  %v17173_v9 = vld [vmem:[%s19090_s17 + $0x1684] ss:$8 sps:$4 sm:$0xff]  }
0x13ae   : > { %7077 = vmatpush2.bf16.msra.mxu0 %v17114_v10  ;;  %v17171_v10 = vld [vmem:[%s19090_s17 + $0x1680] ss:$8 sps:$4 sm:$0xff]  }
0x13af   : > { %7078 = vmatprep.subr.bf16.mxu0 %v17119_v13  ;;  %v17174_v13 = vld [vmem:[%s19090_s17 + $0x1770] ss:$8 sps:$4 sm:$0xff]  }
0x13b2   : > { %7079 = vmatpush2.bf16.msra.mxu0 %v17117_v14  ;;  %v17176_v14 = vld [vmem:[%s19090_s17 + $0x1774] ss:$8 sps:$4 sm:$0xff]  }
0x13b3   : > { %7080 = vmatprep.subr.bf16.mxu0 %v17122_v15  ;;  %v17179_v15 = vld [vmem:[%s19090_s17 + $0x1764] ss:$8 sps:$4 sm:$0xff]  }
0x13b6   : > { %7081 = vmatpush2.bf16.msra.mxu0 %v17120_v16  ;;  %v17177_v16 = vld [vmem:[%s19090_s17 + $0x1760] ss:$8 sps:$4 sm:$0xff]  }
0x13b7   : > { %7082 = vmatprep.subr.bf16.mxu0 %v17125_v18  ;;  %v17182_v18 = vld [vmem:[%s19090_s17 + $0x1754] ss:$8 sps:$4 sm:$0xff]  }
0x13ba   : > { %7083 = vmatpush2.bf16.msra.mxu0 %v17123_v19  ;;  %v17180_v19 = vld [vmem:[%s19090_s17 + $0x1750] ss:$8 sps:$4 sm:$0xff]  }
0x13bb   : > { %7570 = vmatprep.subr.bf16.mxu0 %v17176_v14 }
0x143d   : > { %v6568_v47 = vpop.f32.mrf.mxu0 }
0x143e   : > { %v6569_v48 = vadd.f32 %v6568_v47, %v6367_v45 }
0x143f   : > { %v6570_v49 = vpop.f32.mrf.mxu0 }
0x1440   : > { %v6577_v50 = vmul.f32 0.70710677, %v6569_v48  ;;  %v6571_v51 = vadd.f32 %v6570_v49, %v6371_v46  ;;  %v6575_v59 = vmul.f32 0.5, %v6569_v48 }
0x1441   : > { %v6572_v52 = vpop.f32.mrf.mxu0 }
0x1442   : > { %18136 = verf.f32 %v6577_v50  ;;  %v6578_v53 = vmul.f32 0.70710677, %v6571_v51  ;;  %v6576_v60 = vmul.f32 0.5, %v6571_v51 }
0x1443   : > { %v6573_v54 = vpop.f32.mrf.mxu0 }
0x1444   : > { %18138 = verf.f32 %v6578_v53 }
0x144f   : > { %v18137_v55 = vpop.eup %18136 }
0x1450   : > { %v6581_v56 = vadd.f32 1.0, %v18137_v55 }
0x1451   : > { %v18139_v58 = vpop.eup %18138 }
0x1452   : > { %v6582_v61 = vadd.f32 1.0, %v18139_v58  ;;  %v6583_v62 = vmul.f32 %v6581_v56, %v6575_v59 }
0x1454   : > { %v6584_v63 = vmul.f32 %v6582_v61, %v6576_v60  ;;  %v6585_v1 = vpack.c.bf16 %v6583_v62, %v6583_v62  ;;  %v17155_v60 = vld [vmem:[%s19090_s17 + $0x16e4] ss:$8 sps:$4 sm:$0xff]   ;;  %v17153_v61 = vld [vmem:[%s19090_s17 + $0x16e0] ss:$8 sps:$4 sm:$0xff]   ;;  %v17158_v62 = vld [vmem:[%s19090_s17 + $0x16d4] ss:$8 sps:$4 sm:$0xff]  }
0x1456   : > { %v6586_v0 = vpack.c.bf16 %v6584_v63, %v6584_v63  ;;  %v17156_v63 = vld [vmem:[%s19090_s17 + $0x16d0] ss:$8 sps:$4 sm:$0xff]  }
0x1458   : > { %6825 = vmatprep.mubr.bf16.mxu1 %v6586_v0  ;;  %v17161_v0 = vld [vmem:[%s19090_s17 + $0x16c4] ss:$8 sps:$4 sm:$0xff]  }
0x1459   : > { %6826 = vmatmul.mubr.bf16.vlgmr.msra.gmra.mxu1 %v6585_v1  ;;  %v17159_v1 = vld [vmem:[%s19090_s17 + $0x16c0] ss:$8 sps:$4 sm:$0xff]  }
0x145a   : > { %7312 = vmatpush1.bf16.msra.mxu1 %v17126_v57  ;;  %v17185_v57 = vld [vmem:[%s19090_s17 + $0x1744] ss:$8 sps:$4 sm:$0xff]  }
0x145b   : > { %7313 = vmatprep.subr.bf16.mxu1 %v17131_v21  ;;  %v17188_v21 = vld [vmem:[%s19090_s17 + $0x1734] ss:$8 sps:$4 sm:$0xff]  }
0x145e   : > { %7314 = vmatpush1.bf16.msra.mxu1 %v17129_v22  ;;  %v17186_v22 = vld [vmem:[%s19090_s17 + $0x1730] ss:$8 sps:$4 sm:$0xff]  }
0x145f   : > { %7315 = vmatprep.subr.bf16.mxu1 %v17134_v23  ;;  %v17191_v23 = vld [vmem:[%s19090_s17 + $0x1724] ss:$8 sps:$4 sm:$0xff]  }
0x1462   : > { %7316 = vmatpush1.bf16.msra.mxu1 %v17132_v24  ;;  %v17189_v24 = vld [vmem:[%s19090_s17 + $0x1720] ss:$8 sps:$4 sm:$0xff]  }
0x1463   : > { %7317 = vmatprep.subr.bf16.mxu1 %v17137_v25  ;;  %v17194_v25 = vld [vmem:[%s19090_s17 + $0x1714] ss:$8 sps:$4 sm:$0xff]  }
0x1466   : > { %7318 = vmatpush1.bf16.msra.mxu1 %v17135_v27  ;;  %v17192_v27 = vld [vmem:[%s19090_s17 + $0x1710] ss:$8 sps:$4 sm:$0xff]  }
0x1467   : > { %7319 = vmatprep.subr.bf16.mxu1 %v17140_v28  ;;  %v17197_v28 = vld [vmem:[%s19090_s17 + $0x1704] ss:$8 sps:$4 sm:$0xff]  }
0x146a   : > { %7320 = vmatpush1.bf16.msra.mxu1 %v17138_v29  ;;  %v17195_v29 = vld [vmem:[%s19090_s17 + $0x1700] ss:$8 sps:$4 sm:$0xff]  }
0x146b   : > { %7321 = vmatprep.subr.bf16.mxu1 %v17143_v30  ;;  %v17200_v30 = vld [vmem:[%s19090_s17 + $0x17f4] ss:$8 sps:$4 sm:$0xff]  }
0x146e   : > { %7322 = vmatpush1.bf16.msra.mxu1 %v17141_v31  ;;  %v17198_v31 = vld [vmem:[%s19090_s17 + $0x17f0] ss:$8 sps:$4 sm:$0xff]  }
0x146f   : > { %7323 = vmatprep.subr.bf16.mxu1 %v17146_v32  ;;  %v17203_v32 = vld [vmem:[%s19090_s17 + $0x17e4] ss:$8 sps:$4 sm:$0xff]  }
0x1472   : > { %7324 = vmatpush1.bf16.msra.mxu1 %v17144_v33  ;;  %v17201_v33 = vld [vmem:[%s19090_s17 + $0x17e0] ss:$8 sps:$4 sm:$0xff]  }
0x1473   : > { %7325 = vmatprep.subr.bf16.mxu1 %v17149_v34  ;;  %v14327_v34 = vld [vmem:[%s19092_s22 + $0x2a] sm:$0x3] }
0x1476   : > { %7326 = vmatpush1.bf16.msra.mxu1 %v17147_v35  ;;  %v6885_v35 = vrot.slane %v14327_v34, %v19181_v11 }
0x1477   : > { %7327 = vmatprep.subr.bf16.mxu1 %v17152_v36  ;;  %v6889_v36 = vrot.slane %v14327_v34, %v19183_v12 }
0x147a   : > { %7328 = vmatpush2.bf16.msra.mxu1 %v17150_v37 }
0x147b   : > { %7329 = vmatprep.subr.bf16.mxu1 %v17155_v60  ;;  %v17212_v60 = vld [vmem:[%s19090_s17 + $0x17b4] ss:$8 sps:$4 sm:$0xff]  }
0x147e   : > { %7330 = vmatpush2.bf16.msra.mxu1 %v17153_v61  ;;  %v17210_v61 = vld [vmem:[%s19090_s17 + $0x17b0] ss:$8 sps:$4 sm:$0xff]  }
0x147f   : > { %7331 = vmatprep.subr.bf16.mxu1 %v17158_v62  ;;  %v17215_v62 = vld [vmem:[%s19090_s17 + $0x17a4] ss:$8 sps:$4 sm:$0xff]  }
0x1482   : > { %7332 = vmatpush2.bf16.msra.mxu1 %v17156_v63  ;;  %v17213_v63 = vld [vmem:[%s19090_s17 + $0x17a0] ss:$8 sps:$4 sm:$0xff]  }
0x1483   : > { %7333 = vmatprep.subr.bf16.mxu1 %v17161_v0  ;;  %v17218_v0 = vld [vmem:[%s19090_s17 + $0x1794] ss:$8 sps:$4 sm:$0xff]  }
0x1486   : > { %7334 = vmatpush2.bf16.msra.mxu1 %v17159_v1  ;;  %v17216_v1 = vld [vmem:[%s19090_s17 + $0x1790] ss:$8 sps:$4 sm:$0xff]  }
0x1487   : > { %7335 = vmatprep.subr.bf16.mxu1 %v17164_v2  ;;  %v17221_v2 = vld [vmem:[%s19090_s17 + $0x1784] ss:$8 sps:$4 sm:$0xff]  }
0x148a   : > { %7336 = vmatpush2.bf16.msra.mxu1 %v17162_v3  ;;  %v17219_v3 = vld [vmem:[%s19090_s17 + $0x1780] ss:$8 sps:$4 sm:$0xff]  }
0x148b   : > { %7337 = vmatprep.subr.bf16.mxu1 %v17167_v4  ;;  %v14542_v4 = vld [vmem:[%s19082_s24 + $0x58] sm:$0x33] }
0x148e   : > { %7338 = vmatpush2.bf16.msra.mxu1 %v17165_v5  ;;  %v14547_v5 = vcombine.high %v14542_v4, %v14542_v4 }
0x148f   : > { %7339 = vmatprep.subr.bf16.mxu1 %v17170_v6  ;;  %v17245_v6 = vld [vmem:[%s19116_s30 + $0x178] sm:$0xff]  }
0x1492   : > { %7340 = vmatpush2.bf16.msra.mxu1 %v17168_v8  ;;  %v17249_v8 = vld [vmem:[%s19116_s30 + $0x138] sm:$0xff]  }
0x1493   : > { %7341 = vmatprep.subr.bf16.mxu1 %v17173_v9  ;;  %v14392_v9 = vld [vmem:[%s19092_s22 + $0x2c] sm:$0x3] }
0x1496   : > { %7342 = vmatpush2.bf16.msra.mxu1 %v17171_v10  ;;  %v7144_v10 = vrot.slane %v14392_v9, %v19181_v11 }
0x1497   : > { %15766 = vmatprep.subr.bf16.mxu1 %v17245_v6  ;;  %v17271_v6 = vld [vmem:[%s19090_s17 + $0x18c0] ss:$8 sps:$4 sm:$0xff]  }
0x1519   : > { %v6827_v41 = vpop.f32.mrf.mxu1 }
0x151a   : > { %v6828_v42 = vadd.f32 %v6827_v41, %v6626_v39 }
0x151b   : > { %v6829_v43 = vpop.f32.mrf.mxu1 }
0x151c   : > { %v6836_v44 = vmul.f32 0.70710677, %v6828_v42  ;;  %v6830_v45 = vadd.f32 %v6829_v43, %v6630_v40  ;;  %v6834_v52 = vmul.f32 0.5, %v6828_v42 }
0x151d   : > { %v6831_v46 = vpop.f32.mrf.mxu1 }
0x151e   : > { %18140 = verf.f32 %v6836_v44  ;;  %v6837_v47 = vmul.f32 0.70710677, %v6830_v45  ;;  %v6835_v53 = vmul.f32 0.5, %v6830_v45 }
0x151f   : > { %v6832_v48 = vpop.f32.mrf.mxu1 }
0x1520   : > { %18142 = verf.f32 %v6837_v47 }
0x152b   : > { %v18141_v49 = vpop.eup %18140 }
0x152c   : > { %v6840_v50 = vadd.f32 1.0, %v18141_v49 }
0x152d   : > { %v18143_v51 = vpop.eup %18142 }
0x152e   : > { %v6841_v54 = vadd.f32 1.0, %v18143_v51  ;;  %v6842_v55 = vmul.f32 %v6840_v50, %v6834_v52 }
0x1530   : > { %v6843_v56 = vmul.f32 %v6841_v54, %v6835_v53  ;;  %v6844_v59 = vpack.c.bf16 %v6842_v55, %v6842_v55  ;;  %v17206_v55 = vld [vmem:[%s19090_s17 + $0x17d4] ss:$8 sps:$4 sm:$0xff]  }
0x1532   : > { %v6845_v58 = vpack.c.bf16 %v6843_v56, %v6843_v56  ;;  %v17204_v56 = vld [vmem:[%s19090_s17 + $0x17d0] ss:$8 sps:$4 sm:$0xff]  }
0x1534   : > { %7084 = vmatprep.mubr.bf16.mxu0 %v6845_v58  ;;  %v17209_v58 = vld [vmem:[%s19090_s17 + $0x17c4] ss:$8 sps:$4 sm:$0xff]  }
0x1535   : > { %7085 = vmatmul.mubr.bf16.vlgmr.msra.gmra.mxu0 %v6844_v59  ;;  %v17207_v59 = vld [vmem:[%s19090_s17 + $0x17c0] ss:$8 sps:$4 sm:$0xff]  }
0x1536   : > { %7571 = vmatpush1.bf16.msra.mxu0 %v17174_v13  ;;  %v7148_v13 = vrot.slane %v14392_v9, %v19183_v12  ;;  %v17275_v9 = vld [vmem:[%s19116_s30 + $0x148] sm:$0xff]  }
0x1537   : > { %7572 = vmatprep.subr.bf16.mxu0 %v17179_v15 }
0x153a   : > { %7573 = vmatpush1.bf16.msra.mxu0 %v17177_v16 }
0x153b   : > { %7574 = vmatprep.subr.bf16.mxu0 %v17182_v18 }
0x153e   : > { %7575 = vmatpush1.bf16.msra.mxu0 %v17180_v19 }
0x153f   : > { %7576 = vmatprep.subr.bf16.mxu0 %v17185_v57 }
0x1542   : > { %7577 = vmatpush1.bf16.msra.mxu0 %v17183_v20 }
0x1543   : > { %7578 = vmatprep.subr.bf16.mxu0 %v17188_v21 }
0x1546   : > { %7579 = vmatpush1.bf16.msra.mxu0 %v17186_v22 }
0x1547   : > { %7580 = vmatprep.subr.bf16.mxu0 %v17191_v23 }
0x154a   : > { %7581 = vmatpush1.bf16.msra.mxu0 %v17189_v24 }
0x154b   : > { %7582 = vmatprep.subr.bf16.mxu0 %v17194_v25 }
0x154e   : > { %7583 = vmatpush1.bf16.msra.mxu0 %v17192_v27 }
0x154f   : > { %7584 = vmatprep.subr.bf16.mxu0 %v17197_v28 }
0x1552   : > { %7585 = vmatpush1.bf16.msra.mxu0 %v17195_v29 }
0x1553   : > { %7586 = vmatprep.subr.bf16.mxu0 %v17200_v30  ;;  %v14546_v30 = vcombine.low %v14542_v4, %v14542_v4  ;;  %v17270_v4 = vld [vmem:[%s19116_s30 + $0x150] sm:$0xff]  }
0x1555   : > { %v7834_v34 = vsel %vm814_vm4, %v14546_v30, 0 }
0x1556   : > { %7587 = vmatpush2.bf16.msra.mxu0 %v17198_v31 }
0x1557   : > { %7588 = vmatprep.subr.bf16.mxu0 %v17203_v32 }
0x155a   : > { %7589 = vmatpush2.bf16.msra.mxu0 %v17201_v33 }
0x155b   : > { %7590 = vmatprep.subr.bf16.mxu0 %v17206_v55  ;;  %v17255_v55 = vld [vmem:[%s19116_s30 + $0x168] sm:$0xff]  }
0x155e   : > { %7591 = vmatpush2.bf16.msra.mxu0 %v17204_v56  ;;  %v17258_v56 = vld [vmem:[%s19090_s17 + $0x18f4] ss:$8 sps:$4 sm:$0xff]  }
0x155f   : > { %7592 = vmatprep.subr.bf16.mxu0 %v17209_v58  ;;  %v17256_v58 = vld [vmem:[%s19090_s17 + $0x18f0] ss:$8 sps:$4 sm:$0xff]  }
0x1562   : > { %7593 = vmatpush2.bf16.msra.mxu0 %v17207_v59  ;;  %v17259_v59 = vld [vmem:[%s19116_s30 + $0x128] sm:$0xff]  }
0x1563   : > { %7594 = vmatprep.subr.bf16.mxu0 %v17212_v60  ;;  %v17260_v60 = vld [vmem:[%s19116_s30 + $0x160] sm:$0xff]  }
0x1566   : > { %7595 = vmatpush2.bf16.msra.mxu0 %v17210_v61  ;;  %v17263_v61 = vld [vmem:[%s19090_s17 + $0x18e4] ss:$8 sps:$4 sm:$0xff]  }
0x1567   : > { %7596 = vmatprep.subr.bf16.mxu0 %v17215_v62  ;;  %v17261_v62 = vld [vmem:[%s19090_s17 + $0x18e0] ss:$8 sps:$4 sm:$0xff]  }
0x156a   : > { %7597 = vmatpush2.bf16.msra.mxu0 %v17213_v63  ;;  %v17264_v63 = vld [vmem:[%s19116_s30 + $0x120] sm:$0xff]  }
0x156b   : > { %7598 = vmatprep.subr.bf16.mxu0 %v17218_v0  ;;  %v17265_v0 = vld [vmem:[%s19116_s30 + $0x158] sm:$0xff]  }
0x156e   : > { %7599 = vmatpush2.bf16.msra.mxu0 %v17216_v1  ;;  %v17268_v1 = vld [vmem:[%s19090_s17 + $0x18d4] ss:$8 sps:$4 sm:$0xff]  }
0x156f   : > { %7600 = vmatprep.subr.bf16.mxu0 %v17221_v2  ;;  %v17266_v2 = vld [vmem:[%s19090_s17 + $0x18d0] ss:$8 sps:$4 sm:$0xff]  }
0x1572   : > { %7601 = vmatpush2.bf16.msra.mxu0 %v17219_v3  ;;  %v17269_v3 = vld [vmem:[%s19116_s30 + $0x118] sm:$0xff]  }
0x1573   : > { %14548 = vmatprep.subr.msk.bf16.mxu0 %vm814_vm4, %v14547_v5  ;;  %v17273_v5 = vld [vmem:[%s19090_s17 + $0x18c4] ss:$8 sps:$4 sm:$0xff]  }
0x15f5   : > { %v7086_v37 = vpop.f32.mrf.mxu0 }
0x15f6   : > { %v7087_v38 = vadd.f32 %v7086_v37, %v6885_v35  ;;  %v17226_v35 = vld [vmem:[%s19082_s24 + $0x4c] ss:$8 sps:$4 sm:$0xff]   ;;  %v17229_v37 = vld [vmem:[%s19090_s17 + $0x1874] ss:$8 sps:$4 sm:$0xff]  }
0x15f7   : > { %v7088_v39 = vpop.f32.mrf.mxu0 }
0x15f8   : > { %v7095_v40 = vmul.f32 0.70710677, %v7087_v38  ;;  %v7089_v41 = vadd.f32 %v7088_v39, %v6889_v36  ;;  %v7093_v48 = vmul.f32 0.5, %v7087_v38  ;;  %v17224_v36 = vld [vmem:[%s19082_s24 + $0x48] ss:$8 sps:$4 sm:$0xff]  }
0x15f9   : > { %v7090_v42 = vpop.f32.mrf.mxu0  ;;  %v17227_v38 = vld [vmem:[%s19090_s17 + $0x1870] ss:$8 sps:$4 sm:$0xff]   ;;  %v17232_v39 = vld [vmem:[%s19090_s17 + $0x1864] ss:$8 sps:$4 sm:$0xff]  }
0x15fa   : > { %18144 = verf.f32 %v7095_v40  ;;  %v7096_v43 = vmul.f32 0.70710677, %v7089_v41  ;;  %v7094_v49 = vmul.f32 0.5, %v7089_v41  ;;  %v17230_v40 = vld [vmem:[%s19090_s17 + $0x1860] ss:$8 sps:$4 sm:$0xff]  }
0x15fb   : > { %v7091_v44 = vpop.f32.mrf.mxu0  ;;  %v17235_v41 = vld [vmem:[%s19090_s17 + $0x1854] ss:$8 sps:$4 sm:$0xff]   ;;  %v17233_v42 = vld [vmem:[%s19090_s17 + $0x1850] ss:$8 sps:$4 sm:$0xff]  }
0x15fc   : > { %18146 = verf.f32 %v7096_v43  ;;  %v17238_v43 = vld [vmem:[%s19090_s17 + $0x1844] ss:$8 sps:$4 sm:$0xff]   ;;  %v17236_v44 = vld [vmem:[%s19090_s17 + $0x1840] ss:$8 sps:$4 sm:$0xff]  }
0x1607   : > { %v18145_v45 = vpop.eup %18144 }
0x1608   : > { %v7099_v46 = vadd.f32 1.0, %v18145_v45  ;;  %v17241_v45 = vld [vmem:[%s19090_s17 + $0x1834] ss:$8 sps:$4 sm:$0xff]  }
0x1609   : > { %v18147_v47 = vpop.eup %18146 }
0x160a   : > { %v7100_v50 = vadd.f32 1.0, %v18147_v47  ;;  %v7101_v51 = vmul.f32 %v7099_v46, %v7093_v48  ;;  %v17239_v46 = vld [vmem:[%s19090_s17 + $0x1830] ss:$8 sps:$4 sm:$0xff]   ;;  %v17244_v47 = vld [vmem:[%s19090_s17 + $0x1824] ss:$8 sps:$4 sm:$0xff]  }
0x160b   : > { %v17242_v48 = vld [vmem:[%s19090_s17 + $0x1820] ss:$8 sps:$4 sm:$0xff]  }
0x160c   : > { %v7102_v52 = vmul.f32 %v7100_v50, %v7094_v49  ;;  %v7103_v54 = vpack.c.bf16 %v7101_v51, %v7101_v51  ;;  %v17248_v49 = vld [vmem:[%s19090_s17 + $0x1814] ss:$8 sps:$4 sm:$0xff]   ;;  %v17246_v50 = vld [vmem:[%s19090_s17 + $0x1810] ss:$8 sps:$4 sm:$0xff]  }
0x160d   : > { %v17250_v51 = vld [vmem:[%s19116_s30 + $0x170] sm:$0xff]  }
0x160e   : > { %v7104_v53 = vpack.c.bf16 %v7102_v52, %v7102_v52  ;;  %v17253_v52 = vld [vmem:[%s19090_s17 + $0x1804] ss:$8 sps:$4 sm:$0xff]  }
0x1610   : > { %7343 = vmatprep.mubr.bf16.mxu1 %v7104_v53  ;;  %v17251_v53 = vld [vmem:[%s19090_s17 + $0x1800] ss:$8 sps:$4 sm:$0xff]  }
0x1611   : > { %7344 = vmatmul.mubr.bf16.vlgmr.msra.gmra.mxu1 %v7103_v54  ;;  %v17254_v54 = vld [vmem:[%s19116_s30 + $0x130] sm:$0xff]  }
0x1612   : > { %15767 = vmatpush3.bf16.msra.mxu1 %v17249_v8  ;;  %v17274_v8 = vld [vmem:[%s19116_s30 + $0x110] sm:$0xff]  }
0x1613   : > { %15768 = vmatprep.subr.bf16.mxu1 %v17250_v51 }
0x1616   : > { %15769 = vmatpush3.bf16.msra.mxu1 %v17254_v54 }
0x1617   : > { %15770 = vmatprep.subr.bf16.mxu1 %v17255_v55 }
0x161a   : > { %15771 = vmatpush3.bf16.msra.mxu1 %v17259_v59 }
0x161b   : > { %15772 = vmatprep.subr.bf16.mxu1 %v17260_v60  ;;  %v17296_v60 = vld [vmem:[%s19090_s17 + $0x1964] ss:$8 sps:$4 sm:$0xff]  }
0x161e   : > { %15773 = vmatpush3.bf16.msra.mxu1 %v17264_v63 }
0x161f   : > { %15774 = vmatprep.subr.bf16.mxu1 %v17265_v0 }
0x1622   : > { %15775 = vmatpush3.bf16.msra.mxu1 %v17269_v3 }
0x1623   : > { %15776 = vmatprep.subr.bf16.mxu1 %v17270_v4  ;;  %v17299_v4 = vld [vmem:[%s19090_s17 + $0x1954] ss:$8 sps:$4 sm:$0xff]  }
0x1626   : > { %15777 = vmatpush3.bf16.msra.mxu1 %v17274_v8  ;;  %v17297_v8 = vld [vmem:[%s19090_s17 + $0x1950] ss:$8 sps:$4 sm:$0xff]  }
0x1627   : > { %15778 = vmatprep.subr.bf16.mxu1 %v17275_v9 }
0x16d1   : > { %v7345_v14 = vpop.f32.mrf.mxu1 }
0x16d2   : > { %v7346_v15 = vadd.f32 %v7345_v14, %v7144_v10  ;;  %v17278_v10 = vld [vmem:[%s19090_s17 + $0x18b4] ss:$8 sps:$4 sm:$0xff]   ;;  %v17279_v14 = vld [vmem:[%s19116_s30 + $0x108] sm:$0xff]  }
0x16d3   : > { %v7347_v16 = vpop.f32.mrf.mxu1  ;;  %15779 = vmatpush3.bf16.msra.mxu1 %v17279_v14  ;;  %v17305_v14 = vld [vmem:[%s19090_s17 + $0x1934] ss:$8 sps:$4 sm:$0xff]  }
0x16d4   : > { %v7354_v18 = vmul.f32 0.70710677, %v7346_v15  ;;  %v7348_v19 = vadd.f32 %v7347_v16, %v7148_v13  ;;  %v7352_v25 = vmul.f32 0.5, %v7346_v15  ;;  %v17276_v13 = vld [vmem:[%s19090_s17 + $0x18b0] ss:$8 sps:$4 sm:$0xff]   ;;  %v17280_v15 = vld [vmem:[%s19116_s30 + $0x140] sm:$0xff]  }
0x16d5   : > { %v7349_v57 = vpop.f32.mrf.mxu1  ;;  %v17283_v16 = vld [vmem:[%s19090_s17 + $0x18a4] ss:$8 sps:$4 sm:$0xff]   ;;  %15780 = vmatprep.subr.bf16.mxu1 %v17280_v15  ;;  %v17303_v15 = vld [vmem:[%s19090_s17 + $0x1930] ss:$8 sps:$4 sm:$0xff]  }
0x16d6   : > { %18148 = verf.f32 %v7354_v18  ;;  %v7355_v20 = vmul.f32 0.70710677, %v7348_v19  ;;  %v7353_v27 = vmul.f32 0.5, %v7348_v19  ;;  %v17281_v18 = vld [vmem:[%s19090_s17 + $0x18a0] ss:$8 sps:$4 sm:$0xff]  }
0x16d7   : > { %v7350_v21 = vpop.f32.mrf.mxu1  ;;  %v17284_v19 = vld [vmem:[%s19116_s30 + $0x100] sm:$0xff]   ;;  %v17287_v57 = vld [vmem:[%s19090_s17 + $0x1894] ss:$8 sps:$4 sm:$0xff]  }
0x16d8   : > { %18150 = verf.f32 %v7355_v20  ;;  %15781 = vmatpush3.bf16.msra.mxu1 %v17284_v19  ;;  %v17285_v20 = vld [vmem:[%s19090_s17 + $0x1890] ss:$8 sps:$4 sm:$0xff]   ;;  %v17290_v21 = vld [vmem:[%s19090_s17 + $0x1884] ss:$8 sps:$4 sm:$0xff]   ;;  %v17311_v19 = vld [vmem:[%s19090_s17 + $0x1914] ss:$8 sps:$4 sm:$0xff]  }
0x16e3   : > { %v18149_v22 = vpop.eup %18148 }
0x16e4   : > { %v7358_v23 = vadd.f32 1.0, %v18149_v22  ;;  %v17288_v22 = vld [vmem:[%s19090_s17 + $0x1880] ss:$8 sps:$4 sm:$0xff]  }
0x16e5   : > { %v18151_v24 = vpop.eup %18150 }
0x16e6   : > { %v7359_v28 = vadd.f32 1.0, %v18151_v24  ;;  %v7360_v29 = vmul.f32 %v7358_v23, %v7352_v25  ;;  %v17293_v23 = vld [vmem:[%s19090_s17 + $0x1974] ss:$8 sps:$4 sm:$0xff]  }
0x16e7   : > { %8357 = vmatprep.subr.bf16.mxu1 %v17293_v23  ;;  %v14457_v24 = vld [vmem:[%s19092_s22 + $0x2e] sm:$0x3]  ;;  %v17315_v23 = vld [vmem:[%s19090_s17 + $0x19f0] ss:$8 sps:$4 sm:$0xff]  }
0x16e8   : > { %v7361_v31 = vmul.f32 %v7359_v28, %v7353_v27  ;;  %v7362_v33 = vpack.c.bf16 %v7360_v29, %v7360_v29  ;;  %v7403_v25 = vrot.slane %v14457_v24, %v19181_v11  ;;  %v7407_v27 = vrot.slane %v14457_v24, %v19183_v12  ;;  %v17320_v24 = vld [vmem:[%s19090_s17 + $0x19e4] ss:$8 sps:$4 sm:$0xff]  }
0x16ea   : > { %v7363_v32 = vpack.c.bf16 %v7361_v31, %v7361_v31  ;;  %v14543_v31 = vld [vmem:[%s19088_s28 + $0x6] sm:$0x3] }
0x16ec   : > { %7602 = vmatprep.mubr.bf16.mxu0 %v7363_v32 }
0x16ed   : > { %7603 = vmatmul.mubr.bf16.vlgmr.msra.gmra.mxu0 %v7362_v33 }
0x16ee   : > { %7852 = vmatpush1.bf16.msra.mxu0 %v7834_v34  ;;  %7871 = vmatprep.mubr.bf16.mxu0 %v18687_v17 }
0x16ef   : > { %7853 = vmatprep.subr.bf16.mxu0 %v17226_v35 }
0x16f2   : > { %7854 = vmatpush1.bf16.msra.mxu0 %v17224_v36  ;;  %v7811_v36 = vrot.slane %v14543_v31, %v19181_v11 }
0x16f3   : > { %8098 = vmatprep.subr.bf16.mxu0 %v17229_v37 }
0x16f5   : > { %14549 = vmatmul.mubr.msk.bf16.vlgmr.msra.gmra.mxu0 %vm810_vm5, %v19131_v26 }
0x16f6   : > { %8099 = vmatpush1.bf16.msra.mxu0 %v17227_v38  ;;  %v7815_v38 = vrot.slane %v14543_v31, %v19183_v12  ;;  %v17329_v31 = vld [vmem:[%s19090_s17 + $0x19b4] ss:$8 sps:$4 sm:$0xff]  }
0x16f7   : > { %8100 = vmatprep.subr.bf16.mxu0 %v17232_v39 }
0x16fa   : > { %8101 = vmatpush1.bf16.msra.mxu0 %v17230_v40 }
0x16fb   : > { %8102 = vmatprep.subr.bf16.mxu0 %v17235_v41 }
0x16fe   : > { %8103 = vmatpush1.bf16.msra.mxu0 %v17233_v42 }
0x16ff   : > { %8104 = vmatprep.subr.bf16.mxu0 %v17238_v43 }
0x1702   : > { %8105 = vmatpush1.bf16.msra.mxu0 %v17236_v44 }
0x1703   : > { %8106 = vmatprep.subr.bf16.mxu0 %v17241_v45 }
0x1706   : > { %8107 = vmatpush1.bf16.msra.mxu0 %v17239_v46 }
0x1707   : > { %8108 = vmatprep.subr.bf16.mxu0 %v17244_v47 }
0x170a   : > { %8109 = vmatpush1.bf16.msra.mxu0 %v17242_v48 }
0x170b   : > { %8110 = vmatprep.subr.bf16.mxu0 %v17248_v49 }
0x170e   : > { %8111 = vmatpush1.bf16.msra.mxu0 %v17246_v50 }
0x170f   : > { %8112 = vmatprep.subr.bf16.mxu0 %v17253_v52 }
0x1712   : > { %8113 = vmatpush1.bf16.msra.mxu0 %v17251_v53 }
0x1713   : > { %8114 = vmatprep.subr.bf16.mxu0 %v17258_v56  ;;  %v17291_v56 = vld [vmem:[%s19090_s17 + $0x1970] ss:$8 sps:$4 sm:$0xff]  }
0x1716   : > { %8115 = vmatpush2.bf16.msra.mxu0 %v17256_v58 }
0x1717   : > { %8116 = vmatprep.subr.bf16.mxu0 %v17263_v61 }
0x171a   : > { %8117 = vmatpush2.bf16.msra.mxu0 %v17261_v62 }
0x171b   : > { %8118 = vmatprep.subr.bf16.mxu0 %v17268_v1 }
0x171e   : > { %8119 = vmatpush2.bf16.msra.mxu0 %v17266_v2  ;;  %v17294_v2 = vld [vmem:[%s19090_s17 + $0x1960] ss:$8 sps:$4 sm:$0xff]  }
0x171f   : > { %8120 = vmatprep.subr.bf16.mxu0 %v17273_v5 }
0x1722   : > { %8121 = vmatpush2.bf16.msra.mxu0 %v17271_v6 }
0x1723   : > { %8122 = vmatprep.subr.bf16.mxu0 %v17278_v10  ;;  %v17302_v10 = vld [vmem:[%s19090_s17 + $0x1944] ss:$8 sps:$4 sm:$0xff]  }
0x1726   : > { %8123 = vmatpush2.bf16.msra.mxu0 %v17276_v13  ;;  %v17300_v13 = vld [vmem:[%s19090_s17 + $0x1940] ss:$8 sps:$4 sm:$0xff]  }
0x1727   : > { %8124 = vmatprep.subr.bf16.mxu0 %v17283_v16  ;;  %v17308_v16 = vld [vmem:[%s19090_s17 + $0x1924] ss:$8 sps:$4 sm:$0xff]  }
0x172a   : > { %8125 = vmatpush2.bf16.msra.mxu0 %v17281_v18  ;;  %v17306_v18 = vld [vmem:[%s19090_s17 + $0x1920] ss:$8 sps:$4 sm:$0xff]  }
0x172b   : > { %8126 = vmatprep.subr.bf16.mxu0 %v17287_v57  ;;  %v17309_v57 = vld [vmem:[%s19090_s17 + $0x1910] ss:$8 sps:$4 sm:$0xff]  }
0x172e   : > { %8127 = vmatpush2.bf16.msra.mxu0 %v17285_v20  ;;  %v17314_v20 = vld [vmem:[%s19090_s17 + $0x1904] ss:$8 sps:$4 sm:$0xff]  }
0x172f   : > { %8128 = vmatprep.subr.bf16.mxu0 %v17290_v21  ;;  %v17312_v21 = vld [vmem:[%s19090_s17 + $0x1900] ss:$8 sps:$4 sm:$0xff]  }
0x1732   : > { %8129 = vmatpush2.bf16.msra.mxu0 %v17288_v22  ;;  %v17317_v22 = vld [vmem:[%s19090_s17 + $0x19f4] ss:$8 sps:$4 sm:$0xff]  }
0x17ad   : > { %v7604_v28 = vpop.f32.mrf.mxu0 }
0x17ae   : > { %v7605_v29 = vadd.f32 %v7604_v28, %v7403_v25  ;;  %v17318_v25 = vld [vmem:[%s19090_s17 + $0x19e0] ss:$8 sps:$4 sm:$0xff]   ;;  %v17321_v28 = vld [vmem:[%s19090_s17 + $0x19d0] ss:$8 sps:$4 sm:$0xff]  }
0x17af   : > { %v7606_v30 = vpop.f32.mrf.mxu0 }
0x17b0   : > { %v7613_v32 = vmul.f32 0.70710677, %v7605_v29  ;;  %v7607_v33 = vadd.f32 %v7606_v30, %v7407_v27  ;;  %v7611_v50 = vmul.f32 0.5, %v7605_v29  ;;  %v17323_v27 = vld [vmem:[%s19090_s17 + $0x19d4] ss:$8 sps:$4 sm:$0xff]  }
0x17b1   : > { %v7608_v34 = vpop.f32.mrf.mxu0  ;;  %v17326_v29 = vld [vmem:[%s19090_s17 + $0x19c4] ss:$8 sps:$4 sm:$0xff]   ;;  %v17324_v30 = vld [vmem:[%s19090_s17 + $0x19c0] ss:$8 sps:$4 sm:$0xff]  }
0x17b2   : > { %18152 = verf.f32 %v7613_v32  ;;  %v7614_v35 = vmul.f32 0.70710677, %v7607_v33  ;;  %v7612_v51 = vmul.f32 0.5, %v7607_v33  ;;  %v17327_v32 = vld [vmem:[%s19090_s17 + $0x19b0] ss:$8 sps:$4 sm:$0xff]  }
0x17b3   : > { %v7609_v37 = vpop.f32.mrf.mxu0  ;;  %v17332_v33 = vld [vmem:[%s19090_s17 + $0x19a4] ss:$8 sps:$4 sm:$0xff]   ;;  %v17330_v34 = vld [vmem:[%s19090_s17 + $0x19a0] ss:$8 sps:$4 sm:$0xff]  }
0x17b4   : > { %18154 = verf.f32 %v7614_v35  ;;  %v17335_v35 = vld [vmem:[%s19090_s17 + $0x1994] ss:$8 sps:$4 sm:$0xff]   ;;  %v17338_v37 = vld [vmem:[%s19090_s17 + $0x1984] ss:$8 sps:$4 sm:$0xff]  }
0x17b5   : > { %v7873_v39 = vpop.f32.mrf.mxu0 }
0x17b6   : > { %v7874_v40 = vadd.f32 %v7873_v39, %v7811_v36  ;;  %v17333_v36 = vld [vmem:[%s19090_s17 + $0x1990] ss:$8 sps:$4 sm:$0xff]  }
0x17b7   : > { %v7875_v41 = vpop.f32.mrf.mxu0  ;;  %v17339_v39 = vld [vmem:[%s19090_s17 + $0x1a70] ss:$8 sps:$4 sm:$0xff]  }
0x17b8   : > { %v7882_v42 = vmul.f32 0.70710677, %v7874_v40  ;;  %v7876_v43 = vadd.f32 %v7875_v41, %v7815_v38  ;;  %v7880_v63 = vmul.f32 0.5, %v7874_v40  ;;  %v17336_v38 = vld [vmem:[%s19090_s17 + $0x1980] ss:$8 sps:$4 sm:$0xff]  }
0x17b9   : > { %v7877_v44 = vpop.f32.mrf.mxu0  ;;  %v17341_v40 = vld [vmem:[%s19090_s17 + $0x1a74] ss:$8 sps:$4 sm:$0xff]   ;;  %v17344_v41 = vld [vmem:[%s19090_s17 + $0x1a64] ss:$8 sps:$4 sm:$0xff]  }
0x17ba   : > { %18156 = verf.f32 %v7882_v42  ;;  %v7883_v45 = vmul.f32 0.70710677, %v7876_v43  ;;  %v7881_v0 = vmul.f32 0.5, %v7876_v43  ;;  %8616 = vmatprep.subr.bf16.mxu0 %v17341_v40  ;;  %v17342_v42 = vld [vmem:[%s19090_s17 + $0x1a60] ss:$8 sps:$4 sm:$0xff]  }
0x17bb   : > { %v7878_v46 = vpop.f32.mrf.mxu0  ;;  %v17347_v43 = vld [vmem:[%s19090_s17 + $0x1a54] ss:$8 sps:$4 sm:$0xff]   ;;  %v17345_v44 = vld [vmem:[%s19090_s17 + $0x1a50] ss:$8 sps:$4 sm:$0xff]  }
0x17bc   : > { %18158 = verf.f32 %v7883_v45  ;;  %v17350_v45 = vld [vmem:[%s19090_s17 + $0x1a44] ss:$8 sps:$4 sm:$0xff]   ;;  %v17348_v46 = vld [vmem:[%s19090_s17 + $0x1a40] ss:$8 sps:$4 sm:$0xff]   ;;  %v17387_v40 = vld [vmem:[%s19090_s17 + $0x1b70] ss:$8 sps:$4 sm:$0xff]  }
0x17bf   : > { %v18153_v47 = vpop.eup %18152 }
0x17c0   : > { %v7617_v48 = vadd.f32 1.0, %v18153_v47  ;;  %v17353_v47 = vld [vmem:[%s19090_s17 + $0x1a34] ss:$8 sps:$4 sm:$0xff]  }
0x17c1   : > { %v18155_v49 = vpop.eup %18154 }
0x17c2   : > { %v7618_v52 = vadd.f32 1.0, %v18155_v49  ;;  %v7619_v53 = vmul.f32 %v7617_v48, %v7611_v50  ;;  %v17351_v48 = vld [vmem:[%s19090_s17 + $0x1a30] ss:$8 sps:$4 sm:$0xff]   ;;  %v17356_v49 = vld [vmem:[%s19090_s17 + $0x1a24] ss:$8 sps:$4 sm:$0xff]  }
0x17c3   : > { %v17354_v50 = vld [vmem:[%s19090_s17 + $0x1a20] ss:$8 sps:$4 sm:$0xff]  }
0x17c4   : > { %v7620_v54 = vmul.f32 %v7618_v52, %v7612_v51  ;;  %v7621_v59 = vpack.c.bf16 %v7619_v53, %v7619_v53  ;;  %v17359_v51 = vld [vmem:[%s19090_s17 + $0x1a14] ss:$8 sps:$4 sm:$0xff]   ;;  %v17357_v52 = vld [vmem:[%s19090_s17 + $0x1a10] ss:$8 sps:$4 sm:$0xff]   ;;  %v17362_v53 = vld [vmem:[%s19090_s17 + $0x1a04] ss:$8 sps:$4 sm:$0xff]  }
0x17c6   : > { %v7622_v55 = vpack.c.bf16 %v7620_v54, %v7620_v54  ;;  %v17360_v54 = vld [vmem:[%s19090_s17 + $0x1a00] ss:$8 sps:$4 sm:$0xff]  }
0x17c7   : > { %v18157_v58 = vpop.eup %18156 }
0x17c8   : > { %v7886_v61 = vadd.f32 1.0, %v18157_v58  ;;  %7792 = vmatprep.mubr.bf16.mxu1 %v7622_v55  ;;  %v17365_v55 = vld [vmem:[%s19090_s17 + $0x1af4] ss:$8 sps:$4 sm:$0xff]  }
0x17c9   : > { %v18159_v62 = vpop.eup %18158  ;;  %7793 = vmatmul.mubr.bf16.vlgmr.msra.gmra.mxu1 %v7621_v59  ;;  %v14523_v59 = vld [vmem:[%s19094_s18 + $0x2] ss:$0 sm:$0xff] }
0x17ca   : > { %v7887_v1 = vadd.f32 1.0, %v18159_v62  ;;  %8358 = vmatpush1.bf16.msra.mxu1 %v17291_v56  ;;  %v7888_v3 = vmul.f32 %v7886_v61, %v7880_v63  ;;  %v17363_v56 = vld [vmem:[%s19090_s17 + $0x1af0] ss:$8 sps:$4 sm:$0xff]  }
0x17cb   : > { %8359 = vmatprep.subr.bf16.mxu1 %v17296_v60  ;;  %v14582_v61 = vld [vmem:[%s19092_s22 + $0x30] sm:$0x3] }
0x17cc   : > { %v7889_v5 = vmul.f32 %v7887_v1, %v7881_v0  ;;  %v7890_v9 = vpack.c.bf16 %v7888_v3, %v7888_v3  ;;  %v7931_v1 = vrot.slane %v14582_v61, %v19181_v11 }
0x17ce   : > { %v7891_v6 = vpack.c.bf16 %v7889_v5, %v7889_v5  ;;  %8360 = vmatpush1.bf16.msra.mxu1 %v17294_v2 }
0x17cf   : > { %8361 = vmatprep.subr.bf16.mxu1 %v17299_v4  ;;  %v7935_v4 = vrot.slane %v14582_v61, %v19183_v12 }
0x17d0   : > { %8130 = vmatprep.mubr.bf16.mxu0 %v7891_v6 }
0x17d1   : > { %8131 = vmatmul.mubr.bf16.vlgmr.msra.gmra.mxu0 %v7890_v9 }
0x17d2   : > { %8362 = vmatpush1.bf16.msra.mxu1 %v17297_v8  ;;  %8617 = vmatpush1.bf16.msra.mxu0 %v17339_v39  ;;  %v17384_v39 = vld [vmem:[%s19090_s17 + $0x1a80] ss:$8 sps:$4 sm:$0xff]  }
0x17d3   : > { %8363 = vmatprep.subr.bf16.mxu1 %v17302_v10  ;;  %8618 = vmatprep.subr.bf16.mxu0 %v17344_v41  ;;  %v17389_v41 = vld [vmem:[%s19090_s17 + $0x1b74] ss:$8 sps:$4 sm:$0xff]  }
0x17d6   : > { %8364 = vmatpush1.bf16.msra.mxu1 %v17300_v13  ;;  %8619 = vmatpush1.bf16.msra.mxu0 %v17342_v42  ;;  %v17392_v42 = vld [vmem:[%s19090_s17 + $0x1b64] ss:$8 sps:$4 sm:$0xff]  }
0x17d7   : > { %8365 = vmatprep.subr.bf16.mxu1 %v17305_v14  ;;  %8620 = vmatprep.subr.bf16.mxu0 %v17347_v43  ;;  %v17390_v43 = vld [vmem:[%s19090_s17 + $0x1b60] ss:$8 sps:$4 sm:$0xff]  }
0x17da   : > { %8366 = vmatpush1.bf16.msra.mxu1 %v17303_v15  ;;  %8621 = vmatpush1.bf16.msra.mxu0 %v17345_v44  ;;  %v17395_v44 = vld [vmem:[%s19090_s17 + $0x1b54] ss:$8 sps:$4 sm:$0xff]  }
0x17db   : > { %8367 = vmatprep.subr.bf16.mxu1 %v17308_v16  ;;  %8622 = vmatprep.subr.bf16.mxu0 %v17350_v45  ;;  %v17393_v45 = vld [vmem:[%s19090_s17 + $0x1b50] ss:$8 sps:$4 sm:$0xff]  }
0x17de   : > { %8368 = vmatpush1.bf16.msra.mxu1 %v17306_v18  ;;  %8623 = vmatpush1.bf16.msra.mxu0 %v17348_v46  ;;  %v17398_v46 = vld [vmem:[%s19090_s17 + $0x1b44] ss:$8 sps:$4 sm:$0xff]  }
0x17df   : > { %8369 = vmatprep.subr.bf16.mxu1 %v17311_v19  ;;  %8624 = vmatprep.subr.bf16.mxu0 %v17353_v47  ;;  %v17396_v47 = vld [vmem:[%s19090_s17 + $0x1b40] ss:$8 sps:$4 sm:$0xff]  }
0x17e2   : > { %8370 = vmatpush1.bf16.msra.mxu1 %v17309_v57  ;;  %8625 = vmatpush1.bf16.msra.mxu0 %v17351_v48  ;;  %v17401_v48 = vld [vmem:[%s19090_s17 + $0x1b34] ss:$8 sps:$4 sm:$0xff]  }
0x17e3   : > { %8371 = vmatprep.subr.bf16.mxu1 %v17314_v20  ;;  %8626 = vmatprep.subr.bf16.mxu0 %v17356_v49  ;;  %v17399_v49 = vld [vmem:[%s19090_s17 + $0x1b30] ss:$8 sps:$4 sm:$0xff]  }
0x17e6   : > { %8372 = vmatpush1.bf16.msra.mxu1 %v17312_v21  ;;  %8627 = vmatpush1.bf16.msra.mxu0 %v17354_v50  ;;  %v17404_v50 = vld [vmem:[%s19090_s17 + $0x1b24] ss:$8 sps:$4 sm:$0xff]  }
0x17e7   : > { %8373 = vmatprep.subr.bf16.mxu1 %v17317_v22  ;;  %8628 = vmatprep.subr.bf16.mxu0 %v17359_v51  ;;  %v17402_v51 = vld [vmem:[%s19090_s17 + $0x1b20] ss:$8 sps:$4 sm:$0xff]  }
0x17ea   : > { %8374 = vmatpush2.bf16.msra.mxu1 %v17315_v23  ;;  %8629 = vmatpush1.bf16.msra.mxu0 %v17357_v52  ;;  %v17407_v52 = vld [vmem:[%s19090_s17 + $0x1b14] ss:$8 sps:$4 sm:$0xff]  }
0x17eb   : > { %8375 = vmatprep.subr.bf16.mxu1 %v17320_v24  ;;  %8630 = vmatprep.subr.bf16.mxu0 %v17362_v53  ;;  %v17405_v53 = vld [vmem:[%s19090_s17 + $0x1b10] ss:$8 sps:$4 sm:$0xff]  }
0x17ee   : > { %8376 = vmatpush2.bf16.msra.mxu1 %v17318_v25  ;;  %8631 = vmatpush1.bf16.msra.mxu0 %v17360_v54  ;;  %v17368_v25 = vld [vmem:[%s19090_s17 + $0x1ae4] ss:$8 sps:$4 sm:$0xff]  }
0x17ef   : > { %8377 = vmatprep.subr.bf16.mxu1 %v17323_v27  ;;  %8632 = vmatprep.subr.bf16.mxu0 %v17365_v55  ;;  %v17366_v27 = vld [vmem:[%s19090_s17 + $0x1ae0] ss:$8 sps:$4 sm:$0xff]   ;;  %v17410_v54 = vld [vmem:[%s19090_s17 + $0x1b04] ss:$8 sps:$4 sm:$0xff]  }
0x17f0   : > { %v17408_v55 = vld [vmem:[%s19090_s17 + $0x1b00] ss:$8 sps:$4 sm:$0xff]  }
0x17f2   : > { %8378 = vmatpush2.bf16.msra.mxu1 %v17321_v28  ;;  %8633 = vmatpush2.bf16.msra.mxu0 %v17363_v56  ;;  %v17371_v28 = vld [vmem:[%s19090_s17 + $0x1ad4] ss:$8 sps:$4 sm:$0xff]  }
0x17f3   : > { %8379 = vmatprep.subr.bf16.mxu1 %v17326_v29  ;;  %8634 = vmatprep.subr.bf16.mxu0 %v17368_v25  ;;  %v17369_v29 = vld [vmem:[%s19090_s17 + $0x1ad0] ss:$8 sps:$4 sm:$0xff]   ;;  %v17413_v56 = vld [vmem:[%s19090_s17 + $0x1bf4] ss:$8 sps:$4 sm:$0xff]  }
0x17f4   : > { %v17425_v25 = vld [vmem:[%s19090_s17 + $0x1bb4] ss:$8 sps:$4 sm:$0xff]  }
0x17f6   : > { %8380 = vmatpush2.bf16.msra.mxu1 %v17324_v30  ;;  %8635 = vmatpush2.bf16.msra.mxu0 %v17366_v27  ;;  %v17374_v30 = vld [vmem:[%s19090_s17 + $0x1ac4] ss:$8 sps:$4 sm:$0xff]   ;;  %v17423_v27 = vld [vmem:[%s19090_s17 + $0x1bb0] ss:$8 sps:$4 sm:$0xff]  }
0x17f7   : > { %8381 = vmatprep.subr.bf16.mxu1 %v17329_v31  ;;  %8636 = vmatprep.subr.bf16.mxu0 %v17371_v28  ;;  %v17372_v31 = vld [vmem:[%s19090_s17 + $0x1ac0] ss:$8 sps:$4 sm:$0xff]   ;;  %v17428_v28 = vld [vmem:[%s19090_s17 + $0x1ba4] ss:$8 sps:$4 sm:$0xff]  }
0x17fa   : > { %8382 = vmatpush2.bf16.msra.mxu1 %v17327_v32  ;;  %8637 = vmatpush2.bf16.msra.mxu0 %v17369_v29  ;;  %v17377_v32 = vld [vmem:[%s19090_s17 + $0x1ab4] ss:$8 sps:$4 sm:$0xff]   ;;  %v17426_v29 = vld [vmem:[%s19090_s17 + $0x1ba0] ss:$8 sps:$4 sm:$0xff]  }
0x17fb   : > { %8383 = vmatprep.subr.bf16.mxu1 %v17332_v33  ;;  %8638 = vmatprep.subr.bf16.mxu0 %v17374_v30  ;;  %v17375_v33 = vld [vmem:[%s19090_s17 + $0x1ab0] ss:$8 sps:$4 sm:$0xff]   ;;  %v17431_v30 = vld [vmem:[%s19090_s17 + $0x1b94] ss:$8 sps:$4 sm:$0xff]  }
0x17fe   : > { %8384 = vmatpush2.bf16.msra.mxu1 %v17330_v34  ;;  %8639 = vmatpush2.bf16.msra.mxu0 %v17372_v31  ;;  %v17380_v34 = vld [vmem:[%s19090_s17 + $0x1aa4] ss:$8 sps:$4 sm:$0xff]   ;;  %v17429_v31 = vld [vmem:[%s19090_s17 + $0x1b90] ss:$8 sps:$4 sm:$0xff]  }
0x17ff   : > { %8385 = vmatprep.subr.bf16.mxu1 %v17335_v35  ;;  %8640 = vmatprep.subr.bf16.mxu0 %v17377_v32  ;;  %v17378_v35 = vld [vmem:[%s19090_s17 + $0x1aa0] ss:$8 sps:$4 sm:$0xff]   ;;  %v17434_v32 = vld [vmem:[%s19090_s17 + $0x1b84] ss:$8 sps:$4 sm:$0xff]  }
0x1802   : > { %8386 = vmatpush2.bf16.msra.mxu1 %v17333_v36  ;;  %8641 = vmatpush2.bf16.msra.mxu0 %v17375_v33  ;;  %v17383_v36 = vld [vmem:[%s19090_s17 + $0x1a94] ss:$8 sps:$4 sm:$0xff]   ;;  %v17432_v33 = vld [vmem:[%s19090_s17 + $0x1b80] ss:$8 sps:$4 sm:$0xff]  }
0x1803   : > { %8387 = vmatprep.subr.bf16.mxu1 %v17338_v37  ;;  %8642 = vmatprep.subr.bf16.mxu0 %v17380_v34  ;;  %v17381_v37 = vld [vmem:[%s19090_s17 + $0x1a90] ss:$8 sps:$4 sm:$0xff]  }
0x1804   : > { %v17435_v34 = vld [vmem:[%s19090_s17 + $0x1c70] ss:$8 sps:$4 sm:$0xff]  }
0x1806   : > { %8388 = vmatpush2.bf16.msra.mxu1 %v17336_v38  ;;  %8643 = vmatpush2.bf16.msra.mxu0 %v17378_v35  ;;  %v17386_v38 = vld [vmem:[%s19090_s17 + $0x1a84] ss:$8 sps:$4 sm:$0xff]   ;;  %v17437_v35 = vld [vmem:[%s19090_s17 + $0x1c74] ss:$8 sps:$4 sm:$0xff]  }
0x1807   : > { %8644 = vmatprep.subr.bf16.mxu0 %v17383_v36  ;;  %8875 = vmatprep.subr.bf16.mxu1 %v17389_v41  ;;  %v17440_v36 = vld [vmem:[%s19090_s17 + $0x1c64] ss:$8 sps:$4 sm:$0xff]   ;;  %v17444_v41 = vld [vmem:[%s19090_s17 + $0x1c40] ss:$8 sps:$4 sm:$0xff]  }
0x180a   : > { %8645 = vmatpush2.bf16.msra.mxu0 %v17381_v37  ;;  %v17438_v37 = vld [vmem:[%s19090_s17 + $0x1c60] ss:$8 sps:$4 sm:$0xff]  }
0x180b   : > { %8646 = vmatprep.subr.bf16.mxu0 %v17386_v38  ;;  %v17443_v38 = vld [vmem:[%s19090_s17 + $0x1c54] ss:$8 sps:$4 sm:$0xff]  }
0x180e   : > { %8647 = vmatpush2.bf16.msra.mxu0 %v17384_v39  ;;  %v17441_v39 = vld [vmem:[%s19090_s17 + $0x1c50] ss:$8 sps:$4 sm:$0xff]  }
0x180f   : > { %9134 = vmatprep.subr.bf16.mxu0 %v17437_v35  ;;  %v17492_v35 = vld [vmem:[%s19090_s17 + $0x1d40] ss:$8 sps:$4 sm:$0xff]  }
0x1889   : > { %v15782_v58 = vpop.f32.mrf.mxu1 }
0x188b   : > { %v15783_v60 = vpop.f32.mrf.mxu1 }
0x188c   : > { %v15784_v62 = vadd.f32 %v15783_v60, %v15782_v58  ;;  %v17411_v58 = vld [vmem:[%s19090_s17 + $0x1bf0] ss:$8 sps:$4 sm:$0xff]  }
0x188d   : > { %v15785_v63 = vpop.f32.mrf.mxu1 }
0x188e   : > { %v7795_v0 = vadd.f32 %v15784_v62, %v14523_v59  ;;  %v14647_v59 = vld [vmem:[%s19092_s22 + $0x32] sm:$0x3] }
0x188f   : > { %v15786_v2 = vpop.f32.mrf.mxu1  ;;  %v8190_v60 = vrot.slane %v14647_v59, %v19181_v11  ;;  %v8194_v61 = vrot.slane %v14647_v59, %v19183_v12 }
0x1890   : > { %v20151_v3 = vadd.f32 %v7795_v0, %v19805_v7 }
0x1891   : > { %v8132_v5 = vpop.f32.mrf.mxu0 }
0x1892   : > { %v8133_v6 = vadd.f32 %v8132_v5, %v7931_v1 }
0x1893   : > { %v8134_v8 = vpop.f32.mrf.mxu0 }
0x1894   : > { %v8141_v9 = vmul.f32 0.70710677, %v8133_v6  ;;  %v8135_v10 = vadd.f32 %v8134_v8, %v7935_v4  ;;  %v8139_v19 = vmul.f32 0.5, %v8133_v6 }
0x1895   : > { %v8136_v13 = vpop.f32.mrf.mxu0 }
0x1896   : > { %18160 = verf.f32 %v8141_v9  ;;  %v8142_v14 = vmul.f32 0.70710677, %v8135_v10  ;;  %v8140_v57 = vmul.f32 0.5, %v8135_v10 }
0x1897   : > { %v8137_v15 = vpop.f32.mrf.mxu0 }
0x1898   : > { %18162 = verf.f32 %v8142_v14 }
0x18a3   : > { %v18161_v16 = vpop.eup %18160 }
0x18a4   : > { %v8145_v18 = vadd.f32 1.0, %v18161_v16 }
0x18a5   : > { %v18163_v7 = vpop.eup %18162 }
0x18a6   : > { %v8146_v20 = vadd.f32 1.0, %v18163_v7  ;;  %v8147_v21 = vmul.f32 %v8145_v18, %v8139_v19 }
0x18a8   : > { %v8148_v22 = vmul.f32 %v8146_v20, %v8140_v57  ;;  %v8149_v24 = vpack.c.bf16 %v8147_v21, %v8147_v21  ;;  %v17416_v57 = vld [vmem:[%s19090_s17 + $0x1be4] ss:$8 sps:$4 sm:$0xff]   ;;  %v17414_v20 = vld [vmem:[%s19090_s17 + $0x1be0] ss:$8 sps:$4 sm:$0xff]   ;;  %v17419_v21 = vld [vmem:[%s19090_s17 + $0x1bd4] ss:$8 sps:$4 sm:$0xff]  }
0x18aa   : > { %v8150_v23 = vpack.c.bf16 %v8148_v22, %v8148_v22  ;;  %v17417_v22 = vld [vmem:[%s19090_s17 + $0x1bd0] ss:$8 sps:$4 sm:$0xff]  }
0x18ac   : > { %8389 = vmatprep.mubr.bf16.mxu1 %v8150_v23  ;;  %v17422_v23 = vld [vmem:[%s19090_s17 + $0x1bc4] ss:$8 sps:$4 sm:$0xff]  }
0x18ad   : > { %8390 = vmatmul.mubr.bf16.vlgmr.msra.gmra.mxu1 %v8149_v24  ;;  %v17420_v24 = vld [vmem:[%s19090_s17 + $0x1bc0] ss:$8 sps:$4 sm:$0xff]  }
0x18ae   : > { %8876 = vmatpush1.bf16.msra.mxu1 %v17387_v40  ;;  %v17446_v40 = vld [vmem:[%s19090_s17 + $0x1c44] ss:$8 sps:$4 sm:$0xff]  }
0x18af   : > { %8877 = vmatprep.subr.bf16.mxu1 %v17392_v42  ;;  %v17449_v42 = vld [vmem:[%s19090_s17 + $0x1c34] ss:$8 sps:$4 sm:$0xff]  }
0x18b2   : > { %8878 = vmatpush1.bf16.msra.mxu1 %v17390_v43  ;;  %v17447_v43 = vld [vmem:[%s19090_s17 + $0x1c30] ss:$8 sps:$4 sm:$0xff]  }
0x18b3   : > { %8879 = vmatprep.subr.bf16.mxu1 %v17395_v44  ;;  %v17452_v44 = vld [vmem:[%s19090_s17 + $0x1c24] ss:$8 sps:$4 sm:$0xff]  }
0x18b6   : > { %8880 = vmatpush1.bf16.msra.mxu1 %v17393_v45  ;;  %v17450_v45 = vld [vmem:[%s19090_s17 + $0x1c20] ss:$8 sps:$4 sm:$0xff]  }
0x18b7   : > { %8881 = vmatprep.subr.bf16.mxu1 %v17398_v46  ;;  %v17455_v46 = vld [vmem:[%s19090_s17 + $0x1c14] ss:$8 sps:$4 sm:$0xff]  }
0x18ba   : > { %8882 = vmatpush1.bf16.msra.mxu1 %v17396_v47  ;;  %v17453_v47 = vld [vmem:[%s19090_s17 + $0x1c10] ss:$8 sps:$4 sm:$0xff]  }
0x18bb   : > { %8883 = vmatprep.subr.bf16.mxu1 %v17401_v48  ;;  %v17458_v48 = vld [vmem:[%s19090_s17 + $0x1c04] ss:$8 sps:$4 sm:$0xff]  }
0x18be   : > { %8884 = vmatpush1.bf16.msra.mxu1 %v17399_v49  ;;  %v17456_v49 = vld [vmem:[%s19090_s17 + $0x1c00] ss:$8 sps:$4 sm:$0xff]  }
0x18bf   : > { %8885 = vmatprep.subr.bf16.mxu1 %v17404_v50  ;;  %v17461_v50 = vld [vmem:[%s19090_s17 + $0x1cf4] ss:$8 sps:$4 sm:$0xff]  }
0x18c2   : > { %8886 = vmatpush1.bf16.msra.mxu1 %v17402_v51  ;;  %v17459_v51 = vld [vmem:[%s19090_s17 + $0x1cf0] ss:$8 sps:$4 sm:$0xff]  }
0x18c3   : > { %8887 = vmatprep.subr.bf16.mxu1 %v17407_v52  ;;  %v14712_v52 = vld [vmem:[%s19092_s22 + $0x34] sm:$0x3] }
0x18c6   : > { %8888 = vmatpush1.bf16.msra.mxu1 %v17405_v53  ;;  %v8449_v53 = vrot.slane %v14712_v52, %v19181_v11 }
0x18c7   : > { %8889 = vmatprep.subr.bf16.mxu1 %v17410_v54  ;;  %v8453_v54 = vrot.slane %v14712_v52, %v19183_v12 }
0x18ca   : > { %8890 = vmatpush1.bf16.msra.mxu1 %v17408_v55 }
0x18cb   : > { %8891 = vmatprep.subr.bf16.mxu1 %v17413_v56 }
0x18ce   : > { %8892 = vmatpush2.bf16.msra.mxu1 %v17411_v58 }
0x18cf   : > { %8893 = vmatprep.subr.bf16.mxu1 %v17416_v57  ;;  %v17473_v57 = vld [vmem:[%s19090_s17 + $0x1cb4] ss:$8 sps:$4 sm:$0xff]  }
0x18d2   : > { %8894 = vmatpush2.bf16.msra.mxu1 %v17414_v20  ;;  %v17471_v20 = vld [vmem:[%s19090_s17 + $0x1cb0] ss:$8 sps:$4 sm:$0xff]  }
0x18d3   : > { %8895 = vmatprep.subr.bf16.mxu1 %v17419_v21  ;;  %v17476_v21 = vld [vmem:[%s19090_s17 + $0x1ca4] ss:$8 sps:$4 sm:$0xff]  }
0x18d6   : > { %8896 = vmatpush2.bf16.msra.mxu1 %v17417_v22  ;;  %v17474_v22 = vld [vmem:[%s19090_s17 + $0x1ca0] ss:$8 sps:$4 sm:$0xff]  }
0x18d7   : > { %8897 = vmatprep.subr.bf16.mxu1 %v17422_v23  ;;  %v17479_v23 = vld [vmem:[%s19090_s17 + $0x1c94] ss:$8 sps:$4 sm:$0xff]  }
0x18da   : > { %8898 = vmatpush2.bf16.msra.mxu1 %v17420_v24  ;;  %v17477_v24 = vld [vmem:[%s19090_s17 + $0x1c90] ss:$8 sps:$4 sm:$0xff]  }
0x18db   : > { %8899 = vmatprep.subr.bf16.mxu1 %v17425_v25  ;;  %v17482_v25 = vld [vmem:[%s19090_s17 + $0x1c84] ss:$8 sps:$4 sm:$0xff]  }
0x18de   : > { %8900 = vmatpush2.bf16.msra.mxu1 %v17423_v27  ;;  %v17480_v27 = vld [vmem:[%s19090_s17 + $0x1c80] ss:$8 sps:$4 sm:$0xff]  }
0x18df   : > { %8901 = vmatprep.subr.bf16.mxu1 %v17428_v28  ;;  %v17483_v28 = vld [vmem:[%s19090_s17 + $0x1d70] ss:$8 sps:$4 sm:$0xff]  }
0x18e2   : > { %8902 = vmatpush2.bf16.msra.mxu1 %v17426_v29  ;;  %v17485_v29 = vld [vmem:[%s19090_s17 + $0x1d74] ss:$8 sps:$4 sm:$0xff]  }
0x18e3   : > { %8903 = vmatprep.subr.bf16.mxu1 %v17431_v30  ;;  %v17488_v30 = vld [vmem:[%s19090_s17 + $0x1d64] ss:$8 sps:$4 sm:$0xff]  }
0x18e6   : > { %8904 = vmatpush2.bf16.msra.mxu1 %v17429_v31  ;;  %v17486_v31 = vld [vmem:[%s19090_s17 + $0x1d60] ss:$8 sps:$4 sm:$0xff]  }
0x18e7   : > { %8905 = vmatprep.subr.bf16.mxu1 %v17434_v32  ;;  %v17491_v32 = vld [vmem:[%s19090_s17 + $0x1d54] ss:$8 sps:$4 sm:$0xff]  }
0x18ea   : > { %8906 = vmatpush2.bf16.msra.mxu1 %v17432_v33  ;;  %v17489_v33 = vld [vmem:[%s19090_s17 + $0x1d50] ss:$8 sps:$4 sm:$0xff]  }
0x18eb   : > { %9393 = vmatprep.subr.bf16.mxu1 %v17485_v29  ;;  %v17540_v29 = vld [vmem:[%s19090_s17 + $0x1e40] ss:$8 sps:$4 sm:$0xff]  }
0x196d   : > { %v8391_v62 = vpop.f32.mrf.mxu1 }
0x196e   : > { %v8392_v63 = vadd.f32 %v8391_v62, %v8190_v60 }
0x196f   : > { %v8393_v0 = vpop.f32.mrf.mxu1 }
0x1970   : > { %v8400_v1 = vmul.f32 0.70710677, %v8392_v63  ;;  %v8394_v2 = vadd.f32 %v8393_v0, %v8194_v61  ;;  %v8398_v13 = vmul.f32 0.5, %v8392_v63 }
0x1971   : > { %v8395_v4 = vpop.f32.mrf.mxu1 }
0x1972   : > { %18164 = verf.f32 %v8400_v1  ;;  %v8401_v5 = vmul.f32 0.70710677, %v8394_v2  ;;  %v8399_v14 = vmul.f32 0.5, %v8394_v2 }
0x1973   : > { %v8396_v6 = vpop.f32.mrf.mxu1 }
0x1974   : > { %18166 = verf.f32 %v8401_v5 }
0x197f   : > { %v18165_v8 = vpop.eup %18164 }
0x1980   : > { %v8404_v9 = vadd.f32 1.0, %v18165_v8 }
0x1981   : > { %v18167_v10 = vpop.eup %18166 }
0x1982   : > { %v8405_v15 = vadd.f32 1.0, %v18167_v10  ;;  %v8406_v16 = vmul.f32 %v8404_v9, %v8398_v13 }
0x1984   : > { %v8407_v18 = vmul.f32 %v8405_v15, %v8399_v14  ;;  %v8408_v19 = vpack.c.bf16 %v8406_v16, %v8406_v16  ;;  %v17464_v14 = vld [vmem:[%s19090_s17 + $0x1ce4] ss:$8 sps:$4 sm:$0xff]   ;;  %v17462_v15 = vld [vmem:[%s19090_s17 + $0x1ce0] ss:$8 sps:$4 sm:$0xff]   ;;  %v17467_v16 = vld [vmem:[%s19090_s17 + $0x1cd4] ss:$8 sps:$4 sm:$0xff]  }
0x1986   : > { %v8409_v7 = vpack.c.bf16 %v8407_v18, %v8407_v18  ;;  %v17465_v18 = vld [vmem:[%s19090_s17 + $0x1cd0] ss:$8 sps:$4 sm:$0xff]  }
0x1988   : > { %8648 = vmatprep.mubr.bf16.mxu0 %v8409_v7  ;;  %v17470_v7 = vld [vmem:[%s19090_s17 + $0x1cc4] ss:$8 sps:$4 sm:$0xff]  }
0x1989   : > { %8649 = vmatmul.mubr.bf16.vlgmr.msra.gmra.mxu0 %v8408_v19  ;;  %v17468_v19 = vld [vmem:[%s19090_s17 + $0x1cc0] ss:$8 sps:$4 sm:$0xff]  }
0x198a   : > { %9135 = vmatpush1.bf16.msra.mxu0 %v17435_v34  ;;  %v17494_v34 = vld [vmem:[%s19090_s17 + $0x1d44] ss:$8 sps:$4 sm:$0xff]  }
0x198b   : > { %9136 = vmatprep.subr.bf16.mxu0 %v17440_v36  ;;  %v17497_v36 = vld [vmem:[%s19090_s17 + $0x1d34] ss:$8 sps:$4 sm:$0xff]  }
0x198e   : > { %9137 = vmatpush1.bf16.msra.mxu0 %v17438_v37  ;;  %v17495_v37 = vld [vmem:[%s19090_s17 + $0x1d30] ss:$8 sps:$4 sm:$0xff]  }
0x198f   : > { %9138 = vmatprep.subr.bf16.mxu0 %v17443_v38  ;;  %v17500_v38 = vld [vmem:[%s19090_s17 + $0x1d24] ss:$8 sps:$4 sm:$0xff]  }
0x1992   : > { %9139 = vmatpush1.bf16.msra.mxu0 %v17441_v39  ;;  %v17498_v39 = vld [vmem:[%s19090_s17 + $0x1d20] ss:$8 sps:$4 sm:$0xff]  }
0x1993   : > { %9140 = vmatprep.subr.bf16.mxu0 %v17446_v40  ;;  %v17503_v40 = vld [vmem:[%s19090_s17 + $0x1d14] ss:$8 sps:$4 sm:$0xff]  }
0x1996   : > { %9141 = vmatpush1.bf16.msra.mxu0 %v17444_v41  ;;  %v17501_v41 = vld [vmem:[%s19090_s17 + $0x1d10] ss:$8 sps:$4 sm:$0xff]  }
0x1997   : > { %9142 = vmatprep.subr.bf16.mxu0 %v17449_v42  ;;  %v17506_v42 = vld [vmem:[%s19090_s17 + $0x1d04] ss:$8 sps:$4 sm:$0xff]  }
0x199a   : > { %9143 = vmatpush1.bf16.msra.mxu0 %v17447_v43  ;;  %v17504_v43 = vld [vmem:[%s19090_s17 + $0x1d00] ss:$8 sps:$4 sm:$0xff]  }
0x199b   : > { %9144 = vmatprep.subr.bf16.mxu0 %v17452_v44  ;;  %v17509_v44 = vld [vmem:[%s19090_s17 + $0x1df4] ss:$8 sps:$4 sm:$0xff]  }
0x199e   : > { %9145 = vmatpush1.bf16.msra.mxu0 %v17450_v45  ;;  %v17507_v45 = vld [vmem:[%s19090_s17 + $0x1df0] ss:$8 sps:$4 sm:$0xff]  }
0x199f   : > { %9146 = vmatprep.subr.bf16.mxu0 %v17455_v46  ;;  %v14777_v46 = vld [vmem:[%s19092_s22 + $0x36] sm:$0x3] }
0x19a2   : > { %9147 = vmatpush1.bf16.msra.mxu0 %v17453_v47  ;;  %v8708_v47 = vrot.slane %v14777_v46, %v19181_v11 }
0x19a3   : > { %9148 = vmatprep.subr.bf16.mxu0 %v17458_v48  ;;  %v8712_v48 = vrot.slane %v14777_v46, %v19183_v12 }
0x19a6   : > { %9149 = vmatpush1.bf16.msra.mxu0 %v17456_v49 }
0x19a7   : > { %9150 = vmatprep.subr.bf16.mxu0 %v17461_v50 }
0x19aa   : > { %9151 = vmatpush2.bf16.msra.mxu0 %v17459_v51 }
0x19ab   : > { %9152 = vmatprep.subr.bf16.mxu0 %v17464_v14  ;;  %v17521_v14 = vld [vmem:[%s19090_s17 + $0x1db4] ss:$8 sps:$4 sm:$0xff]  }
0x19ae   : > { %9153 = vmatpush2.bf16.msra.mxu0 %v17462_v15  ;;  %v17519_v15 = vld [vmem:[%s19090_s17 + $0x1db0] ss:$8 sps:$4 sm:$0xff]  }
0x19af   : > { %9154 = vmatprep.subr.bf16.mxu0 %v17467_v16  ;;  %v17524_v16 = vld [vmem:[%s19090_s17 + $0x1da4] ss:$8 sps:$4 sm:$0xff]  }
0x19b2   : > { %9155 = vmatpush2.bf16.msra.mxu0 %v17465_v18  ;;  %v17522_v18 = vld [vmem:[%s19090_s17 + $0x1da0] ss:$8 sps:$4 sm:$0xff]  }
0x19b3   : > { %9156 = vmatprep.subr.bf16.mxu0 %v17470_v7  ;;  %v17527_v7 = vld [vmem:[%s19090_s17 + $0x1d94] ss:$8 sps:$4 sm:$0xff]  }
0x19b6   : > { %9157 = vmatpush2.bf16.msra.mxu0 %v17468_v19  ;;  %v17525_v19 = vld [vmem:[%s19090_s17 + $0x1d90] ss:$8 sps:$4 sm:$0xff]  }
0x19b7   : > { %9158 = vmatprep.subr.bf16.mxu0 %v17473_v57  ;;  %v17530_v57 = vld [vmem:[%s19090_s17 + $0x1d84] ss:$8 sps:$4 sm:$0xff]  }
0x19ba   : > { %9159 = vmatpush2.bf16.msra.mxu0 %v17471_v20  ;;  %v17528_v20 = vld [vmem:[%s19090_s17 + $0x1d80] ss:$8 sps:$4 sm:$0xff]  }
0x19bb   : > { %9160 = vmatprep.subr.bf16.mxu0 %v17476_v21  ;;  %v17531_v21 = vld [vmem:[%s19090_s17 + $0x1e70] ss:$8 sps:$4 sm:$0xff]  }
0x19be   : > { %9161 = vmatpush2.bf16.msra.mxu0 %v17474_v22  ;;  %v17533_v22 = vld [vmem:[%s19090_s17 + $0x1e74] ss:$8 sps:$4 sm:$0xff]  }
0x19bf   : > { %9162 = vmatprep.subr.bf16.mxu0 %v17479_v23  ;;  %v17536_v23 = vld [vmem:[%s19090_s17 + $0x1e64] ss:$8 sps:$4 sm:$0xff]  }
0x19c2   : > { %9163 = vmatpush2.bf16.msra.mxu0 %v17477_v24  ;;  %v17534_v24 = vld [vmem:[%s19090_s17 + $0x1e60] ss:$8 sps:$4 sm:$0xff]  }
0x19c3   : > { %9164 = vmatprep.subr.bf16.mxu0 %v17482_v25  ;;  %v17539_v25 = vld [vmem:[%s19090_s17 + $0x1e54] ss:$8 sps:$4 sm:$0xff]  }
0x19c6   : > { %9165 = vmatpush2.bf16.msra.mxu0 %v17480_v27  ;;  %v17537_v27 = vld [vmem:[%s19090_s17 + $0x1e50] ss:$8 sps:$4 sm:$0xff]  }
0x19c7   : > { %9652 = vmatprep.subr.bf16.mxu0 %v17533_v22  ;;  %v17588_v22 = vld [vmem:[%s19090_s17 + $0x1f40] ss:$8 sps:$4 sm:$0xff]  }
0x1a49   : > { %v8650_v55 = vpop.f32.mrf.mxu0 }
0x1a4a   : > { %v8651_v56 = vadd.f32 %v8650_v55, %v8449_v53 }
0x1a4b   : > { %v8652_v58 = vpop.f32.mrf.mxu0 }
0x1a4c   : > { %v8659_v59 = vmul.f32 0.70710677, %v8651_v56  ;;  %v8653_v60 = vadd.f32 %v8652_v58, %v8453_v54  ;;  %v8657_v4 = vmul.f32 0.5, %v8651_v56 }
0x1a4d   : > { %v8654_v61 = vpop.f32.mrf.mxu0 }
0x1a4e   : > { %18168 = verf.f32 %v8659_v59  ;;  %v8660_v62 = vmul.f32 0.70710677, %v8653_v60  ;;  %v8658_v5 = vmul.f32 0.5, %v8653_v60 }
0x1a4f   : > { %v8655_v63 = vpop.f32.mrf.mxu0 }
0x1a50   : > { %18170 = verf.f32 %v8660_v62 }
0x1a5b   : > { %v18169_v0 = vpop.eup %18168 }
0x1a5c   : > { %v8663_v1 = vadd.f32 1.0, %v18169_v0 }
0x1a5d   : > { %v18171_v2 = vpop.eup %18170 }
0x1a5e   : > { %v8664_v6 = vadd.f32 1.0, %v18171_v2  ;;  %v8665_v8 = vmul.f32 %v8663_v1, %v8657_v4 }
0x1a60   : > { %v8666_v9 = vmul.f32 %v8664_v6, %v8658_v5  ;;  %v8667_v13 = vpack.c.bf16 %v8665_v8, %v8665_v8  ;;  %v17512_v5 = vld [vmem:[%s19090_s17 + $0x1de4] ss:$8 sps:$4 sm:$0xff]   ;;  %v17510_v6 = vld [vmem:[%s19090_s17 + $0x1de0] ss:$8 sps:$4 sm:$0xff]   ;;  %v17515_v8 = vld [vmem:[%s19090_s17 + $0x1dd4] ss:$8 sps:$4 sm:$0xff]  }
0x1a62   : > { %v8668_v10 = vpack.c.bf16 %v8666_v9, %v8666_v9  ;;  %v17513_v9 = vld [vmem:[%s19090_s17 + $0x1dd0] ss:$8 sps:$4 sm:$0xff]  }
0x1a64   : > { %8907 = vmatprep.mubr.bf16.mxu1 %v8668_v10  ;;  %v17518_v10 = vld [vmem:[%s19090_s17 + $0x1dc4] ss:$8 sps:$4 sm:$0xff]  }
0x1a65   : > { %8908 = vmatmul.mubr.bf16.vlgmr.msra.gmra.mxu1 %v8667_v13  ;;  %v17516_v13 = vld [vmem:[%s19090_s17 + $0x1dc0] ss:$8 sps:$4 sm:$0xff]  }
0x1a66   : > { %9394 = vmatpush1.bf16.msra.mxu1 %v17483_v28  ;;  %v17542_v28 = vld [vmem:[%s19090_s17 + $0x1e44] ss:$8 sps:$4 sm:$0xff]  }
0x1a67   : > { %9395 = vmatprep.subr.bf16.mxu1 %v17488_v30  ;;  %v17545_v30 = vld [vmem:[%s19090_s17 + $0x1e34] ss:$8 sps:$4 sm:$0xff]  }
0x1a6a   : > { %9396 = vmatpush1.bf16.msra.mxu1 %v17486_v31  ;;  %v17543_v31 = vld [vmem:[%s19090_s17 + $0x1e30] ss:$8 sps:$4 sm:$0xff]  }
0x1a6b   : > { %9397 = vmatprep.subr.bf16.mxu1 %v17491_v32  ;;  %v17548_v32 = vld [vmem:[%s19090_s17 + $0x1e24] ss:$8 sps:$4 sm:$0xff]  }
0x1a6e   : > { %9398 = vmatpush1.bf16.msra.mxu1 %v17489_v33  ;;  %v17546_v33 = vld [vmem:[%s19090_s17 + $0x1e20] ss:$8 sps:$4 sm:$0xff]  }
0x1a6f   : > { %9399 = vmatprep.subr.bf16.mxu1 %v17494_v34  ;;  %v17551_v34 = vld [vmem:[%s19090_s17 + $0x1e14] ss:$8 sps:$4 sm:$0xff]  }
0x1a72   : > { %9400 = vmatpush1.bf16.msra.mxu1 %v17492_v35  ;;  %v17549_v35 = vld [vmem:[%s19090_s17 + $0x1e10] ss:$8 sps:$4 sm:$0xff]  }
0x1a73   : > { %9401 = vmatprep.subr.bf16.mxu1 %v17497_v36  ;;  %v17554_v36 = vld [vmem:[%s19090_s17 + $0x1e04] ss:$8 sps:$4 sm:$0xff]  }
0x1a76   : > { %9402 = vmatpush1.bf16.msra.mxu1 %v17495_v37  ;;  %v17552_v37 = vld [vmem:[%s19090_s17 + $0x1e00] ss:$8 sps:$4 sm:$0xff]  }
0x1a77   : > { %9403 = vmatprep.subr.bf16.mxu1 %v17500_v38  ;;  %v17557_v38 = vld [vmem:[%s19090_s17 + $0x1ef4] ss:$8 sps:$4 sm:$0xff]  }
0x1a7a   : > { %9404 = vmatpush1.bf16.msra.mxu1 %v17498_v39  ;;  %v17555_v39 = vld [vmem:[%s19090_s17 + $0x1ef0] ss:$8 sps:$4 sm:$0xff]  }
0x1a7b   : > { %9405 = vmatprep.subr.bf16.mxu1 %v17503_v40  ;;  %v14842_v40 = vld [vmem:[%s19092_s22 + $0x38] sm:$0x3] }
0x1a7e   : > { %9406 = vmatpush1.bf16.msra.mxu1 %v17501_v41  ;;  %v8967_v41 = vrot.slane %v14842_v40, %v19181_v11 }
0x1a7f   : > { %9407 = vmatprep.subr.bf16.mxu1 %v17506_v42  ;;  %v8971_v42 = vrot.slane %v14842_v40, %v19183_v12 }
0x1a82   : > { %9408 = vmatpush1.bf16.msra.mxu1 %v17504_v43 }
0x1a83   : > { %9409 = vmatprep.subr.bf16.mxu1 %v17509_v44 }
0x1a86   : > { %9410 = vmatpush2.bf16.msra.mxu1 %v17507_v45 }
0x1a87   : > { %9411 = vmatprep.subr.bf16.mxu1 %v17512_v5  ;;  %v17569_v5 = vld [vmem:[%s19090_s17 + $0x1eb4] ss:$8 sps:$4 sm:$0xff]  }
0x1a8a   : > { %9412 = vmatpush2.bf16.msra.mxu1 %v17510_v6  ;;  %v17567_v6 = vld [vmem:[%s19090_s17 + $0x1eb0] ss:$8 sps:$4 sm:$0xff]  }
0x1a8b   : > { %9413 = vmatprep.subr.bf16.mxu1 %v17515_v8  ;;  %v17572_v8 = vld [vmem:[%s19090_s17 + $0x1ea4] ss:$8 sps:$4 sm:$0xff]  }
0x1a8e   : > { %9414 = vmatpush2.bf16.msra.mxu1 %v17513_v9  ;;  %v17570_v9 = vld [vmem:[%s19090_s17 + $0x1ea0] ss:$8 sps:$4 sm:$0xff]  }
0x1a8f   : > { %9415 = vmatprep.subr.bf16.mxu1 %v17518_v10  ;;  %v17575_v10 = vld [vmem:[%s19090_s17 + $0x1e94] ss:$8 sps:$4 sm:$0xff]  }
0x1a92   : > { %9416 = vmatpush2.bf16.msra.mxu1 %v17516_v13  ;;  %v17573_v13 = vld [vmem:[%s19090_s17 + $0x1e90] ss:$8 sps:$4 sm:$0xff]  }
0x1a93   : > { %9417 = vmatprep.subr.bf16.mxu1 %v17521_v14  ;;  %v17578_v14 = vld [vmem:[%s19090_s17 + $0x1e84] ss:$8 sps:$4 sm:$0xff]  }
0x1a96   : > { %9418 = vmatpush2.bf16.msra.mxu1 %v17519_v15  ;;  %v17576_v15 = vld [vmem:[%s19090_s17 + $0x1e80] ss:$8 sps:$4 sm:$0xff]  }
0x1a97   : > { %9419 = vmatprep.subr.bf16.mxu1 %v17524_v16  ;;  %v17579_v16 = vld [vmem:[%s19090_s17 + $0x1f70] ss:$8 sps:$4 sm:$0xff]  }
0x1a9a   : > { %9420 = vmatpush2.bf16.msra.mxu1 %v17522_v18  ;;  %v17581_v18 = vld [vmem:[%s19090_s17 + $0x1f74] ss:$8 sps:$4 sm:$0xff]  }
0x1a9b   : > { %9421 = vmatprep.subr.bf16.mxu1 %v17527_v7  ;;  %v17584_v7 = vld [vmem:[%s19090_s17 + $0x1f64] ss:$8 sps:$4 sm:$0xff]  }
0x1a9e   : > { %9422 = vmatpush2.bf16.msra.mxu1 %v17525_v19  ;;  %v17582_v19 = vld [vmem:[%s19090_s17 + $0x1f60] ss:$8 sps:$4 sm:$0xff]  }
0x1a9f   : > { %9423 = vmatprep.subr.bf16.mxu1 %v17530_v57  ;;  %v17587_v57 = vld [vmem:[%s19090_s17 + $0x1f54] ss:$8 sps:$4 sm:$0xff]  }
0x1aa2   : > { %9424 = vmatpush2.bf16.msra.mxu1 %v17528_v20  ;;  %v17585_v20 = vld [vmem:[%s19090_s17 + $0x1f50] ss:$8 sps:$4 sm:$0xff]  }
0x1aa3   : > { %9911 = vmatprep.subr.bf16.mxu1 %v17581_v18 }
0x1b25   : > { %v8909_v49 = vpop.f32.mrf.mxu1 }
0x1b26   : > { %v8910_v50 = vadd.f32 %v8909_v49, %v8708_v47 }
0x1b27   : > { %v8911_v51 = vpop.f32.mrf.mxu1 }
0x1b28   : > { %v8918_v52 = vmul.f32 0.70710677, %v8910_v50  ;;  %v8912_v53 = vadd.f32 %v8911_v51, %v8712_v48  ;;  %v8916_v61 = vmul.f32 0.5, %v8910_v50 }
0x1b29   : > { %v8913_v54 = vpop.f32.mrf.mxu1 }
0x1b2a   : > { %18172 = verf.f32 %v8918_v52  ;;  %v8919_v55 = vmul.f32 0.70710677, %v8912_v53  ;;  %v8917_v62 = vmul.f32 0.5, %v8912_v53 }
0x1b2b   : > { %v8914_v56 = vpop.f32.mrf.mxu1 }
0x1b2c   : > { %18174 = verf.f32 %v8919_v55 }
0x1b37   : > { %v18173_v58 = vpop.eup %18172 }
0x1b38   : > { %v8922_v59 = vadd.f32 1.0, %v18173_v58 }
0x1b39   : > { %v18175_v60 = vpop.eup %18174 }
0x1b3a   : > { %v8923_v63 = vadd.f32 1.0, %v18175_v60  ;;  %v8924_v0 = vmul.f32 %v8922_v59, %v8916_v61 }
0x1b3c   : > { %v8925_v1 = vmul.f32 %v8923_v63, %v8917_v62  ;;  %v8926_v4 = vpack.c.bf16 %v8924_v0, %v8924_v0  ;;  %v17560_v62 = vld [vmem:[%s19090_s17 + $0x1ee4] ss:$8 sps:$4 sm:$0xff]   ;;  %v17558_v63 = vld [vmem:[%s19090_s17 + $0x1ee0] ss:$8 sps:$4 sm:$0xff]   ;;  %v17563_v0 = vld [vmem:[%s19090_s17 + $0x1ed4] ss:$8 sps:$4 sm:$0xff]  }
0x1b3e   : > { %v8927_v2 = vpack.c.bf16 %v8925_v1, %v8925_v1  ;;  %v17561_v1 = vld [vmem:[%s19090_s17 + $0x1ed0] ss:$8 sps:$4 sm:$0xff]  }
0x1b40   : > { %9166 = vmatprep.mubr.bf16.mxu0 %v8927_v2  ;;  %v17566_v2 = vld [vmem:[%s19090_s17 + $0x1ec4] ss:$8 sps:$4 sm:$0xff]  }
0x1b41   : > { %9167 = vmatmul.mubr.bf16.vlgmr.msra.gmra.mxu0 %v8926_v4  ;;  %v17564_v4 = vld [vmem:[%s19090_s17 + $0x1ec0] ss:$8 sps:$4 sm:$0xff]  }
0x1b42   : > { %9653 = vmatpush1.bf16.msra.mxu0 %v17531_v21  ;;  %v17590_v21 = vld [vmem:[%s19090_s17 + $0x1f44] ss:$8 sps:$4 sm:$0xff]  }
0x1b43   : > { %9654 = vmatprep.subr.bf16.mxu0 %v17536_v23  ;;  %v17593_v23 = vld [vmem:[%s19090_s17 + $0x1f34] ss:$8 sps:$4 sm:$0xff]  }
0x1b46   : > { %9655 = vmatpush1.bf16.msra.mxu0 %v17534_v24  ;;  %v17591_v24 = vld [vmem:[%s19090_s17 + $0x1f30] ss:$8 sps:$4 sm:$0xff]  }
0x1b47   : > { %9656 = vmatprep.subr.bf16.mxu0 %v17539_v25  ;;  %v17596_v25 = vld [vmem:[%s19090_s17 + $0x1f24] ss:$8 sps:$4 sm:$0xff]  }
0x1b4a   : > { %9657 = vmatpush1.bf16.msra.mxu0 %v17537_v27  ;;  %v17594_v27 = vld [vmem:[%s19090_s17 + $0x1f20] ss:$8 sps:$4 sm:$0xff]  }
0x1b4b   : > { %9658 = vmatprep.subr.bf16.mxu0 %v17542_v28  ;;  %v17599_v28 = vld [vmem:[%s19090_s17 + $0x1f14] ss:$8 sps:$4 sm:$0xff]  }
0x1b4e   : > { %9659 = vmatpush1.bf16.msra.mxu0 %v17540_v29  ;;  %v17597_v29 = vld [vmem:[%s19090_s17 + $0x1f10] ss:$8 sps:$4 sm:$0xff]  }
0x1b4f   : > { %9660 = vmatprep.subr.bf16.mxu0 %v17545_v30  ;;  %v17602_v30 = vld [vmem:[%s19090_s17 + $0x1f04] ss:$8 sps:$4 sm:$0xff]  }
0x1b52   : > { %9661 = vmatpush1.bf16.msra.mxu0 %v17543_v31  ;;  %v17600_v31 = vld [vmem:[%s19090_s17 + $0x1f00] ss:$8 sps:$4 sm:$0xff]  }
0x1b53   : > { %9662 = vmatprep.subr.bf16.mxu0 %v17548_v32  ;;  %v17605_v32 = vld [vmem:[%s19090_s17 + $0x1ff4] ss:$8 sps:$4 sm:$0xff]  }
0x1b56   : > { %9663 = vmatpush1.bf16.msra.mxu0 %v17546_v33  ;;  %v17603_v33 = vld [vmem:[%s19090_s17 + $0x1ff0] ss:$8 sps:$4 sm:$0xff]  }
0x1b57   : > { %9664 = vmatprep.subr.bf16.mxu0 %v17551_v34  ;;  %v17608_v34 = vld [vmem:[%s19090_s17 + $0x1fe4] ss:$8 sps:$4 sm:$0xff]  }
0x1b5a   : > { %9665 = vmatpush1.bf16.msra.mxu0 %v17549_v35  ;;  %v17606_v35 = vld [vmem:[%s19090_s17 + $0x1fe0] ss:$8 sps:$4 sm:$0xff]  }
0x1b5b   : > { %9666 = vmatprep.subr.bf16.mxu0 %v17554_v36  ;;  %v14907_v36 = vld [vmem:[%s19092_s22 + $0x3a] sm:$0x3] }
0x1b5e   : > { %9667 = vmatpush1.bf16.msra.mxu0 %v17552_v37  ;;  %v9226_v37 = vrot.slane %v14907_v36, %v19181_v11 }
0x1b5f   : > { %9668 = vmatprep.subr.bf16.mxu0 %v17557_v38  ;;  %v9230_v38 = vrot.slane %v14907_v36, %v19183_v12 }
0x1b62   : > { %9669 = vmatpush2.bf16.msra.mxu0 %v17555_v39 }
0x1b63   : > { %9670 = vmatprep.subr.bf16.mxu0 %v17560_v62  ;;  %v17617_v62 = vld [vmem:[%s19090_s17 + $0x1fb4] ss:$8 sps:$4 sm:$0xff]  }
0x1b66   : > { %9671 = vmatpush2.bf16.msra.mxu0 %v17558_v63  ;;  %v17615_v63 = vld [vmem:[%s19090_s17 + $0x1fb0] ss:$8 sps:$4 sm:$0xff]  }
0x1b67   : > { %9672 = vmatprep.subr.bf16.mxu0 %v17563_v0  ;;  %v17620_v0 = vld [vmem:[%s19090_s17 + $0x1fa4] ss:$8 sps:$4 sm:$0xff]  }
0x1b6a   : > { %9673 = vmatpush2.bf16.msra.mxu0 %v17561_v1  ;;  %v17618_v1 = vld [vmem:[%s19090_s17 + $0x1fa0] ss:$8 sps:$4 sm:$0xff]  }
0x1b6b   : > { %9674 = vmatprep.subr.bf16.mxu0 %v17566_v2  ;;  %v17623_v2 = vld [vmem:[%s19090_s17 + $0x1f94] ss:$8 sps:$4 sm:$0xff]  }
0x1b6e   : > { %9675 = vmatpush2.bf16.msra.mxu0 %v17564_v4  ;;  %v17621_v4 = vld [vmem:[%s19090_s17 + $0x1f90] ss:$8 sps:$4 sm:$0xff]  }
0x1b6f   : > { %9676 = vmatprep.subr.bf16.mxu0 %v17569_v5  ;;  %v17626_v5 = vld [vmem:[%s19090_s17 + $0x1f84] ss:$8 sps:$4 sm:$0xff]  }
0x1b72   : > { %9677 = vmatpush2.bf16.msra.mxu0 %v17567_v6  ;;  %v17624_v6 = vld [vmem:[%s19090_s17 + $0x1f80] ss:$8 sps:$4 sm:$0xff]  }
0x1b73   : > { %9678 = vmatprep.subr.bf16.mxu0 %v17572_v8  ;;  %v15122_v8 = vld [vmem:[%s19082_s24 + $0x70] sm:$0x33] }
0x1b76   : > { %9679 = vmatpush2.bf16.msra.mxu0 %v17570_v9  ;;  %v15127_v9 = vcombine.high %v15122_v8, %v15122_v8 }
0x1b77   : > { %9680 = vmatprep.subr.bf16.mxu0 %v17575_v10  ;;  %v17650_v10 = vld [vmem:[%s19116_s30 + $0x1f8] sm:$0xff]  }
0x1b7a   : > { %9681 = vmatpush2.bf16.msra.mxu0 %v17573_v13  ;;  %v17654_v13 = vld [vmem:[%s19116_s30 + $0x1b8] sm:$0xff]  }
0x1b7b   : > { %9682 = vmatprep.subr.bf16.mxu0 %v17578_v14  ;;  %v14972_v14 = vld [vmem:[%s19092_s22 + $0x3c] sm:$0x3] }
0x1b7e   : > { %9683 = vmatpush2.bf16.msra.mxu0 %v17576_v15  ;;  %v9485_v15 = vrot.slane %v14972_v14, %v19181_v11 }
0x1b7f   : > { %15788 = vmatprep.subr.bf16.mxu0 %v17650_v10  ;;  %v17680_v10 = vld [vmem:[%s19116_s30 + $0x1c8] sm:$0xff]  }
0x1c01   : > { %v9168_v43 = vpop.f32.mrf.mxu0 }
0x1c02   : > { %v9169_v44 = vadd.f32 %v9168_v43, %v8967_v41 }
0x1c03   : > { %v9170_v45 = vpop.f32.mrf.mxu0 }
0x1c04   : > { %v9177_v46 = vmul.f32 0.70710677, %v9169_v44  ;;  %v9171_v47 = vadd.f32 %v9170_v45, %v8971_v42  ;;  %v9175_v54 = vmul.f32 0.5, %v9169_v44 }
0x1c05   : > { %v9172_v48 = vpop.f32.mrf.mxu0 }
0x1c06   : > { %18176 = verf.f32 %v9177_v46  ;;  %v9178_v49 = vmul.f32 0.70710677, %v9171_v47  ;;  %v9176_v55 = vmul.f32 0.5, %v9171_v47 }
0x1c07   : > { %v9173_v50 = vpop.f32.mrf.mxu0 }
0x1c08   : > { %18178 = verf.f32 %v9178_v49 }
0x1c13   : > { %v18177_v51 = vpop.eup %18176 }
0x1c14   : > { %v9181_v52 = vadd.f32 1.0, %v18177_v51 }
0x1c15   : > { %v18179_v53 = vpop.eup %18178 }
0x1c16   : > { %v9182_v56 = vadd.f32 1.0, %v18179_v53  ;;  %v9183_v58 = vmul.f32 %v9181_v52, %v9175_v54 }
0x1c18   : > { %v9184_v59 = vmul.f32 %v9182_v56, %v9176_v55  ;;  %v9185_v61 = vpack.c.bf16 %v9183_v58, %v9183_v58  ;;  %v17611_v58 = vld [vmem:[%s19090_s17 + $0x1fd4] ss:$8 sps:$4 sm:$0xff]  }
0x1c1a   : > { %v9186_v60 = vpack.c.bf16 %v9184_v59, %v9184_v59  ;;  %v17609_v59 = vld [vmem:[%s19090_s17 + $0x1fd0] ss:$8 sps:$4 sm:$0xff]  }
0x1c1c   : > { %9425 = vmatprep.mubr.bf16.mxu1 %v9186_v60  ;;  %v17614_v60 = vld [vmem:[%s19090_s17 + $0x1fc4] ss:$8 sps:$4 sm:$0xff]  }
0x1c1d   : > { %9426 = vmatmul.mubr.bf16.vlgmr.msra.gmra.mxu1 %v9185_v61  ;;  %v17612_v61 = vld [vmem:[%s19090_s17 + $0x1fc0] ss:$8 sps:$4 sm:$0xff]  }
0x1c1e   : > { %9912 = vmatpush1.bf16.msra.mxu1 %v17579_v16  ;;  %v9489_v16 = vrot.slane %v14972_v14, %v19183_v12  ;;  %v17681_v14 = vld [vmem:[%s19090_s17 + $0x20b0] ss:$8 sps:$4 sm:$0xff]  }
0x1c1f   : > { %9913 = vmatprep.subr.bf16.mxu1 %v17584_v7 }
0x1c22   : > { %9914 = vmatpush1.bf16.msra.mxu1 %v17582_v19 }
0x1c23   : > { %9915 = vmatprep.subr.bf16.mxu1 %v17587_v57 }
0x1c26   : > { %9916 = vmatpush1.bf16.msra.mxu1 %v17585_v20 }
0x1c27   : > { %9917 = vmatprep.subr.bf16.mxu1 %v17590_v21 }
0x1c2a   : > { %9918 = vmatpush1.bf16.msra.mxu1 %v17588_v22 }
0x1c2b   : > { %9919 = vmatprep.subr.bf16.mxu1 %v17593_v23 }
0x1c2e   : > { %9920 = vmatpush1.bf16.msra.mxu1 %v17591_v24 }
0x1c2f   : > { %9921 = vmatprep.subr.bf16.mxu1 %v17596_v25 }
0x1c32   : > { %9922 = vmatpush1.bf16.msra.mxu1 %v17594_v27 }
0x1c33   : > { %9923 = vmatprep.subr.bf16.mxu1 %v17599_v28 }
0x1c36   : > { %9924 = vmatpush1.bf16.msra.mxu1 %v17597_v29 }
0x1c37   : > { %9925 = vmatprep.subr.bf16.mxu1 %v17602_v30 }
0x1c3a   : > { %9926 = vmatpush1.bf16.msra.mxu1 %v17600_v31 }
0x1c3b   : > { %9927 = vmatprep.subr.bf16.mxu1 %v17605_v32  ;;  %v15126_v32 = vcombine.low %v15122_v8, %v15122_v8  ;;  %v17676_v8 = vld [vmem:[%s19090_s17 + $0x20c0] ss:$8 sps:$4 sm:$0xff]  }
0x1c3d   : > { %v10175_v36 = vsel %vm814_vm4, %v15126_v32, 0 }
0x1c3e   : > { %9928 = vmatpush2.bf16.msra.mxu1 %v17603_v33 }
0x1c3f   : > { %9929 = vmatprep.subr.bf16.mxu1 %v17608_v34 }
0x1c42   : > { %9930 = vmatpush2.bf16.msra.mxu1 %v17606_v35 }
0x1c43   : > { %9931 = vmatprep.subr.bf16.mxu1 %v17611_v58  ;;  %v17661_v58 = vld [vmem:[%s19090_s17 + $0x20f0] ss:$8 sps:$4 sm:$0xff]  }
0x1c46   : > { %9932 = vmatpush2.bf16.msra.mxu1 %v17609_v59  ;;  %v17664_v59 = vld [vmem:[%s19116_s30 + $0x1a8] sm:$0xff]  }
0x1c47   : > { %9933 = vmatprep.subr.bf16.mxu1 %v17614_v60  ;;  %v17665_v60 = vld [vmem:[%s19116_s30 + $0x1e0] sm:$0xff]  }
0x1c4a   : > { %9934 = vmatpush2.bf16.msra.mxu1 %v17612_v61  ;;  %v17668_v61 = vld [vmem:[%s19090_s17 + $0x20e4] ss:$8 sps:$4 sm:$0xff]  }
0x1c4b   : > { %9935 = vmatprep.subr.bf16.mxu1 %v17617_v62  ;;  %v17666_v62 = vld [vmem:[%s19090_s17 + $0x20e0] ss:$8 sps:$4 sm:$0xff]  }
0x1c4e   : > { %9936 = vmatpush2.bf16.msra.mxu1 %v17615_v63  ;;  %v17669_v63 = vld [vmem:[%s19116_s30 + $0x1a0] sm:$0xff]  }
0x1c4f   : > { %9937 = vmatprep.subr.bf16.mxu1 %v17620_v0  ;;  %v17670_v0 = vld [vmem:[%s19116_s30 + $0x1d8] sm:$0xff]  }
0x1c52   : > { %9938 = vmatpush2.bf16.msra.mxu1 %v17618_v1  ;;  %v17673_v1 = vld [vmem:[%s19090_s17 + $0x20d4] ss:$8 sps:$4 sm:$0xff]  }
0x1c53   : > { %9939 = vmatprep.subr.bf16.mxu1 %v17623_v2  ;;  %v17671_v2 = vld [vmem:[%s19090_s17 + $0x20d0] ss:$8 sps:$4 sm:$0xff]  }
0x1c56   : > { %9940 = vmatpush2.bf16.msra.mxu1 %v17621_v4  ;;  %v17674_v4 = vld [vmem:[%s19116_s30 + $0x198] sm:$0xff]  }
0x1c57   : > { %9941 = vmatprep.subr.bf16.mxu1 %v17626_v5  ;;  %v17675_v5 = vld [vmem:[%s19116_s30 + $0x1d0] sm:$0xff]  }
0x1c5a   : > { %9942 = vmatpush2.bf16.msra.mxu1 %v17624_v6  ;;  %v17678_v6 = vld [vmem:[%s19090_s17 + $0x20c4] ss:$8 sps:$4 sm:$0xff]  }
0x1c5b   : > { %15128 = vmatprep.subr.msk.bf16.mxu1 %vm814_vm4, %v15127_v9  ;;  %v17679_v9 = vld [vmem:[%s19116_s30 + $0x190] sm:$0xff]  }
0x1cdd   : > { %v9427_v39 = vpop.f32.mrf.mxu1 }
0x1cde   : > { %v9428_v40 = vadd.f32 %v9427_v39, %v9226_v37  ;;  %v17631_v37 = vld [vmem:[%s19082_s24 + $0x64] ss:$8 sps:$4 sm:$0xff]   ;;  %v17634_v39 = vld [vmem:[%s19090_s17 + $0x2074] ss:$8 sps:$4 sm:$0xff]  }
0x1cdf   : > { %v9429_v41 = vpop.f32.mrf.mxu1 }
0x1ce0   : > { %v9436_v42 = vmul.f32 0.70710677, %v9428_v40  ;;  %v9430_v43 = vadd.f32 %v9429_v41, %v9230_v38  ;;  %v9434_v50 = vmul.f32 0.5, %v9428_v40  ;;  %v17629_v38 = vld [vmem:[%s19082_s24 + $0x60] ss:$8 sps:$4 sm:$0xff]  }
0x1ce1   : > { %v9431_v44 = vpop.f32.mrf.mxu1  ;;  %v17632_v40 = vld [vmem:[%s19090_s17 + $0x2070] ss:$8 sps:$4 sm:$0xff]   ;;  %v17637_v41 = vld [vmem:[%s19090_s17 + $0x2064] ss:$8 sps:$4 sm:$0xff]  }
0x1ce2   : > { %18180 = verf.f32 %v9436_v42  ;;  %v9437_v45 = vmul.f32 0.70710677, %v9430_v43  ;;  %v9435_v51 = vmul.f32 0.5, %v9430_v43  ;;  %v17635_v42 = vld [vmem:[%s19090_s17 + $0x2060] ss:$8 sps:$4 sm:$0xff]  }
0x1ce3   : > { %v9432_v46 = vpop.f32.mrf.mxu1  ;;  %v17640_v43 = vld [vmem:[%s19090_s17 + $0x2054] ss:$8 sps:$4 sm:$0xff]   ;;  %v17643_v44 = vld [vmem:[%s19090_s17 + $0x2044] ss:$8 sps:$4 sm:$0xff]  }
0x1ce4   : > { %18182 = verf.f32 %v9437_v45  ;;  %v17641_v45 = vld [vmem:[%s19090_s17 + $0x2040] ss:$8 sps:$4 sm:$0xff]   ;;  %v17646_v46 = vld [vmem:[%s19090_s17 + $0x2034] ss:$8 sps:$4 sm:$0xff]  }
0x1cef   : > { %v18181_v47 = vpop.eup %18180 }
0x1cf0   : > { %v9440_v48 = vadd.f32 1.0, %v18181_v47  ;;  %v17649_v47 = vld [vmem:[%s19090_s17 + $0x2024] ss:$8 sps:$4 sm:$0xff]  }
0x1cf1   : > { %v18183_v49 = vpop.eup %18182 }
0x1cf2   : > { %v9441_v52 = vadd.f32 1.0, %v18183_v49  ;;  %v9442_v53 = vmul.f32 %v9440_v48, %v9434_v50  ;;  %v17647_v48 = vld [vmem:[%s19090_s17 + $0x2020] ss:$8 sps:$4 sm:$0xff]   ;;  %v17653_v49 = vld [vmem:[%s19090_s17 + $0x2014] ss:$8 sps:$4 sm:$0xff]  }
0x1cf3   : > { %v17651_v50 = vld [vmem:[%s19090_s17 + $0x2010] ss:$8 sps:$4 sm:$0xff]  }
0x1cf4   : > { %v9443_v54 = vmul.f32 %v9441_v52, %v9435_v51  ;;  %v9444_v56 = vpack.c.bf16 %v9442_v53, %v9442_v53  ;;  %v17655_v51 = vld [vmem:[%s19116_s30 + $0x1f0] sm:$0xff]   ;;  %v17658_v52 = vld [vmem:[%s19090_s17 + $0x2004] ss:$8 sps:$4 sm:$0xff]   ;;  %v17656_v53 = vld [vmem:[%s19090_s17 + $0x2000] ss:$8 sps:$4 sm:$0xff]  }
0x1cf6   : > { %v9445_v55 = vpack.c.bf16 %v9443_v54, %v9443_v54  ;;  %v17659_v54 = vld [vmem:[%s19116_s30 + $0x1b0] sm:$0xff]  }
0x1cf8   : > { %9684 = vmatprep.mubr.bf16.mxu0 %v9445_v55  ;;  %v17660_v55 = vld [vmem:[%s19116_s30 + $0x1e8] sm:$0xff]  }
0x1cf9   : > { %9685 = vmatmul.mubr.bf16.vlgmr.msra.gmra.mxu0 %v9444_v56  ;;  %v17663_v56 = vld [vmem:[%s19090_s17 + $0x20f4] ss:$8 sps:$4 sm:$0xff]  }
0x1cfa   : > { %15789 = vmatpush3.bf16.msra.mxu0 %v17654_v13  ;;  %v17683_v13 = vld [vmem:[%s19090_s17 + $0x20b4] ss:$8 sps:$4 sm:$0xff]  }
0x1cfb   : > { %15790 = vmatprep.subr.bf16.mxu0 %v17655_v51 }
0x1cfe   : > { %15791 = vmatpush3.bf16.msra.mxu0 %v17659_v54  ;;  %v17696_v54 = vld [vmem:[%s19090_s17 + $0x2170] ss:$8 sps:$4 sm:$0xff]  }
0x1cff   : > { %15792 = vmatprep.subr.bf16.mxu0 %v17660_v55 }
0x1d02   : > { %15793 = vmatpush3.bf16.msra.mxu0 %v17664_v59 }
0x1d03   : > { %15794 = vmatprep.subr.bf16.mxu0 %v17665_v60 }
0x1d06   : > { %15795 = vmatpush3.bf16.msra.mxu0 %v17669_v63 }
0x1d07   : > { %15796 = vmatprep.subr.bf16.mxu0 %v17670_v0  ;;  %v17699_v0 = vld [vmem:[%s19090_s17 + $0x2160] ss:$8 sps:$4 sm:$0xff]  }
0x1d0a   : > { %15797 = vmatpush3.bf16.msra.mxu0 %v17674_v4 }
0x1d0b   : > { %15798 = vmatprep.subr.bf16.mxu0 %v17675_v5 }
0x1d0e   : > { %15799 = vmatpush3.bf16.msra.mxu0 %v17679_v9  ;;  %v17707_v9 = vld [vmem:[%s19090_s17 + $0x2144] ss:$8 sps:$4 sm:$0xff]  }
0x1d0f   : > { %15800 = vmatprep.subr.bf16.mxu0 %v17680_v10  ;;  %v17705_v10 = vld [vmem:[%s19090_s17 + $0x2140] ss:$8 sps:$4 sm:$0xff]  }
0x1db9   : > { %v9686_v18 = vpop.f32.mrf.mxu0 }
0x1dba   : > { %v9687_v7 = vadd.f32 %v9686_v18, %v9485_v15  ;;  %v17684_v15 = vld [vmem:[%s19116_s30 + $0x188] sm:$0xff]  }
0x1dbb   : > { %v9688_v19 = vpop.f32.mrf.mxu0  ;;  %15801 = vmatpush3.bf16.msra.mxu0 %v17684_v15  ;;  %v17688_v18 = vld [vmem:[%s19090_s17 + $0x20a4] ss:$8 sps:$4 sm:$0xff]  }
0x1dbc   : > { %v9695_v57 = vmul.f32 0.70710677, %v9687_v7  ;;  %v9689_v20 = vadd.f32 %v9688_v19, %v9489_v16  ;;  %v9693_v28 = vmul.f32 0.5, %v9687_v7  ;;  %v17685_v16 = vld [vmem:[%s19116_s30 + $0x1c0] sm:$0xff]  }
0x1dbd   : > { %v9690_v21 = vpop.f32.mrf.mxu0  ;;  %v17686_v7 = vld [vmem:[%s19090_s17 + $0x20a0] ss:$8 sps:$4 sm:$0xff]   ;;  %15802 = vmatprep.subr.bf16.mxu0 %v17685_v16  ;;  %v17713_v15 = vld [vmem:[%s19090_s17 + $0x2124] ss:$8 sps:$4 sm:$0xff]  }
0x1dbe   : > { %18184 = verf.f32 %v9695_v57  ;;  %v9696_v22 = vmul.f32 0.70710677, %v9689_v20  ;;  %v9694_v29 = vmul.f32 0.5, %v9689_v20  ;;  %v17689_v19 = vld [vmem:[%s19116_s30 + $0x180] sm:$0xff]   ;;  %v17692_v57 = vld [vmem:[%s19090_s17 + $0x2094] ss:$8 sps:$4 sm:$0xff]  }
0x1dbf   : > { %v9691_v23 = vpop.f32.mrf.mxu0  ;;  %15803 = vmatpush3.bf16.msra.mxu0 %v17689_v19  ;;  %v17690_v20 = vld [vmem:[%s19090_s17 + $0x2090] ss:$8 sps:$4 sm:$0xff]   ;;  %v17695_v21 = vld [vmem:[%s19090_s17 + $0x2084] ss:$8 sps:$4 sm:$0xff]   ;;  %v17711_v16 = vld [vmem:[%s19090_s17 + $0x2120] ss:$8 sps:$4 sm:$0xff]  }
0x1dc0   : > { %18186 = verf.f32 %v9696_v22  ;;  %v17693_v22 = vld [vmem:[%s19090_s17 + $0x2080] ss:$8 sps:$4 sm:$0xff]   ;;  %v17698_v23 = vld [vmem:[%s19090_s17 + $0x2174] ss:$8 sps:$4 sm:$0xff]   ;;  %v17719_v19 = vld [vmem:[%s19090_s17 + $0x2104] ss:$8 sps:$4 sm:$0xff]  }
0x1dc1   : > { %10698 = vmatprep.subr.bf16.mxu0 %v17698_v23  ;;  %v17723_v23 = vld [vmem:[%s19090_s17 + $0x21e0] ss:$8 sps:$4 sm:$0xff]  }
0x1dcb   : > { %v18185_v24 = vpop.eup %18184 }
0x1dcc   : > { %v9699_v25 = vadd.f32 1.0, %v18185_v24  ;;  %v15037_v24 = vld [vmem:[%s19092_s22 + $0x3e] sm:$0x3] }
0x1dcd   : > { %v18187_v27 = vpop.eup %18186 }
0x1dce   : > { %v9700_v30 = vadd.f32 1.0, %v18187_v27  ;;  %v9701_v31 = vmul.f32 %v9699_v25, %v9693_v28  ;;  %v9744_v25 = vrot.slane %v15037_v24, %v19181_v11  ;;  %v9748_v27 = vrot.slane %v15037_v24, %v19183_v12  ;;  %v17728_v24 = vld [vmem:[%s19090_s17 + $0x21d4] ss:$8 sps:$4 sm:$0xff]  }
0x1dd0   : > { %v9702_v33 = vmul.f32 %v9700_v30, %v9694_v29  ;;  %v9703_v35 = vpack.c.bf16 %v9701_v31, %v9701_v31  ;;  %v15123_v31 = vld [vmem:[%s19088_s28 + $0x8] sm:$0x3] }
0x1dd2   : > { %v9704_v34 = vpack.c.bf16 %v9702_v33, %v9702_v33 }
0x1dd4   : > { %9943 = vmatprep.mubr.bf16.mxu1 %v9704_v34 }
0x1dd5   : > { %9944 = vmatmul.mubr.bf16.vlgmr.msra.gmra.mxu1 %v9703_v35 }
0x1dd6   : > { %10193 = vmatpush1.bf16.msra.mxu1 %v10175_v36  ;;  %10212 = vmatprep.mubr.bf16.mxu1 %v18687_v17  ;;  %v17638_v17 = vld [vmem:[%s19090_s17 + $0x2050] ss:$8 sps:$4 sm:$0xff]   ;;  %v10152_v36 = vrot.slane %v15123_v31, %v19181_v11 }
0x1dd7   : > { %10194 = vmatprep.subr.bf16.mxu1 %v17631_v37 }
0x1dda   : > { %10195 = vmatpush1.bf16.msra.mxu1 %v17629_v38  ;;  %v10156_v38 = vrot.slane %v15123_v31, %v19183_v12  ;;  %v17737_v31 = vld [vmem:[%s19090_s17 + $0x21a4] ss:$8 sps:$4 sm:$0xff]  }
0x1ddb   : > { %10439 = vmatprep.subr.bf16.mxu1 %v17634_v39 }
0x1ddd   : > { %15129 = vmatmul.mubr.msk.bf16.vlgmr.msra.gmra.mxu1 %vm810_vm5, %v19131_v26  ;;  %v17644_v26 = vld [vmem:[%s19090_s17 + $0x2030] ss:$8 sps:$4 sm:$0xff]  }
0x1dde   : > { %10440 = vmatpush1.bf16.msra.mxu1 %v17632_v40 }
0x1ddf   : > { %10441 = vmatprep.subr.bf16.mxu1 %v17637_v41 }
0x1de2   : > { %10442 = vmatpush1.bf16.msra.mxu1 %v17635_v42 }
0x1de3   : > { %10443 = vmatprep.subr.bf16.mxu1 %v17640_v43 }
0x1de6   : > { %10444 = vmatpush1.bf16.msra.mxu1 %v17638_v17 }
0x1de7   : > { %10445 = vmatprep.subr.bf16.mxu1 %v17643_v44 }
0x1dea   : > { %10446 = vmatpush1.bf16.msra.mxu1 %v17641_v45 }
0x1deb   : > { %10447 = vmatprep.subr.bf16.mxu1 %v17646_v46 }
0x1dee   : > { %10448 = vmatpush1.bf16.msra.mxu1 %v17644_v26 }
0x1def   : > { %10449 = vmatprep.subr.bf16.mxu1 %v17649_v47 }
0x1df2   : > { %10450 = vmatpush1.bf16.msra.mxu1 %v17647_v48 }
0x1df3   : > { %10451 = vmatprep.subr.bf16.mxu1 %v17653_v49 }
0x1df6   : > { %10452 = vmatpush1.bf16.msra.mxu1 %v17651_v50 }
0x1df7   : > { %10453 = vmatprep.subr.bf16.mxu1 %v17658_v52 }
0x1dfa   : > { %10454 = vmatpush1.bf16.msra.mxu1 %v17656_v53 }
0x1dfb   : > { %10455 = vmatprep.subr.bf16.mxu1 %v17663_v56 }
0x1dfe   : > { %10456 = vmatpush2.bf16.msra.mxu1 %v17661_v58  ;;  %v17701_v58 = vld [vmem:[%s19090_s17 + $0x2164] ss:$8 sps:$4 sm:$0xff]  }
0x1dff   : > { %10457 = vmatprep.subr.bf16.mxu1 %v17668_v61 }
0x1e02   : > { %10458 = vmatpush2.bf16.msra.mxu1 %v17666_v62 }
0x1e03   : > { %10459 = vmatprep.subr.bf16.mxu1 %v17673_v1 }
0x1e06   : > { %10460 = vmatpush2.bf16.msra.mxu1 %v17671_v2  ;;  %v17704_v2 = vld [vmem:[%s19090_s17 + $0x2154] ss:$8 sps:$4 sm:$0xff]  }
0x1e07   : > { %10461 = vmatprep.subr.bf16.mxu1 %v17678_v6  ;;  %v17702_v6 = vld [vmem:[%s19090_s17 + $0x2150] ss:$8 sps:$4 sm:$0xff]  }
0x1e0a   : > { %10462 = vmatpush2.bf16.msra.mxu1 %v17676_v8 }
0x1e0b   : > { %10463 = vmatprep.subr.bf16.mxu1 %v17683_v13  ;;  %v17710_v13 = vld [vmem:[%s19090_s17 + $0x2134] ss:$8 sps:$4 sm:$0xff]  }
0x1e0e   : > { %10464 = vmatpush2.bf16.msra.mxu1 %v17681_v14  ;;  %v17708_v14 = vld [vmem:[%s19090_s17 + $0x2130] ss:$8 sps:$4 sm:$0xff]  }
0x1e0f   : > { %10465 = vmatprep.subr.bf16.mxu1 %v17688_v18  ;;  %v17716_v18 = vld [vmem:[%s19090_s17 + $0x2114] ss:$8 sps:$4 sm:$0xff]  }
0x1e12   : > { %10466 = vmatpush2.bf16.msra.mxu1 %v17686_v7  ;;  %v17714_v7 = vld [vmem:[%s19090_s17 + $0x2110] ss:$8 sps:$4 sm:$0xff]  }
0x1e13   : > { %10467 = vmatprep.subr.bf16.mxu1 %v17692_v57  ;;  %v17717_v57 = vld [vmem:[%s19090_s17 + $0x2100] ss:$8 sps:$4 sm:$0xff]  }
0x1e16   : > { %10468 = vmatpush2.bf16.msra.mxu1 %v17690_v20  ;;  %v17722_v20 = vld [vmem:[%s19090_s17 + $0x21f4] ss:$8 sps:$4 sm:$0xff]  }
0x1e17   : > { %10469 = vmatprep.subr.bf16.mxu1 %v17695_v21  ;;  %v17720_v21 = vld [vmem:[%s19090_s17 + $0x21f0] ss:$8 sps:$4 sm:$0xff]  }
0x1e1a   : > { %10470 = vmatpush2.bf16.msra.mxu1 %v17693_v22  ;;  %v17725_v22 = vld [vmem:[%s19090_s17 + $0x21e4] ss:$8 sps:$4 sm:$0xff]  }
0x1e95   : > { %v9945_v28 = vpop.f32.mrf.mxu1 }
0x1e96   : > { %v9946_v29 = vadd.f32 %v9945_v28, %v9744_v25  ;;  %v17726_v25 = vld [vmem:[%s19090_s17 + $0x21d0] ss:$8 sps:$4 sm:$0xff]   ;;  %v17729_v28 = vld [vmem:[%s19090_s17 + $0x21c0] ss:$8 sps:$4 sm:$0xff]  }
0x1e97   : > { %v9947_v30 = vpop.f32.mrf.mxu1 }
0x1e98   : > { %v9954_v32 = vmul.f32 0.70710677, %v9946_v29  ;;  %v9948_v33 = vadd.f32 %v9947_v30, %v9748_v27  ;;  %v9952_v48 = vmul.f32 0.5, %v9946_v29  ;;  %v17731_v27 = vld [vmem:[%s19090_s17 + $0x21c4] ss:$8 sps:$4 sm:$0xff]  }
0x1e99   : > { %v9949_v34 = vpop.f32.mrf.mxu1  ;;  %v17734_v29 = vld [vmem:[%s19090_s17 + $0x21b4] ss:$8 sps:$4 sm:$0xff]   ;;  %v17732_v30 = vld [vmem:[%s19090_s17 + $0x21b0] ss:$8 sps:$4 sm:$0xff]  }
0x1e9a   : > { %18188 = verf.f32 %v9954_v32  ;;  %v9955_v35 = vmul.f32 0.70710677, %v9948_v33  ;;  %v9953_v49 = vmul.f32 0.5, %v9948_v33  ;;  %v17735_v32 = vld [vmem:[%s19090_s17 + $0x21a0] ss:$8 sps:$4 sm:$0xff]  }
0x1e9b   : > { %v9950_v37 = vpop.f32.mrf.mxu1  ;;  %v17740_v33 = vld [vmem:[%s19090_s17 + $0x2194] ss:$8 sps:$4 sm:$0xff]   ;;  %v17738_v34 = vld [vmem:[%s19090_s17 + $0x2190] ss:$8 sps:$4 sm:$0xff]  }
0x1e9c   : > { %18190 = verf.f32 %v9955_v35  ;;  %v17743_v35 = vld [vmem:[%s19090_s17 + $0x2184] ss:$8 sps:$4 sm:$0xff]   ;;  %v17744_v37 = vld [vmem:[%s19090_s17 + $0x2270] ss:$8 sps:$4 sm:$0xff]  }
0x1e9d   : > { %v10214_v39 = vpop.f32.mrf.mxu1 }
0x1e9e   : > { %v10215_v40 = vadd.f32 %v10214_v39, %v10152_v36  ;;  %v17741_v36 = vld [vmem:[%s19090_s17 + $0x2180] ss:$8 sps:$4 sm:$0xff]   ;;  %v17749_v39 = vld [vmem:[%s19090_s17 + $0x2264] ss:$8 sps:$4 sm:$0xff]  }
0x1e9f   : > { %v10216_v41 = vpop.f32.mrf.mxu1 }
0x1ea0   : > { %v10223_v42 = vmul.f32 0.70710677, %v10215_v40  ;;  %v10217_v43 = vadd.f32 %v10216_v41, %v10156_v38  ;;  %v10221_v61 = vmul.f32 0.5, %v10215_v40  ;;  %v17746_v38 = vld [vmem:[%s19090_s17 + $0x2274] ss:$8 sps:$4 sm:$0xff]  }
0x1ea1   : > { %v10218_v17 = vpop.f32.mrf.mxu1  ;;  %10957 = vmatprep.subr.bf16.mxu1 %v17746_v38  ;;  %v17747_v40 = vld [vmem:[%s19090_s17 + $0x2260] ss:$8 sps:$4 sm:$0xff]   ;;  %v17752_v41 = vld [vmem:[%s19090_s17 + $0x2254] ss:$8 sps:$4 sm:$0xff]   ;;  %v17797_v38 = vld [vmem:[%s19090_s17 + $0x2364] ss:$8 sps:$4 sm:$0xff]  }
0x1ea2   : > { %18192 = verf.f32 %v10223_v42  ;;  %v10224_v44 = vmul.f32 0.70710677, %v10217_v43  ;;  %v10222_v62 = vmul.f32 0.5, %v10217_v43  ;;  %v17750_v42 = vld [vmem:[%s19090_s17 + $0x2250] ss:$8 sps:$4 sm:$0xff]  }
0x1ea3   : > { %v10219_v45 = vpop.f32.mrf.mxu1  ;;  %v17755_v43 = vld [vmem:[%s19090_s17 + $0x2244] ss:$8 sps:$4 sm:$0xff]   ;;  %v17753_v17 = vld [vmem:[%s19090_s17 + $0x2240] ss:$8 sps:$4 sm:$0xff]  }
0x1ea4   : > { %18194 = verf.f32 %v10224_v44  ;;  %v17758_v44 = vld [vmem:[%s19090_s17 + $0x2234] ss:$8 sps:$4 sm:$0xff]   ;;  %v17756_v45 = vld [vmem:[%s19090_s17 + $0x2230] ss:$8 sps:$4 sm:$0xff]  }
0x1ea7   : > { %v18189_v46 = vpop.eup %18188 }
0x1ea8   : > { %v9958_v26 = vadd.f32 1.0, %v18189_v46  ;;  %v17761_v46 = vld [vmem:[%s19090_s17 + $0x2224] ss:$8 sps:$4 sm:$0xff]  }
0x1ea9   : > { %v18191_v47 = vpop.eup %18190 }
0x1eaa   : > { %v9959_v50 = vadd.f32 1.0, %v18191_v47  ;;  %v9960_v51 = vmul.f32 %v9958_v26, %v9952_v48  ;;  %v17759_v26 = vld [vmem:[%s19090_s17 + $0x2220] ss:$8 sps:$4 sm:$0xff]   ;;  %v17764_v47 = vld [vmem:[%s19090_s17 + $0x2214] ss:$8 sps:$4 sm:$0xff]  }
0x1eab   : > { %v17762_v48 = vld [vmem:[%s19090_s17 + $0x2210] ss:$8 sps:$4 sm:$0xff]  }
0x1eac   : > { %v9961_v52 = vmul.f32 %v9959_v50, %v9953_v49  ;;  %v9962_v56 = vpack.c.bf16 %v9960_v51, %v9960_v51  ;;  %v17767_v49 = vld [vmem:[%s19090_s17 + $0x2204] ss:$8 sps:$4 sm:$0xff]   ;;  %v17765_v50 = vld [vmem:[%s19090_s17 + $0x2200] ss:$8 sps:$4 sm:$0xff]   ;;  %v17770_v51 = vld [vmem:[%s19090_s17 + $0x22f4] ss:$8 sps:$4 sm:$0xff]  }
0x1eae   : > { %v9963_v53 = vpack.c.bf16 %v9961_v52, %v9961_v52  ;;  %v17768_v52 = vld [vmem:[%s19090_s17 + $0x22f0] ss:$8 sps:$4 sm:$0xff]  }
0x1eaf   : > { %v18193_v55 = vpop.eup %18192 }
0x1eb0   : > { %v10227_v59 = vadd.f32 1.0, %v18193_v55  ;;  %10133 = vmatprep.mubr.bf16.mxu0 %v9963_v53 }
0x1eb1   : > { %v18195_v60 = vpop.eup %18194  ;;  %10134 = vmatmul.mubr.bf16.vlgmr.msra.gmra.mxu0 %v9962_v56  ;;  %v15162_v56 = vld [vmem:[%s19092_s22 + $0x40] sm:$0x3] }
0x1eb2   : > { %v10228_v63 = vadd.f32 1.0, %v18195_v60  ;;  %10699 = vmatpush1.bf16.msra.mxu0 %v17696_v54  ;;  %v10229_v1 = vmul.f32 %v10227_v59, %v10221_v61  ;;  %v15103_v54 = vld [vmem:[%s19094_s18 + $0x3] ss:$0 sm:$0xff]  ;;  %v10272_v61 = vrot.slane %v15162_v56, %v19181_v11 }
0x1eb3   : > { %10700 = vmatprep.subr.bf16.mxu0 %v17701_v58 }
0x1eb4   : > { %v10230_v4 = vmul.f32 %v10228_v63, %v10222_v62  ;;  %v10231_v8 = vpack.c.bf16 %v10229_v1, %v10229_v1 }
0x1eb6   : > { %v10232_v5 = vpack.c.bf16 %v10230_v4, %v10230_v4  ;;  %10701 = vmatpush1.bf16.msra.mxu0 %v17699_v0  ;;  %v10276_v0 = vrot.slane %v15162_v56, %v19183_v12 }
0x1eb7   : > { %10702 = vmatprep.subr.bf16.mxu0 %v17704_v2 }
0x1eb8   : > { %10471 = vmatprep.mubr.bf16.mxu1 %v10232_v5 }
0x1eb9   : > { %10472 = vmatmul.mubr.bf16.vlgmr.msra.gmra.mxu1 %v10231_v8 }
0x1eba   : > { %10703 = vmatpush1.bf16.msra.mxu0 %v17702_v6  ;;  %10958 = vmatpush1.bf16.msra.mxu1 %v17744_v37  ;;  %v17794_v37 = vld [vmem:[%s19090_s17 + $0x2374] ss:$8 sps:$4 sm:$0xff]  }
0x1ebb   : > { %10704 = vmatprep.subr.bf16.mxu0 %v17707_v9  ;;  %10959 = vmatprep.subr.bf16.mxu1 %v17749_v39  ;;  %v17795_v39 = vld [vmem:[%s19090_s17 + $0x2360] ss:$8 sps:$4 sm:$0xff]  }
0x1ebe   : > { %10705 = vmatpush1.bf16.msra.mxu0 %v17705_v10  ;;  %10960 = vmatpush1.bf16.msra.mxu1 %v17747_v40  ;;  %v17800_v40 = vld [vmem:[%s19090_s17 + $0x2354] ss:$8 sps:$4 sm:$0xff]  }
0x1ebf   : > { %10706 = vmatprep.subr.bf16.mxu0 %v17710_v13  ;;  %10961 = vmatprep.subr.bf16.mxu1 %v17752_v41  ;;  %v17798_v41 = vld [vmem:[%s19090_s17 + $0x2350] ss:$8 sps:$4 sm:$0xff]  }
0x1ec2   : > { %10707 = vmatpush1.bf16.msra.mxu0 %v17708_v14  ;;  %10962 = vmatpush1.bf16.msra.mxu1 %v17750_v42  ;;  %v17803_v42 = vld [vmem:[%s19090_s17 + $0x2344] ss:$8 sps:$4 sm:$0xff]  }
0x1ec3   : > { %10708 = vmatprep.subr.bf16.mxu0 %v17713_v15  ;;  %10963 = vmatprep.subr.bf16.mxu1 %v17755_v43  ;;  %v17801_v43 = vld [vmem:[%s19090_s17 + $0x2340] ss:$8 sps:$4 sm:$0xff]  }
0x1ec6   : > { %10709 = vmatpush1.bf16.msra.mxu0 %v17711_v16  ;;  %10964 = vmatpush1.bf16.msra.mxu1 %v17753_v17  ;;  %v17806_v17 = vld [vmem:[%s19090_s17 + $0x2334] ss:$8 sps:$4 sm:$0xff]  }
0x1ec7   : > { %10710 = vmatprep.subr.bf16.mxu0 %v17716_v18  ;;  %10965 = vmatprep.subr.bf16.mxu1 %v17758_v44  ;;  %v17804_v44 = vld [vmem:[%s19090_s17 + $0x2330] ss:$8 sps:$4 sm:$0xff]  }
0x1eca   : > { %10711 = vmatpush1.bf16.msra.mxu0 %v17714_v7  ;;  %10966 = vmatpush1.bf16.msra.mxu1 %v17756_v45  ;;  %v17809_v45 = vld [vmem:[%s19090_s17 + $0x2324] ss:$8 sps:$4 sm:$0xff]  }
0x1ecb   : > { %10712 = vmatprep.subr.bf16.mxu0 %v17719_v19  ;;  %10967 = vmatprep.subr.bf16.mxu1 %v17761_v46  ;;  %v17807_v46 = vld [vmem:[%s19090_s17 + $0x2320] ss:$8 sps:$4 sm:$0xff]  }
0x1ece   : > { %10713 = vmatpush1.bf16.msra.mxu0 %v17717_v57  ;;  %10968 = vmatpush1.bf16.msra.mxu1 %v17759_v26  ;;  %v17812_v26 = vld [vmem:[%s19090_s17 + $0x2314] ss:$8 sps:$4 sm:$0xff]  }
0x1ecf   : > { %10714 = vmatprep.subr.bf16.mxu0 %v17722_v20  ;;  %10969 = vmatprep.subr.bf16.mxu1 %v17764_v47  ;;  %v17810_v47 = vld [vmem:[%s19090_s17 + $0x2310] ss:$8 sps:$4 sm:$0xff]  }
0x1ed2   : > { %10715 = vmatpush2.bf16.msra.mxu0 %v17720_v21  ;;  %10970 = vmatpush1.bf16.msra.mxu1 %v17762_v48  ;;  %v17773_v21 = vld [vmem:[%s19090_s17 + $0x22e4] ss:$8 sps:$4 sm:$0xff]  }
0x1ed3   : > { %10716 = vmatprep.subr.bf16.mxu0 %v17725_v22  ;;  %10971 = vmatprep.subr.bf16.mxu1 %v17767_v49  ;;  %v17771_v22 = vld [vmem:[%s19090_s17 + $0x22e0] ss:$8 sps:$4 sm:$0xff]   ;;  %v17815_v48 = vld [vmem:[%s19090_s17 + $0x2304] ss:$8 sps:$4 sm:$0xff]  }
0x1ed4   : > { %v17813_v49 = vld [vmem:[%s19090_s17 + $0x2300] ss:$8 sps:$4 sm:$0xff]  }
0x1ed6   : > { %10717 = vmatpush2.bf16.msra.mxu0 %v17723_v23  ;;  %10972 = vmatpush1.bf16.msra.mxu1 %v17765_v50  ;;  %v17776_v23 = vld [vmem:[%s19090_s17 + $0x22d4] ss:$8 sps:$4 sm:$0xff]  }
0x1ed7   : > { %10718 = vmatprep.subr.bf16.mxu0 %v17728_v24  ;;  %10973 = vmatprep.subr.bf16.mxu1 %v17770_v51  ;;  %v17774_v24 = vld [vmem:[%s19090_s17 + $0x22d0] ss:$8 sps:$4 sm:$0xff]   ;;  %v17818_v50 = vld [vmem:[%s19090_s17 + $0x23f4] ss:$8 sps:$4 sm:$0xff]  }
0x1ed8   : > { %v17816_v51 = vld [vmem:[%s19090_s17 + $0x23f0] ss:$8 sps:$4 sm:$0xff]  }
0x1eda   : > { %10719 = vmatpush2.bf16.msra.mxu0 %v17726_v25  ;;  %10974 = vmatpush2.bf16.msra.mxu1 %v17768_v52  ;;  %v17779_v25 = vld [vmem:[%s19090_s17 + $0x22c4] ss:$8 sps:$4 sm:$0xff]   ;;  %v15227_v52 = vld [vmem:[%s19092_s22 + $0x42] sm:$0x3] }
0x1edb   : > { %10720 = vmatprep.subr.bf16.mxu0 %v17731_v27  ;;  %10975 = vmatprep.subr.bf16.mxu1 %v17773_v21  ;;  %v17777_v27 = vld [vmem:[%s19090_s17 + $0x22c0] ss:$8 sps:$4 sm:$0xff]   ;;  %v17833_v21 = vld [vmem:[%s19090_s17 + $0x23a4] ss:$8 sps:$4 sm:$0xff]  }
0x1ede   : > { %10721 = vmatpush2.bf16.msra.mxu0 %v17729_v28  ;;  %10976 = vmatpush2.bf16.msra.mxu1 %v17771_v22  ;;  %v17782_v28 = vld [vmem:[%s19090_s17 + $0x22b4] ss:$8 sps:$4 sm:$0xff]   ;;  %v17831_v22 = vld [vmem:[%s19090_s17 + $0x23a0] ss:$8 sps:$4 sm:$0xff]  }
0x1edf   : > { %10722 = vmatprep.subr.bf16.mxu0 %v17734_v29  ;;  %10977 = vmatprep.subr.bf16.mxu1 %v17776_v23  ;;  %v17780_v29 = vld [vmem:[%s19090_s17 + $0x22b0] ss:$8 sps:$4 sm:$0xff]   ;;  %v17836_v23 = vld [vmem:[%s19090_s17 + $0x2394] ss:$8 sps:$4 sm:$0xff]  }
0x1ee2   : > { %10723 = vmatpush2.bf16.msra.mxu0 %v17732_v30  ;;  %10978 = vmatpush2.bf16.msra.mxu1 %v17774_v24  ;;  %v17785_v30 = vld [vmem:[%s19090_s17 + $0x22a4] ss:$8 sps:$4 sm:$0xff]   ;;  %v17834_v24 = vld [vmem:[%s19090_s17 + $0x2390] ss:$8 sps:$4 sm:$0xff]  }
0x1ee3   : > { %10724 = vmatprep.subr.bf16.mxu0 %v17737_v31  ;;  %10979 = vmatprep.subr.bf16.mxu1 %v17779_v25  ;;  %v17783_v31 = vld [vmem:[%s19090_s17 + $0x22a0] ss:$8 sps:$4 sm:$0xff]   ;;  %v17839_v25 = vld [vmem:[%s19090_s17 + $0x2384] ss:$8 sps:$4 sm:$0xff]  }
0x1ee6   : > { %10725 = vmatpush2.bf16.msra.mxu0 %v17735_v32  ;;  %10980 = vmatpush2.bf16.msra.mxu1 %v17777_v27  ;;  %v17788_v32 = vld [vmem:[%s19090_s17 + $0x2294] ss:$8 sps:$4 sm:$0xff]   ;;  %v17837_v27 = vld [vmem:[%s19090_s17 + $0x2380] ss:$8 sps:$4 sm:$0xff]  }
0x1ee7   : > { %10726 = vmatprep.subr.bf16.mxu0 %v17740_v33  ;;  %10981 = vmatprep.subr.bf16.mxu1 %v17782_v28  ;;  %v17786_v33 = vld [vmem:[%s19090_s17 + $0x2290] ss:$8 sps:$4 sm:$0xff]  }
0x1ee8   : > { %v17840_v28 = vld [vmem:[%s19090_s17 + $0x2470] ss:$8 sps:$4 sm:$0xff]  }
0x1eea   : > { %10727 = vmatpush2.bf16.msra.mxu0 %v17738_v34  ;;  %10982 = vmatpush2.bf16.msra.mxu1 %v17780_v29  ;;  %v17791_v34 = vld [vmem:[%s19090_s17 + $0x2284] ss:$8 sps:$4 sm:$0xff]   ;;  %v17842_v29 = vld [vmem:[%s19090_s17 + $0x2474] ss:$8 sps:$4 sm:$0xff]  }
0x1eeb   : > { %10728 = vmatprep.subr.bf16.mxu0 %v17743_v35  ;;  %10983 = vmatprep.subr.bf16.mxu1 %v17785_v30  ;;  %v17789_v35 = vld [vmem:[%s19090_s17 + $0x2280] ss:$8 sps:$4 sm:$0xff]   ;;  %v17845_v30 = vld [vmem:[%s19090_s17 + $0x2464] ss:$8 sps:$4 sm:$0xff]  }
0x1eee   : > { %10729 = vmatpush2.bf16.msra.mxu0 %v17741_v36  ;;  %10984 = vmatpush2.bf16.msra.mxu1 %v17783_v31  ;;  %v17792_v36 = vld [vmem:[%s19090_s17 + $0x2370] ss:$8 sps:$4 sm:$0xff]   ;;  %v17843_v31 = vld [vmem:[%s19090_s17 + $0x2460] ss:$8 sps:$4 sm:$0xff]  }
0x1eef   : > { %10985 = vmatprep.subr.bf16.mxu1 %v17788_v32  ;;  %11216 = vmatprep.subr.bf16.mxu0 %v17794_v37  ;;  %v17848_v32 = vld [vmem:[%s19090_s17 + $0x2454] ss:$8 sps:$4 sm:$0xff]   ;;  %v17852_v37 = vld [vmem:[%s19090_s17 + $0x2430] ss:$8 sps:$4 sm:$0xff]  }
0x1ef2   : > { %10986 = vmatpush2.bf16.msra.mxu1 %v17786_v33  ;;  %v17846_v33 = vld [vmem:[%s19090_s17 + $0x2450] ss:$8 sps:$4 sm:$0xff]  }
0x1ef3   : > { %10987 = vmatprep.subr.bf16.mxu1 %v17791_v34  ;;  %v17851_v34 = vld [vmem:[%s19090_s17 + $0x2444] ss:$8 sps:$4 sm:$0xff]  }
0x1ef6   : > { %10988 = vmatpush2.bf16.msra.mxu1 %v17789_v35  ;;  %v17849_v35 = vld [vmem:[%s19090_s17 + $0x2440] ss:$8 sps:$4 sm:$0xff]  }
0x1ef7   : > { %11475 = vmatprep.subr.bf16.mxu1 %v17842_v29  ;;  %v17900_v29 = vld [vmem:[%s19090_s17 + $0x2530] ss:$8 sps:$4 sm:$0xff]  }
0x1f71   : > { %v15804_v53 = vpop.f32.mrf.mxu0 }
0x1f73   : > { %v15805_v55 = vpop.f32.mrf.mxu0 }
0x1f74   : > { %v15806_v58 = vadd.f32 %v15805_v55, %v15804_v53  ;;  %v10531_v53 = vrot.slane %v15227_v52, %v19181_v11 }
0x1f75   : > { %v15807_v59 = vpop.f32.mrf.mxu0 }
0x1f76   : > { %v10136_v60 = vadd.f32 %v15806_v58, %v15103_v54  ;;  %v10535_v54 = vrot.slane %v15227_v52, %v19183_v12 }
0x1f77   : > { %v15808_v62 = vpop.f32.mrf.mxu0 }
0x1f78   : > { %v20462_v63 = vadd.f32 %v10136_v60, %v20151_v3 }
0x1f79   : > { %v10473_v1 = vpop.f32.mrf.mxu1 }
0x1f7a   : > { %v10474_v2 = vadd.f32 %v10473_v1, %v10272_v61 }
0x1f7b   : > { %v10475_v4 = vpop.f32.mrf.mxu1 }
0x1f7c   : > { %v10482_v5 = vmul.f32 0.70710677, %v10474_v2  ;;  %v10476_v6 = vadd.f32 %v10475_v4, %v10276_v0  ;;  %v10480_v15 = vmul.f32 0.5, %v10474_v2 }
0x1f7d   : > { %v10477_v8 = vpop.f32.mrf.mxu1 }
0x1f7e   : > { %18196 = verf.f32 %v10482_v5  ;;  %v10483_v9 = vmul.f32 0.70710677, %v10476_v6  ;;  %v10481_v16 = vmul.f32 0.5, %v10476_v6 }
0x1f7f   : > { %v10478_v10 = vpop.f32.mrf.mxu1 }
0x1f80   : > { %18198 = verf.f32 %v10483_v9 }
0x1f8b   : > { %v18197_v13 = vpop.eup %18196 }
0x1f8c   : > { %v10486_v14 = vadd.f32 1.0, %v18197_v13 }
0x1f8d   : > { %v18199_v3 = vpop.eup %18198 }
0x1f8e   : > { %v10487_v18 = vadd.f32 1.0, %v18199_v3  ;;  %v10488_v7 = vmul.f32 %v10486_v14, %v10480_v15  ;;  %v17821_v3 = vld [vmem:[%s19090_s17 + $0x23e4] ss:$8 sps:$4 sm:$0xff]   ;;  %v17819_v15 = vld [vmem:[%s19090_s17 + $0x23e0] ss:$8 sps:$4 sm:$0xff]  }
0x1f90   : > { %v10489_v19 = vmul.f32 %v10487_v18, %v10481_v16  ;;  %v10490_v20 = vpack.c.bf16 %v10488_v7, %v10488_v7  ;;  %v17824_v16 = vld [vmem:[%s19090_s17 + $0x23d4] ss:$8 sps:$4 sm:$0xff]   ;;  %v17822_v18 = vld [vmem:[%s19090_s17 + $0x23d0] ss:$8 sps:$4 sm:$0xff]   ;;  %v17827_v7 = vld [vmem:[%s19090_s17 + $0x23c4] ss:$8 sps:$4 sm:$0xff]  }
0x1f92   : > { %v10491_v57 = vpack.c.bf16 %v10489_v19, %v10489_v19  ;;  %v17825_v19 = vld [vmem:[%s19090_s17 + $0x23c0] ss:$8 sps:$4 sm:$0xff]  }
0x1f94   : > { %10730 = vmatprep.mubr.bf16.mxu0 %v10491_v57  ;;  %v17830_v57 = vld [vmem:[%s19090_s17 + $0x23b4] ss:$8 sps:$4 sm:$0xff]  }
0x1f95   : > { %10731 = vmatmul.mubr.bf16.vlgmr.msra.gmra.mxu0 %v10490_v20  ;;  %v17828_v20 = vld [vmem:[%s19090_s17 + $0x23b0] ss:$8 sps:$4 sm:$0xff]  }
0x1f96   : > { %11217 = vmatpush1.bf16.msra.mxu0 %v17792_v36  ;;  %v17854_v36 = vld [vmem:[%s19090_s17 + $0x2434] ss:$8 sps:$4 sm:$0xff]  }
0x1f97   : > { %11218 = vmatprep.subr.bf16.mxu0 %v17797_v38  ;;  %v17857_v38 = vld [vmem:[%s19090_s17 + $0x2424] ss:$8 sps:$4 sm:$0xff]  }
0x1f9a   : > { %11219 = vmatpush1.bf16.msra.mxu0 %v17795_v39  ;;  %v17855_v39 = vld [vmem:[%s19090_s17 + $0x2420] ss:$8 sps:$4 sm:$0xff]  }
0x1f9b   : > { %11220 = vmatprep.subr.bf16.mxu0 %v17800_v40  ;;  %v17860_v40 = vld [vmem:[%s19090_s17 + $0x2414] ss:$8 sps:$4 sm:$0xff]  }
0x1f9e   : > { %11221 = vmatpush1.bf16.msra.mxu0 %v17798_v41  ;;  %v17858_v41 = vld [vmem:[%s19090_s17 + $0x2410] ss:$8 sps:$4 sm:$0xff]  }
0x1f9f   : > { %11222 = vmatprep.subr.bf16.mxu0 %v17803_v42  ;;  %v17863_v42 = vld [vmem:[%s19090_s17 + $0x2404] ss:$8 sps:$4 sm:$0xff]  }
0x1fa2   : > { %11223 = vmatpush1.bf16.msra.mxu0 %v17801_v43  ;;  %v17861_v43 = vld [vmem:[%s19090_s17 + $0x2400] ss:$8 sps:$4 sm:$0xff]  }
0x1fa3   : > { %11224 = vmatprep.subr.bf16.mxu0 %v17806_v17  ;;  %v17866_v17 = vld [vmem:[%s19090_s17 + $0x24f4] ss:$8 sps:$4 sm:$0xff]  }
0x1fa6   : > { %11225 = vmatpush1.bf16.msra.mxu0 %v17804_v44  ;;  %v17864_v44 = vld [vmem:[%s19090_s17 + $0x24f0] ss:$8 sps:$4 sm:$0xff]  }
0x1fa7   : > { %11226 = vmatprep.subr.bf16.mxu0 %v17809_v45  ;;  %v15292_v45 = vld [vmem:[%s19092_s22 + $0x44] sm:$0x3] }
0x1faa   : > { %11227 = vmatpush1.bf16.msra.mxu0 %v17807_v46  ;;  %v10790_v46 = vrot.slane %v15292_v45, %v19181_v11 }
0x1fab   : > { %11228 = vmatprep.subr.bf16.mxu0 %v17812_v26  ;;  %v10794_v26 = vrot.slane %v15292_v45, %v19183_v12 }
0x1fae   : > { %11229 = vmatpush1.bf16.msra.mxu0 %v17810_v47 }
0x1faf   : > { %11230 = vmatprep.subr.bf16.mxu0 %v17815_v48 }
0x1fb2   : > { %11231 = vmatpush1.bf16.msra.mxu0 %v17813_v49 }
0x1fb3   : > { %11232 = vmatprep.subr.bf16.mxu0 %v17818_v50 }
0x1fb6   : > { %11233 = vmatpush2.bf16.msra.mxu0 %v17816_v51 }
0x1fb7   : > { %11234 = vmatprep.subr.bf16.mxu0 %v17821_v3  ;;  %v17881_v3 = vld [vmem:[%s19090_s17 + $0x24a4] ss:$8 sps:$4 sm:$0xff]  }
0x1fba   : > { %11235 = vmatpush2.bf16.msra.mxu0 %v17819_v15  ;;  %v17879_v15 = vld [vmem:[%s19090_s17 + $0x24a0] ss:$8 sps:$4 sm:$0xff]  }
0x1fbb   : > { %11236 = vmatprep.subr.bf16.mxu0 %v17824_v16  ;;  %v17884_v16 = vld [vmem:[%s19090_s17 + $0x2494] ss:$8 sps:$4 sm:$0xff]  }
0x1fbe   : > { %11237 = vmatpush2.bf16.msra.mxu0 %v17822_v18  ;;  %v17882_v18 = vld [vmem:[%s19090_s17 + $0x2490] ss:$8 sps:$4 sm:$0xff]  }
0x1fbf   : > { %11238 = vmatprep.subr.bf16.mxu0 %v17827_v7  ;;  %v17887_v7 = vld [vmem:[%s19090_s17 + $0x2484] ss:$8 sps:$4 sm:$0xff]  }
0x1fc2   : > { %11239 = vmatpush2.bf16.msra.mxu0 %v17825_v19  ;;  %v17885_v19 = vld [vmem:[%s19090_s17 + $0x2480] ss:$8 sps:$4 sm:$0xff]  }
0x1fc3   : > { %11240 = vmatprep.subr.bf16.mxu0 %v17830_v57  ;;  %v17888_v57 = vld [vmem:[%s19090_s17 + $0x2570] ss:$8 sps:$4 sm:$0xff]  }
0x1fc6   : > { %11241 = vmatpush2.bf16.msra.mxu0 %v17828_v20  ;;  %v17890_v20 = vld [vmem:[%s19090_s17 + $0x2574] ss:$8 sps:$4 sm:$0xff]  }
0x1fc7   : > { %11242 = vmatprep.subr.bf16.mxu0 %v17833_v21  ;;  %v17893_v21 = vld [vmem:[%s19090_s17 + $0x2564] ss:$8 sps:$4 sm:$0xff]  }
0x1fca   : > { %11243 = vmatpush2.bf16.msra.mxu0 %v17831_v22  ;;  %v17891_v22 = vld [vmem:[%s19090_s17 + $0x2560] ss:$8 sps:$4 sm:$0xff]  }
0x1fcb   : > { %11244 = vmatprep.subr.bf16.mxu0 %v17836_v23  ;;  %v17896_v23 = vld [vmem:[%s19090_s17 + $0x2554] ss:$8 sps:$4 sm:$0xff]  }
0x1fce   : > { %11245 = vmatpush2.bf16.msra.mxu0 %v17834_v24  ;;  %v17894_v24 = vld [vmem:[%s19090_s17 + $0x2550] ss:$8 sps:$4 sm:$0xff]  }
0x1fcf   : > { %11246 = vmatprep.subr.bf16.mxu0 %v17839_v25  ;;  %v17899_v25 = vld [vmem:[%s19090_s17 + $0x2544] ss:$8 sps:$4 sm:$0xff]  }
0x1fd2   : > { %11247 = vmatpush2.bf16.msra.mxu0 %v17837_v27  ;;  %v17897_v27 = vld [vmem:[%s19090_s17 + $0x2540] ss:$8 sps:$4 sm:$0xff]  }
0x1fd3   : > { %11734 = vmatprep.subr.bf16.mxu0 %v17890_v20  ;;  %v17948_v20 = vld [vmem:[%s19090_s17 + $0x2630] ss:$8 sps:$4 sm:$0xff]  }
0x2055   : > { %v10732_v55 = vpop.f32.mrf.mxu0 }
0x2056   : > { %v10733_v56 = vadd.f32 %v10732_v55, %v10531_v53 }
0x2057   : > { %v10734_v58 = vpop.f32.mrf.mxu0 }
0x2058   : > { %v10741_v59 = vmul.f32 0.70710677, %v10733_v56  ;;  %v10735_v60 = vadd.f32 %v10734_v58, %v10535_v54  ;;  %v10739_v5 = vmul.f32 0.5, %v10733_v56 }
0x2059   : > { %v10736_v61 = vpop.f32.mrf.mxu0 }
0x205a   : > { %18200 = verf.f32 %v10741_v59  ;;  %v10742_v62 = vmul.f32 0.70710677, %v10735_v60  ;;  %v10740_v6 = vmul.f32 0.5, %v10735_v60 }
0x205b   : > { %v10737_v0 = vpop.f32.mrf.mxu0 }
0x205c   : > { %18202 = verf.f32 %v10742_v62 }
0x2067   : > { %v18201_v1 = vpop.eup %18200 }
0x2068   : > { %v10745_v2 = vadd.f32 1.0, %v18201_v1 }
0x2069   : > { %v18203_v4 = vpop.eup %18202 }
0x206a   : > { %v10746_v8 = vadd.f32 1.0, %v18203_v4  ;;  %v10747_v9 = vmul.f32 %v10745_v2, %v10739_v5  ;;  %v17869_v4 = vld [vmem:[%s19090_s17 + $0x24e4] ss:$8 sps:$4 sm:$0xff]   ;;  %v17867_v5 = vld [vmem:[%s19090_s17 + $0x24e0] ss:$8 sps:$4 sm:$0xff]  }
0x206c   : > { %v10748_v10 = vmul.f32 %v10746_v8, %v10740_v6  ;;  %v10749_v14 = vpack.c.bf16 %v10747_v9, %v10747_v9  ;;  %v17872_v6 = vld [vmem:[%s19090_s17 + $0x24d4] ss:$8 sps:$4 sm:$0xff]   ;;  %v17870_v8 = vld [vmem:[%s19090_s17 + $0x24d0] ss:$8 sps:$4 sm:$0xff]   ;;  %v17875_v9 = vld [vmem:[%s19090_s17 + $0x24c4] ss:$8 sps:$4 sm:$0xff]  }
0x206e   : > { %v10750_v13 = vpack.c.bf16 %v10748_v10, %v10748_v10  ;;  %v17873_v10 = vld [vmem:[%s19090_s17 + $0x24c0] ss:$8 sps:$4 sm:$0xff]  }
0x2070   : > { %10989 = vmatprep.mubr.bf16.mxu1 %v10750_v13  ;;  %v17878_v13 = vld [vmem:[%s19090_s17 + $0x24b4] ss:$8 sps:$4 sm:$0xff]  }
0x2071   : > { %10990 = vmatmul.mubr.bf16.vlgmr.msra.gmra.mxu1 %v10749_v14  ;;  %v17876_v14 = vld [vmem:[%s19090_s17 + $0x24b0] ss:$8 sps:$4 sm:$0xff]  }
0x2072   : > { %11476 = vmatpush1.bf16.msra.mxu1 %v17840_v28  ;;  %v17902_v28 = vld [vmem:[%s19090_s17 + $0x2534] ss:$8 sps:$4 sm:$0xff]  }
0x2073   : > { %11477 = vmatprep.subr.bf16.mxu1 %v17845_v30  ;;  %v17905_v30 = vld [vmem:[%s19090_s17 + $0x2524] ss:$8 sps:$4 sm:$0xff]  }
0x2076   : > { %11478 = vmatpush1.bf16.msra.mxu1 %v17843_v31  ;;  %v17903_v31 = vld [vmem:[%s19090_s17 + $0x2520] ss:$8 sps:$4 sm:$0xff]  }
0x2077   : > { %11479 = vmatprep.subr.bf16.mxu1 %v17848_v32  ;;  %v17908_v32 = vld [vmem:[%s19090_s17 + $0x2514] ss:$8 sps:$4 sm:$0xff]  }
0x207a   : > { %11480 = vmatpush1.bf16.msra.mxu1 %v17846_v33  ;;  %v17906_v33 = vld [vmem:[%s19090_s17 + $0x2510] ss:$8 sps:$4 sm:$0xff]  }
0x207b   : > { %11481 = vmatprep.subr.bf16.mxu1 %v17851_v34  ;;  %v17911_v34 = vld [vmem:[%s19090_s17 + $0x2504] ss:$8 sps:$4 sm:$0xff]  }
0x207e   : > { %11482 = vmatpush1.bf16.msra.mxu1 %v17849_v35  ;;  %v17909_v35 = vld [vmem:[%s19090_s17 + $0x2500] ss:$8 sps:$4 sm:$0xff]  }
0x207f   : > { %11483 = vmatprep.subr.bf16.mxu1 %v17854_v36  ;;  %v17914_v36 = vld [vmem:[%s19090_s17 + $0x25f4] ss:$8 sps:$4 sm:$0xff]  }
0x2082   : > { %11484 = vmatpush1.bf16.msra.mxu1 %v17852_v37  ;;  %v17912_v37 = vld [vmem:[%s19090_s17 + $0x25f0] ss:$8 sps:$4 sm:$0xff]  }
0x2083   : > { %11485 = vmatprep.subr.bf16.mxu1 %v17857_v38  ;;  %v15357_v38 = vld [vmem:[%s19092_s22 + $0x46] sm:$0x3] }
0x2086   : > { %11486 = vmatpush1.bf16.msra.mxu1 %v17855_v39  ;;  %v11049_v39 = vrot.slane %v15357_v38, %v19181_v11 }
0x2087   : > { %11487 = vmatprep.subr.bf16.mxu1 %v17860_v40  ;;  %v11053_v40 = vrot.slane %v15357_v38, %v19183_v12 }
0x208a   : > { %11488 = vmatpush1.bf16.msra.mxu1 %v17858_v41 }
0x208b   : > { %11489 = vmatprep.subr.bf16.mxu1 %v17863_v42 }
0x208e   : > { %11490 = vmatpush1.bf16.msra.mxu1 %v17861_v43 }
0x208f   : > { %11491 = vmatprep.subr.bf16.mxu1 %v17866_v17 }
0x2092   : > { %11492 = vmatpush2.bf16.msra.mxu1 %v17864_v44 }
0x2093   : > { %11493 = vmatprep.subr.bf16.mxu1 %v17869_v4  ;;  %v17929_v4 = vld [vmem:[%s19090_s17 + $0x25a4] ss:$8 sps:$4 sm:$0xff]  }
0x2096   : > { %11494 = vmatpush2.bf16.msra.mxu1 %v17867_v5  ;;  %v17927_v5 = vld [vmem:[%s19090_s17 + $0x25a0] ss:$8 sps:$4 sm:$0xff]  }
0x2097   : > { %11495 = vmatprep.subr.bf16.mxu1 %v17872_v6  ;;  %v17932_v6 = vld [vmem:[%s19090_s17 + $0x2594] ss:$8 sps:$4 sm:$0xff]  }
0x209a   : > { %11496 = vmatpush2.bf16.msra.mxu1 %v17870_v8  ;;  %v17930_v8 = vld [vmem:[%s19090_s17 + $0x2590] ss:$8 sps:$4 sm:$0xff]  }
0x209b   : > { %11497 = vmatprep.subr.bf16.mxu1 %v17875_v9  ;;  %v17935_v9 = vld [vmem:[%s19090_s17 + $0x2584] ss:$8 sps:$4 sm:$0xff]  }
0x209e   : > { %11498 = vmatpush2.bf16.msra.mxu1 %v17873_v10  ;;  %v17933_v10 = vld [vmem:[%s19090_s17 + $0x2580] ss:$8 sps:$4 sm:$0xff]  }
0x209f   : > { %11499 = vmatprep.subr.bf16.mxu1 %v17878_v13  ;;  %v17936_v13 = vld [vmem:[%s19090_s17 + $0x2670] ss:$8 sps:$4 sm:$0xff]  }
0x20a2   : > { %11500 = vmatpush2.bf16.msra.mxu1 %v17876_v14  ;;  %v17938_v14 = vld [vmem:[%s19090_s17 + $0x2674] ss:$8 sps:$4 sm:$0xff]  }
0x20a3   : > { %11501 = vmatprep.subr.bf16.mxu1 %v17881_v3  ;;  %v17941_v3 = vld [vmem:[%s19090_s17 + $0x2664] ss:$8 sps:$4 sm:$0xff]  }
0x20a6   : > { %11502 = vmatpush2.bf16.msra.mxu1 %v17879_v15  ;;  %v17939_v15 = vld [vmem:[%s19090_s17 + $0x2660] ss:$8 sps:$4 sm:$0xff]  }
0x20a7   : > { %11503 = vmatprep.subr.bf16.mxu1 %v17884_v16  ;;  %v17944_v16 = vld [vmem:[%s19090_s17 + $0x2654] ss:$8 sps:$4 sm:$0xff]  }
0x20aa   : > { %11504 = vmatpush2.bf16.msra.mxu1 %v17882_v18  ;;  %v17942_v18 = vld [vmem:[%s19090_s17 + $0x2650] ss:$8 sps:$4 sm:$0xff]  }
0x20ab   : > { %11505 = vmatprep.subr.bf16.mxu1 %v17887_v7  ;;  %v17947_v7 = vld [vmem:[%s19090_s17 + $0x2644] ss:$8 sps:$4 sm:$0xff]  }
0x20ae   : > { %11506 = vmatpush2.bf16.msra.mxu1 %v17885_v19  ;;  %v17945_v19 = vld [vmem:[%s19090_s17 + $0x2640] ss:$8 sps:$4 sm:$0xff]  }
0x20af   : > { %11993 = vmatprep.subr.bf16.mxu1 %v17938_v14  ;;  %v17996_v14 = vld [vmem:[%s19090_s17 + $0x2730] ss:$8 sps:$4 sm:$0xff]  }
0x2131   : > { %v10991_v47 = vpop.f32.mrf.mxu1 }
0x2132   : > { %v10992_v48 = vadd.f32 %v10991_v47, %v10790_v46 }
0x2133   : > { %v10993_v49 = vpop.f32.mrf.mxu1 }
0x2134   : > { %v11000_v50 = vmul.f32 0.70710677, %v10992_v48  ;;  %v10994_v51 = vadd.f32 %v10993_v49, %v10794_v26  ;;  %v10998_v59 = vmul.f32 0.5, %v10992_v48 }
0x2135   : > { %v10995_v52 = vpop.f32.mrf.mxu1 }
0x2136   : > { %18204 = verf.f32 %v11000_v50  ;;  %v11001_v53 = vmul.f32 0.70710677, %v10994_v51  ;;  %v10999_v60 = vmul.f32 0.5, %v10994_v51 }
0x2137   : > { %v10996_v54 = vpop.f32.mrf.mxu1 }
0x2138   : > { %18206 = verf.f32 %v11001_v53 }
0x2143   : > { %v18205_v55 = vpop.eup %18204 }
0x2144   : > { %v11004_v56 = vadd.f32 1.0, %v18205_v55 }
0x2145   : > { %v18207_v58 = vpop.eup %18206 }
0x2146   : > { %v11005_v61 = vadd.f32 1.0, %v18207_v58  ;;  %v11006_v62 = vmul.f32 %v11004_v56, %v10998_v59  ;;  %v17917_v58 = vld [vmem:[%s19090_s17 + $0x25e4] ss:$8 sps:$4 sm:$0xff]   ;;  %v17915_v59 = vld [vmem:[%s19090_s17 + $0x25e0] ss:$8 sps:$4 sm:$0xff]  }
0x2148   : > { %v11007_v0 = vmul.f32 %v11005_v61, %v10999_v60  ;;  %v11008_v2 = vpack.c.bf16 %v11006_v62, %v11006_v62  ;;  %v17920_v60 = vld [vmem:[%s19090_s17 + $0x25d4] ss:$8 sps:$4 sm:$0xff]   ;;  %v17918_v61 = vld [vmem:[%s19090_s17 + $0x25d0] ss:$8 sps:$4 sm:$0xff]   ;;  %v17923_v62 = vld [vmem:[%s19090_s17 + $0x25c4] ss:$8 sps:$4 sm:$0xff]  }
0x214a   : > { %v11009_v1 = vpack.c.bf16 %v11007_v0, %v11007_v0  ;;  %v17921_v0 = vld [vmem:[%s19090_s17 + $0x25c0] ss:$8 sps:$4 sm:$0xff]  }
0x214c   : > { %11248 = vmatprep.mubr.bf16.mxu0 %v11009_v1  ;;  %v17926_v1 = vld [vmem:[%s19090_s17 + $0x25b4] ss:$8 sps:$4 sm:$0xff]  }
0x214d   : > { %11249 = vmatmul.mubr.bf16.vlgmr.msra.gmra.mxu0 %v11008_v2  ;;  %v17924_v2 = vld [vmem:[%s19090_s17 + $0x25b0] ss:$8 sps:$4 sm:$0xff]  }
0x214e   : > { %11735 = vmatpush1.bf16.msra.mxu0 %v17888_v57  ;;  %v17950_v57 = vld [vmem:[%s19090_s17 + $0x2634] ss:$8 sps:$4 sm:$0xff]  }
0x214f   : > { %11736 = vmatprep.subr.bf16.mxu0 %v17893_v21  ;;  %v17953_v21 = vld [vmem:[%s19090_s17 + $0x2624] ss:$8 sps:$4 sm:$0xff]  }
0x2152   : > { %11737 = vmatpush1.bf16.msra.mxu0 %v17891_v22  ;;  %v17951_v22 = vld [vmem:[%s19090_s17 + $0x2620] ss:$8 sps:$4 sm:$0xff]  }
0x2153   : > { %11738 = vmatprep.subr.bf16.mxu0 %v17896_v23  ;;  %v17956_v23 = vld [vmem:[%s19090_s17 + $0x2614] ss:$8 sps:$4 sm:$0xff]  }
0x2156   : > { %11739 = vmatpush1.bf16.msra.mxu0 %v17894_v24  ;;  %v17954_v24 = vld [vmem:[%s19090_s17 + $0x2610] ss:$8 sps:$4 sm:$0xff]  }
0x2157   : > { %11740 = vmatprep.subr.bf16.mxu0 %v17899_v25  ;;  %v17959_v25 = vld [vmem:[%s19090_s17 + $0x2604] ss:$8 sps:$4 sm:$0xff]  }
0x215a   : > { %11741 = vmatpush1.bf16.msra.mxu0 %v17897_v27  ;;  %v17957_v27 = vld [vmem:[%s19090_s17 + $0x2600] ss:$8 sps:$4 sm:$0xff]  }
0x215b   : > { %11742 = vmatprep.subr.bf16.mxu0 %v17902_v28  ;;  %v17962_v28 = vld [vmem:[%s19090_s17 + $0x26f4] ss:$8 sps:$4 sm:$0xff]  }
0x215e   : > { %11743 = vmatpush1.bf16.msra.mxu0 %v17900_v29  ;;  %v17960_v29 = vld [vmem:[%s19090_s17 + $0x26f0] ss:$8 sps:$4 sm:$0xff]  }
0x215f   : > { %11744 = vmatprep.subr.bf16.mxu0 %v17905_v30  ;;  %v15422_v30 = vld [vmem:[%s19092_s22 + $0x48] sm:$0x3] }
0x2162   : > { %11745 = vmatpush1.bf16.msra.mxu0 %v17903_v31  ;;  %v11308_v31 = vrot.slane %v15422_v30, %v19181_v11 }
0x2163   : > { %11746 = vmatprep.subr.bf16.mxu0 %v17908_v32  ;;  %v11312_v32 = vrot.slane %v15422_v30, %v19183_v12 }
0x2166   : > { %11747 = vmatpush1.bf16.msra.mxu0 %v17906_v33 }
0x2167   : > { %11748 = vmatprep.subr.bf16.mxu0 %v17911_v34 }
0x216a   : > { %11749 = vmatpush1.bf16.msra.mxu0 %v17909_v35 }
0x216b   : > { %11750 = vmatprep.subr.bf16.mxu0 %v17914_v36 }
0x216e   : > { %11751 = vmatpush2.bf16.msra.mxu0 %v17912_v37 }
0x216f   : > { %11752 = vmatprep.subr.bf16.mxu0 %v17917_v58  ;;  %v17977_v58 = vld [vmem:[%s19090_s17 + $0x26a4] ss:$8 sps:$4 sm:$0xff]  }
0x2172   : > { %11753 = vmatpush2.bf16.msra.mxu0 %v17915_v59  ;;  %v17975_v59 = vld [vmem:[%s19090_s17 + $0x26a0] ss:$8 sps:$4 sm:$0xff]  }
0x2173   : > { %11754 = vmatprep.subr.bf16.mxu0 %v17920_v60  ;;  %v17980_v60 = vld [vmem:[%s19090_s17 + $0x2694] ss:$8 sps:$4 sm:$0xff]  }
0x2176   : > { %11755 = vmatpush2.bf16.msra.mxu0 %v17918_v61  ;;  %v17978_v61 = vld [vmem:[%s19090_s17 + $0x2690] ss:$8 sps:$4 sm:$0xff]  }
0x2177   : > { %11756 = vmatprep.subr.bf16.mxu0 %v17923_v62  ;;  %v17983_v62 = vld [vmem:[%s19090_s17 + $0x2684] ss:$8 sps:$4 sm:$0xff]  }
0x217a   : > { %11757 = vmatpush2.bf16.msra.mxu0 %v17921_v0  ;;  %v17981_v0 = vld [vmem:[%s19090_s17 + $0x2680] ss:$8 sps:$4 sm:$0xff]  }
0x217b   : > { %11758 = vmatprep.subr.bf16.mxu0 %v17926_v1  ;;  %v17984_v1 = vld [vmem:[%s19090_s17 + $0x2770] ss:$8 sps:$4 sm:$0xff]  }
0x217e   : > { %11759 = vmatpush2.bf16.msra.mxu0 %v17924_v2  ;;  %v17986_v2 = vld [vmem:[%s19090_s17 + $0x2774] ss:$8 sps:$4 sm:$0xff]  }
0x217f   : > { %11760 = vmatprep.subr.bf16.mxu0 %v17929_v4  ;;  %v17989_v4 = vld [vmem:[%s19090_s17 + $0x2764] ss:$8 sps:$4 sm:$0xff]  }
0x2182   : > { %11761 = vmatpush2.bf16.msra.mxu0 %v17927_v5  ;;  %v17987_v5 = vld [vmem:[%s19090_s17 + $0x2760] ss:$8 sps:$4 sm:$0xff]  }
0x2183   : > { %11762 = vmatprep.subr.bf16.mxu0 %v17932_v6  ;;  %v17992_v6 = vld [vmem:[%s19090_s17 + $0x2754] ss:$8 sps:$4 sm:$0xff]  }
0x2186   : > { %11763 = vmatpush2.bf16.msra.mxu0 %v17930_v8  ;;  %v17990_v8 = vld [vmem:[%s19090_s17 + $0x2750] ss:$8 sps:$4 sm:$0xff]  }
0x2187   : > { %11764 = vmatprep.subr.bf16.mxu0 %v17935_v9  ;;  %v17995_v9 = vld [vmem:[%s19090_s17 + $0x2744] ss:$8 sps:$4 sm:$0xff]  }
0x218a   : > { %11765 = vmatpush2.bf16.msra.mxu0 %v17933_v10  ;;  %v17993_v10 = vld [vmem:[%s19090_s17 + $0x2740] ss:$8 sps:$4 sm:$0xff]  }
0x218b   : > { %12252 = vmatprep.subr.bf16.mxu0 %v17986_v2 }
0x220d   : > { %v11250_v41 = vpop.f32.mrf.mxu0 }
0x220e   : > { %v11251_v42 = vadd.f32 %v11250_v41, %v11049_v39 }
0x220f   : > { %v11252_v43 = vpop.f32.mrf.mxu0 }
0x2210   : > { %v11259_v17 = vmul.f32 0.70710677, %v11251_v42  ;;  %v11253_v44 = vadd.f32 %v11252_v43, %v11053_v40  ;;  %v11257_v50 = vmul.f32 0.5, %v11251_v42 }
0x2211   : > { %v11254_v45 = vpop.f32.mrf.mxu0 }
0x2212   : > { %18208 = verf.f32 %v11259_v17  ;;  %v11260_v46 = vmul.f32 0.70710677, %v11253_v44  ;;  %v11258_v51 = vmul.f32 0.5, %v11253_v44 }
0x2213   : > { %v11255_v26 = vpop.f32.mrf.mxu0 }
0x2214   : > { %18210 = verf.f32 %v11260_v46 }
0x221f   : > { %v18209_v47 = vpop.eup %18208 }
0x2220   : > { %v11263_v48 = vadd.f32 1.0, %v18209_v47 }
0x2221   : > { %v18211_v49 = vpop.eup %18210 }
0x2222   : > { %v11264_v52 = vadd.f32 1.0, %v18211_v49  ;;  %v11265_v53 = vmul.f32 %v11263_v48, %v11257_v50  ;;  %v17965_v49 = vld [vmem:[%s19090_s17 + $0x26e4] ss:$8 sps:$4 sm:$0xff]   ;;  %v17963_v50 = vld [vmem:[%s19090_s17 + $0x26e0] ss:$8 sps:$4 sm:$0xff]  }
0x2224   : > { %v11266_v54 = vmul.f32 %v11264_v52, %v11258_v51  ;;  %v11267_v56 = vpack.c.bf16 %v11265_v53, %v11265_v53  ;;  %v17968_v51 = vld [vmem:[%s19090_s17 + $0x26d4] ss:$8 sps:$4 sm:$0xff]   ;;  %v17966_v52 = vld [vmem:[%s19090_s17 + $0x26d0] ss:$8 sps:$4 sm:$0xff]   ;;  %v17971_v53 = vld [vmem:[%s19090_s17 + $0x26c4] ss:$8 sps:$4 sm:$0xff]  }
0x2226   : > { %v11268_v55 = vpack.c.bf16 %v11266_v54, %v11266_v54  ;;  %v17969_v54 = vld [vmem:[%s19090_s17 + $0x26c0] ss:$8 sps:$4 sm:$0xff]  }
0x2228   : > { %11507 = vmatprep.mubr.bf16.mxu1 %v11268_v55  ;;  %v17974_v55 = vld [vmem:[%s19090_s17 + $0x26b4] ss:$8 sps:$4 sm:$0xff]  }
0x2229   : > { %11508 = vmatmul.mubr.bf16.vlgmr.msra.gmra.mxu1 %v11267_v56  ;;  %v17972_v56 = vld [vmem:[%s19090_s17 + $0x26b0] ss:$8 sps:$4 sm:$0xff]  }
0x222a   : > { %11994 = vmatpush1.bf16.msra.mxu1 %v17936_v13  ;;  %v17998_v13 = vld [vmem:[%s19090_s17 + $0x2734] ss:$8 sps:$4 sm:$0xff]  }
0x222b   : > { %11995 = vmatprep.subr.bf16.mxu1 %v17941_v3  ;;  %v18001_v3 = vld [vmem:[%s19090_s17 + $0x2724] ss:$8 sps:$4 sm:$0xff]  }
0x222e   : > { %11996 = vmatpush1.bf16.msra.mxu1 %v17939_v15  ;;  %v17999_v15 = vld [vmem:[%s19090_s17 + $0x2720] ss:$8 sps:$4 sm:$0xff]  }
0x222f   : > { %11997 = vmatprep.subr.bf16.mxu1 %v17944_v16  ;;  %v18004_v16 = vld [vmem:[%s19090_s17 + $0x2714] ss:$8 sps:$4 sm:$0xff]  }
0x2232   : > { %11998 = vmatpush1.bf16.msra.mxu1 %v17942_v18  ;;  %v18002_v18 = vld [vmem:[%s19090_s17 + $0x2710] ss:$8 sps:$4 sm:$0xff]  }
0x2233   : > { %11999 = vmatprep.subr.bf16.mxu1 %v17947_v7  ;;  %v18007_v7 = vld [vmem:[%s19090_s17 + $0x2704] ss:$8 sps:$4 sm:$0xff]  }
0x2236   : > { %12000 = vmatpush1.bf16.msra.mxu1 %v17945_v19  ;;  %v18005_v19 = vld [vmem:[%s19090_s17 + $0x2700] ss:$8 sps:$4 sm:$0xff]  }
0x2237   : > { %12001 = vmatprep.subr.bf16.mxu1 %v17950_v57  ;;  %v18010_v57 = vld [vmem:[%s19090_s17 + $0x27f4] ss:$8 sps:$4 sm:$0xff]  }
0x223a   : > { %12002 = vmatpush1.bf16.msra.mxu1 %v17948_v20  ;;  %v18008_v20 = vld [vmem:[%s19090_s17 + $0x27f0] ss:$8 sps:$4 sm:$0xff]  }
0x223b   : > { %12003 = vmatprep.subr.bf16.mxu1 %v17953_v21  ;;  %v15487_v21 = vld [vmem:[%s19092_s22 + $0x4a] sm:$0x3] }
0x223e   : > { %12004 = vmatpush1.bf16.msra.mxu1 %v17951_v22  ;;  %v11567_v22 = vrot.slane %v15487_v21, %v19181_v11 }
0x223f   : > { %12005 = vmatprep.subr.bf16.mxu1 %v17956_v23  ;;  %v11571_v23 = vrot.slane %v15487_v21, %v19183_v12  ;;  %v18037_v21 = vld [vmem:[%s19116_s30 + $0x228] sm:$0xff]  }
0x2242   : > { %12006 = vmatpush1.bf16.msra.mxu1 %v17954_v24 }
0x2243   : > { %12007 = vmatprep.subr.bf16.mxu1 %v17959_v25 }
0x2246   : > { %12008 = vmatpush1.bf16.msra.mxu1 %v17957_v27 }
0x2247   : > { %12009 = vmatprep.subr.bf16.mxu1 %v17962_v28 }
0x224a   : > { %12010 = vmatpush2.bf16.msra.mxu1 %v17960_v29 }
0x224b   : > { %12011 = vmatprep.subr.bf16.mxu1 %v17965_v49  ;;  %v18025_v49 = vld [vmem:[%s19090_s17 + $0x27a4] ss:$8 sps:$4 sm:$0xff]  }
0x224e   : > { %12012 = vmatpush2.bf16.msra.mxu1 %v17963_v50  ;;  %v18023_v50 = vld [vmem:[%s19090_s17 + $0x27a0] ss:$8 sps:$4 sm:$0xff]  }
0x224f   : > { %12013 = vmatprep.subr.bf16.mxu1 %v17968_v51  ;;  %v18028_v51 = vld [vmem:[%s19090_s17 + $0x2794] ss:$8 sps:$4 sm:$0xff]  }
0x2252   : > { %12014 = vmatpush2.bf16.msra.mxu1 %v17966_v52  ;;  %v18026_v52 = vld [vmem:[%s19090_s17 + $0x2790] ss:$8 sps:$4 sm:$0xff]  }
0x2253   : > { %12015 = vmatprep.subr.bf16.mxu1 %v17971_v53  ;;  %v18031_v53 = vld [vmem:[%s19090_s17 + $0x2784] ss:$8 sps:$4 sm:$0xff]  }
0x2256   : > { %12016 = vmatpush2.bf16.msra.mxu1 %v17969_v54  ;;  %v18029_v54 = vld [vmem:[%s19090_s17 + $0x2780] ss:$8 sps:$4 sm:$0xff]  }
0x2257   : > { %12017 = vmatprep.subr.bf16.mxu1 %v17974_v55  ;;  %v18032_v55 = vld [vmem:[%s19116_s30 + $0x278] sm:$0xff]  }
0x225a   : > { %12018 = vmatpush2.bf16.msra.mxu1 %v17972_v56  ;;  %v18033_v56 = vld [vmem:[%s19116_s30 + $0x238] sm:$0xff]  }
0x225b   : > { %12019 = vmatprep.subr.bf16.mxu1 %v17977_v58  ;;  %v15552_v58 = vld [vmem:[%s19092_s22 + $0x4c] sm:$0x3] }
0x225e   : > { %12020 = vmatpush2.bf16.msra.mxu1 %v17975_v59  ;;  %v11826_v59 = vrot.slane %v15552_v58, %v19181_v11 }
0x225f   : > { %12021 = vmatprep.subr.bf16.mxu1 %v17980_v60  ;;  %v11830_v60 = vrot.slane %v15552_v58, %v19183_v12 }
0x2262   : > { %12022 = vmatpush2.bf16.msra.mxu1 %v17978_v61 }
0x2263   : > { %12023 = vmatprep.subr.bf16.mxu1 %v17983_v62 }
0x2266   : > { %12024 = vmatpush2.bf16.msra.mxu1 %v17981_v0 }
0x2267   : > { %15810 = vmatprep.subr.bf16.mxu1 %v18032_v55 }
0x22e9   : > { %v11509_v33 = vpop.f32.mrf.mxu1 }
0x22ea   : > { %v11510_v34 = vadd.f32 %v11509_v33, %v11308_v31 }
0x22eb   : > { %v11511_v35 = vpop.f32.mrf.mxu1 }
0x22ec   : > { %v11518_v36 = vmul.f32 0.70710677, %v11510_v34  ;;  %v11512_v37 = vadd.f32 %v11511_v35, %v11312_v32  ;;  %v11516_v17 = vmul.f32 0.5, %v11510_v34 }
0x22ed   : > { %v11513_v38 = vpop.f32.mrf.mxu1 }
0x22ee   : > { %18212 = verf.f32 %v11518_v36  ;;  %v11519_v39 = vmul.f32 0.70710677, %v11512_v37  ;;  %v11517_v44 = vmul.f32 0.5, %v11512_v37 }
0x22ef   : > { %v11514_v40 = vpop.f32.mrf.mxu1 }
0x22f0   : > { %18214 = verf.f32 %v11519_v39 }
0x22fb   : > { %v18213_v41 = vpop.eup %18212 }
0x22fc   : > { %v11522_v42 = vadd.f32 1.0, %v18213_v41 }
0x22fd   : > { %v18215_v43 = vpop.eup %18214 }
0x22fe   : > { %v11523_v45 = vadd.f32 1.0, %v18215_v43  ;;  %v11524_v46 = vmul.f32 %v11522_v42, %v11516_v17  ;;  %v18013_v43 = vld [vmem:[%s19090_s17 + $0x27e4] ss:$8 sps:$4 sm:$0xff]   ;;  %v18011_v17 = vld [vmem:[%s19090_s17 + $0x27e0] ss:$8 sps:$4 sm:$0xff]  }
0x2300   : > { %v11525_v26 = vmul.f32 %v11523_v45, %v11517_v44  ;;  %v11526_v48 = vpack.c.bf16 %v11524_v46, %v11524_v46  ;;  %v18016_v44 = vld [vmem:[%s19090_s17 + $0x27d4] ss:$8 sps:$4 sm:$0xff]   ;;  %v18014_v45 = vld [vmem:[%s19090_s17 + $0x27d0] ss:$8 sps:$4 sm:$0xff]   ;;  %v18019_v46 = vld [vmem:[%s19090_s17 + $0x27c4] ss:$8 sps:$4 sm:$0xff]  }
0x2302   : > { %v11527_v47 = vpack.c.bf16 %v11525_v26, %v11525_v26  ;;  %v18017_v26 = vld [vmem:[%s19090_s17 + $0x27c0] ss:$8 sps:$4 sm:$0xff]  }
0x2304   : > { %11766 = vmatprep.mubr.bf16.mxu0 %v11527_v47  ;;  %v18022_v47 = vld [vmem:[%s19090_s17 + $0x27b4] ss:$8 sps:$4 sm:$0xff]  }
0x2305   : > { %11767 = vmatmul.mubr.bf16.vlgmr.msra.gmra.mxu0 %v11526_v48  ;;  %v18020_v48 = vld [vmem:[%s19090_s17 + $0x27b0] ss:$8 sps:$4 sm:$0xff]  }
0x2306   : > { %12253 = vmatpush1.bf16.msra.mxu0 %v17984_v1 }
0x2307   : > { %12254 = vmatprep.subr.bf16.mxu0 %v17989_v4 }
0x230a   : > { %12255 = vmatpush1.bf16.msra.mxu0 %v17987_v5 }
0x230b   : > { %12256 = vmatprep.subr.bf16.mxu0 %v17992_v6 }
0x230e   : > { %12257 = vmatpush1.bf16.msra.mxu0 %v17990_v8 }
0x230f   : > { %12258 = vmatprep.subr.bf16.mxu0 %v17995_v9 }
0x2312   : > { %12259 = vmatpush1.bf16.msra.mxu0 %v17993_v10 }
0x2313   : > { %12260 = vmatprep.subr.bf16.mxu0 %v17998_v13 }
0x2316   : > { %12261 = vmatpush1.bf16.msra.mxu0 %v17996_v14 }
0x2317   : > { %12262 = vmatprep.subr.bf16.mxu0 %v18001_v3 }
0x231a   : > { %12263 = vmatpush1.bf16.msra.mxu0 %v17999_v15 }
0x231b   : > { %12264 = vmatprep.subr.bf16.mxu0 %v18004_v16 }
0x231e   : > { %12265 = vmatpush1.bf16.msra.mxu0 %v18002_v18 }
0x231f   : > { %12266 = vmatprep.subr.bf16.mxu0 %v18007_v7 }
0x2322   : > { %12267 = vmatpush1.bf16.msra.mxu0 %v18005_v19  ;;  %v18034_v19 = vld [vmem:[%s19116_s30 + $0x270] sm:$0xff]  }
0x2323   : > { %12268 = vmatprep.subr.bf16.mxu0 %v18010_v57  ;;  %v18035_v57 = vld [vmem:[%s19116_s30 + $0x230] sm:$0xff]  }
0x2326   : > { %12269 = vmatpush2.bf16.msra.mxu0 %v18008_v20  ;;  %v18036_v20 = vld [vmem:[%s19116_s30 + $0x268] sm:$0xff]  }
0x2327   : > { %12270 = vmatprep.subr.bf16.mxu0 %v18013_v43 }
0x232a   : > { %12271 = vmatpush2.bf16.msra.mxu0 %v18011_v17 }
0x232b   : > { %12272 = vmatprep.subr.bf16.mxu0 %v18016_v44 }
0x232e   : > { %12273 = vmatpush2.bf16.msra.mxu0 %v18014_v45 }
0x232f   : > { %12274 = vmatprep.subr.bf16.mxu0 %v18019_v46 }
0x2332   : > { %12275 = vmatpush2.bf16.msra.mxu0 %v18017_v26 }
0x2333   : > { %12276 = vmatprep.subr.bf16.mxu0 %v18022_v47 }
0x2336   : > { %12277 = vmatpush2.bf16.msra.mxu0 %v18020_v48 }
0x2337   : > { %12278 = vmatprep.subr.bf16.mxu0 %v18025_v49 }
0x233a   : > { %12279 = vmatpush2.bf16.msra.mxu0 %v18023_v50 }
0x233b   : > { %12280 = vmatprep.subr.bf16.mxu0 %v18028_v51  ;;  %v15683_v51 = vld [vmem:[%s19094_s18 + $0x4] ss:$0 sm:$0xff] }
0x233e   : > { %12281 = vmatpush2.bf16.msra.mxu0 %v18026_v52 }
0x233f   : > { %12282 = vmatprep.subr.bf16.mxu0 %v18031_v53 }
0x2342   : > { %12283 = vmatpush2.bf16.msra.mxu0 %v18029_v54 }
0x23c5   : > { %v11768_v24 = vpop.f32.mrf.mxu0 }
0x23c6   : > { %v11769_v25 = vadd.f32 %v11768_v24, %v11567_v22  ;;  %v18038_v22 = vld [vmem:[%s19116_s30 + $0x260] sm:$0xff]   ;;  %v18040_v24 = vld [vmem:[%s19116_s30 + $0x258] sm:$0xff]  }
0x23c7   : > { %v11770_v27 = vpop.f32.mrf.mxu0 }
0x23c8   : > { %v11777_v28 = vmul.f32 0.70710677, %v11769_v25  ;;  %v11771_v29 = vadd.f32 %v11770_v27, %v11571_v23  ;;  %v11775_v36 = vmul.f32 0.5, %v11769_v25  ;;  %v18039_v23 = vld [vmem:[%s19116_s30 + $0x220] sm:$0xff]   ;;  %v18041_v25 = vld [vmem:[%s19116_s30 + $0x218] sm:$0xff]   ;;  %v18042_v27 = vld [vmem:[%s19116_s30 + $0x250] sm:$0xff]  }
0x23c9   : > { %v11772_v30 = vpop.f32.mrf.mxu0 }
0x23ca   : > { %18216 = verf.f32 %v11777_v28  ;;  %v11778_v31 = vmul.f32 0.70710677, %v11771_v29  ;;  %v11776_v37 = vmul.f32 0.5, %v11771_v29  ;;  %v18043_v28 = vld [vmem:[%s19116_s30 + $0x210] sm:$0xff]   ;;  %v18044_v29 = vld [vmem:[%s19116_s30 + $0x248] sm:$0xff]  }
0x23cb   : > { %v11773_v32 = vpop.f32.mrf.mxu0  ;;  %v18045_v30 = vld [vmem:[%s19116_s30 + $0x208] sm:$0xff]  }
0x23cc   : > { %18218 = verf.f32 %v11778_v31  ;;  %v18046_v31 = vld [vmem:[%s19116_s30 + $0x240] sm:$0xff]  }
0x23cd   : > { %v18047_v32 = vld [vmem:[%s19116_s30 + $0x200] sm:$0xff]  }
0x23d7   : > { %v18217_v33 = vpop.eup %18216 }
0x23d8   : > { %v11781_v34 = vadd.f32 1.0, %v18217_v33  ;;  %v15617_v33 = vld [vmem:[%s19092_s22 + $0x4e] sm:$0x3] }
0x23d9   : > { %v18219_v35 = vpop.eup %18218 }
0x23da   : > { %v11782_v38 = vadd.f32 1.0, %v18219_v35  ;;  %v11783_v39 = vmul.f32 %v11781_v34, %v11775_v36  ;;  %v12085_v34 = vrot.slane %v15617_v33, %v19181_v11  ;;  %v12089_v35 = vrot.slane %v15617_v33, %v19183_v12 }
0x23dc   : > { %v11784_v40 = vmul.f32 %v11782_v38, %v11776_v37  ;;  %v11785_v42 = vpack.c.bf16 %v11783_v39, %v11783_v39 }
0x23de   : > { %v11786_v41 = vpack.c.bf16 %v11784_v40, %v11784_v40 }
0x23e0   : > { %12025 = vmatprep.mubr.bf16.mxu1 %v11786_v41 }
0x23e1   : > { %12026 = vmatmul.mubr.bf16.vlgmr.msra.gmra.mxu1 %v11785_v42 }
0x23e2   : > { %15811 = vmatpush3.bf16.msra.mxu1 %v18033_v56  ;;  %v12483_v56 = vld [vmem:[#allocation3] sm:$0xff] }
0x23e3   : > { %15812 = vmatprep.subr.bf16.mxu1 %v18034_v19 }
0x23e6   : > { %15813 = vmatpush3.bf16.msra.mxu1 %v18035_v57 }
0x23e7   : > { %15814 = vmatprep.subr.bf16.mxu1 %v18036_v20 }
0x23ea   : > { %15815 = vmatpush3.bf16.msra.mxu1 %v18037_v21 }
0x23eb   : > { %15816 = vmatprep.subr.bf16.mxu1 %v18038_v22 }
0x23ee   : > { %15817 = vmatpush3.bf16.msra.mxu1 %v18039_v23 }
0x23ef   : > { %15818 = vmatprep.subr.bf16.mxu1 %v18040_v24 }
0x23f2   : > { %15819 = vmatpush3.bf16.msra.mxu1 %v18041_v25 }
0x23f3   : > { %15820 = vmatprep.subr.bf16.mxu1 %v18042_v27 }
0x23f6   : > { %15821 = vmatpush3.bf16.msra.mxu1 %v18043_v28 }
0x23f7   : > { %15822 = vmatprep.subr.bf16.mxu1 %v18044_v29 }
0x23fa   : > { %15823 = vmatpush3.bf16.msra.mxu1 %v18045_v30 }
0x23fb   : > { %15824 = vmatprep.subr.bf16.mxu1 %v18046_v31 }
0x23fe   : > { %15825 = vmatpush3.bf16.msra.mxu1 %v18047_v32 }
0x24a1   : > { %v12027_v61 = vpop.f32.mrf.mxu1 }
0x24a2   : > { %v12028_v62 = vadd.f32 %v12027_v61, %v11826_v59 }
0x24a3   : > { %v12029_v0 = vpop.f32.mrf.mxu1 }
0x24a4   : > { %v12036_v1 = vmul.f32 0.70710677, %v12028_v62  ;;  %v12030_v2 = vadd.f32 %v12029_v0, %v11830_v60  ;;  %v12034_v13 = vmul.f32 0.5, %v12028_v62 }
0x24a5   : > { %v12031_v4 = vpop.f32.mrf.mxu1 }
0x24a6   : > { %18220 = verf.f32 %v12036_v1  ;;  %v12037_v5 = vmul.f32 0.70710677, %v12030_v2  ;;  %v12035_v14 = vmul.f32 0.5, %v12030_v2 }
0x24a7   : > { %v12032_v6 = vpop.f32.mrf.mxu1 }
0x24a8   : > { %18222 = verf.f32 %v12037_v5 }
0x24b3   : > { %v18221_v8 = vpop.eup %18220 }
0x24b4   : > { %v12040_v9 = vadd.f32 1.0, %v18221_v8 }
0x24b5   : > { %v18223_v10 = vpop.eup %18222 }
0x24b6   : > { %v12041_v3 = vadd.f32 1.0, %v18223_v10  ;;  %v12042_v15 = vmul.f32 %v12040_v9, %v12034_v13 }
0x24b8   : > { %v12043_v16 = vmul.f32 %v12041_v3, %v12035_v14  ;;  %v12044_v7 = vpack.c.bf16 %v12042_v15, %v12042_v15 }
0x24ba   : > { %v12045_v18 = vpack.c.bf16 %v12043_v16, %v12043_v16 }
0x24bc   : > { %12284 = vmatprep.mubr.bf16.mxu0 %v12045_v18 }
0x24bd   : > { %12285 = vmatmul.mubr.bf16.vlgmr.msra.gmra.mxu0 %v12044_v7 }
0x257d   : > { %v12286_v36 = vpop.f32.mrf.mxu0 }
0x257e   : > { %v12287_v37 = vadd.f32 %v12286_v36, %v12085_v34 }
0x257f   : > { %v12288_v38 = vpop.f32.mrf.mxu0 }
0x2580   : > { %v12295_v39 = vmul.f32 0.70710677, %v12287_v37  ;;  %v12289_v40 = vadd.f32 %v12288_v38, %v12089_v35  ;;  %v12293_v46 = vmul.f32 0.5, %v12287_v37 }
0x2581   : > { %v12290_v41 = vpop.f32.mrf.mxu0 }
0x2582   : > { %18224 = verf.f32 %v12295_v39  ;;  %v12296_v42 = vmul.f32 0.70710677, %v12289_v40  ;;  %v12294_v26 = vmul.f32 0.5, %v12289_v40 }
0x2583   : > { %v12291_v43 = vpop.f32.mrf.mxu0 }
0x2584   : > { %18226 = verf.f32 %v12296_v42 }
0x258f   : > { %v18225_v17 = vpop.eup %18224 }
0x2590   : > { %v12299_v44 = vadd.f32 1.0, %v18225_v17 }
0x2591   : > { %v18227_v45 = vpop.eup %18226 }
0x2592   : > { %v12300_v47 = vadd.f32 1.0, %v18227_v45  ;;  %v12301_v11 = vmul.f32 %v12299_v44, %v12293_v46 }
0x2594   : > { %v12302_v48 = vmul.f32 %v12300_v47, %v12294_v26  ;;  %v12303_v49 = vpack.c.bf16 %v12301_v11, %v12301_v11 }
0x2596   : > { %v12304_v12 = vpack.c.bf16 %v12302_v48, %v12302_v48 }
0x2598   : > { %12474 = vmatprep.mubr.bf16.mxu1 %v12304_v12 }
0x2599   : > { %12475 = vmatmul.mubr.bf16.vlgmr.msra.gmra.mxu1 %v12303_v49 }
0x2659   : > { %v15826_v50 = vpop.f32.mrf.mxu1 }
0x265b   : > { %v15827_v52 = vpop.f32.mrf.mxu1 }
0x265c   : > { %v15828_v53 = vadd.f32 %v15827_v52, %v15826_v50 }
0x265d   : > { %v15829_v54 = vpop.f32.mrf.mxu1 }
0x265e   : > { %v12477_v55 = vadd.f32 %v15828_v53, %v15683_v51 }
0x265f   : > { %v15830_v58 = vpop.f32.mrf.mxu1 }
0x2660   : > { %v12482_v59 = vadd.f32 %v12477_v55, %v20462_v63  ;;  %12490 = sbr.rel (%p15700_p3) target bundleno = 10060 (0x274c), region = 136 }
0x2662   : > { %v12484_v60 = vadd.f32 %v12483_v56, %v12482_v59 }
0x2664   : > { %12486 = vst.msk [vmem:[#allocation3] sm:$0xff] %vm12485_vm6, %v12484_v60 }
0x2665   : > { %v12513_v61 = vld [vmem:[#allocation17 + $0x20] sm:$0xff]  ;;  %v18688_v62 = vmov 0.0   ;;  %v12512_v0 = vld [vmem:[#allocation17 + $0x18] sm:$0xff]  ;;  %vm18689_vm7 = vmmov 0   ;;  %v12511_v5 = vld [vmem:[#allocation17 + $0x10] sm:$0xff] }
0x2666   : > { %15838 = vmatprep.subr.mxu0 %v18688_v62  ;;  %15848 = vmatprep.mubr.msk.f32.mxu0 %vm18689_vm7, %v18688_v62  ;;  %v15701_v4 = vld [vmem:[#allocation14] ss:$0 sm:$0xff]  ;;  %v15702_v6 = vld [vmem:[#allocation15] ss:$0 sm:$0xff]  ;;  %v12510_v8 = vld [vmem:[#allocation17 + $0x8] sm:$0xff] }
0x2667   : > { %15839 = vmatpush3.msra.mxu0 %v12513_v61  ;;  %v12509_v9 = vld [vmem:[#allocation17] sm:$0xff]  ;;  %v15703_v13 = vld [vmem:[#allocation18] ss:$0 sm:$0xff]  ;;  %v15705_v3 = vld [vmem:[#allocation20] ss:$0 sm:$0xff] }
0x2668   : > { %15840 = vmatprep.subr.mxu0 %v18688_v62  ;;  %v15706_v16 = vld [vmem:[#allocation21] ss:$0 sm:$0xff] }
0x2669   : > { %15841 = vmatpush3.msra.mxu0 %v12512_v0 }
0x266a   : > { %15842 = vmatprep.subr.mxu0 %v18688_v62 }
0x266b   : > { %v12491_v1 = vld [vmem:[#allocation3] sm:$0xff]  ;;  %15843 = vmatpush3.msra.mxu0 %v12511_v5 }
0x266c   : > { %v12492_v2 = vmul.f32 0.1, %v12491_v1  ;;  %15844 = vmatprep.subr.mxu0 %v18688_v62 }
0x266d   : > { %15845 = vmatpush3.msra.mxu0 %v12510_v8 }
0x266e   : > { %v12500_v63 = vmul.f32 %v15701_v4, %v12492_v2  ;;  %15846 = vmatprep.subr.mxu0 %v18688_v62 }
0x266f   : > { %15847 = vmatpush3.msra.mxu0 %v12509_v9 }
0x2670   : > { %v12508_v10 = vadd.f32 %v15702_v6, %v12500_v63 }
0x2672   : > { %15849 = vmatmul.mubr.msk.f32.vlgmr.msra.gmra.mxu0 %vm12485_vm6, %v12508_v10 }
0x2732   : > { %v12590_v14 = vpop.f32.mrf.mxu0 }
0x2733   : > { %v12591_v15 = vadd.f32 %v15703_v13, %v12590_v14 }
0x2734   : > { %v15850_v18 = vpop.f32.mrf.mxu0 }
0x2735   : > { %v12601_v7 = vmul.f32 %v15705_v3, %v12591_v15 }
0x2737   : > { %v12609_v19 = vadd.f32 %v15706_v16, %v12601_v7 }
0x2739   : > { %v12610_v57 = vmul.f32 2.3025851, %v12609_v19 }
0x273b   : > { %v12611_v20 = vmul.f32 1.442695, %v12610_v57 }
0x273d   : > { %18228 = vpow2.f32 %v12611_v20 }
0x274a   : > { %v18229_v21 = vpop.eup %18228 }
0x274b   : > { %12613 = vst [vmem:[#allocation23] sm:$0xff] %v18229_v21 }
0x274c PF: > { %s20800_s20 = sld [smem:[#allocation34_spill]]  ;;  %s18690_s27 = smov [#allocation23]  }
0x274d   : > { %s12621_s0 = sshll.u32 %s18690_s27, 4  ;;  %s12622_s0 = int_to_ptr.vmem [resolvable:$true] %s12621_s0 }
0x274e   : > { %s18578_s6 = scalar_lea.vmem %s12622_s0, 128  ;;  %p18585_p13 = scmp.lt.s32.totalorder %s12622_s0, %s12622_s0 }
0x274f   : > { %p18579_p9 = scmp.ne.s32.totalorder %s12622_s0, %s18578_s6  ;;  %p18586_p1 = scmp.lt.s32.totalorder %s18578_s6, %s18578_s6 }
0x2751   : > { %p18587_p0 = por %p18586_p1, %p18585_p13 }
0x2752   : > { %p15967_p10 = scmp.eq.s32.totalorder %s20800_s20, 1 }
0x2754   : > { %p18580_p8 = pnand %p18579_p9, %p15967_p10 }
0x2756   : > { %p18581_p12 = pneg %p18580_p8 }
0x2758   : > { %p18588_p5 = pnand %p18587_p0, %p18581_p12 }
0x275a   : > { %18591 = shalt.err (!%p18588_p5)
}
0x275b   : > { %s20801_s24 = sld [smem:[#allocation44_spill]] }
0x2761   : > { %15905 = dma.vmem_to_hbm [thread:$0]  (%p15967_p10), %s12622_s0, 128, %s20801_s24, [#allocation6]  }
0x2762   : > { %18647 = dma.done.wait (%p15967_p10), [#allocation6], 128  }
0x2763   : > { %18649 = vsyncadd (%p15967_p10), [#allocation6], 4294967168 }
0x2764 PF: > { %s20802_s16 = sld [smem:[#allocation36_spill]] }
0x2765   : > { %s20803_s29 = sld [smem:[#allocation32_spill]] }
0x2766   : > { %s20804_s30 = sld [smem:[#allocation33_spill]] }
0x2767   : > { %s20805_s15 = sld [smem:[#allocation37_spill]] }
0x276a   : > { %p27_p4 = scmp.ge.s32.totalorder %s20802_s16, 4  }
0x276c   :  { %29 = sbr.rel (!%p27_p4) target bundleno = 14 (0xe), region = 293 }
0x2771   :  { %12634 = vsyncpa [#allocation5], 1 }
0x2772   :  { %12636 = vsyncpa [#allocation5 + $0x1], 1 }
0x2773   :  { %12637 = vsyncpa [#allocation8], 1 }
0x2774   :  { %12638 = vsyncpa [#allocation16], 1 }
0x2775   :  { %12639 = vsyncpa [#allocation19], 1 }
0x2776   :  { %12640 = vsyncpa [#allocation22], 1 }
0x2777   :  { %12641 = vsyncpa [#allocation6], 1 }
0x2778   :  { %12643 = vsyncpa [#allocation6 + $0x1], 1 }

</bundles_post_ra>
